<compile_context>
chip_gen: v7x
topology: tpu7x:2x2x1
jax: 0.10.0
libtpu: 0.0.40
codegen_flags: <defaults>
</compile_context>

<pallas_src>
import jax
import jax.numpy as jnp
import numpy as np
from jax.experimental import pallas as pl
from jax.experimental.pallas import tpu as pltpu

_KEY_CHUNK = 128  # keys processed per inner step (keeps N on the 128-lane axis)


def _attention_kernel(fq_ref, fk_ref, fkT_ref, wp_ref, wpT_ref, wa_ref, ba_ref,
                      out_ref, pkT_ref):
    # Per grid step (b, i):
    #   fq_ref  : (1, Ti, H)   query-row tile of local_feats
    #   fk_ref  : (1, Np, H)   all (padded) rows of this batch element (values)
    #   fkT_ref : (1, H, Np)   same rows, pre-transposed (lane-dense in N)
    #   wp_ref  : (H, H)       W_apair
    #   wpT_ref : (H, H)       W_apair^T
    #   wa_ref  : (1, H)       W_att row
    #   ba_ref  : (1,)         b_att scalar (SMEM)
    #   out_ref : (1, Ti, H)
    #   pkT_ref : (H, Np)      VMEM scratch: cached W_apair @ feats^T
    i_tile = pl.program_id(1)

    # proj_k is shared by every query tile of this batch element: compute it
    # once per batch element.  Grid axis 1 is "arbitrary" so this cache is
    # safe (it is never sharded across TensorCores).
    @pl.when(i_tile == 0)
    def _():
        pkT_ref[...] = jnp.dot(wp_ref[...], fkT_ref[0],
                               preferred_element_type=jnp.float32)   # (H, Np)

    fq = fq_ref[0]                                                   # (Ti, H)
    ti, hidden = fq.shape
    np_keys = fk_ref.shape[1]
    num_chunks = np_keys // _KEY_CHUNK

    # Factor W_apair through the pairwise sum:
    #   relu((fi + fj) @ Wp^T) = relu(proj_q[i] + proj_k[j])
    proj_q = jnp.dot(fq, wpT_ref[...], preferred_element_type=jnp.float32)  # (Ti, H)
    proj_q_b = proj_q[:, :, None]                                    # (Ti, H, 1)
    wa_b = wa_ref[0][None, :, None]                                  # (1, H, 1)
    ba = ba_ref[0]                                                   # scalar

    def process_chunk(j0, acc):
        # Chunk layout (Ti, H, CK): keys on the 128-wide lane axis, H on
        # sublanes -> the wa-weighted reduce over H is VPU vreg adds plus a
        # small sublane reduce.  Nothing of size O(Ti*Np*H) is materialized.
        pkT_c = pkT_ref[:, pl.ds(j0, _KEY_CHUNK)]                    # (H, CK)
        hp = jnp.maximum(proj_q_b + pkT_c[None, :, :], 0.0)          # (Ti, H, CK)
        logits = jnp.sum(hp * wa_b, axis=1) + ba                     # (Ti, CK)
        score = jax.nn.sigmoid(logits)                               # (Ti, CK)
        fk_c = fk_ref[0, pl.ds(j0, _KEY_CHUNK), :]                   # (CK, H)
        return acc + jnp.dot(score, fk_c, preferred_element_type=jnp.float32)

    acc = jnp.zeros((ti, hidden), jnp.float32)
    if num_chunks == 1:
        acc = process_chunk(0, acc)
    else:
        acc = jax.lax.fori_loop(
            0, num_chunks,
            lambda c, a: process_chunk(
                pl.multiple_of(c * _KEY_CHUNK, _KEY_CHUNK), a),
            acc,
            unroll=min(num_chunks, 8))

    out_ref[0] = acc.astype(out_ref.dtype)


def _pick_tile_i(batch, n_pad, hidden, budget_bytes=4 << 20):
    """Largest query tile (multiple of 8, dividing n_pad) whose per-chunk
    (Ti, H, 128) f32 intermediate stays under budget_bytes, while keeping at
    least 2 total grid steps so both v7x TensorCores get work."""
    best = 8
    for t in range(8, n_pad + 1, 8):
        if n_pad % t == 0 and t * hidden * _KEY_CHUNK * 4 <= budget_bytes:
            best = t
    # Guarantee >= 2 grid steps (megacore) when possible.
    while batch * (n_pad // best) < 2 and best > 8:
        cand = best - 8
        while cand > 8 and n_pad % cand != 0:
            cand -= 8
        if n_pad % cand != 0:
            break
        best = cand
    return best


def attention_forward(local_feats, sparse_idx, w_apair, w_att, b_att):
    """local_feats: (B, N, H); sparse_idx is unused (matches the PyTorch forward)."""
    del sparse_idx  # unused by the reference forward pass
    local_feats = jnp.asarray(local_feats, jnp.float32)
    B, N, H = local_feats.shape

    # Pad the atom axis to a multiple of 128 so it lives on the vreg lane axis.
    # Padded rows are zero, so they contribute exactly zero to the final
    # score-weighted sum (score * 0); padded query rows are sliced off below.
    n_pad = max(128, ((N + 127) // 128) * 128)
    feats = local_feats
    if n_pad != N:
        feats = jnp.pad(feats, ((0, 0), (0, n_pad - N), (0, 0)))
    featsT = jnp.transpose(feats, (0, 2, 1))                         # (B, H, Np)

    tile_i = _pick_tile_i(B, n_pad, H)
    n_i = n_pad // tile_i

    # Layout plumbing done once in HBM (outside the kernel):
    wp = jnp.asarray(w_apair, jnp.float32)                           # (H, H)
    wpT = wp.T                                                       # (H, H)
    wa_row = jnp.asarray(w_att, jnp.float32).reshape(1, H)
    ba = jnp.asarray(b_att, jnp.float32).reshape(1)                  # SMEM scalar

    out_padded = pl.pallas_call(
        _attention_kernel,
        out_shape=jax.ShapeDtypeStruct((B, n_pad, H), jnp.float32),
        grid_spec=pltpu.PrefetchScalarGridSpec(
            num_scalar_prefetch=0,
            grid=(B, n_i),
            in_specs=[
                pl.BlockSpec((1, tile_i, H), lambda b, i: (b, i, 0)),   # queries
                pl.BlockSpec((1, n_pad, H), lambda b, i: (b, 0, 0)),    # values
                pl.BlockSpec((1, H, n_pad), lambda b, i: (b, 0, 0)),    # keys^T
                pl.BlockSpec((H, H), lambda b, i: (0, 0)),              # Wp
                pl.BlockSpec((H, H), lambda b, i: (0, 0)),              # Wp^T
                pl.BlockSpec((1, H), lambda b, i: (0, 0)),              # W_att
                pl.BlockSpec(memory_space=pltpu.MemorySpace.SMEM),      # b_att
            ],
            out_specs=pl.BlockSpec((1, tile_i, H), lambda b, i: (b, i, 0)),
            scratch_shapes=[pltpu.VMEM((H, n_pad), jnp.float32)],       # proj_k^T cache
        ),
        compiler_params=pltpu.CompilerParams(
            dimension_semantics=("parallel", "arbitrary")),
    )(feats, feats, featsT, wp, wpT, wa_row, ba)

    return out_padded[:, :N, :]


def attention_reference(local_feats, w_apair, w_att, b_att):
    """Pure-JAX reference mirroring the PyTorch module exactly."""
    pair = local_feats[:, None, :, :] + local_feats[:, :, None, :]       # (B,N,N,H)
    lf = jnp.einsum('bijh,kh->bijk', pair, w_apair)                      # Linear no bias
    af = jax.nn.relu(lf)
    score = jax.nn.sigmoid(jnp.einsum('bijh,h->bij', af, w_att) + b_att[0])[..., None]
    return jnp.sum(local_feats[:, None, :, :] * score, axis=2)           # (B,N,H)


if __name__ == "__main__":
    B, N, H = 2, 8, 32   # batch, max_natoms, hidden_size

    key = jax.random.PRNGKey(0)
    k1, k2, k3, k4 = jax.random.split(key, 4)

    local_feats = jax.random.normal(k1, (B, N, H), dtype=jnp.float32)
    sparse_idx = jnp.zeros((B, N), dtype=jnp.int32)   # unused by forward

    # Deterministic parameter init (PyTorch Linear layout: W is (out, in))
    w_apair = jax.random.normal(k2, (H, H), dtype=jnp.float32) * 0.1
    w_att = jax.random.normal(k3, (H,), dtype=jnp.float32) * 0.1
    b_att = jax.random.normal(k4, (1,), dtype=jnp.float32) * 0.1

    out = attention_forward(local_feats, sparse_idx, w_apair, w_att, b_att)
    out = jax.block_until_ready(out)

    ref = attention_reference(local_feats, w_apair, w_att, b_att)
    np.testing.assert_allclose(np.asarray(out), np.asarray(ref), rtol=1e-5, atol=1e-5)

    print("KERNEL_OK")
</pallas_src>

<mosaic_0001>
module attributes {stable_mosaic.version = 11 : i64} {
  func.func @_attention_kernel(%arg0: i32, %arg1: i32, %arg2: memref<1x128x32xf32, #tpu.memory_space<vmem>>, %arg3: memref<1x128x32xf32, #tpu.memory_space<vmem>>, %arg4: memref<1x32x128xf32, #tpu.memory_space<vmem>>, %arg5: memref<32x32xf32, #tpu.memory_space<vmem>>, %arg6: memref<32x32xf32, #tpu.memory_space<vmem>>, %arg7: memref<1x32xf32, #tpu.memory_space<vmem>>, %arg8: memref<1xf32, #tpu.memory_space<smem>>, %arg9: memref<1x128x32xf32, #tpu.memory_space<vmem>>, %arg10: memref<32x128xf32, #tpu.memory_space<vmem>>) attributes {dimension_semantics = [#tpu.dimension_semantics<parallel>, #tpu.dimension_semantics<arbitrary>], iteration_bounds = array<i64: 2, 1>, scalar_prefetch = 0 : i64, scratch_operands = 1 : i64, tpu.core_type = #tpu.core_type<tc>, window_params = [{transform_indices = @transform_0, window_bounds = array<i64: 1, 128, 32>}, {transform_indices = @transform_1, window_bounds = array<i64: 1, 128, 32>}, {transform_indices = @transform_2, window_bounds = array<i64: 1, 32, 128>}, {pipeline_mode = #tpu.pipeline_mode<synchronous>, transform_indices = @transform_3, window_bounds = array<i64: 32, 32>}, {pipeline_mode = #tpu.pipeline_mode<synchronous>, transform_indices = @transform_4, window_bounds = array<i64: 32, 32>}, {pipeline_mode = #tpu.pipeline_mode<synchronous>, transform_indices = @transform_5, window_bounds = array<i64: 1, 32>}, {transform_indices = @transform_6, window_bounds = array<i64: 1>}, {transform_indices = @transform_7, window_bounds = array<i64: 1, 128, 32>}]} {
    %c0_i32 = arith.constant 0 : i32
    %0 = arith.cmpi eq, %arg1, %c0_i32 : i32
    %1 = arith.extui %0 : i1 to i32
    %c0_i32_0 = arith.constant 0 : i32
    %2 = arith.cmpi ne, %1, %c0_i32_0 : i32
    scf.if %2 {
      %c0_21 = arith.constant 0 : index
      %c0_22 = arith.constant 0 : index
      %37 = vector.load %arg5[%c0_21, %c0_22] : memref<32x32xf32, #tpu.memory_space<vmem>>, vector<32x32xf32>
      %c0_23 = arith.constant 0 : index
      %c0_24 = arith.constant 0 : index
      %c0_25 = arith.constant 0 : index
      %38 = vector.load %arg4[%c0_23, %c0_24, %c0_25] : memref<1x32x128xf32, #tpu.memory_space<vmem>>, vector<1x32x128xf32>
      %39 = vector.shape_cast %38 : vector<1x32x128xf32> to vector<32x128xf32>
      %cst_26 = arith.constant dense<0.000000e+00> : vector<32x128xf32>
      %40 = tpu.matmul %37, %39, %cst_26 {dimension_numbers = #tpu.dot_dimension_numbers<[1], [0], [0], [1], [0, 0, 1, 1], [], []>} : vector<32x32xf32>, vector<32x128xf32>, vector<32x128xf32> -> vector<32x128xf32>
      %c0_27 = arith.constant 0 : index
      %c0_28 = arith.constant 0 : index
      %41 = vector.load %arg10[%c0_27, %c0_28] : memref<32x128xf32, #tpu.memory_space<vmem>>, vector<32x128xf32>
      tpu.vector_store %arg10[%c0_27, %c0_28], %40 {strides = array<i32>} : memref<32x128xf32, #tpu.memory_space<vmem>>, vector<32x128xf32>,
    } else {
    }
    %c0 = arith.constant 0 : index
    %c0_1 = arith.constant 0 : index
    %c0_2 = arith.constant 0 : index
    %3 = vector.load %arg2[%c0, %c0_1, %c0_2] : memref<1x128x32xf32, #tpu.memory_space<vmem>>, vector<1x128x32xf32>
    %4 = vector.shape_cast %3 : vector<1x128x32xf32> to vector<128x32xf32>
    %c0_3 = arith.constant 0 : index
    %c0_4 = arith.constant 0 : index
    %5 = vector.load %arg6[%c0_3, %c0_4] : memref<32x32xf32, #tpu.memory_space<vmem>>, vector<32x32xf32>
    %cst = arith.constant dense<0.000000e+00> : vector<128x32xf32>
    %6 = tpu.matmul %4, %5, %cst {dimension_numbers = #tpu.dot_dimension_numbers<[1], [0], [0], [1], [0, 0, 1, 1], [], []>} : vector<128x32xf32>, vector<32x32xf32>, vector<128x32xf32> -> vector<128x32xf32>
    %7 = vector.shape_cast %6 : vector<128x32xf32> to vector<128x32x1xf32>
    %c0_5 = arith.constant 0 : index
    %c0_6 = arith.constant 0 : index
    %8 = vector.load %arg7[%c0_5, %c0_6] : memref<1x32xf32, #tpu.memory_space<vmem>>, vector<1x32xf32>
    %9 = vector.shape_cast %8 : vector<1x32xf32> to vector<32xf32>
    %10 = vector.shape_cast %9 : vector<32xf32> to vector<1x32x1xf32>
    %c0_7 = arith.constant 0 : index
    %11 = memref.load %arg8[%c0_7] : memref<1xf32, #tpu.memory_space<smem>>
    %cst_8 = arith.constant 0.000000e+00 : f32
    %12 = vector.broadcast %cst_8 : f32 to vector<128x32xf32>
    %c0_9 = arith.constant 0 : index
    %c0_10 = arith.constant 0 : index
    %13 = vector.load %arg10[%c0_9, %c0_10] : memref<32x128xf32, #tpu.memory_space<vmem>>, vector<32x128xf32>
    %14 = vector.shape_cast %13 : vector<32x128xf32> to vector<1x32x128xf32>
    %15 = vector.broadcast %7 : vector<128x32x1xf32> to vector<128x32x128xf32>
    %16 = vector.broadcast %14 : vector<1x32x128xf32> to vector<128x32x128xf32>
    %17 = arith.addf %15, %16 : vector<128x32x128xf32>
    %cst_11 = arith.constant 0.000000e+00 : f32
    %18 = vector.broadcast %cst_11 : f32 to vector<128x32x128xf32>
    %19 = arith.maximumf %17, %18 : vector<128x32x128xf32>
    %20 = vector.broadcast %10 : vector<1x32x1xf32> to vector<128x32x128xf32>
    %21 = arith.mulf %19, %20 : vector<128x32x128xf32>
    %cst_12 = arith.constant dense<0.000000e+00> : vector<128x128xf32>
    %22 = vector.multi_reduction <add>, %21, %cst_12 [1] : vector<128x32x128xf32> to vector<128x128xf32>
    %23 = vector.broadcast %11 : f32 to vector<128x128xf32>
    %24 = arith.addf %22, %23 : vector<128x128xf32>
    %25 = arith.negf %24 : vector<128x128xf32>
    %26 = math.exp %25 : vector<128x128xf32>
    %cst_13 = arith.constant 1.000000e+00 : f32
    %27 = vector.broadcast %cst_13 : f32 to vector<128x128xf32>
    %28 = arith.addf %27, %26 : vector<128x128xf32>
    %29 = arith.divf %27, %28 : vector<128x128xf32>
    %c0_14 = arith.constant 0 : index
    %c0_15 = arith.constant 0 : index
    %c0_16 = arith.constant 0 : index
    %30 = vector.load %arg3[%c0_14, %c0_15, %c0_16] : memref<1x128x32xf32, #tpu.memory_space<vmem>>, vector<1x128x32xf32>
    %31 = vector.shape_cast %30 : vector<1x128x32xf32> to vector<128x32xf32>
    %cst_17 = arith.constant dense<0.000000e+00> : vector<128x32xf32>
    %32 = tpu.matmul %29, %31, %cst_17 {dimension_numbers = #tpu.dot_dimension_numbers<[1], [0], [0], [1], [0, 0, 1, 1], [], []>} : vector<128x128xf32>, vector<128x32xf32>, vector<128x32xf32> -> vector<128x32xf32>
    %33 = arith.addf %12, %32 : vector<128x32xf32>
    %c0_18 = arith.constant 0 : index
    %c0_19 = arith.constant 0 : index
    %c0_20 = arith.constant 0 : index
    %34 = vector.load %arg9[%c0_18, %c0_19, %c0_20] : memref<1x128x32xf32, #tpu.memory_space<vmem>>, vector<1x128x32xf32>
    %35 = vector.shape_cast %34 : vector<1x128x32xf32> to vector<128x32xf32>
    %36 = vector.shape_cast %33 : vector<128x32xf32> to vector<1x128x32xf32>
    tpu.vector_store %arg9[%c0_18, %c0_19, %c0_20], %36 {strides = array<i32>} : memref<1x128x32xf32, #tpu.memory_space<vmem>>, vector<1x128x32xf32>,
    return
  }
  func.func @transform_0(%arg0: i32, %arg1: i32) -> (i32, i32, i32) {
    %c0_i32 = arith.constant 0 : i32
    %c0_i32_0 = arith.constant 0 : i32
    return %arg0, %arg1, %c0_i32 : i32, i32, i32
  }
  func.func @transform_1(%arg0: i32, %arg1: i32) -> (i32, i32, i32) {
    %c0_i32 = arith.constant 0 : i32
    %c0_i32_0 = arith.constant 0 : i32
    %c0_i32_1 = arith.constant 0 : i32
    return %arg0, %c0_i32, %c0_i32_0 : i32, i32, i32
  }
  func.func @transform_2(%arg0: i32, %arg1: i32) -> (i32, i32, i32) {
    %c0_i32 = arith.constant 0 : i32
    %c0_i32_0 = arith.constant 0 : i32
    %c0_i32_1 = arith.constant 0 : i32
    return %arg0, %c0_i32, %c0_i32_0 : i32, i32, i32
  }
  func.func @transform_3(%arg0: i32, %arg1: i32) -> (i32, i32) {
    %c0_i32 = arith.constant 0 : i32
    %c0_i32_0 = arith.constant 0 : i32
    %c0_i32_1 = arith.constant 0 : i32
    return %c0_i32, %c0_i32_0 : i32, i32
  }
  func.func @transform_4(%arg0: i32, %arg1: i32) -> (i32, i32) {
    %c0_i32 = arith.constant 0 : i32
    %c0_i32_0 = arith.constant 0 : i32
    %c0_i32_1 = arith.constant 0 : i32
    return %c0_i32, %c0_i32_0 : i32, i32
  }
  func.func @transform_5(%arg0: i32, %arg1: i32) -> (i32, i32) {
    %c0_i32 = arith.constant 0 : i32
    %c0_i32_0 = arith.constant 0 : i32
    %c0_i32_1 = arith.constant 0 : i32
    return %c0_i32, %c0_i32_0 : i32, i32
  }
  func.func @transform_6(%arg0: i32, %arg1: i32) -> i32 {
    %c0_i32 = arith.constant 0 : i32
    %c0_i32_0 = arith.constant 0 : i32
    return %c0_i32 : i32
  }
  func.func @transform_7(%arg0: i32, %arg1: i32) -> (i32, i32, i32) {
    %c0_i32 = arith.constant 0 : i32
    %c0_i32_0 = arith.constant 0 : i32
    return %arg0, %arg1, %c0_i32 : i32, i32, i32
  }
}

</mosaic_0001>

<bundles_post_ra>
// kernel: tpu_custom_call.1
= control target key start
LH: loop header
LB: loop body
LE: loop exit
PB: predicated region body
PF: predicated region fallthrough
CT: control target
= control target key end

     0   :  { %s8277_s26 = smov 0   ;;  %s8279_s27 = smov 0   ;;  %s13892_s0 = inlined_call_operand.vmem [shape: f32[2,128,32], index: 0, kind: input, shape index: {}]   ;;  %s13893_s1 = inlined_call_operand.vmem [shape: f32[2,128,32], index: 1, kind: input, shape index: {}]   ;;  %s13894_s2 = inlined_call_operand.vmem [shape: f32[2,32,128], index: 2, kind: input, shape index: {}]   ;;  %s13895_s3 = inlined_call_operand.vmem [shape: f32[32,32], index: 3, kind: input, shape index: {}]   ;;  %s13896_s4 = inlined_call_operand.vmem [shape: f32[32,32], index: 4, kind: input, shape index: {}]   ;;  %s13897_s5 = inlined_call_operand.vmem [shape: f32[1,32], index: 5, kind: input, shape index: {}]   ;;  %s13898_s6 = inlined_call_operand.<no memory space> [shape: f32[1], index: 6, kind: input, shape index: {}]   ;;  %s13899_s7 = inlined_call_operand.vmem [shape: f32[2,128,32], index: 7, kind: output, shape index: {}]  }
   0x1   :  { %12 = sst [smem:[#allocation3]] %s13898_s6  ;;  %s8281_s28 = smov 0  }
   0x2 LB: > { %s30_s6 = sadd.s32 1, %s8228_s27  ;;  %p7284_p0 = scmp.ge.s32.totalorder %s8232_s28, 1  ;;  %s8232_s28 = sphi %s8281_s28, %s18_s28   ;;  %s8228_s27 = sphi %s8279_s27, %s16076_s27   ;;  %s8224_s26 = sphi %s8277_s26, %s16075_s26  }
   0x3   : > { %p32_p1 = scmp.ge.s32.totalorder %s30_s6, 2  ;;  %p279_p2 = scmp.lt.s32.totalorder %s8232_s28, 3 }
   0x5   : > { %s16078_s6 = smov (%p32_p1, %s30_s6), 0  ;;  %p280_p3 = pnand %p7284_p0, %p279_p2 }
   0x7   : > { %283 = sbr.rel (%p280_p3) target bundleno = 2078 (0x81e), region = 48 }
   0xe   : > { %v489_v0 = vld [vmem:[%s13896_s4] sm:$0xff]  ;;  %v490_v1 = vld [vmem:[%s13896_s4 + $0x8] sm:$0xff]  ;;  %v491_v2 = vld [vmem:[%s13896_s4 + $0x10] sm:$0xff]  ;;  %p330_p4 = scmp.lt.s32.totalorder %s8224_s26, 1  ;;  %vm371_vm0 = vcmask 261120   ;;  %v687_v22 = vlaneseq  ;;  %s10963_s14 = sld [smem:[#allocation3]] }
   0xf   : > { %v7618_v3 = vpack.c.bf16 %v490_v1, %v489_v0  ;;  %v492_v4 = vld [vmem:[%s13896_s4 + $0x18] sm:$0xff]  ;;  %v363_v5 = vld [vmem:[%s13895_s3] sm:$0xff]  ;;  %v364_v17 = vld [vmem:[%s13895_s3 + $0x8] sm:$0xff]  ;;  %vm6873_vm1 = vcmask 1041409   ;;  %vm6875_vm2 = vcmask 1042434   ;;  %vm6877_vm3 = vcmask 1043459  }
  0x10   : > { %v7622_v6 = vpack.c.bf16 %v492_v4, %v491_v2  ;;  %s16080_s26 = smov (!%p330_p4, %s8224_s26), 1  ;;  %7516 = vmatprep.mubr.msk.f32.mxu0 %vm371_vm0, %v363_v5  ;;  %v365_v18 = vld [vmem:[%s13895_s3 + $0x10] sm:$0xff]  ;;  %v366_v19 = vld [vmem:[%s13895_s3 + $0x18] sm:$0xff]  ;;  %v688_v23 = vshrl.u32 %v687_v22, 7  ;;  %vm6879_vm4 = vcmask 1044484   ;;  %vm6881_vm5 = vcmask 1045509  }
  0x11   : > { %7619 = vmatprep.subr.bf16.mxu1 %v7618_v3  ;;  %s8311_s16 = sshll.u32 %s16080_s26, 7  ;;  %s7446_s17 = sshll.u32 %s16080_s26, 5  ;;  %vm6883_vm6 = vcmask 1046534   ;;  %vm6885_vm7 = vcmask 1047559  }
  0x12   : > { %7621 = vmatpush3.bf16.msra.mxu1 %v7618_v3  ;;  %s8317_s20 = scalar_lea.vmem %s13892_s0, %s8311_s16  ;;  %s348_s23 = scalar_lea.vmem %s13894_s2, %s7446_s17  ;;  %v8346_v24 = vsub.s32 0, %v688_v23  ;;  %v8353_v29 = vsub.s32 1, %v688_v23  ;;  %v8366_v36 = vsub.s32 2, %v688_v23  ;;  %v8369_v38 = vsub.s32 3, %v688_v23 }
  0x13   : > { %7623 = vmatprep.subr.bf16.mxu1 %v7622_v6  ;;  %v473_v7 = vld [vmem:[%s8317_s20] sm:$0xff]  ;;  %v368_v9 = vld [vmem:[%s348_s23 + $0x8] sm:$0xff]  ;;  %v369_v10 = vld [vmem:[%s348_s23 + $0x10] sm:$0xff]  ;;  %v8372_v40 = vsub.s32 4, %v688_v23  ;;  %v8375_v42 = vsub.s32 5, %v688_v23  ;;  %v8380_v46 = vsub.s32 6, %v688_v23  ;;  %s10348_s13 = scalar_lea.vmem %s13893_s1, %s8311_s16  ;;  %s13489_s18 = scalar_lea.vmem %s13899_s7, %s8311_s16 }
  0x14   : > { %7530 = vmatprep.mubr.msk.f32.mxu1 %vm371_vm0, %v473_v7  ;;  %v367_v8 = vld [vmem:[%s348_s23] sm:$0xff]  ;;  %v474_v11 = vld [vmem:[%s8317_s20 + $0x8] sm:$0xff]  ;;  %v370_v13 = vld [vmem:[%s348_s23 + $0x18] sm:$0xff]  ;;  %14301 = vst [vmem:[#allocation4_spill] sm:$0xff] %v8346_v24  ;;  %v8385_v48 = vsub.s32 7, %v688_v23 }
  0x15   : > { %v7610_v12 = vpack.c.bf16 %v368_v9, %v367_v8  ;;  %v7614_v14 = vpack.c.bf16 %v370_v13, %v369_v10  ;;  %v475_v15 = vld [vmem:[%s8317_s20 + $0x10] sm:$0xff]  ;;  %v476_v16 = vld [vmem:[%s8317_s20 + $0x18] sm:$0xff]  ;;  %v477_v20 = vld [vmem:[%s8317_s20 + $0x20] sm:$0xff]  ;;  %14303 = vst [vmem:[#allocation6_spill] sm:$0xff] %v8369_v38 }
  0x16   : > { %7625 = vmatpush3.bf16.msra.mxu1 %v7622_v6  ;;  %v478_v21 = vld [vmem:[%s8317_s20 + $0x28] sm:$0xff]  ;;  %14304 = vst [vmem:[#allocation7_spill] sm:$0xff] %v8372_v40  ;;  %14305 = vst [vmem:[#allocation8_spill] sm:$0xff] %v8375_v42  ;;  %v479_v44 = vld [vmem:[%s8317_s20 + $0x30] sm:$0xff] }
  0x17   : > { %7611 = vmatprep.subr.bf16.mxu0 %v7610_v12  ;;  %v480_v45 = vld [vmem:[%s8317_s20 + $0x38] sm:$0xff]  ;;  %14306 = vst [vmem:[#allocation9_spill] sm:$0xff] %v8380_v46  ;;  %14307 = vst [vmem:[#allocation10_spill] sm:$0xff] %v8385_v48 }
  0x18   : > { %7613 = vmatpush3.bf16.msra.mxu0 %v7610_v12 }
  0x19   : > { %7531 = vmatmul.mubr.msk.f32.vlgmr.msra.gmra.mrb[0].mxu1 %vm371_vm0, %v474_v11  ;;  %7615 = vmatprep.subr.bf16.mxu0 %v7614_v14 }
  0x1a   : > { %7533 = vmatprep.mubr.msk.f32.mxu1 %vm371_vm0, %v475_v15 }
  0x1c   : > { %7617 = vmatpush3.bf16.msra.mxu0 %v7614_v14 }
  0x1d   : > { %7534 = vmatmul.mubr.msk.f32.gmra.mrb[2].mxu1 %vm371_vm0, %v476_v16 }
  0x1e   : > { %7536 = vmatprep.mubr.msk.f32.mxu1 %vm371_vm0, %v477_v20 }
  0x1f   : > { %7517 = vmatmul.mubr.msk.f32.vlgmr.msra.gmra.mrb[0].mxu0 %vm371_vm0, %v364_v17 }
  0x20   : > { %7519 = vmatprep.mubr.msk.f32.mxu0 %vm371_vm0, %v365_v18 }
  0x21   : > { %7537 = vmatmul.mubr.msk.f32.gmra.mrb[4].mxu1 %vm371_vm0, %v478_v21 }
  0x22   : > { %7539 = vmatprep.mubr.msk.f32.mxu1 %vm371_vm0, %v479_v44 }
  0x23   : > { %7520 = vmatmul.mubr.msk.f32.gmra.mrb[2].mxu0 %vm371_vm0, %v366_v19 }
  0x25   : > { %7540 = vmatmul.mubr.msk.f32.gmra.mrb[6].mxu1 %vm371_vm0, %v480_v45 }
  0xec   : > { %v7532_v25 = vpop.f32.mrb[0].mxu1 }
  0xed   : > { %v8348_v26 = vpop.f32.mrb[1].mxu1  ;;  %v842_v27 = vrot.slane %v7532_v25, %v8346_v24  ;;  %v861_v33 = vrot.slane %v7532_v25, %v8353_v29  ;;  %v880_v37 = vrot.slane %v7532_v25, %v8366_v36  ;;  %v899_v39 = vrot.slane %v7532_v25, %v8369_v38 }
  0xee   : > { %v918_v41 = vrot.slane %v7532_v25, %v8372_v40  ;;  %v937_v43 = vrot.slane %v7532_v25, %v8375_v42  ;;  %v956_v47 = vrot.slane %v7532_v25, %v8380_v46  ;;  %v975_v49 = vrot.slane %v7532_v25, %v8385_v48 }
  0xef   : > { %848 = vbcast.lane.b32.xlu1 %v842_v27, 264  ;;  %844 = vbcast.lane.b32.xlu0 %v842_v27, 256  ;;  %v690_v50 = vrot.slane %v8348_v26, %v8346_v24  ;;  %v709_v51 = vrot.slane %v8348_v26, %v8353_v29  ;;  %v728_v52 = vrot.slane %v8348_v26, %v8366_v36 }
  0xf0   : > { %v8351_v28 = vpop.f32.mrb[2].mxu1  ;;  %v747_v53 = vrot.slane %v8348_v26, %v8369_v38  ;;  %v766_v54 = vrot.slane %v8348_v26, %v8372_v40  ;;  %v785_v55 = vrot.slane %v8348_v26, %v8375_v42  ;;  %v804_v56 = vrot.slane %v8348_v26, %v8380_v46 }
  0xf1   : > { %v8355_v30 = vpop.f32.mrb[3].mxu1  ;;  %v823_v61 = vrot.slane %v8348_v26, %v8385_v48  ;;  %v1146_v0 = vrot.slane %v8351_v28, %v8346_v24  ;;  %v1165_v9 = vrot.slane %v8351_v28, %v8353_v29  ;;  %v1184_v14 = vrot.slane %v8351_v28, %v8366_v36 }
  0xf2   : > { %v8357_v31 = vpop.f32.mrb[0].mxu0  ;;  %v1203_v19 = vrot.slane %v8351_v28, %v8369_v38  ;;  %v1222_v25 = vrot.slane %v8351_v28, %v8372_v40 }
  0xf3   : > { %856 = vbcast.lane.b32.xlu1 %v842_v27, 280  ;;  %852 = vbcast.lane.b32.xlu0 %v842_v27, 272  ;;  %v8359_v32 = vpop.f32.mrb[1].mxu0 }
  0xf4   : > { %v8418_v1 = vpop.f32.mrb[4].mxu1 }
  0xf5   : > { %v8424_v4 = vpop.f32.mrb[5].mxu1 }
  0xf6   : > { %v8362_v34 = vpop.f32.mrb[2].mxu0 }
  0xf7   : > { %867 = vbcast.lane.b32.xlu1 %v861_v33, 264  ;;  %863 = vbcast.lane.b32.xlu0 %v861_v33, 256  ;;  %14302 = vst [vmem:[#allocation5_spill] sm:$0xff] %v8362_v34  ;;  %v8364_v35 = vpop.f32.mrb[3].mxu0 }
  0xfb   : > { %875 = vbcast.lane.b32.xlu1 %v861_v33, 280  ;;  %871 = vbcast.lane.b32.xlu0 %v861_v33, 272 }
  0xff   : > { %886 = vbcast.lane.b32.xlu1 %v880_v37, 264  ;;  %882 = vbcast.lane.b32.xlu0 %v880_v37, 256 }
 0x103   : > { %894 = vbcast.lane.b32.xlu1 %v880_v37, 280  ;;  %890 = vbcast.lane.b32.xlu0 %v880_v37, 272 }
 0x107   : > { %905 = vbcast.lane.b32.xlu1 %v899_v39, 264  ;;  %901 = vbcast.lane.b32.xlu0 %v899_v39, 256 }
 0x10b   : > { %913 = vbcast.lane.b32.xlu1 %v899_v39, 280  ;;  %909 = vbcast.lane.b32.xlu0 %v899_v39, 272  ;;  %v994_v39 = vrot.slane %v8355_v30, %v8346_v24 }
 0x10f   : > { %924 = vbcast.lane.b32.xlu1 %v918_v41, 264  ;;  %920 = vbcast.lane.b32.xlu0 %v918_v41, 256 }
 0x113   : > { %932 = vbcast.lane.b32.xlu1 %v918_v41, 280  ;;  %928 = vbcast.lane.b32.xlu0 %v918_v41, 272  ;;  %v481_v41 = vld [vmem:[%s8317_s20 + $0x40] sm:$0xff] }
 0x114   : > { %7542 = vmatprep.mubr.msk.f32.mxu1 %vm371_vm0, %v481_v41 }
 0x117   : > { %943 = vbcast.lane.b32.xlu1 %v937_v43, 264  ;;  %939 = vbcast.lane.b32.xlu0 %v937_v43, 256 }
 0x11b   : > { %951 = vbcast.lane.b32.xlu1 %v937_v43, 280  ;;  %947 = vbcast.lane.b32.xlu0 %v937_v43, 272  ;;  %v482_v43 = vld [vmem:[%s8317_s20 + $0x48] sm:$0xff] }
 0x11c   : > { %7543 = vmatmul.mubr.msk.f32.gmra.mrb[8].mxu1 %vm371_vm0, %v482_v43  ;;  %v1070_v43 = vrot.slane %v8355_v30, %v8372_v40 }
 0x11f   : > { %962 = vbcast.lane.b32.xlu1 %v956_v47, 264  ;;  %958 = vbcast.lane.b32.xlu0 %v956_v47, 256 }
 0x123   : > { %970 = vbcast.lane.b32.xlu1 %v956_v47, 280  ;;  %966 = vbcast.lane.b32.xlu0 %v956_v47, 272 }
 0x127   : > { %981 = vbcast.lane.b32.xlu1 %v975_v49, 264  ;;  %977 = vbcast.lane.b32.xlu0 %v975_v49, 256 }
 0x12b   : > { %989 = vbcast.lane.b32.xlu1 %v975_v49, 280  ;;  %985 = vbcast.lane.b32.xlu0 %v975_v49, 272 }
 0x12f   : > { %700 = vbcast.lane.b32.xlu1 %v690_v50, 272  ;;  %692 = vbcast.lane.b32.xlu0 %v690_v50, 256 }
 0x133   : > { %704 = vbcast.lane.b32.xlu1 %v690_v50, 280  ;;  %696 = vbcast.lane.b32.xlu0 %v690_v50, 264  ;;  %v1013_v50 = vrot.slane %v8355_v30, %v8353_v29 }
 0x137   : > { %715 = vbcast.lane.b32.xlu1 %v709_v51, 264  ;;  %711 = vbcast.lane.b32.xlu0 %v709_v51, 256 }
 0x13b   : > { %723 = vbcast.lane.b32.xlu1 %v709_v51, 280  ;;  %719 = vbcast.lane.b32.xlu0 %v709_v51, 272 }
 0x13f   : > { %734 = vbcast.lane.b32.xlu1 %v728_v52, 264  ;;  %730 = vbcast.lane.b32.xlu0 %v728_v52, 256 }
 0x143   : > { %742 = vbcast.lane.b32.xlu1 %v728_v52, 280  ;;  %738 = vbcast.lane.b32.xlu0 %v728_v52, 272 }
 0x147   : > { %753 = vbcast.lane.b32.xlu1 %v747_v53, 264  ;;  %749 = vbcast.lane.b32.xlu0 %v747_v53, 256 }
 0x14b   : > { %761 = vbcast.lane.b32.xlu1 %v747_v53, 280  ;;  %757 = vbcast.lane.b32.xlu0 %v747_v53, 272 }
 0x14f   : > { %772 = vbcast.lane.b32.xlu1 %v766_v54, 264  ;;  %768 = vbcast.lane.b32.xlu0 %v766_v54, 256 }
 0x153   : > { %780 = vbcast.lane.b32.xlu1 %v766_v54, 280  ;;  %776 = vbcast.lane.b32.xlu0 %v766_v54, 272 }
 0x157   : > { %791 = vbcast.lane.b32.xlu1 %v785_v55, 264  ;;  %787 = vbcast.lane.b32.xlu0 %v785_v55, 256 }
 0x15b   : > { %799 = vbcast.lane.b32.xlu1 %v785_v55, 280  ;;  %795 = vbcast.lane.b32.xlu0 %v785_v55, 272  ;;  %v1032_v55 = vrot.slane %v8355_v30, %v8366_v36 }
 0x15f   : > { %810 = vbcast.lane.b32.xlu1 %v804_v56, 264  ;;  %806 = vbcast.lane.b32.xlu0 %v804_v56, 256 }
 0x161   : > { %v8402_v57 = vpop.permute.xlu1 %848  ;;  %v8404_v58 = vpop.permute.xlu0 %844 }
 0x163   : > { %818 = vbcast.lane.b32.xlu1 %v804_v56, 280  ;;  %814 = vbcast.lane.b32.xlu0 %v804_v56, 272 }
 0x165   : > { %v8406_v59 = vpop.permute.xlu1 %856  ;;  %v8408_v60 = vpop.permute.xlu0 %852 }
 0x167   : > { %829 = vbcast.lane.b32.xlu1 %v823_v61, 264  ;;  %825 = vbcast.lane.b32.xlu0 %v823_v61, 256 }
 0x169   : > { %v8412_v62 = vpop.permute.xlu1 %867  ;;  %v8414_v63 = vpop.permute.xlu0 %863 }
 0x16b   : > { %837 = vbcast.lane.b32.xlu1 %v823_v61, 280  ;;  %833 = vbcast.lane.b32.xlu0 %v823_v61, 272 }
 0x16d   : > { %v8420_v2 = vpop.permute.xlu1 %875  ;;  %v8422_v3 = vpop.permute.xlu0 %871 }
 0x16f   : > { %1152 = vbcast.lane.b32.xlu1 %v1146_v0, 264  ;;  %1148 = vbcast.lane.b32.xlu0 %v1146_v0, 256 }
 0x171   : > { %v8426_v5 = vpop.permute.xlu1 %886  ;;  %v8428_v6 = vpop.permute.xlu0 %882 }
 0x173   : > { %1160 = vbcast.lane.b32.xlu1 %v1146_v0, 280  ;;  %1156 = vbcast.lane.b32.xlu0 %v1146_v0, 272 }
 0x175   : > { %v8430_v7 = vpop.permute.xlu1 %894  ;;  %v8432_v8 = vpop.permute.xlu0 %890 }
 0x177   : > { %1171 = vbcast.lane.b32.xlu1 %v1165_v9, 264  ;;  %1167 = vbcast.lane.b32.xlu0 %v1165_v9, 256 }
 0x179   : > { %v8436_v10 = vpop.permute.xlu1 %905  ;;  %v8438_v11 = vpop.permute.xlu0 %901 }
 0x17b   : > { %1179 = vbcast.lane.b32.xlu1 %v1165_v9, 280  ;;  %1175 = vbcast.lane.b32.xlu0 %v1165_v9, 272 }
 0x17d   : > { %v8440_v12 = vpop.permute.xlu1 %913  ;;  %v8442_v13 = vpop.permute.xlu0 %909 }
 0x17f   : > { %1190 = vbcast.lane.b32.xlu1 %v1184_v14, 264  ;;  %1186 = vbcast.lane.b32.xlu0 %v1184_v14, 256 }
 0x181   : > { %v8446_v15 = vpop.permute.xlu1 %924  ;;  %v8448_v16 = vpop.permute.xlu0 %920 }
 0x183   : > { %1198 = vbcast.lane.b32.xlu1 %v1184_v14, 280  ;;  %1194 = vbcast.lane.b32.xlu0 %v1184_v14, 272  ;;  %v1051_v14 = vrot.slane %v8355_v30, %v8369_v38 }
 0x185   : > { %v8450_v17 = vpop.permute.xlu1 %932  ;;  %v8452_v18 = vpop.permute.xlu0 %928 }
 0x187   : > { %1209 = vbcast.lane.b32.xlu1 %v1203_v19, 264  ;;  %1205 = vbcast.lane.b32.xlu0 %v1203_v19, 256 }
 0x189   : > { %v8456_v20 = vpop.permute.xlu1 %943  ;;  %v8458_v21 = vpop.permute.xlu0 %939 }
 0x18b   : > { %1217 = vbcast.lane.b32.xlu1 %v1203_v19, 280  ;;  %1213 = vbcast.lane.b32.xlu0 %v1203_v19, 272 }
 0x18d   : > { %v8460_v22 = vpop.permute.xlu1 %951  ;;  %v8462_v23 = vpop.permute.xlu0 %947 }
 0x18f   : > { %1228 = vbcast.lane.b32.xlu1 %v1222_v25, 264  ;;  %1224 = vbcast.lane.b32.xlu0 %v1222_v25, 256 }
 0x191   : > { %v8466_v26 = vpop.permute.xlu1 %962  ;;  %v8468_v27 = vpop.permute.xlu0 %958 }
 0x193   : > { %1236 = vbcast.lane.b32.xlu1 %v1222_v25, 280  ;;  %1232 = vbcast.lane.b32.xlu0 %v1222_v25, 272 }
 0x195   : > { %v8470_v33 = vpop.permute.xlu1 %970  ;;  %v8472_v37 = vpop.permute.xlu0 %966 }
 0x197   : > { %1000 = vbcast.lane.b32.xlu1 %v994_v39, 264  ;;  %996 = vbcast.lane.b32.xlu0 %v994_v39, 256 }
 0x199   : > { %v8478_v44 = vpop.permute.xlu1 %981  ;;  %v8480_v45 = vpop.permute.xlu0 %977 }
 0x19b   : > { %1008 = vbcast.lane.b32.xlu1 %v994_v39, 280  ;;  %1004 = vbcast.lane.b32.xlu0 %v994_v39, 272 }
 0x19d   : > { %v8484_v47 = vpop.permute.xlu1 %989  ;;  %v8486_v49 = vpop.permute.xlu0 %985 }
 0x19f   : > { %1019 = vbcast.lane.b32.xlu1 %v1013_v50, 264  ;;  %1015 = vbcast.lane.b32.xlu0 %v1013_v50, 256 }
 0x1a1   : > { %v8490_v51 = vpop.permute.xlu1 %700  ;;  %v8492_v52 = vpop.permute.xlu0 %692 }
 0x1a3   : > { %1027 = vbcast.lane.b32.xlu1 %v1013_v50, 280  ;;  %1023 = vbcast.lane.b32.xlu0 %v1013_v50, 272 }
 0x1a5   : > { %v8494_v53 = vpop.permute.xlu1 %704  ;;  %v8496_v54 = vpop.permute.xlu0 %696 }
 0x1a7   : > { %1038 = vbcast.lane.b32.xlu1 %v1032_v55, 264  ;;  %1034 = vbcast.lane.b32.xlu0 %v1032_v55, 256 }
 0x1a9   : > { %v8500_v56 = vpop.permute.xlu1 %715  ;;  %v8502_v61 = vpop.permute.xlu0 %711 }
 0x1ab   : > { %1046 = vbcast.lane.b32.xlu1 %v1032_v55, 280  ;;  %1042 = vbcast.lane.b32.xlu0 %v1032_v55, 272 }
 0x1ad   : > { %v8504_v0 = vpop.permute.xlu1 %723  ;;  %v8506_v9 = vpop.permute.xlu0 %719 }
 0x1ae   : > { %14308 = vst [vmem:[#allocation11_spill] sm:$0xff] %v8504_v0  ;;  %14309 = vst [vmem:[#allocation12_spill] sm:$0xff] %v8506_v9 }
 0x1af   : > { %1057 = vbcast.lane.b32.xlu1 %v1051_v14, 264  ;;  %1053 = vbcast.lane.b32.xlu0 %v1051_v14, 256 }
 0x1b1   : > { %v8510_v19 = vpop.permute.xlu1 %734  ;;  %v8512_v25 = vpop.permute.xlu0 %730 }
 0x1b2   : > { %14310 = vst [vmem:[#allocation13_spill] sm:$0xff] %v8510_v19  ;;  %14311 = vst [vmem:[#allocation14_spill] sm:$0xff] %v8512_v25 }
 0x1b3   : > { %1065 = vbcast.lane.b32.xlu1 %v1051_v14, 280  ;;  %1061 = vbcast.lane.b32.xlu0 %v1051_v14, 272  ;;  %v1089_v14 = vrot.slane %v8355_v30, %v8375_v42 }
 0x1b5   : > { %v8514_v39 = vpop.permute.xlu1 %742  ;;  %v8516_v41 = vpop.permute.xlu0 %738 }
 0x1b6   : > { %14312 = vst [vmem:[#allocation15_spill] sm:$0xff] %v8514_v39  ;;  %14313 = vst [vmem:[#allocation16_spill] sm:$0xff] %v8516_v41 }
 0x1b7   : > { %1076 = vbcast.lane.b32.xlu1 %v1070_v43, 264  ;;  %1072 = vbcast.lane.b32.xlu0 %v1070_v43, 256 }
 0x1b9   : > { %v8520_v50 = vpop.permute.xlu1 %753  ;;  %v8522_v55 = vpop.permute.xlu0 %749 }
 0x1ba   : > { %14314 = vst [vmem:[#allocation17_spill] sm:$0xff] %v8520_v50  ;;  %14315 = vst [vmem:[#allocation18_spill] sm:$0xff] %v8522_v55 }
 0x1bb   : > { %1084 = vbcast.lane.b32.xlu1 %v1070_v43, 280  ;;  %1080 = vbcast.lane.b32.xlu0 %v1070_v43, 272  ;;  %v1108_v43 = vrot.slane %v8355_v30, %v8380_v46 }
 0x1bd   : > { %v8524_v19 = vpop.permute.xlu1 %761  ;;  %v8526_v25 = vpop.permute.xlu0 %757 }
 0x1be   : > { %14316 = vst [vmem:[#allocation19_spill] sm:$0xff] %v8524_v19  ;;  %14317 = vst [vmem:[#allocation20_spill] sm:$0xff] %v8526_v25 }
 0x1bf   : > { %1095 = vbcast.lane.b32.xlu1 %v1089_v14, 264  ;;  %1091 = vbcast.lane.b32.xlu0 %v1089_v14, 256 }
 0x1c1   : > { %v8530_v41 = vpop.permute.xlu1 %772  ;;  %v8532_v39 = vpop.permute.xlu0 %768 }
 0x1c2   : > { %14318 = vst [vmem:[#allocation21_spill] sm:$0xff] %v8530_v41  ;;  %14319 = vst [vmem:[#allocation22_spill] sm:$0xff] %v8532_v39 }
 0x1c3   : > { %1103 = vbcast.lane.b32.xlu1 %v1089_v14, 280  ;;  %1099 = vbcast.lane.b32.xlu0 %v1089_v14, 272  ;;  %v1127_v14 = vrot.slane %v8355_v30, %v8385_v48 }
 0x1c5   : > { %v8534_v50 = vpop.permute.xlu1 %780  ;;  %v8536_v55 = vpop.permute.xlu0 %776 }
 0x1c6   : > { %14320 = vst [vmem:[#allocation23_spill] sm:$0xff] %v8534_v50  ;;  %14321 = vst [vmem:[#allocation24_spill] sm:$0xff] %v8536_v55 }
 0x1c7   : > { %1114 = vbcast.lane.b32.xlu1 %v1108_v43, 264  ;;  %1110 = vbcast.lane.b32.xlu0 %v1108_v43, 256 }
 0x1c9   : > { %v8540_v25 = vpop.permute.xlu1 %791  ;;  %v8542_v19 = vpop.permute.xlu0 %787 }
 0x1ca   : > { %14322 = vst [vmem:[#allocation25_spill] sm:$0xff] %v8540_v25  ;;  %14323 = vst [vmem:[#allocation26_spill] sm:$0xff] %v8542_v19 }
 0x1cb   : > { %1122 = vbcast.lane.b32.xlu1 %v1108_v43, 280  ;;  %1118 = vbcast.lane.b32.xlu0 %v1108_v43, 272  ;;  %v1241_v43 = vrot.slane %v8351_v28, %v8375_v42 }
 0x1cd   : > { %v8544_v41 = vpop.permute.xlu1 %799  ;;  %v8546_v39 = vpop.permute.xlu0 %795 }
 0x1ce   : > { %14324 = vst [vmem:[#allocation27_spill] sm:$0xff] %v8544_v41  ;;  %14325 = vst [vmem:[#allocation28_spill] sm:$0xff] %v8546_v39 }
 0x1cf   : > { %1133 = vbcast.lane.b32.xlu1 %v1127_v14, 264  ;;  %1129 = vbcast.lane.b32.xlu0 %v1127_v14, 256 }
 0x1d1   : > { %v8550_v55 = vpop.permute.xlu1 %810  ;;  %v8552_v50 = vpop.permute.xlu0 %806 }
 0x1d2   : > { %14326 = vst [vmem:[#allocation29_spill] sm:$0xff] %v8550_v55  ;;  %14327 = vst [vmem:[#allocation30_spill] sm:$0xff] %v8552_v50 }
 0x1d3   : > { %1141 = vbcast.lane.b32.xlu1 %v1127_v14, 280  ;;  %1137 = vbcast.lane.b32.xlu0 %v1127_v14, 272  ;;  %v1260_v14 = vrot.slane %v8351_v28, %v8380_v46 }
 0x1d5   : > { %v8554_v25 = vpop.permute.xlu1 %818  ;;  %v8556_v19 = vpop.permute.xlu0 %814 }
 0x1d6   : > { %14328 = vst [vmem:[#allocation31_spill] sm:$0xff] %v8554_v25  ;;  %14329 = vst [vmem:[#allocation32_spill] sm:$0xff] %v8556_v19 }
 0x1d7   : > { %1247 = vbcast.lane.b32.xlu1 %v1241_v43, 264  ;;  %1243 = vbcast.lane.b32.xlu0 %v1241_v43, 256 }
 0x1d9   : > { %v8560_v39 = vpop.permute.xlu1 %829  ;;  %v8562_v30 = vpop.permute.xlu0 %825 }
 0x1da   : > { %14330 = vst [vmem:[#allocation33_spill] sm:$0xff] %v8560_v39  ;;  %14331 = vst [vmem:[#allocation34_spill] sm:$0xff] %v8562_v30 }
 0x1db   : > { %1255 = vbcast.lane.b32.xlu1 %v1241_v43, 280  ;;  %1251 = vbcast.lane.b32.xlu0 %v1241_v43, 272  ;;  %v1279_v43 = vrot.slane %v8351_v28, %v8385_v48 }
 0x1dd   : > { %v8564_v55 = vpop.permute.xlu1 %837  ;;  %v8566_v50 = vpop.permute.xlu0 %833 }
 0x1de   : > { %14332 = vst [vmem:[#allocation35_spill] sm:$0xff] %v8564_v55  ;;  %14333 = vst [vmem:[#allocation36_spill] sm:$0xff] %v8566_v50 }
 0x1df   : > { %1266 = vbcast.lane.b32.xlu1 %v1260_v14, 264  ;;  %1262 = vbcast.lane.b32.xlu0 %v1260_v14, 256 }
 0x1e1   : > { %v8570_v19 = vpop.permute.xlu1 %1152  ;;  %v8572_v25 = vpop.permute.xlu0 %1148 }
 0x1e2   : > { %14334 = vst [vmem:[#allocation37_spill] sm:$0xff] %v8570_v19  ;;  %14335 = vst [vmem:[#allocation38_spill] sm:$0xff] %v8572_v25  ;;  %v1298_v25 = vrot.slane %v8424_v4, %v8346_v24 }
 0x1e3   : > { %1274 = vbcast.lane.b32.xlu1 %v1260_v14, 280  ;;  %1270 = vbcast.lane.b32.xlu0 %v1260_v14, 272 }
 0x1e5   : > { %v8574_v39 = vpop.permute.xlu1 %1160  ;;  %v8576_v30 = vpop.permute.xlu0 %1156 }
 0x1e6   : > { %14336 = vst [vmem:[#allocation39_spill] sm:$0xff] %v8574_v39  ;;  %14337 = vst [vmem:[#allocation40_spill] sm:$0xff] %v8576_v30  ;;  %v8590_v39 = vpop.f32.mrb[6].mxu1 }
 0x1e7   : > { %1285 = vbcast.lane.b32.xlu1 %v1279_v43, 264  ;;  %1281 = vbcast.lane.b32.xlu0 %v1279_v43, 256  ;;  %v8592_v28 = vpop.f32.mrb[7].mxu1 }
 0x1e9   : > { %v8580_v50 = vpop.permute.xlu1 %1171  ;;  %v8582_v55 = vpop.permute.xlu0 %1167 }
 0x1ea   : > { %14338 = vst [vmem:[#allocation41_spill] sm:$0xff] %v8580_v50  ;;  %14339 = vst [vmem:[#allocation42_spill] sm:$0xff] %v8582_v55 }
 0x1eb   : > { %1293 = vbcast.lane.b32.xlu1 %v1279_v43, 280  ;;  %1289 = vbcast.lane.b32.xlu0 %v1279_v43, 272 }
 0x1ed   : > { %v8586_v19 = vpop.permute.xlu1 %1179  ;;  %v8588_v14 = vpop.permute.xlu0 %1175 }
 0x1ee   : > { %14340 = vst [vmem:[#allocation43_spill] sm:$0xff] %v8586_v19  ;;  %14341 = vst [vmem:[#allocation44_spill] sm:$0xff] %v8588_v14  ;;  %v1317_v19 = vrot.slane %v8424_v4, %v8353_v29 }
 0x1ef   : > { %1304 = vbcast.lane.b32.xlu1 %v1298_v25, 264  ;;  %1300 = vbcast.lane.b32.xlu0 %v1298_v25, 256 }
 0x1f1   : > { %v8594_v30 = vpop.permute.xlu1 %1190  ;;  %v8596_v50 = vpop.permute.xlu0 %1186 }
 0x1f2   : > { %14342 = vst [vmem:[#allocation45_spill] sm:$0xff] %v8594_v30  ;;  %14343 = vst [vmem:[#allocation46_spill] sm:$0xff] %v8596_v50 }
 0x1f3   : > { %1312 = vbcast.lane.b32.xlu1 %v1298_v25, 280  ;;  %1308 = vbcast.lane.b32.xlu0 %v1298_v25, 272  ;;  %v1336_v25 = vrot.slane %v8424_v4, %v8366_v36 }
 0x1f5   : > { %v8598_v43 = vpop.permute.xlu1 %1198  ;;  %v8600_v55 = vpop.permute.xlu0 %1194 }
 0x1f6   : > { %14344 = vst [vmem:[#allocation47_spill] sm:$0xff] %v8598_v43  ;;  %14345 = vst [vmem:[#allocation48_spill] sm:$0xff] %v8600_v55 }
 0x1f7   : > { %1323 = vbcast.lane.b32.xlu1 %v1317_v19, 264  ;;  %1319 = vbcast.lane.b32.xlu0 %v1317_v19, 256 }
 0x1f9   : > { %v8604_v14 = vpop.permute.xlu1 %1209  ;;  %v8606_v41 = vpop.permute.xlu0 %1205 }
 0x1fa   : > { %14346 = vst [vmem:[#allocation49_spill] sm:$0xff] %v8604_v14  ;;  %14347 = vst [vmem:[#allocation50_spill] sm:$0xff] %v8606_v41 }
 0x1fb   : > { %1331 = vbcast.lane.b32.xlu1 %v1317_v19, 280  ;;  %1327 = vbcast.lane.b32.xlu0 %v1317_v19, 272  ;;  %v1355_v19 = vrot.slane %v8424_v4, %v8369_v38 }
 0x1fd   : > { %v8608_v30 = vpop.permute.xlu1 %1217  ;;  %v8610_v50 = vpop.permute.xlu0 %1213 }
 0x1fe   : > { %14348 = vst [vmem:[#allocation51_spill] sm:$0xff] %v8608_v30  ;;  %14349 = vst [vmem:[#allocation52_spill] sm:$0xff] %v8610_v50 }
 0x1ff   : > { %1342 = vbcast.lane.b32.xlu1 %v1336_v25, 264  ;;  %1338 = vbcast.lane.b32.xlu0 %v1336_v25, 256 }
 0x201   : > { %v8614_v55 = vpop.permute.xlu1 %1228  ;;  %v8616_v43 = vpop.permute.xlu0 %1224 }
 0x202   : > { %14350 = vst [vmem:[#allocation53_spill] sm:$0xff] %v8614_v55  ;;  %14351 = vst [vmem:[#allocation54_spill] sm:$0xff] %v8616_v43 }
 0x203   : > { %1350 = vbcast.lane.b32.xlu1 %v1336_v25, 280  ;;  %1346 = vbcast.lane.b32.xlu0 %v1336_v25, 272 }
 0x205   : > { %v8618_v14 = vpop.permute.xlu1 %1236  ;;  %v8620_v41 = vpop.permute.xlu0 %1232 }
 0x206   : > { %14352 = vst [vmem:[#allocation55_spill] sm:$0xff] %v8618_v14  ;;  %14353 = vst [vmem:[#allocation56_spill] sm:$0xff] %v8620_v41  ;;  %v1374_v41 = vrot.slane %v8424_v4, %v8372_v40 }
 0x207   : > { %1361 = vbcast.lane.b32.xlu1 %v1355_v19, 264  ;;  %1357 = vbcast.lane.b32.xlu0 %v1355_v19, 256 }
 0x209   : > { %v8624_v50 = vpop.permute.xlu1 %1000  ;;  %v8626_v30 = vpop.permute.xlu0 %996 }
 0x20a   : > { %14354 = vst [vmem:[#allocation57_spill] sm:$0xff] %v8624_v50  ;;  %14355 = vst [vmem:[#allocation58_spill] sm:$0xff] %v8626_v30 }
 0x20b   : > { %1369 = vbcast.lane.b32.xlu1 %v1355_v19, 280  ;;  %1365 = vbcast.lane.b32.xlu0 %v1355_v19, 272  ;;  %v1393_v19 = vrot.slane %v8424_v4, %v8375_v42 }
 0x20d   : > { %v8628_v43 = vpop.permute.xlu1 %1008  ;;  %v8630_v25 = vpop.permute.xlu0 %1004 }
 0x20e   : > { %14356 = vst [vmem:[#allocation59_spill] sm:$0xff] %v8628_v43  ;;  %14357 = vst [vmem:[#allocation60_spill] sm:$0xff] %v8630_v25  ;;  %v483_v25 = vld [vmem:[%s8317_s20 + $0x50] sm:$0xff]  ;;  %v484_v43 = vld [vmem:[%s8317_s20 + $0x58] sm:$0xff] }
 0x20f   : > { %1380 = vbcast.lane.b32.xlu1 %v1374_v41, 264  ;;  %1376 = vbcast.lane.b32.xlu0 %v1374_v41, 256 }
 0x210   : > { %7545 = vmatprep.mubr.msk.f32.mxu1 %vm371_vm0, %v483_v25 }
 0x211   : > { %v8634_v14 = vpop.permute.xlu1 %1019  ;;  %v8636_v55 = vpop.permute.xlu0 %1015  ;;  %7546 = vmatmul.mubr.msk.f32.gmra.mrb[10].mxu1 %vm371_vm0, %v484_v43 }
 0x212   : > { %14358 = vst [vmem:[#allocation61_spill] sm:$0xff] %v8636_v55 }
 0x213   : > { %1388 = vbcast.lane.b32.xlu1 %v1374_v41, 280  ;;  %1384 = vbcast.lane.b32.xlu0 %v1374_v41, 272 }
 0x215   : > { %v8638_v30 = vpop.permute.xlu1 %1027  ;;  %v8640_v50 = vpop.permute.xlu0 %1023 }
 0x216   : > { %14359 = vst [vmem:[#allocation62_spill] sm:$0xff] %v8638_v30  ;;  %14360 = vst [vmem:[#allocation63_spill] sm:$0xff] %v8640_v50  ;;  %v1412_v30 = vrot.slane %v8424_v4, %v8380_v46 }
 0x217   : > { %1399 = vbcast.lane.b32.xlu1 %v1393_v19, 264  ;;  %1395 = vbcast.lane.b32.xlu0 %v1393_v19, 256 }
 0x219   : > { %v8646_v9 = vpop.permute.xlu1 %1038  ;;  %v8648_v0 = vpop.permute.xlu0 %1034 }
 0x21a   : > { %14361 = vst [vmem:[#allocation64_spill] sm:$0xff] %v8646_v9  ;;  %14362 = vst [vmem:[#allocation65_spill] sm:$0xff] %v8648_v0 }
 0x21b   : > { %1407 = vbcast.lane.b32.xlu1 %v1393_v19, 280  ;;  %1403 = vbcast.lane.b32.xlu0 %v1393_v19, 272  ;;  %v1431_v19 = vrot.slane %v8424_v4, %v8385_v48 }
 0x21d   : > { %v8652_v41 = vpop.permute.xlu1 %1046  ;;  %v8654_v50 = vpop.permute.xlu0 %1042 }
 0x21e   : > { %14363 = vst [vmem:[#allocation66_spill] sm:$0xff] %v8652_v41  ;;  %14364 = vst [vmem:[#allocation67_spill] sm:$0xff] %v8654_v50 }
 0x21f   : > { %1418 = vbcast.lane.b32.xlu1 %v1412_v30, 264  ;;  %1414 = vbcast.lane.b32.xlu0 %v1412_v30, 256 }
 0x221   : > { %v8658_v55 = vpop.permute.xlu1 %1057  ;;  %v8660_v9 = vpop.permute.xlu0 %1053 }
 0x222   : > { %14365 = vst [vmem:[#allocation68_spill] sm:$0xff] %v8658_v55  ;;  %14366 = vst [vmem:[#allocation69_spill] sm:$0xff] %v8660_v9 }
 0x223   : > { %1426 = vbcast.lane.b32.xlu1 %v1412_v30, 280  ;;  %1422 = vbcast.lane.b32.xlu0 %v1412_v30, 272  ;;  %v1450_v30 = vrot.slane %v8418_v1, %v8346_v24 }
 0x225   : > { %v8662_v25 = vpop.permute.xlu1 %1065  ;;  %v8664_v43 = vpop.permute.xlu0 %1061 }
 0x226   : > { %14367 = vst [vmem:[#allocation70_spill] sm:$0xff] %v8662_v25  ;;  %14368 = vst [vmem:[#allocation71_spill] sm:$0xff] %v8664_v43 }
 0x227   : > { %1437 = vbcast.lane.b32.xlu1 %v1431_v19, 264  ;;  %1433 = vbcast.lane.b32.xlu0 %v1431_v19, 256 }
 0x229   : > { %v8668_v50 = vpop.permute.xlu1 %1076  ;;  %v8670_v41 = vpop.permute.xlu0 %1072 }
 0x22a   : > { %14369 = vst [vmem:[#allocation72_spill] sm:$0xff] %v8668_v50  ;;  %14370 = vst [vmem:[#allocation73_spill] sm:$0xff] %v8670_v41 }
 0x22b   : > { %1445 = vbcast.lane.b32.xlu1 %v1431_v19, 280  ;;  %1441 = vbcast.lane.b32.xlu0 %v1431_v19, 272  ;;  %v1469_v19 = vrot.slane %v8418_v1, %v8353_v29 }
 0x22d   : > { %v8672_v55 = vpop.permute.xlu1 %1084  ;;  %v8674_v9 = vpop.permute.xlu0 %1080 }
 0x22e   : > { %14371 = vst [vmem:[#allocation74_spill] sm:$0xff] %v8672_v55  ;;  %14372 = vst [vmem:[#allocation75_spill] sm:$0xff] %v8674_v9 }
 0x22f   : > { %1456 = vbcast.lane.b32.xlu1 %v1450_v30, 264  ;;  %1452 = vbcast.lane.b32.xlu0 %v1450_v30, 256 }
 0x231   : > { %v8678_v43 = vpop.permute.xlu1 %1095  ;;  %v8680_v4 = vpop.permute.xlu0 %1091 }
 0x232   : > { %14373 = vst [vmem:[#allocation76_spill] sm:$0xff] %v8678_v43  ;;  %14374 = vst [vmem:[#allocation77_spill] sm:$0xff] %v8680_v4 }
 0x233   : > { %1464 = vbcast.lane.b32.xlu1 %v1450_v30, 280  ;;  %1460 = vbcast.lane.b32.xlu0 %v1450_v30, 272  ;;  %v1488_v30 = vrot.slane %v8418_v1, %v8366_v36 }
 0x235   : > { %v8682_v50 = vpop.permute.xlu1 %1103  ;;  %v8684_v41 = vpop.permute.xlu0 %1099 }
 0x236   : > { %14375 = vst [vmem:[#allocation78_spill] sm:$0xff] %v8682_v50  ;;  %14376 = vst [vmem:[#allocation79_spill] sm:$0xff] %v8684_v41 }
 0x237   : > { %1475 = vbcast.lane.b32.xlu1 %v1469_v19, 264  ;;  %1471 = vbcast.lane.b32.xlu0 %v1469_v19, 256 }
 0x239   : > { %v8688_v9 = vpop.permute.xlu1 %1114  ;;  %v8690_v55 = vpop.permute.xlu0 %1110 }
 0x23a   : > { %14377 = vst [vmem:[#allocation80_spill] sm:$0xff] %v8688_v9  ;;  %14378 = vst [vmem:[#allocation81_spill] sm:$0xff] %v8690_v55 }
 0x23b   : > { %1483 = vbcast.lane.b32.xlu1 %v1469_v19, 280  ;;  %1479 = vbcast.lane.b32.xlu0 %v1469_v19, 272  ;;  %v1507_v19 = vrot.slane %v8418_v1, %v8369_v38 }
 0x23d   : > { %v8692_v43 = vpop.permute.xlu1 %1122  ;;  %v8694_v4 = vpop.permute.xlu0 %1118 }
 0x23e   : > { %14379 = vst [vmem:[#allocation82_spill] sm:$0xff] %v8692_v43  ;;  %14380 = vst [vmem:[#allocation83_spill] sm:$0xff] %v8694_v4 }
 0x23f   : > { %1494 = vbcast.lane.b32.xlu1 %v1488_v30, 264  ;;  %1490 = vbcast.lane.b32.xlu0 %v1488_v30, 256 }
 0x241   : > { %v8698_v41 = vpop.permute.xlu1 %1133  ;;  %v8700_v50 = vpop.permute.xlu0 %1129 }
 0x242   : > { %14381 = vst [vmem:[#allocation84_spill] sm:$0xff] %v8698_v41  ;;  %14382 = vst [vmem:[#allocation85_spill] sm:$0xff] %v8700_v50 }
 0x243   : > { %1502 = vbcast.lane.b32.xlu1 %v1488_v30, 280  ;;  %1498 = vbcast.lane.b32.xlu0 %v1488_v30, 272  ;;  %v1526_v30 = vrot.slane %v8418_v1, %v8372_v40 }
 0x245   : > { %v8702_v9 = vpop.permute.xlu1 %1141  ;;  %v8704_v55 = vpop.permute.xlu0 %1137 }
 0x246   : > { %14383 = vst [vmem:[#allocation86_spill] sm:$0xff] %v8702_v9  ;;  %14384 = vst [vmem:[#allocation87_spill] sm:$0xff] %v8704_v55 }
 0x247   : > { %1513 = vbcast.lane.b32.xlu1 %v1507_v19, 264  ;;  %1509 = vbcast.lane.b32.xlu0 %v1507_v19, 256 }
 0x249   : > { %v8708_v4 = vpop.permute.xlu1 %1247  ;;  %v8710_v43 = vpop.permute.xlu0 %1243 }
 0x24a   : > { %14385 = vst [vmem:[#allocation88_spill] sm:$0xff] %v8708_v4  ;;  %14386 = vst [vmem:[#allocation89_spill] sm:$0xff] %v8710_v43 }
 0x24b   : > { %1521 = vbcast.lane.b32.xlu1 %v1507_v19, 280  ;;  %1517 = vbcast.lane.b32.xlu0 %v1507_v19, 272  ;;  %v1545_v19 = vrot.slane %v8418_v1, %v8375_v42 }
 0x24d   : > { %v8712_v41 = vpop.permute.xlu1 %1255  ;;  %v8714_v50 = vpop.permute.xlu0 %1251 }
 0x24e   : > { %14387 = vst [vmem:[#allocation90_spill] sm:$0xff] %v8712_v41  ;;  %14388 = vst [vmem:[#allocation91_spill] sm:$0xff] %v8714_v50 }
 0x24f   : > { %1532 = vbcast.lane.b32.xlu1 %v1526_v30, 264  ;;  %1528 = vbcast.lane.b32.xlu0 %v1526_v30, 256 }
 0x251   : > { %v8718_v55 = vpop.permute.xlu1 %1266  ;;  %v8720_v9 = vpop.permute.xlu0 %1262 }
 0x252   : > { %14389 = vst [vmem:[#allocation92_spill] sm:$0xff] %v8718_v55  ;;  %14390 = vst [vmem:[#allocation93_spill] sm:$0xff] %v8720_v9 }
 0x253   : > { %1540 = vbcast.lane.b32.xlu1 %v1526_v30, 280  ;;  %1536 = vbcast.lane.b32.xlu0 %v1526_v30, 272  ;;  %v1564_v30 = vrot.slane %v8418_v1, %v8380_v46 }
 0x255   : > { %v8722_v4 = vpop.permute.xlu1 %1274  ;;  %v8724_v43 = vpop.permute.xlu0 %1270 }
 0x256   : > { %14391 = vst [vmem:[#allocation94_spill] sm:$0xff] %v8722_v4  ;;  %14392 = vst [vmem:[#allocation95_spill] sm:$0xff] %v8724_v43 }
 0x257   : > { %1551 = vbcast.lane.b32.xlu1 %v1545_v19, 264  ;;  %1547 = vbcast.lane.b32.xlu0 %v1545_v19, 256 }
 0x259   : > { %v8728_v50 = vpop.permute.xlu1 %1285  ;;  %v8730_v41 = vpop.permute.xlu0 %1281 }
 0x25a   : > { %14393 = vst [vmem:[#allocation96_spill] sm:$0xff] %v8728_v50  ;;  %14394 = vst [vmem:[#allocation97_spill] sm:$0xff] %v8730_v41 }
 0x25b   : > { %1559 = vbcast.lane.b32.xlu1 %v1545_v19, 280  ;;  %1555 = vbcast.lane.b32.xlu0 %v1545_v19, 272 }
 0x25d   : > { %v8732_v55 = vpop.permute.xlu1 %1293  ;;  %v8734_v9 = vpop.permute.xlu0 %1289 }
 0x25e   : > { %14395 = vst [vmem:[#allocation98_spill] sm:$0xff] %v8732_v55  ;;  %14396 = vst [vmem:[#allocation99_spill] sm:$0xff] %v8734_v9  ;;  %v1583_v9 = vrot.slane %v8418_v1, %v8385_v48  ;;  %v8761_v1 = vpop.f32.mrb[8].mxu1 }
 0x25f   : > { %1570 = vbcast.lane.b32.xlu1 %v1564_v30, 264  ;;  %1566 = vbcast.lane.b32.xlu0 %v1564_v30, 256 }
 0x261   : > { %v8738_v43 = vpop.permute.xlu1 %1304  ;;  %v8740_v4 = vpop.permute.xlu0 %1300 }
 0x262   : > { %14397 = vst [vmem:[#allocation100_spill] sm:$0xff] %v8738_v43  ;;  %14398 = vst [vmem:[#allocation101_spill] sm:$0xff] %v8740_v4  ;;  %v1602_v4 = vrot.slane %v8592_v28, %v8346_v24  ;;  %v485_v43 = vld [vmem:[%s8317_s20 + $0x60] sm:$0xff] }
 0x263   : > { %1578 = vbcast.lane.b32.xlu1 %v1564_v30, 280  ;;  %1574 = vbcast.lane.b32.xlu0 %v1564_v30, 272  ;;  %v486_v30 = vld [vmem:[%s8317_s20 + $0x68] sm:$0xff] }
 0x264   : > { %7548 = vmatprep.mubr.msk.f32.mxu1 %vm371_vm0, %v485_v43  ;;  %v1621_v43 = vrot.slane %v8592_v28, %v8353_v29 }
 0x265   : > { %v8742_v41 = vpop.permute.xlu1 %1312  ;;  %v8744_v19 = vpop.permute.xlu0 %1308  ;;  %7549 = vmatmul.mubr.msk.f32.gmra.mrb[12].mxu1 %vm371_vm0, %v486_v30 }
 0x266   : > { %14399 = vst [vmem:[#allocation102_spill] sm:$0xff] %v8742_v41  ;;  %14400 = vst [vmem:[#allocation103_spill] sm:$0xff] %v8744_v19 }
 0x267   : > { %1589 = vbcast.lane.b32.xlu1 %v1583_v9, 264  ;;  %1585 = vbcast.lane.b32.xlu0 %v1583_v9, 256 }
 0x269   : > { %v8748_v55 = vpop.permute.xlu1 %1323  ;;  %v8750_v50 = vpop.permute.xlu0 %1319 }
 0x26a   : > { %14401 = vst [vmem:[#allocation104_spill] sm:$0xff] %v8748_v55  ;;  %14402 = vst [vmem:[#allocation105_spill] sm:$0xff] %v8750_v50  ;;  %v8764_v50 = vpop.f32.mrb[9].mxu1 }
 0x26b   : > { %1597 = vbcast.lane.b32.xlu1 %v1583_v9, 280  ;;  %1593 = vbcast.lane.b32.xlu0 %v1583_v9, 272 }
 0x26d   : > { %v8756_v25 = vpop.permute.xlu1 %1331  ;;  %v8758_v41 = vpop.permute.xlu0 %1327 }
 0x26e   : > { %14403 = vst [vmem:[#allocation106_spill] sm:$0xff] %v8756_v25  ;;  %14404 = vst [vmem:[#allocation107_spill] sm:$0xff] %v8758_v41 }
 0x26f   : > { %1608 = vbcast.lane.b32.xlu1 %v1602_v4, 264  ;;  %1604 = vbcast.lane.b32.xlu0 %v1602_v4, 256 }
 0x271   : > { %v8766_v9 = vpop.permute.xlu1 %1342  ;;  %v8768_v55 = vpop.permute.xlu0 %1338 }
 0x272   : > { %14405 = vst [vmem:[#allocation108_spill] sm:$0xff] %v8766_v9  ;;  %14406 = vst [vmem:[#allocation109_spill] sm:$0xff] %v8768_v55 }
 0x273   : > { %1616 = vbcast.lane.b32.xlu1 %v1602_v4, 280  ;;  %1612 = vbcast.lane.b32.xlu0 %v1602_v4, 272  ;;  %v1640_v4 = vrot.slane %v8592_v28, %v8366_v36 }
 0x275   : > { %v8770_v19 = vpop.permute.xlu1 %1350  ;;  %v8772_v25 = vpop.permute.xlu0 %1346 }
 0x276   : > { %14407 = vst [vmem:[#allocation110_spill] sm:$0xff] %v8770_v19  ;;  %14408 = vst [vmem:[#allocation111_spill] sm:$0xff] %v8772_v25 }
 0x277   : > { %1627 = vbcast.lane.b32.xlu1 %v1621_v43, 264  ;;  %1623 = vbcast.lane.b32.xlu0 %v1621_v43, 256 }
 0x279   : > { %v8776_v30 = vpop.permute.xlu1 %1361  ;;  %v8778_v41 = vpop.permute.xlu0 %1357 }
 0x27a   : > { %14409 = vst [vmem:[#allocation112_spill] sm:$0xff] %v8776_v30  ;;  %14410 = vst [vmem:[#allocation113_spill] sm:$0xff] %v8778_v41 }
 0x27b   : > { %1635 = vbcast.lane.b32.xlu1 %v1621_v43, 280  ;;  %1631 = vbcast.lane.b32.xlu0 %v1621_v43, 272  ;;  %v1659_v43 = vrot.slane %v8592_v28, %v8369_v38 }
 0x27d   : > { %v8780_v9 = vpop.permute.xlu1 %1369  ;;  %v8782_v55 = vpop.permute.xlu0 %1365 }
 0x27e   : > { %14411 = vst [vmem:[#allocation114_spill] sm:$0xff] %v8780_v9  ;;  %14412 = vst [vmem:[#allocation115_spill] sm:$0xff] %v8782_v55 }
 0x27f   : > { %1646 = vbcast.lane.b32.xlu1 %v1640_v4, 264  ;;  %1642 = vbcast.lane.b32.xlu0 %v1640_v4, 256 }
 0x281   : > { %v8786_v25 = vpop.permute.xlu1 %1380  ;;  %v8788_v19 = vpop.permute.xlu0 %1376 }
 0x282   : > { %14413 = vst [vmem:[#allocation116_spill] sm:$0xff] %v8786_v25  ;;  %14414 = vst [vmem:[#allocation117_spill] sm:$0xff] %v8788_v19 }
 0x283   : > { %1654 = vbcast.lane.b32.xlu1 %v1640_v4, 280  ;;  %1650 = vbcast.lane.b32.xlu0 %v1640_v4, 272  ;;  %v1678_v4 = vrot.slane %v8592_v28, %v8372_v40 }
 0x285   : > { %v8790_v30 = vpop.permute.xlu1 %1388  ;;  %v8792_v41 = vpop.permute.xlu0 %1384 }
 0x286   : > { %14415 = vst [vmem:[#allocation118_spill] sm:$0xff] %v8790_v30  ;;  %14416 = vst [vmem:[#allocation119_spill] sm:$0xff] %v8792_v41 }
 0x287   : > { %1665 = vbcast.lane.b32.xlu1 %v1659_v43, 264  ;;  %1661 = vbcast.lane.b32.xlu0 %v1659_v43, 256 }
 0x289   : > { %v8796_v55 = vpop.permute.xlu1 %1399  ;;  %v8798_v9 = vpop.permute.xlu0 %1395 }
 0x28a   : > { %14417 = vst [vmem:[#allocation120_spill] sm:$0xff] %v8796_v55  ;;  %14418 = vst [vmem:[#allocation121_spill] sm:$0xff] %v8798_v9 }
 0x28b   : > { %1673 = vbcast.lane.b32.xlu1 %v1659_v43, 280  ;;  %1669 = vbcast.lane.b32.xlu0 %v1659_v43, 272  ;;  %v1697_v43 = vrot.slane %v8592_v28, %v8375_v42 }
 0x28d   : > { %v8800_v25 = vpop.permute.xlu1 %1407  ;;  %v8802_v19 = vpop.permute.xlu0 %1403 }
 0x28e   : > { %14419 = vst [vmem:[#allocation122_spill] sm:$0xff] %v8800_v25  ;;  %14420 = vst [vmem:[#allocation123_spill] sm:$0xff] %v8802_v19 }
 0x28f   : > { %1684 = vbcast.lane.b32.xlu1 %v1678_v4, 264  ;;  %1680 = vbcast.lane.b32.xlu0 %v1678_v4, 256 }
 0x291   : > { %v8806_v41 = vpop.permute.xlu1 %1418  ;;  %v8808_v30 = vpop.permute.xlu0 %1414 }
 0x292   : > { %14421 = vst [vmem:[#allocation124_spill] sm:$0xff] %v8806_v41  ;;  %14422 = vst [vmem:[#allocation125_spill] sm:$0xff] %v8808_v30 }
 0x293   : > { %1692 = vbcast.lane.b32.xlu1 %v1678_v4, 280  ;;  %1688 = vbcast.lane.b32.xlu0 %v1678_v4, 272  ;;  %v1716_v4 = vrot.slane %v8592_v28, %v8380_v46 }
 0x295   : > { %v8810_v55 = vpop.permute.xlu1 %1426  ;;  %v8812_v9 = vpop.permute.xlu0 %1422 }
 0x296   : > { %14423 = vst [vmem:[#allocation126_spill] sm:$0xff] %v8810_v55  ;;  %14424 = vst [vmem:[#allocation127_spill] sm:$0xff] %v8812_v9 }
 0x297   : > { %1703 = vbcast.lane.b32.xlu1 %v1697_v43, 264  ;;  %1699 = vbcast.lane.b32.xlu0 %v1697_v43, 256 }
 0x299   : > { %v8816_v19 = vpop.permute.xlu1 %1437  ;;  %v8818_v25 = vpop.permute.xlu0 %1433 }
 0x29a   : > { %14425 = vst [vmem:[#allocation128_spill] sm:$0xff] %v8816_v19  ;;  %14426 = vst [vmem:[#allocation129_spill] sm:$0xff] %v8818_v25 }
 0x29b   : > { %1711 = vbcast.lane.b32.xlu1 %v1697_v43, 280  ;;  %1707 = vbcast.lane.b32.xlu0 %v1697_v43, 272  ;;  %v1735_v43 = vrot.slane %v8592_v28, %v8385_v48 }
 0x29d   : > { %v8820_v41 = vpop.permute.xlu1 %1445  ;;  %v8822_v30 = vpop.permute.xlu0 %1441 }
 0x29e   : > { %14427 = vst [vmem:[#allocation130_spill] sm:$0xff] %v8820_v41  ;;  %14428 = vst [vmem:[#allocation131_spill] sm:$0xff] %v8822_v30 }
 0x29f   : > { %1722 = vbcast.lane.b32.xlu1 %v1716_v4, 264  ;;  %1718 = vbcast.lane.b32.xlu0 %v1716_v4, 256 }
 0x2a1   : > { %v8826_v9 = vpop.permute.xlu1 %1456  ;;  %v8828_v55 = vpop.permute.xlu0 %1452 }
 0x2a2   : > { %14429 = vst [vmem:[#allocation132_spill] sm:$0xff] %v8826_v9  ;;  %14430 = vst [vmem:[#allocation133_spill] sm:$0xff] %v8828_v55 }
 0x2a3   : > { %1730 = vbcast.lane.b32.xlu1 %v1716_v4, 280  ;;  %1726 = vbcast.lane.b32.xlu0 %v1716_v4, 272  ;;  %v1754_v4 = vrot.slane %v8590_v39, %v8346_v24 }
 0x2a5   : > { %v8830_v19 = vpop.permute.xlu1 %1464  ;;  %v8832_v25 = vpop.permute.xlu0 %1460 }
 0x2a6   : > { %14431 = vst [vmem:[#allocation134_spill] sm:$0xff] %v8830_v19  ;;  %14432 = vst [vmem:[#allocation135_spill] sm:$0xff] %v8832_v25 }
 0x2a7   : > { %1741 = vbcast.lane.b32.xlu1 %v1735_v43, 264  ;;  %1737 = vbcast.lane.b32.xlu0 %v1735_v43, 256 }
 0x2a9   : > { %v8836_v30 = vpop.permute.xlu1 %1475  ;;  %v8838_v41 = vpop.permute.xlu0 %1471 }
 0x2aa   : > { %14433 = vst [vmem:[#allocation136_spill] sm:$0xff] %v8836_v30  ;;  %14434 = vst [vmem:[#allocation137_spill] sm:$0xff] %v8838_v41 }
 0x2ab   : > { %1749 = vbcast.lane.b32.xlu1 %v1735_v43, 280  ;;  %1745 = vbcast.lane.b32.xlu0 %v1735_v43, 272  ;;  %v1773_v43 = vrot.slane %v8590_v39, %v8353_v29 }
 0x2ad   : > { %v8840_v9 = vpop.permute.xlu1 %1483  ;;  %v8842_v55 = vpop.permute.xlu0 %1479 }
 0x2ae   : > { %14435 = vst [vmem:[#allocation138_spill] sm:$0xff] %v8840_v9  ;;  %14436 = vst [vmem:[#allocation139_spill] sm:$0xff] %v8842_v55 }
 0x2af   : > { %1760 = vbcast.lane.b32.xlu1 %v1754_v4, 264  ;;  %1756 = vbcast.lane.b32.xlu0 %v1754_v4, 256 }
 0x2b1   : > { %v8846_v25 = vpop.permute.xlu1 %1494  ;;  %v8848_v28 = vpop.permute.xlu0 %1490 }
 0x2b2   : > { %14437 = vst [vmem:[#allocation140_spill] sm:$0xff] %v8846_v25  ;;  %14438 = vst [vmem:[#allocation141_spill] sm:$0xff] %v8848_v28 }
 0x2b3   : > { %1768 = vbcast.lane.b32.xlu1 %v1754_v4, 280  ;;  %1764 = vbcast.lane.b32.xlu0 %v1754_v4, 272  ;;  %v1792_v4 = vrot.slane %v8590_v39, %v8366_v36 }
 0x2b5   : > { %v8850_v30 = vpop.permute.xlu1 %1502  ;;  %v8852_v41 = vpop.permute.xlu0 %1498 }
 0x2b6   : > { %14439 = vst [vmem:[#allocation142_spill] sm:$0xff] %v8850_v30  ;;  %14440 = vst [vmem:[#allocation143_spill] sm:$0xff] %v8852_v41 }
 0x2b7   : > { %1779 = vbcast.lane.b32.xlu1 %v1773_v43, 264  ;;  %1775 = vbcast.lane.b32.xlu0 %v1773_v43, 256 }
 0x2b9   : > { %v8856_v55 = vpop.permute.xlu1 %1513  ;;  %v8858_v9 = vpop.permute.xlu0 %1509 }
 0x2ba   : > { %14441 = vst [vmem:[#allocation144_spill] sm:$0xff] %v8856_v55  ;;  %14442 = vst [vmem:[#allocation145_spill] sm:$0xff] %v8858_v9 }
 0x2bb   : > { %1787 = vbcast.lane.b32.xlu1 %v1773_v43, 280  ;;  %1783 = vbcast.lane.b32.xlu0 %v1773_v43, 272 }
 0x2bd   : > { %v8860_v25 = vpop.permute.xlu1 %1521  ;;  %v8862_v28 = vpop.permute.xlu0 %1517 }
 0x2be   : > { %14443 = vst [vmem:[#allocation146_spill] sm:$0xff] %v8860_v25  ;;  %14444 = vst [vmem:[#allocation147_spill] sm:$0xff] %v8862_v28  ;;  %v1811_v28 = vrot.slane %v8590_v39, %v8369_v38 }
 0x2bf   : > { %1798 = vbcast.lane.b32.xlu1 %v1792_v4, 264  ;;  %1794 = vbcast.lane.b32.xlu0 %v1792_v4, 256 }
 0x2c1   : > { %v8866_v41 = vpop.permute.xlu1 %1532  ;;  %v8868_v30 = vpop.permute.xlu0 %1528 }
 0x2c2   : > { %14445 = vst [vmem:[#allocation148_spill] sm:$0xff] %v8866_v41  ;;  %14446 = vst [vmem:[#allocation149_spill] sm:$0xff] %v8868_v30 }
 0x2c3   : > { %1806 = vbcast.lane.b32.xlu1 %v1792_v4, 280  ;;  %1802 = vbcast.lane.b32.xlu0 %v1792_v4, 272  ;;  %v1830_v4 = vrot.slane %v8590_v39, %v8372_v40 }
 0x2c5   : > { %v8870_v9 = vpop.permute.xlu1 %1540  ;;  %v8872_v43 = vpop.permute.xlu0 %1536 }
 0x2c6   : > { %14447 = vst [vmem:[#allocation150_spill] sm:$0xff] %v8870_v9  ;;  %14448 = vst [vmem:[#allocation151_spill] sm:$0xff] %v8872_v43  ;;  %v487_v43 = vld [vmem:[%s8317_s20 + $0x70] sm:$0xff]  ;;  %v488_v9 = vld [vmem:[%s8317_s20 + $0x78] sm:$0xff] }
 0x2c7   : > { %1817 = vbcast.lane.b32.xlu1 %v1811_v28, 264  ;;  %1813 = vbcast.lane.b32.xlu0 %v1811_v28, 256 }
 0x2c8   : > { %7551 = vmatprep.mubr.msk.f32.mxu1 %vm371_vm0, %v487_v43 }
 0x2c9   : > { %v8876_v25 = vpop.permute.xlu1 %1551  ;;  %v8878_v55 = vpop.permute.xlu0 %1547  ;;  %7552 = vmatmul.mubr.msk.f32.gmra.mrb[14].mxu1 %vm371_vm0, %v488_v9 }
 0x2ca   : > { %14449 = vst [vmem:[#allocation152_spill] sm:$0xff] %v8878_v55 }
 0x2cb   : > { %1825 = vbcast.lane.b32.xlu1 %v1811_v28, 280  ;;  %1821 = vbcast.lane.b32.xlu0 %v1811_v28, 272 }
 0x2cd   : > { %v8880_v30 = vpop.permute.xlu1 %1559  ;;  %v8882_v41 = vpop.permute.xlu0 %1555 }
 0x2ce   : > { %14450 = vst [vmem:[#allocation153_spill] sm:$0xff] %v8880_v30  ;;  %14451 = vst [vmem:[#allocation154_spill] sm:$0xff] %v8882_v41  ;;  %v1849_v30 = vrot.slane %v8590_v39, %v8375_v42 }
 0x2cf   : > { %1836 = vbcast.lane.b32.xlu1 %v1830_v4, 264  ;;  %1832 = vbcast.lane.b32.xlu0 %v1830_v4, 256 }
 0x2d1   : > { %v8888_v19 = vpop.permute.xlu1 %1570  ;;  %v8890_v0 = vpop.permute.xlu0 %1566 }
 0x2d2   : > { %14452 = vst [vmem:[#allocation155_spill] sm:$0xff] %v8888_v19  ;;  %14453 = vst [vmem:[#allocation156_spill] sm:$0xff] %v8890_v0 }
 0x2d3   : > { %1844 = vbcast.lane.b32.xlu1 %v1830_v4, 280  ;;  %1840 = vbcast.lane.b32.xlu0 %v1830_v4, 272  ;;  %v1868_v4 = vrot.slane %v8590_v39, %v8380_v46 }
 0x2d5   : > { %v8894_v28 = vpop.permute.xlu1 %1578  ;;  %v8896_v41 = vpop.permute.xlu0 %1574 }
 0x2d6   : > { %14454 = vst [vmem:[#allocation157_spill] sm:$0xff] %v8894_v28  ;;  %14455 = vst [vmem:[#allocation158_spill] sm:$0xff] %v8896_v41 }
 0x2d7   : > { %1855 = vbcast.lane.b32.xlu1 %v1849_v30, 264  ;;  %1851 = vbcast.lane.b32.xlu0 %v1849_v30, 256 }
 0x2d9   : > { %v8900_v55 = vpop.permute.xlu1 %1589  ;;  %v8902_v19 = vpop.permute.xlu0 %1585 }
 0x2da   : > { %14456 = vst [vmem:[#allocation159_spill] sm:$0xff] %v8900_v55  ;;  %14457 = vst [vmem:[#allocation160_spill] sm:$0xff] %v8902_v19 }
 0x2db   : > { %1863 = vbcast.lane.b32.xlu1 %v1849_v30, 280  ;;  %1859 = vbcast.lane.b32.xlu0 %v1849_v30, 272  ;;  %v1887_v30 = vrot.slane %v8590_v39, %v8385_v48 }
 0x2dd   : > { %v8904_v43 = vpop.permute.xlu1 %1597  ;;  %v8906_v9 = vpop.permute.xlu0 %1593 }
 0x2de   : > { %14458 = vst [vmem:[#allocation161_spill] sm:$0xff] %v8904_v43  ;;  %14459 = vst [vmem:[#allocation162_spill] sm:$0xff] %v8906_v9 }
 0x2df   : > { %1874 = vbcast.lane.b32.xlu1 %v1868_v4, 264  ;;  %1870 = vbcast.lane.b32.xlu0 %v1868_v4, 256 }
 0x2e1   : > { %v8910_v41 = vpop.permute.xlu1 %1608  ;;  %v8912_v28 = vpop.permute.xlu0 %1604 }
 0x2e2   : > { %14460 = vst [vmem:[#allocation163_spill] sm:$0xff] %v8910_v41  ;;  %14461 = vst [vmem:[#allocation164_spill] sm:$0xff] %v8912_v28  ;;  %v1906_v28 = vrot.slane %v8764_v50, %v8346_v24 }
 0x2e3   : > { %1882 = vbcast.lane.b32.xlu1 %v1868_v4, 280  ;;  %1878 = vbcast.lane.b32.xlu0 %v1868_v4, 272 }
 0x2e5   : > { %v8914_v55 = vpop.permute.xlu1 %1616  ;;  %v8916_v19 = vpop.permute.xlu0 %1612 }
 0x2e6   : > { %14462 = vst [vmem:[#allocation165_spill] sm:$0xff] %v8914_v55  ;;  %14463 = vst [vmem:[#allocation166_spill] sm:$0xff] %v8916_v19  ;;  %v8930_v55 = vpop.f32.mrb[10].mxu1 }
 0x2e7   : > { %1893 = vbcast.lane.b32.xlu1 %v1887_v30, 264  ;;  %1889 = vbcast.lane.b32.xlu0 %v1887_v30, 256  ;;  %v8932_v39 = vpop.f32.mrb[11].mxu1 }
 0x2e9   : > { %v8920_v9 = vpop.permute.xlu1 %1627  ;;  %v8922_v43 = vpop.permute.xlu0 %1623 }
 0x2ea   : > { %14464 = vst [vmem:[#allocation167_spill] sm:$0xff] %v8920_v9  ;;  %14465 = vst [vmem:[#allocation168_spill] sm:$0xff] %v8922_v43 }
 0x2eb   : > { %1901 = vbcast.lane.b32.xlu1 %v1887_v30, 280  ;;  %1897 = vbcast.lane.b32.xlu0 %v1887_v30, 272 }
 0x2ed   : > { %v8926_v41 = vpop.permute.xlu1 %1635  ;;  %v8928_v4 = vpop.permute.xlu0 %1631 }
 0x2ee   : > { %14466 = vst [vmem:[#allocation169_spill] sm:$0xff] %v8926_v41  ;;  %14467 = vst [vmem:[#allocation170_spill] sm:$0xff] %v8928_v4  ;;  %v1925_v41 = vrot.slane %v8764_v50, %v8353_v29 }
 0x2ef   : > { %1912 = vbcast.lane.b32.xlu1 %v1906_v28, 264  ;;  %1908 = vbcast.lane.b32.xlu0 %v1906_v28, 256 }
 0x2f1   : > { %v8934_v19 = vpop.permute.xlu1 %1646  ;;  %v8936_v9 = vpop.permute.xlu0 %1642 }
 0x2f2   : > { %14468 = vst [vmem:[#allocation171_spill] sm:$0xff] %v8934_v19  ;;  %14469 = vst [vmem:[#allocation172_spill] sm:$0xff] %v8936_v9 }
 0x2f3   : > { %1920 = vbcast.lane.b32.xlu1 %v1906_v28, 280  ;;  %1916 = vbcast.lane.b32.xlu0 %v1906_v28, 272  ;;  %v1944_v28 = vrot.slane %v8764_v50, %v8366_v36 }
 0x2f5   : > { %v8938_v30 = vpop.permute.xlu1 %1654  ;;  %v8940_v43 = vpop.permute.xlu0 %1650 }
 0x2f6   : > { %14470 = vst [vmem:[#allocation173_spill] sm:$0xff] %v8938_v30  ;;  %14471 = vst [vmem:[#allocation174_spill] sm:$0xff] %v8940_v43 }
 0x2f7   : > { %1931 = vbcast.lane.b32.xlu1 %v1925_v41, 264  ;;  %1927 = vbcast.lane.b32.xlu0 %v1925_v41, 256 }
 0x2f9   : > { %v8944_v4 = vpop.permute.xlu1 %1665  ;;  %v8946_v0 = vpop.permute.xlu0 %1661 }
 0x2fa   : > { %14472 = vst [vmem:[#allocation175_spill] sm:$0xff] %v8944_v4  ;;  %14473 = vst [vmem:[#allocation176_spill] sm:$0xff] %v8946_v0 }
 0x2fb   : > { %1939 = vbcast.lane.b32.xlu1 %v1925_v41, 280  ;;  %1935 = vbcast.lane.b32.xlu0 %v1925_v41, 272  ;;  %v1963_v41 = vrot.slane %v8764_v50, %v8369_v38 }
 0x2fd   : > { %v8948_v19 = vpop.permute.xlu1 %1673  ;;  %v8950_v9 = vpop.permute.xlu0 %1669 }
 0x2fe   : > { %14474 = vst [vmem:[#allocation177_spill] sm:$0xff] %v8948_v19  ;;  %14475 = vst [vmem:[#allocation178_spill] sm:$0xff] %v8950_v9 }
 0x2ff   : > { %1950 = vbcast.lane.b32.xlu1 %v1944_v28, 264  ;;  %1946 = vbcast.lane.b32.xlu0 %v1944_v28, 256 }
 0x301   : > { %v8954_v43 = vpop.permute.xlu1 %1684  ;;  %v8956_v30 = vpop.permute.xlu0 %1680 }
 0x302   : > { %14476 = vst [vmem:[#allocation179_spill] sm:$0xff] %v8954_v43  ;;  %14477 = vst [vmem:[#allocation180_spill] sm:$0xff] %v8956_v30 }
 0x303   : > { %1958 = vbcast.lane.b32.xlu1 %v1944_v28, 280  ;;  %1954 = vbcast.lane.b32.xlu0 %v1944_v28, 272  ;;  %v1982_v28 = vrot.slane %v8764_v50, %v8372_v40 }
 0x305   : > { %v8958_v4 = vpop.permute.xlu1 %1692  ;;  %v8960_v0 = vpop.permute.xlu0 %1688 }
 0x306   : > { %14478 = vst [vmem:[#allocation181_spill] sm:$0xff] %v8958_v4  ;;  %14479 = vst [vmem:[#allocation182_spill] sm:$0xff] %v8960_v0 }
 0x307   : > { %1969 = vbcast.lane.b32.xlu1 %v1963_v41, 264  ;;  %1965 = vbcast.lane.b32.xlu0 %v1963_v41, 256 }
 0x309   : > { %v8964_v9 = vpop.permute.xlu1 %1703  ;;  %v8966_v19 = vpop.permute.xlu0 %1699 }
 0x30a   : > { %14480 = vst [vmem:[#allocation183_spill] sm:$0xff] %v8964_v9  ;;  %14481 = vst [vmem:[#allocation184_spill] sm:$0xff] %v8966_v19 }
 0x30b   : > { %1977 = vbcast.lane.b32.xlu1 %v1963_v41, 280  ;;  %1973 = vbcast.lane.b32.xlu0 %v1963_v41, 272  ;;  %v2001_v41 = vrot.slane %v8764_v50, %v8375_v42 }
 0x30d   : > { %v8968_v43 = vpop.permute.xlu1 %1711  ;;  %v8970_v30 = vpop.permute.xlu0 %1707 }
 0x30e   : > { %14482 = vst [vmem:[#allocation185_spill] sm:$0xff] %v8968_v43  ;;  %14483 = vst [vmem:[#allocation186_spill] sm:$0xff] %v8970_v30 }
 0x30f   : > { %1988 = vbcast.lane.b32.xlu1 %v1982_v28, 264  ;;  %1984 = vbcast.lane.b32.xlu0 %v1982_v28, 256 }
 0x311   : > { %v8974_v0 = vpop.permute.xlu1 %1722  ;;  %v8976_v4 = vpop.permute.xlu0 %1718 }
 0x312   : > { %14484 = vst [vmem:[#allocation187_spill] sm:$0xff] %v8974_v0  ;;  %14485 = vst [vmem:[#allocation188_spill] sm:$0xff] %v8976_v4 }
 0x313   : > { %1996 = vbcast.lane.b32.xlu1 %v1982_v28, 280  ;;  %1992 = vbcast.lane.b32.xlu0 %v1982_v28, 272  ;;  %v2020_v28 = vrot.slane %v8764_v50, %v8380_v46 }
 0x315   : > { %v8978_v9 = vpop.permute.xlu1 %1730  ;;  %v8980_v19 = vpop.permute.xlu0 %1726 }
 0x316   : > { %14486 = vst [vmem:[#allocation189_spill] sm:$0xff] %v8978_v9  ;;  %14487 = vst [vmem:[#allocation190_spill] sm:$0xff] %v8980_v19 }
 0x317   : > { %2007 = vbcast.lane.b32.xlu1 %v2001_v41, 264  ;;  %2003 = vbcast.lane.b32.xlu0 %v2001_v41, 256 }
 0x319   : > { %v8984_v30 = vpop.permute.xlu1 %1741  ;;  %v8986_v43 = vpop.permute.xlu0 %1737 }
 0x31a   : > { %14488 = vst [vmem:[#allocation191_spill] sm:$0xff] %v8984_v30  ;;  %14489 = vst [vmem:[#allocation192_spill] sm:$0xff] %v8986_v43 }
 0x31b   : > { %2015 = vbcast.lane.b32.xlu1 %v2001_v41, 280  ;;  %2011 = vbcast.lane.b32.xlu0 %v2001_v41, 272  ;;  %v2039_v41 = vrot.slane %v8764_v50, %v8385_v48 }
 0x31d   : > { %v8988_v0 = vpop.permute.xlu1 %1749  ;;  %v8990_v4 = vpop.permute.xlu0 %1745 }
 0x31e   : > { %14490 = vst [vmem:[#allocation193_spill] sm:$0xff] %v8988_v0  ;;  %14491 = vst [vmem:[#allocation194_spill] sm:$0xff] %v8990_v4 }
 0x31f   : > { %2026 = vbcast.lane.b32.xlu1 %v2020_v28, 264  ;;  %2022 = vbcast.lane.b32.xlu0 %v2020_v28, 256 }
 0x321   : > { %v8994_v19 = vpop.permute.xlu1 %1760  ;;  %v8996_v9 = vpop.permute.xlu0 %1756 }
 0x322   : > { %14492 = vst [vmem:[#allocation195_spill] sm:$0xff] %v8994_v19  ;;  %14493 = vst [vmem:[#allocation196_spill] sm:$0xff] %v8996_v9 }
 0x323   : > { %2034 = vbcast.lane.b32.xlu1 %v2020_v28, 280  ;;  %2030 = vbcast.lane.b32.xlu0 %v2020_v28, 272  ;;  %v2058_v28 = vrot.slane %v8761_v1, %v8346_v24 }
 0x325   : > { %v8998_v30 = vpop.permute.xlu1 %1768  ;;  %v9000_v43 = vpop.permute.xlu0 %1764 }
 0x326   : > { %14494 = vst [vmem:[#allocation197_spill] sm:$0xff] %v8998_v30  ;;  %14495 = vst [vmem:[#allocation198_spill] sm:$0xff] %v9000_v43 }
 0x327   : > { %2045 = vbcast.lane.b32.xlu1 %v2039_v41, 264  ;;  %2041 = vbcast.lane.b32.xlu0 %v2039_v41, 256 }
 0x329   : > { %v9004_v4 = vpop.permute.xlu1 %1779  ;;  %v9006_v0 = vpop.permute.xlu0 %1775 }
 0x32a   : > { %14496 = vst [vmem:[#allocation199_spill] sm:$0xff] %v9004_v4  ;;  %14497 = vst [vmem:[#allocation200_spill] sm:$0xff] %v9006_v0 }
 0x32b   : > { %2053 = vbcast.lane.b32.xlu1 %v2039_v41, 280  ;;  %2049 = vbcast.lane.b32.xlu0 %v2039_v41, 272  ;;  %v2077_v41 = vrot.slane %v8761_v1, %v8353_v29 }
 0x32d   : > { %v9008_v19 = vpop.permute.xlu1 %1787  ;;  %v9010_v9 = vpop.permute.xlu0 %1783 }
 0x32e   : > { %14498 = vst [vmem:[#allocation201_spill] sm:$0xff] %v9008_v19  ;;  %14499 = vst [vmem:[#allocation202_spill] sm:$0xff] %v9010_v9 }
 0x32f   : > { %2064 = vbcast.lane.b32.xlu1 %v2058_v28, 264  ;;  %2060 = vbcast.lane.b32.xlu0 %v2058_v28, 256 }
 0x331   : > { %v9014_v43 = vpop.permute.xlu1 %1798  ;;  %v9016_v50 = vpop.permute.xlu0 %1794 }
 0x332   : > { %14500 = vst [vmem:[#allocation203_spill] sm:$0xff] %v9014_v43  ;;  %14501 = vst [vmem:[#allocation204_spill] sm:$0xff] %v9016_v50 }
 0x333   : > { %2072 = vbcast.lane.b32.xlu1 %v2058_v28, 280  ;;  %2068 = vbcast.lane.b32.xlu0 %v2058_v28, 272  ;;  %v2096_v28 = vrot.slane %v8761_v1, %v8366_v36 }
 0x335   : > { %v9018_v4 = vpop.permute.xlu1 %1806  ;;  %v9020_v0 = vpop.permute.xlu0 %1802 }
 0x336   : > { %14502 = vst [vmem:[#allocation205_spill] sm:$0xff] %v9018_v4  ;;  %14503 = vst [vmem:[#allocation206_spill] sm:$0xff] %v9020_v0 }
 0x337   : > { %2083 = vbcast.lane.b32.xlu1 %v2077_v41, 264  ;;  %2079 = vbcast.lane.b32.xlu0 %v2077_v41, 256 }
 0x338   : > { %v9038_v30 = vpop.f32.mrb[12].mxu1 }
 0x339   : > { %v9024_v9 = vpop.permute.xlu1 %1817  ;;  %v9026_v19 = vpop.permute.xlu0 %1813  ;;  %14510 = vst [vmem:[#allocation213_spill] sm:$0xff] %v9038_v30 }
 0x33a   : > { %14504 = vst [vmem:[#allocation207_spill] sm:$0xff] %v9024_v9  ;;  %14505 = vst [vmem:[#allocation208_spill] sm:$0xff] %v9026_v19  ;;  %v9040_v19 = vpop.f32.mrb[13].mxu1 }
 0x33b   : > { %2091 = vbcast.lane.b32.xlu1 %v2077_v41, 280  ;;  %2087 = vbcast.lane.b32.xlu0 %v2077_v41, 272 }
 0x33d   : > { %v9028_v43 = vpop.permute.xlu1 %1825  ;;  %v9030_v50 = vpop.permute.xlu0 %1821 }
 0x33e   : > { %14506 = vst [vmem:[#allocation209_spill] sm:$0xff] %v9028_v43  ;;  %14507 = vst [vmem:[#allocation210_spill] sm:$0xff] %v9030_v50  ;;  %v2115_v50 = vrot.slane %v8761_v1, %v8369_v38 }
 0x33f   : > { %2102 = vbcast.lane.b32.xlu1 %v2096_v28, 264  ;;  %2098 = vbcast.lane.b32.xlu0 %v2096_v28, 256 }
 0x341   : > { %v9034_v0 = vpop.permute.xlu1 %1836  ;;  %v9036_v4 = vpop.permute.xlu0 %1832 }
 0x342   : > { %14508 = vst [vmem:[#allocation211_spill] sm:$0xff] %v9034_v0  ;;  %14509 = vst [vmem:[#allocation212_spill] sm:$0xff] %v9036_v4 }
 0x343   : > { %2110 = vbcast.lane.b32.xlu1 %v2096_v28, 280  ;;  %2106 = vbcast.lane.b32.xlu0 %v2096_v28, 272 }
 0x345   : > { %v9042_v41 = vpop.permute.xlu1 %1844  ;;  %v9044_v43 = vpop.permute.xlu0 %1840 }
 0x346   : > { %14511 = vst [vmem:[#allocation214_spill] sm:$0xff] %v9042_v41  ;;  %14512 = vst [vmem:[#allocation215_spill] sm:$0xff] %v9044_v43  ;;  %v2134_v41 = vrot.slane %v8761_v1, %v8372_v40 }
 0x347   : > { %2121 = vbcast.lane.b32.xlu1 %v2115_v50, 264  ;;  %2117 = vbcast.lane.b32.xlu0 %v2115_v50, 256 }
 0x349   : > { %v9048_v9 = vpop.permute.xlu1 %1855  ;;  %v9050_v0 = vpop.permute.xlu0 %1851 }
 0x34a   : > { %14513 = vst [vmem:[#allocation216_spill] sm:$0xff] %v9048_v9  ;;  %14514 = vst [vmem:[#allocation217_spill] sm:$0xff] %v9050_v0 }
 0x34b   : > { %2129 = vbcast.lane.b32.xlu1 %v2115_v50, 280  ;;  %2125 = vbcast.lane.b32.xlu0 %v2115_v50, 272  ;;  %v2153_v50 = vrot.slane %v8761_v1, %v8375_v42 }
 0x34d   : > { %v9052_v4 = vpop.permute.xlu1 %1863  ;;  %v9054_v28 = vpop.permute.xlu0 %1859 }
 0x34e   : > { %14515 = vst [vmem:[#allocation218_spill] sm:$0xff] %v9052_v4  ;;  %14516 = vst [vmem:[#allocation219_spill] sm:$0xff] %v9054_v28 }
 0x34f   : > { %2140 = vbcast.lane.b32.xlu1 %v2134_v41, 264  ;;  %2136 = vbcast.lane.b32.xlu0 %v2134_v41, 256 }
 0x351   : > { %v9058_v43 = vpop.permute.xlu1 %1874  ;;  %v9060_v30 = vpop.permute.xlu0 %1870 }
 0x352   : > { %14517 = vst [vmem:[#allocation220_spill] sm:$0xff] %v9058_v43  ;;  %14518 = vst [vmem:[#allocation221_spill] sm:$0xff] %v9060_v30  ;;  %v9074_v30 = vadd.f32 %v8357_v31, %v8402_v57  ;;  %v9084_v43 = vadd.f32 %v8404_v58, %v8359_v32  ;;  %v9093_v57 = vadd.f32 %v8362_v34, %v8406_v59 }
 0x353   : > { %2148 = vbcast.lane.b32.xlu1 %v2134_v41, 280  ;;  %2144 = vbcast.lane.b32.xlu0 %v2134_v41, 272  ;;  %v9101_v58 = vadd.f32 %v8357_v31, %v8412_v62  ;;  %v9114_v59 = vadd.f32 %v8422_v3, %v8364_v35  ;;  %v9122_v62 = vadd.f32 %v8428_v6, %v8359_v32 }
 0x354   : > { %14523 = vst [vmem:[#allocation226_spill] sm:$0xff] %v9074_v30  ;;  %14526 = vst [vmem:[#allocation229_spill] sm:$0xff] %v9084_v43  ;;  %v9110_v30 = vadd.f32 %v8362_v34, %v8420_v2  ;;  %v9130_v2 = vadd.f32 %v8432_v8, %v8364_v35  ;;  %v9134_v3 = vadd.f32 %v8357_v31, %v8436_v10 }
 0x355   : > { %v9062_v9 = vpop.permute.xlu1 %1882  ;;  %v9064_v0 = vpop.permute.xlu0 %1878  ;;  %14529 = vst [vmem:[#allocation232_spill] sm:$0xff] %v9093_v57  ;;  %14531 = vst [vmem:[#allocation234_spill] sm:$0xff] %v9101_v58  ;;  %v9142_v6 = vadd.f32 %v8362_v34, %v8440_v12  ;;  %v2191_v10 = vrot.slane %v8761_v1, %v8385_v48  ;;  %v9186_v12 = vadd.f32 %v8452_v18, %v8364_v35  ;;  %v14586_v57 = vld [vmem:[#allocation21_spill] sm:$0xff] }
 0x356   : > { %14519 = vst [vmem:[#allocation222_spill] sm:$0xff] %v9062_v9  ;;  %14520 = vst [vmem:[#allocation223_spill] sm:$0xff] %v9064_v0  ;;  %v2172_v0 = vrot.slane %v8761_v1, %v8380_v46  ;;  %v2210_v18 = vrot.slane %v8932_v39, %v8346_v24  ;;  %v9268_v43 = vadd.f32 %v8492_v52, %v8359_v32  ;;  %v14566_v52 = vld [vmem:[#allocation11_spill] sm:$0xff] }
 0x357   : > { %2159 = vbcast.lane.b32.xlu1 %v2153_v50, 264  ;;  %2155 = vbcast.lane.b32.xlu0 %v2153_v50, 256  ;;  %14533 = vst [vmem:[#allocation236_spill] sm:$0xff] %v9110_v30  ;;  %14534 = vst [vmem:[#allocation237_spill] sm:$0xff] %v9114_v59  ;;  %v9272_v1 = vadd.f32 %v8362_v34, %v8494_v53  ;;  %v14568_v53 = vld [vmem:[#allocation12_spill] sm:$0xff] }
 0x358   : > { %14536 = vst [vmem:[#allocation239_spill] sm:$0xff] %v9122_v62  ;;  %14538 = vst [vmem:[#allocation241_spill] sm:$0xff] %v9130_v2  ;;  %v14614_v62 = vld [vmem:[#allocation35_spill] sm:$0xff] }
 0x359   : > { %v9068_v28 = vpop.permute.xlu1 %1893  ;;  %v9070_v4 = vpop.permute.xlu0 %1889  ;;  %14539 = vst [vmem:[#allocation242_spill] sm:$0xff] %v9134_v3  ;;  %14541 = vst [vmem:[#allocation244_spill] sm:$0xff] %v9142_v6  ;;  %v9276_v6 = vadd.f32 %v8357_v31, %v8496_v54  ;;  %v14570_v54 = vld [vmem:[#allocation13_spill] sm:$0xff]  ;;  %v14596_v3 = vld [vmem:[#allocation26_spill] sm:$0xff] }
 0x35a   : > { %14521 = vst [vmem:[#allocation224_spill] sm:$0xff] %v9068_v28  ;;  %14522 = vst [vmem:[#allocation225_spill] sm:$0xff] %v9070_v4  ;;  %v9182_v4 = vadd.f32 %v8362_v34, %v8450_v17  ;;  %v9203_v17 = vadd.f32 %v8462_v23, %v8364_v35  ;;  %v9221_v23 = vadd.f32 %v8472_v37, %v8364_v35 }
 0x35b   : > { %2167 = vbcast.lane.b32.xlu1 %v2153_v50, 280  ;;  %2163 = vbcast.lane.b32.xlu0 %v2153_v50, 272  ;;  %14547 = vst [vmem:[#allocation250_spill] sm:$0xff] %v9186_v12  ;;  %14561 = vst [vmem:[#allocation264_spill] sm:$0xff] %v9268_v43 }
 0x35c   : > { %14546 = vst [vmem:[#allocation249_spill] sm:$0xff] %v9182_v4  ;;  %14551 = vst [vmem:[#allocation254_spill] sm:$0xff] %v9203_v17  ;;  %v14584_v4 = vld [vmem:[#allocation20_spill] sm:$0xff] }
 0x35d   : > { %v9076_v41 = vpop.permute.xlu1 %1901  ;;  %v9078_v9 = vpop.permute.xlu0 %1897  ;;  %14555 = vst [vmem:[#allocation258_spill] sm:$0xff] %v9221_v23  ;;  %14562 = vst [vmem:[#allocation265_spill] sm:$0xff] %v9272_v1  ;;  %v9338_v12 = vadd.f32 %v14584_v4, %v8364_v35  ;;  %v9349_v4 = vadd.f32 %v8357_v31, %v14586_v57 }
 0x35e   : > { %14524 = vst [vmem:[#allocation227_spill] sm:$0xff] %v9076_v41  ;;  %14525 = vst [vmem:[#allocation228_spill] sm:$0xff] %v9078_v9  ;;  %v9097_v9 = vadd.f32 %v8408_v60, %v8364_v35  ;;  %v9105_v41 = vadd.f32 %v8414_v63, %v8359_v32  ;;  %v9118_v60 = vadd.f32 %v8357_v31, %v8426_v5 }
 0x35f   : > { %2178 = vbcast.lane.b32.xlu1 %v2172_v0, 264  ;;  %2174 = vbcast.lane.b32.xlu0 %v2172_v0, 256  ;;  %v9126_v63 = vadd.f32 %v8362_v34, %v8430_v7  ;;  %v9138_v5 = vadd.f32 %v8438_v11, %v8359_v32  ;;  %v9146_v7 = vadd.f32 %v8442_v13, %v8364_v35 }
 0x360   : > { %14530 = vst [vmem:[#allocation233_spill] sm:$0xff] %v9097_v9  ;;  %14532 = vst [vmem:[#allocation235_spill] sm:$0xff] %v9105_v41  ;;  %v9190_v13 = vadd.f32 %v8357_v31, %v8456_v20  ;;  %v9209_v20 = vadd.f32 %v8357_v31, %v8466_v26  ;;  %v9229_v26 = vadd.f32 %v8480_v45, %v8359_v32 }
 0x361   : > { %v9087_v50 = vpop.permute.xlu1 %1912  ;;  %v9089_v28 = vpop.permute.xlu0 %1908  ;;  %14535 = vst [vmem:[#allocation238_spill] sm:$0xff] %v9118_v60  ;;  %14537 = vst [vmem:[#allocation240_spill] sm:$0xff] %v9126_v63  ;;  %v9280_v63 = vadd.f32 %v8357_v31, %v8500_v56  ;;  %v9289_v45 = vadd.f32 %v8362_v34, %v14566_v52  ;;  %v9297_v56 = vadd.f32 %v8357_v31, %v14570_v54  ;;  %v14576_v52 = vld [vmem:[#allocation16_spill] sm:$0xff] }
 0x362   : > { %14527 = vst [vmem:[#allocation230_spill] sm:$0xff] %v9087_v50  ;;  %14528 = vst [vmem:[#allocation231_spill] sm:$0xff] %v9089_v28  ;;  %v9199_v28 = vadd.f32 %v8362_v34, %v8460_v22  ;;  %v9217_v22 = vadd.f32 %v8362_v34, %v8470_v33  ;;  %v9237_v33 = vadd.f32 %v8486_v49, %v8364_v35 }
 0x363   : > { %2186 = vbcast.lane.b32.xlu1 %v2172_v0, 280  ;;  %2182 = vbcast.lane.b32.xlu0 %v2172_v0, 272  ;;  %14540 = vst [vmem:[#allocation243_spill] sm:$0xff] %v9138_v5  ;;  %14542 = vst [vmem:[#allocation245_spill] sm:$0xff] %v9146_v7  ;;  %v9252_v49 = vadd.f32 %v8490_v51, %v8364_v35  ;;  %v14604_v7 = vld [vmem:[#allocation30_spill] sm:$0xff] }
 0x364   : > { %14548 = vst [vmem:[#allocation251_spill] sm:$0xff] %v9190_v13  ;;  %14550 = vst [vmem:[#allocation253_spill] sm:$0xff] %v9199_v28  ;;  %v14572_v28 = vld [vmem:[#allocation14_spill] sm:$0xff]  ;;  %v14592_v13 = vld [vmem:[#allocation24_spill] sm:$0xff]  ;;  %v9390_v5 = vadd.f32 %v14604_v7, %v8359_v32  ;;  %v9410_v7 = vadd.f32 %v8362_v34, %v14614_v62 }
 0x365   : > { %v9148_v0 = vpop.permute.xlu1 %1920  ;;  %v9150_v8 = vpop.permute.xlu0 %1916  ;;  %14552 = vst [vmem:[#allocation255_spill] sm:$0xff] %v9209_v20  ;;  %14554 = vst [vmem:[#allocation257_spill] sm:$0xff] %v9217_v22  ;;  %v14582_v22 = vld [vmem:[#allocation19_spill] sm:$0xff]  ;;  %v14588_v20 = vld [vmem:[#allocation22_spill] sm:$0xff] }
 0x366   : > { %14543 = vst [vmem:[#allocation246_spill] sm:$0xff] %v9150_v8  ;;  %v9163_v8 = vadd.f32 %v8357_v31, %v8446_v15  ;;  %v9174_v15 = vadd.f32 %v8448_v16, %v8359_v32  ;;  %v9194_v16 = vadd.f32 %v8458_v21, %v8359_v32  ;;  %v9213_v21 = vadd.f32 %v8468_v27, %v8359_v32  ;;  %v14624_v62 = vld [vmem:[#allocation40_spill] sm:$0xff] }
 0x367   : > { %2197 = vbcast.lane.b32.xlu1 %v2191_v10, 264  ;;  %2193 = vbcast.lane.b32.xlu0 %v2191_v10, 256  ;;  %14557 = vst [vmem:[#allocation260_spill] sm:$0xff] %v9229_v26  ;;  %v9233_v27 = vadd.f32 %v8362_v34, %v8484_v47  ;;  %14559 = vst [vmem:[#allocation262_spill] sm:$0xff] %v9237_v33  ;;  %v9285_v47 = vadd.f32 %v8502_v61, %v8359_v32  ;;  %v14574_v61 = vld [vmem:[#allocation15_spill] sm:$0xff] }
 0x368   : > { %14544 = vst [vmem:[#allocation247_spill] sm:$0xff] %v9163_v8  ;;  %14545 = vst [vmem:[#allocation248_spill] sm:$0xff] %v9174_v15  ;;  %v9305_v33 = vadd.f32 %v8362_v34, %v14574_v61 }
 0x369   : > { %v9176_v11 = vpop.permute.xlu1 %1931  ;;  %v9178_v30 = vpop.permute.xlu0 %1927  ;;  %14549 = vst [vmem:[#allocation252_spill] sm:$0xff] %v9194_v16  ;;  %14553 = vst [vmem:[#allocation256_spill] sm:$0xff] %v9213_v21  ;;  %v14590_v21 = vld [vmem:[#allocation23_spill] sm:$0xff]  ;;  %v14594_v16 = vld [vmem:[#allocation25_spill] sm:$0xff] }
 0x36a   : > { %14558 = vst [vmem:[#allocation261_spill] sm:$0xff] %v9233_v27  ;;  %14560 = vst [vmem:[#allocation263_spill] sm:$0xff] %v9252_v49  ;;  %v9301_v27 = vadd.f32 %v14572_v28, %v8359_v32  ;;  %v9321_v28 = vadd.f32 %v8362_v34, %v14582_v22  ;;  %v9365_v22 = vadd.f32 %v14592_v13, %v8364_v35  ;;  %v14602_v13 = vld [vmem:[#allocation29_spill] sm:$0xff] }
 0x36b   : > { %2205 = vbcast.lane.b32.xlu1 %v2191_v10, 280  ;;  %2201 = vbcast.lane.b32.xlu0 %v2191_v10, 272  ;;  %v9225_v10 = vadd.f32 %v8357_v31, %v8478_v44  ;;  %14563 = vst [vmem:[#allocation266_spill] sm:$0xff] %v9276_v6  ;;  %14564 = vst [vmem:[#allocation267_spill] sm:$0xff] %v9280_v63  ;;  %v9293_v44 = vadd.f32 %v14568_v53, %v8364_v35  ;;  %v14578_v53 = vld [vmem:[#allocation17_spill] sm:$0xff]  ;;  %v14646_v6 = vld [vmem:[#allocation51_spill] sm:$0xff] }
 0x36c   : > { %14565 = vst [vmem:[#allocation268_spill] sm:$0xff] %v9285_v47  ;;  %14567 = vst [vmem:[#allocation11_spill] sm:$0xff] %v9289_v45  ;;  %v9313_v26 = vadd.f32 %v8357_v31, %v14578_v53  ;;  %v9357_v53 = vadd.f32 %v14588_v20, %v8359_v32  ;;  %v9369_v57 = vadd.f32 %v8357_v31, %v14594_v16  ;;  %v14598_v20 = vld [vmem:[#allocation27_spill] sm:$0xff]  ;;  %v14634_v49 = vld [vmem:[#allocation45_spill] sm:$0xff] }
 0x36d   : > { %14556 = vst [vmem:[#allocation259_spill] sm:$0xff] %v9225_v10  ;;  %v9239_v50 = vpop.permute.xlu1 %1939  ;;  %v9241_v37 = vpop.permute.xlu0 %1935  ;;  %14569 = vst [vmem:[#allocation12_spill] sm:$0xff] %v9293_v44  ;;  %v9309_v10 = vadd.f32 %v14576_v52, %v8364_v35  ;;  %v2229_v52 = vrot.slane %v8932_v39, %v8353_v29  ;;  %v9386_v16 = vadd.f32 %v8357_v31, %v14602_v13  ;;  %v14654_v63 = vld [vmem:[#allocation55_spill] sm:$0xff]  ;;  %v14712_v47 = vld [vmem:[#allocation81_spill] sm:$0xff] }
 0x36e   : > { %14571 = vst [vmem:[#allocation13_spill] sm:$0xff] %v9297_v56  ;;  %14573 = vst [vmem:[#allocation14_spill] sm:$0xff] %v9301_v27  ;;  %v9688_v43 = vadd.f32 %v14712_v47, %v8359_v32  ;;  %v14726_v47 = vld [vmem:[#allocation87_spill] sm:$0xff] }
 0x36f   : > { %2216 = vbcast.lane.b32.xlu1 %v2210_v18, 264  ;;  %2212 = vbcast.lane.b32.xlu0 %v2210_v18, 256  ;;  %14575 = vst [vmem:[#allocation15_spill] sm:$0xff] %v9305_v33  ;;  %14577 = vst [vmem:[#allocation16_spill] sm:$0xff] %v9309_v10  ;;  %v9378_v33 = vadd.f32 %v8362_v34, %v14598_v20  ;;  %v14608_v20 = vld [vmem:[#allocation32_spill] sm:$0xff] }
 0x370   : > { %14579 = vst [vmem:[#allocation17_spill] sm:$0xff] %v9313_v26  ;;  %14583 = vst [vmem:[#allocation19_spill] sm:$0xff] %v9321_v28  ;;  %v9374_v28 = vadd.f32 %v14596_v3, %v8359_v32  ;;  %v14606_v3 = vld [vmem:[#allocation31_spill] sm:$0xff]  ;;  %v9398_v2 = vadd.f32 %v14608_v20, %v8364_v35  ;;  %v2248_v20 = vrot.slane %v8932_v39, %v8366_v36  ;;  %v14616_v10 = vld [vmem:[#allocation36_spill] sm:$0xff] }
 0x371   : > { %v9262_v51 = vpop.permute.xlu1 %1950  ;;  %v9264_v17 = vpop.permute.xlu0 %1946  ;;  %14585 = vst [vmem:[#allocation20_spill] sm:$0xff] %v9338_v12  ;;  %14587 = vst [vmem:[#allocation21_spill] sm:$0xff] %v9349_v4  ;;  %v9394_v1 = vadd.f32 %v8362_v34, %v14606_v3  ;;  %v9427_v44 = vadd.f32 %v14616_v10, %v8364_v35  ;;  %v9455_v12 = vadd.f32 %v14624_v62, %v8364_v35 }
 0x372   : > { %14589 = vst [vmem:[#allocation22_spill] sm:$0xff] %v9357_v53  ;;  %14593 = vst [vmem:[#allocation24_spill] sm:$0xff] %v9365_v22  ;;  %v14618_v22 = vld [vmem:[#allocation37_spill] sm:$0xff]  ;;  %v14678_v53 = vld [vmem:[#allocation66_spill] sm:$0xff] }
 0x373   : > { %2224 = vbcast.lane.b32.xlu1 %v2210_v18, 280  ;;  %2220 = vbcast.lane.b32.xlu0 %v2210_v18, 272  ;;  %v14580_v18 = vld [vmem:[#allocation18_spill] sm:$0xff]  ;;  %14595 = vst [vmem:[#allocation25_spill] sm:$0xff] %v9369_v57  ;;  %14597 = vst [vmem:[#allocation26_spill] sm:$0xff] %v9374_v28  ;;  %v9443_v58 = vadd.f32 %v8357_v31, %v14618_v22 }
 0x374   : > { %v9317_v54 = vadd.f32 %v14580_v18, %v8359_v32  ;;  %v9361_v18 = vadd.f32 %v8362_v34, %v14590_v21  ;;  %14599 = vst [vmem:[#allocation27_spill] sm:$0xff] %v9378_v33  ;;  %v14600_v21 = vld [vmem:[#allocation28_spill] sm:$0xff]  ;;  %14603 = vst [vmem:[#allocation29_spill] sm:$0xff] %v9386_v16  ;;  %v14628_v22 = vld [vmem:[#allocation42_spill] sm:$0xff]  ;;  %v9476_v33 = vadd.f32 %v8357_v31, %v14634_v49 }
 0x375   : > { %v9323_v23 = vpop.permute.xlu1 %1958  ;;  %v9325_v61 = vpop.permute.xlu0 %1954  ;;  %v9382_v45 = vadd.f32 %v14600_v21, %v8364_v35  ;;  %14605 = vst [vmem:[#allocation30_spill] sm:$0xff] %v9390_v5  ;;  %14607 = vst [vmem:[#allocation31_spill] sm:$0xff] %v9394_v1  ;;  %v14610_v21 = vld [vmem:[#allocation33_spill] sm:$0xff]  ;;  %v14644_v57 = vld [vmem:[#allocation50_spill] sm:$0xff] }
 0x376   : > { %14581 = vst [vmem:[#allocation18_spill] sm:$0xff] %v9317_v54  ;;  %14591 = vst [vmem:[#allocation23_spill] sm:$0xff] %v9361_v18  ;;  %v9402_v60 = vadd.f32 %v8357_v31, %v14610_v21  ;;  %v14620_v21 = vld [vmem:[#allocation38_spill] sm:$0xff]  ;;  %v9496_v49 = vadd.f32 %v14644_v57, %v8359_v32  ;;  %v14648_v5 = vld [vmem:[#allocation52_spill] sm:$0xff]  ;;  %v9540_v57 = vadd.f32 %v8362_v34, %v14654_v63 }
 0x377   : > { %2235 = vbcast.lane.b32.xlu1 %v2229_v52, 264  ;;  %2231 = vbcast.lane.b32.xlu0 %v2229_v52, 256  ;;  %14601 = vst [vmem:[#allocation28_spill] sm:$0xff] %v9382_v45  ;;  %14609 = vst [vmem:[#allocation32_spill] sm:$0xff] %v9398_v2  ;;  %v9447_v41 = vadd.f32 %v14620_v21, %v8359_v32  ;;  %v9464_v2 = vadd.f32 %v14628_v22, %v8359_v32  ;;  %v14630_v21 = vld [vmem:[#allocation43_spill] sm:$0xff] }
 0x378   : > { %14611 = vst [vmem:[#allocation33_spill] sm:$0xff] %v9402_v60  ;;  %14615 = vst [vmem:[#allocation35_spill] sm:$0xff] %v9410_v7  ;;  %v14626_v7 = vld [vmem:[#allocation41_spill] sm:$0xff]  ;;  %v9468_v45 = vadd.f32 %v8362_v34, %v14630_v21  ;;  %v14638_v22 = vld [vmem:[#allocation47_spill] sm:$0xff]  ;;  %v9516_v28 = vadd.f32 %v14648_v5, %v8364_v35  ;;  %v9602_v54 = vadd.f32 %v8362_v34, %v14678_v53 }
 0x379   : > { %v9351_v8 = vpop.permute.xlu1 %1969  ;;  %v9353_v15 = vpop.permute.xlu0 %1965  ;;  %14617 = vst [vmem:[#allocation36_spill] sm:$0xff] %v9427_v44  ;;  %14619 = vst [vmem:[#allocation37_spill] sm:$0xff] %v9443_v58  ;;  %v9460_v1 = vadd.f32 %v8357_v31, %v14626_v7  ;;  %v14636_v7 = vld [vmem:[#allocation46_spill] sm:$0xff]  ;;  %v9484_v60 = vadd.f32 %v8362_v34, %v14638_v22  ;;  %v14640_v21 = vld [vmem:[#allocation48_spill] sm:$0xff]  ;;  %v2267_v22 = vrot.slane %v8932_v39, %v8369_v38 }
 0x37a   : > { %14621 = vst [vmem:[#allocation38_spill] sm:$0xff] %v9447_v41  ;;  %14625 = vst [vmem:[#allocation40_spill] sm:$0xff] %v9455_v12  ;;  %v9480_v44 = vadd.f32 %v14636_v7, %v8359_v32  ;;  %v9488_v16 = vadd.f32 %v14640_v21, %v8364_v35  ;;  %v14662_v63 = vld [vmem:[#allocation59_spill] sm:$0xff]  ;;  %v14676_v58 = vld [vmem:[#allocation65_spill] sm:$0xff] }
 0x37b   : > { %2243 = vbcast.lane.b32.xlu1 %v2229_v52, 280  ;;  %2239 = vbcast.lane.b32.xlu0 %v2229_v52, 272  ;;  %v14612_v52 = vld [vmem:[#allocation34_spill] sm:$0xff]  ;;  %14627 = vst [vmem:[#allocation41_spill] sm:$0xff] %v9460_v1  ;;  %14629 = vst [vmem:[#allocation42_spill] sm:$0xff] %v9464_v2  ;;  %v9566_v1 = vadd.f32 %v8357_v31, %v8634_v14  ;;  %v9598_v41 = vadd.f32 %v14676_v58, %v8359_v32  ;;  %v14690_v58 = vld [vmem:[#allocation71_spill] sm:$0xff] }
 0x37c   : > { %v9406_v13 = vadd.f32 %v14612_v52, %v8359_v32  ;;  %v14622_v52 = vld [vmem:[#allocation39_spill] sm:$0xff]  ;;  %14631 = vst [vmem:[#allocation43_spill] sm:$0xff] %v9468_v45  ;;  %14635 = vst [vmem:[#allocation45_spill] sm:$0xff] %v9476_v33  ;;  %v14684_v45 = vld [vmem:[#allocation68_spill] sm:$0xff] }
 0x37d   : > { %v9412_v59 = vpop.permute.xlu1 %1977  ;;  %v9414_v3 = vpop.permute.xlu0 %1973  ;;  %v9451_v9 = vadd.f32 %v8362_v34, %v14622_v52  ;;  %v14632_v52 = vld [vmem:[#allocation44_spill] sm:$0xff]  ;;  %14637 = vst [vmem:[#allocation46_spill] sm:$0xff] %v9480_v44  ;;  %14639 = vst [vmem:[#allocation47_spill] sm:$0xff] %v9484_v60  ;;  %v14660_v60 = vld [vmem:[#allocation58_spill] sm:$0xff] }
 0x37e   : > { %14613 = vst [vmem:[#allocation34_spill] sm:$0xff] %v9406_v13  ;;  %v9472_v62 = vadd.f32 %v14632_v52, %v8364_v35  ;;  %14641 = vst [vmem:[#allocation48_spill] sm:$0xff] %v9488_v16  ;;  %v9512_v13 = vadd.f32 %v8362_v34, %v14646_v6  ;;  %v14656_v6 = vld [vmem:[#allocation56_spill] sm:$0xff]  ;;  %v9558_v16 = vadd.f32 %v8362_v34, %v14662_v63  ;;  %v14698_v53 = vld [vmem:[#allocation75_spill] sm:$0xff] }
 0x37f   : > { %2254 = vbcast.lane.b32.xlu1 %v2248_v20, 264  ;;  %2250 = vbcast.lane.b32.xlu0 %v2248_v20, 256  ;;  %14623 = vst [vmem:[#allocation39_spill] sm:$0xff] %v9451_v9  ;;  %14645 = vst [vmem:[#allocation50_spill] sm:$0xff] %v9496_v49  ;;  %v14650_v9 = vld [vmem:[#allocation53_spill] sm:$0xff]  ;;  %v9544_v21 = vadd.f32 %v14656_v6, %v8364_v35  ;;  %v14664_v6 = vld [vmem:[#allocation60_spill] sm:$0xff] }
 0x380   : > { %14633 = vst [vmem:[#allocation44_spill] sm:$0xff] %v9472_v62  ;;  %14647 = vst [vmem:[#allocation51_spill] sm:$0xff] %v9512_v13  ;;  %v9532_v26 = vadd.f32 %v8357_v31, %v14650_v9  ;;  %v14658_v49 = vld [vmem:[#allocation57_spill] sm:$0xff]  ;;  %v9562_v33 = vadd.f32 %v14664_v6, %v8364_v35  ;;  %v9621_v62 = vadd.f32 %v8357_v31, %v14684_v45 }
 0x381   : > { %v9437_v10 = vpop.permute.xlu1 %1988  ;;  %v9439_v18 = vpop.permute.xlu0 %1984  ;;  %14649 = vst [vmem:[#allocation52_spill] sm:$0xff] %v9516_v28  ;;  %14655 = vst [vmem:[#allocation55_spill] sm:$0xff] %v9540_v57  ;;  %v9550_v9 = vadd.f32 %v8357_v31, %v14658_v49  ;;  %v14667_v49 = vld [vmem:[#allocation61_spill] sm:$0xff]  ;;  %v14673_v28 = vld [vmem:[#allocation64_spill] sm:$0xff]  ;;  %v9633_v57 = vadd.f32 %v14690_v58, %v8364_v35 }
 0x382   : > { %14651 = vst [vmem:[#allocation53_spill] sm:$0xff] %v9532_v26  ;;  %14657 = vst [vmem:[#allocation56_spill] sm:$0xff] %v9544_v21  ;;  %v9582_v6 = vadd.f32 %v8357_v31, %v14673_v28 }
 0x383   : > { %2262 = vbcast.lane.b32.xlu1 %v2248_v20, 280  ;;  %2258 = vbcast.lane.b32.xlu0 %v2248_v20, 272  ;;  %v14642_v20 = vld [vmem:[#allocation49_spill] sm:$0xff]  ;;  %14659 = vst [vmem:[#allocation57_spill] sm:$0xff] %v9550_v9  ;;  %14663 = vst [vmem:[#allocation59_spill] sm:$0xff] %v9558_v16  ;;  %v14716_v9 = vld [vmem:[#allocation83_spill] sm:$0xff] }
 0x384   : > { %v9492_v52 = vadd.f32 %v8357_v31, %v14642_v20  ;;  %v14652_v20 = vld [vmem:[#allocation54_spill] sm:$0xff]  ;;  %14665 = vst [vmem:[#allocation60_spill] sm:$0xff] %v9562_v33  ;;  %14666 = vst [vmem:[#allocation269_spill] sm:$0xff] %v9566_v1  ;;  %v14720_v33 = vld [vmem:[#allocation84_spill] sm:$0xff] }
 0x385   : > { %v9498_v4 = vpop.permute.xlu1 %1996  ;;  %v9500_v7 = vpop.permute.xlu0 %1992  ;;  %v9536_v56 = vadd.f32 %v14652_v20, %v8359_v32  ;;  %v9554_v20 = vadd.f32 %v14660_v60, %v8359_v32  ;;  %v14669_v60 = vld [vmem:[#allocation62_spill] sm:$0xff]  ;;  %14674 = vst [vmem:[#allocation64_spill] sm:$0xff] %v9582_v6  ;;  %14677 = vst [vmem:[#allocation65_spill] sm:$0xff] %v9598_v41  ;;  %v9652_v41 = vadd.f32 %v14698_v53, %v8364_v35  ;;  %v14700_v6 = vld [vmem:[#allocation76_spill] sm:$0xff] }
 0x386   : > { %14643 = vst [vmem:[#allocation49_spill] sm:$0xff] %v9492_v52  ;;  %v9570_v52 = vadd.f32 %v14667_v49, %v8359_v32  ;;  %v9574_v13 = vadd.f32 %v8362_v34, %v14669_v60  ;;  %v2286_v49 = vrot.slane %v8932_v39, %v8372_v40  ;;  %14679 = vst [vmem:[#allocation66_spill] sm:$0xff] %v9602_v54  ;;  %v14680_v60 = vld [vmem:[#allocation67_spill] sm:$0xff]  ;;  %v14696_v1 = vld [vmem:[#allocation74_spill] sm:$0xff] }
 0x387   : > { %2273 = vbcast.lane.b32.xlu1 %v2267_v22, 264  ;;  %2269 = vbcast.lane.b32.xlu0 %v2267_v22, 256  ;;  %14653 = vst [vmem:[#allocation54_spill] sm:$0xff] %v9536_v56  ;;  %14661 = vst [vmem:[#allocation58_spill] sm:$0xff] %v9554_v20  ;;  %v9609_v12 = vadd.f32 %v14680_v60, %v8364_v35  ;;  %v14688_v56 = vld [vmem:[#allocation70_spill] sm:$0xff]  ;;  %v9648_v58 = vadd.f32 %v8362_v34, %v14696_v1  ;;  %v14702_v54 = vld [vmem:[#allocation77_spill] sm:$0xff] }
 0x388   : > { %14668 = vst [vmem:[#allocation61_spill] sm:$0xff] %v9570_v52  ;;  %14670 = vst [vmem:[#allocation62_spill] sm:$0xff] %v9574_v13  ;;  %v9629_v28 = vadd.f32 %v8362_v34, %v14688_v56  ;;  %v14692_v13 = vld [vmem:[#allocation72_spill] sm:$0xff]  ;;  %v14704_v52 = vld [vmem:[#allocation78_spill] sm:$0xff] }
 0x389   : > { %v9526_v5 = vpop.permute.xlu1 %2007  ;;  %v9528_v2 = vpop.permute.xlu0 %2003  ;;  %14681 = vst [vmem:[#allocation67_spill] sm:$0xff] %v9609_v12  ;;  %14685 = vst [vmem:[#allocation68_spill] sm:$0xff] %v9621_v62  ;;  %v9639_v45 = vadd.f32 %v8357_v31, %v14692_v13  ;;  %v9656_v13 = vadd.f32 %v8357_v31, %v14700_v6  ;;  %v14706_v56 = vld [vmem:[#allocation79_spill] sm:$0xff]  ;;  %v2305_v6 = vrot.slane %v8932_v39, %v8375_v42  ;;  %v14710_v20 = vld [vmem:[#allocation80_spill] sm:$0xff] }
 0x38a   : > { %14689 = vst [vmem:[#allocation70_spill] sm:$0xff] %v9629_v28  ;;  %14691 = vst [vmem:[#allocation71_spill] sm:$0xff] %v9633_v57  ;;  %v9668_v1 = vadd.f32 %v14706_v56, %v8364_v35  ;;  %v9684_v27 = vadd.f32 %v8357_v31, %v14710_v20  ;;  %v9698_v56 = vadd.f32 %v14716_v9, %v8364_v35  ;;  %v14749_v62 = vld [vmem:[#allocation97_spill] sm:$0xff] }
 0x38b   : > { %2281 = vbcast.lane.b32.xlu1 %v2267_v22, 280  ;;  %2277 = vbcast.lane.b32.xlu0 %v2267_v22, 272  ;;  %v14671_v22 = vld [vmem:[#allocation63_spill] sm:$0xff]  ;;  %14693 = vst [vmem:[#allocation72_spill] sm:$0xff] %v9639_v45  ;;  %14697 = vst [vmem:[#allocation74_spill] sm:$0xff] %v9648_v58  ;;  %v14722_v58 = vld [vmem:[#allocation85_spill] sm:$0xff]  ;;  %v9722_v45 = vadd.f32 %v14726_v47, %v8364_v35 }
 0x38c   : > { %v9578_v63 = vadd.f32 %v14671_v22, %v8364_v35  ;;  %v14686_v22 = vld [vmem:[#allocation69_spill] sm:$0xff]  ;;  %14699 = vst [vmem:[#allocation75_spill] sm:$0xff] %v9652_v41  ;;  %14701 = vst [vmem:[#allocation76_spill] sm:$0xff] %v9656_v13  ;;  %v9714_v9 = vadd.f32 %v14722_v58, %v8359_v32  ;;  %v14724_v41 = vld [vmem:[#allocation86_spill] sm:$0xff] }
 0x38d   : > { %v9584_v44 = vpop.permute.xlu1 %2015  ;;  %v9586_v14 = vpop.permute.xlu0 %2011  ;;  %v9625_v60 = vadd.f32 %v14686_v22, %v8359_v32  ;;  %14707 = vst [vmem:[#allocation79_spill] sm:$0xff] %v9668_v1  ;;  %14711 = vst [vmem:[#allocation80_spill] sm:$0xff] %v9684_v27  ;;  %v9718_v20 = vadd.f32 %v8362_v34, %v14724_v41  ;;  %v14728_v1 = vld [vmem:[#allocation88_spill] sm:$0xff]  ;;  %v14730_v13 = vld [vmem:[#allocation89_spill] sm:$0xff] }
 0x38e   : > { %14672 = vst [vmem:[#allocation63_spill] sm:$0xff] %v9578_v63  ;;  %14675 = vst [vmem:[#allocation270_spill] sm:$0xff] %v9586_v14  ;;  %v14694_v63 = vld [vmem:[#allocation73_spill] sm:$0xff]  ;;  %v9732_v58 = vadd.f32 %v14730_v13, %v8359_v32  ;;  %v14732_v47 = vld [vmem:[#allocation90_spill] sm:$0xff] }
 0x38f   : > { %2292 = vbcast.lane.b32.xlu1 %v2286_v49, 264  ;;  %2288 = vbcast.lane.b32.xlu0 %v2286_v49, 256  ;;  %14687 = vst [vmem:[#allocation69_spill] sm:$0xff] %v9625_v60  ;;  %v9643_v22 = vadd.f32 %v14694_v63, %v8359_v32  ;;  %v9660_v63 = vadd.f32 %v14702_v54, %v8359_v32  ;;  %14713 = vst [vmem:[#allocation81_spill] sm:$0xff] %v9688_v43  ;;  %v14714_v54 = vld [vmem:[#allocation82_spill] sm:$0xff]  ;;  %v14738_v13 = vld [vmem:[#allocation93_spill] sm:$0xff] }
 0x390   : > { %14717 = vst [vmem:[#allocation83_spill] sm:$0xff] %v9698_v56  ;;  %14723 = vst [vmem:[#allocation85_spill] sm:$0xff] %v9714_v9  ;;  %v9738_v57 = vadd.f32 %v8362_v34, %v14732_v47  ;;  %v9750_v43 = vadd.f32 %v14738_v13, %v8359_v32  ;;  %v14745_v60 = vld [vmem:[#allocation95_spill] sm:$0xff]  ;;  %v14769_v9 = vld [vmem:[#allocation106_spill] sm:$0xff] }
 0x391   : > { %v9615_v21 = vpop.permute.xlu1 %2026  ;;  %v9617_v26 = vpop.permute.xlu0 %2022  ;;  %14695 = vst [vmem:[#allocation73_spill] sm:$0xff] %v9643_v22  ;;  %14703 = vst [vmem:[#allocation77_spill] sm:$0xff] %v9660_v63  ;;  %v14734_v22 = vld [vmem:[#allocation91_spill] sm:$0xff] }
 0x392   : > { %14682 = vst [vmem:[#allocation271_spill] sm:$0xff] %v9615_v21  ;;  %14683 = vst [vmem:[#allocation272_spill] sm:$0xff] %v9617_v26  ;;  %v14753_v13 = vld [vmem:[#allocation99_spill] sm:$0xff]  ;;  %v14914_v26 = vld [vmem:[#allocation169_spill] sm:$0xff] }
 0x393   : > { %2300 = vbcast.lane.b32.xlu1 %v2286_v49, 280  ;;  %2296 = vbcast.lane.b32.xlu0 %v2286_v49, 272  ;;  %v9664_v49 = vadd.f32 %v8362_v34, %v14704_v52  ;;  %v9694_v52 = vadd.f32 %v8362_v34, %v14714_v54  ;;  %v9710_v54 = vadd.f32 %v8357_v31, %v14720_v33  ;;  %v14763_v56 = vld [vmem:[#allocation103_spill] sm:$0xff] }
 0x394   : > { %14725 = vst [vmem:[#allocation86_spill] sm:$0xff] %v9718_v20  ;;  %14727 = vst [vmem:[#allocation87_spill] sm:$0xff] %v9722_v45  ;;  %v9728_v33 = vadd.f32 %v8357_v31, %v14728_v1  ;;  %v14736_v1 = vld [vmem:[#allocation92_spill] sm:$0xff]  ;;  %v14759_v20 = vld [vmem:[#allocation101_spill] sm:$0xff]  ;;  %v10232_v21 = vadd.f32 %v8362_v34, %v14914_v26 }
 0x395   : > { %14705 = vst [vmem:[#allocation78_spill] sm:$0xff] %v9664_v49  ;;  %v9670_v12 = vpop.permute.xlu1 %2034  ;;  %v9672_v53 = vpop.permute.xlu0 %2030  ;;  %14715 = vst [vmem:[#allocation82_spill] sm:$0xff] %v9694_v52  ;;  %v9742_v49 = vadd.f32 %v14734_v22, %v8364_v35  ;;  %v9746_v27 = vadd.f32 %v8357_v31, %v14736_v1  ;;  %v9762_v22 = vrot.slane %v8932_v39, %v8380_v46  ;;  %v14761_v1 = vld [vmem:[#allocation102_spill] sm:$0xff]  ;;  %v14922_v26 = vld [vmem:[#allocation172_spill] sm:$0xff] }
 0x396   : > { %14708 = vst [vmem:[#allocation273_spill] sm:$0xff] %v9670_v12  ;;  %14709 = vst [vmem:[#allocation274_spill] sm:$0xff] %v9672_v53  ;;  %v9784_v52 = vadd.f32 %v14749_v62, %v8359_v32  ;;  %v9812_v45 = vadd.f32 %v14759_v20, %v8359_v32  ;;  %v14847_v12 = vld [vmem:[#allocation140_spill] sm:$0xff] }
 0x397   : > { %2311 = vbcast.lane.b32.xlu1 %v2305_v6, 264  ;;  %2307 = vbcast.lane.b32.xlu0 %v2305_v6, 256  ;;  %14721 = vst [vmem:[#allocation84_spill] sm:$0xff] %v9710_v54  ;;  %14729 = vst [vmem:[#allocation88_spill] sm:$0xff] %v9728_v33  ;;  %v9816_v33 = vadd.f32 %v8362_v34, %v14761_v1  ;;  %v14767_v54 = vld [vmem:[#allocation105_spill] sm:$0xff] }
 0x398   : > { %14731 = vst [vmem:[#allocation89_spill] sm:$0xff] %v9732_v58  ;;  %14733 = vst [vmem:[#allocation90_spill] sm:$0xff] %v9738_v57  ;;  %v9800_v57 = vadd.f32 %v14753_v13, %v8364_v35  ;;  %v9820_v13 = vadd.f32 %v14763_v56, %v8364_v35  ;;  %v9830_v20 = vadd.f32 %v14767_v54, %v8359_v32  ;;  %v14773_v54 = vld [vmem:[#allocation108_spill] sm:$0xff] }
 0x399   : > { %v9704_v28 = vpop.permute.xlu1 %2045  ;;  %v9706_v16 = vpop.permute.xlu0 %2041  ;;  %14735 = vst [vmem:[#allocation91_spill] sm:$0xff] %v9742_v49  ;;  %14737 = vst [vmem:[#allocation92_spill] sm:$0xff] %v9746_v27  ;;  %v14771_v27 = vld [vmem:[#allocation107_spill] sm:$0xff] }
 0x39a   : > { %14718 = vst [vmem:[#allocation275_spill] sm:$0xff] %v9704_v28  ;;  %14719 = vst [vmem:[#allocation276_spill] sm:$0xff] %v9706_v16 }
 0x39b   : > { %2319 = vbcast.lane.b32.xlu1 %v2305_v6, 280  ;;  %2315 = vbcast.lane.b32.xlu0 %v2305_v6, 272  ;;  %14739 = vst [vmem:[#allocation93_spill] sm:$0xff] %v9750_v43  ;;  %v14740_v6 = vld [vmem:[#allocation94_spill] sm:$0xff]  ;;  %14744 = vst [vmem:[#allocation279_spill] sm:$0xff] %v9762_v22  ;;  %v14765_v43 = vld [vmem:[#allocation104_spill] sm:$0xff] }
 0x39c   : > { %v9754_v41 = vadd.f32 %v8362_v34, %v14740_v6  ;;  %14750 = vst [vmem:[#allocation97_spill] sm:$0xff] %v9784_v52  ;;  %v14751_v6 = vld [vmem:[#allocation98_spill] sm:$0xff]  ;;  %14754 = vst [vmem:[#allocation99_spill] sm:$0xff] %v9800_v57  ;;  %v9865_v57 = vpop.f32.mrb[14].mxu1 }
 0x39d   : > { %v9756_v63 = vpop.permute.xlu1 %2053  ;;  %v9758_v47 = vpop.permute.xlu0 %2049  ;;  %14760 = vst [vmem:[#allocation101_spill] sm:$0xff] %v9812_v45  ;;  %14762 = vst [vmem:[#allocation102_spill] sm:$0xff] %v9816_v33  ;;  %v14801_v45 = vld [vmem:[#allocation119_spill] sm:$0xff] }
 0x39e   : > { %14741 = vst [vmem:[#allocation94_spill] sm:$0xff] %v9754_v41  ;;  %14742 = vst [vmem:[#allocation277_spill] sm:$0xff] %v9756_v63  ;;  %v9772_v63 = vadd.f32 %v14745_v60, %v8364_v35  ;;  %v9788_v60 = vadd.f32 %v8362_v34, %v14751_v6  ;;  %v14757_v6 = vld [vmem:[#allocation100_spill] sm:$0xff]  ;;  %v9838_v41 = vadd.f32 %v8362_v34, %v14769_v9 }
 0x39f   : > { %14743 = vst [vmem:[#allocation278_spill] sm:$0xff] %v9758_v47  ;;  %v14747_v47 = vld [vmem:[#allocation96_spill] sm:$0xff]  ;;  %2330 = vbcast.lane.b32.xlu1 %v9762_v22, 264  ;;  %2326 = vbcast.lane.b32.xlu0 %v9762_v22, 256  ;;  %v9808_v58 = vadd.f32 %v8357_v31, %v14757_v6  ;;  %14764 = vst [vmem:[#allocation103_spill] sm:$0xff] %v9820_v13  ;;  %v9826_v6 = vadd.f32 %v8357_v31, %v14765_v43 }
 0x3a0   : > { %14746 = vst [vmem:[#allocation95_spill] sm:$0xff] %v9772_v63  ;;  %v9776_v16 = vadd.f32 %v8357_v31, %v14747_v47  ;;  %14752 = vst [vmem:[#allocation98_spill] sm:$0xff] %v9788_v60  ;;  %v9793_v47 = vld [vmem:[%s13897_s5] ss:$0 sm:$0xff]  ;;  %v9842_v43 = vadd.f32 %v14771_v27, %v8364_v35  ;;  %v9847_v63 = vadd.f32 %v8357_v31, %v14773_v54  ;;  %v9879_v60 = vpop.f32.mrb[15].mxu1 }
 0x3a1   : > { %v9802_v62 = vpop.permute.xlu1 %2064  ;;  %v9804_v49 = vpop.permute.xlu0 %2060  ;;  %14758 = vst [vmem:[#allocation100_spill] sm:$0xff] %v9808_v58  ;;  %14766 = vst [vmem:[#allocation104_spill] sm:$0xff] %v9826_v6  ;;  %v9859_v9 = vrot.slane %v8930_v55, %v8346_v24  ;;  %v14785_v27 = vld [vmem:[#allocation112_spill] sm:$0xff]  ;;  %v14797_v6 = vld [vmem:[#allocation117_spill] sm:$0xff] }
 0x3a2   : > { %14748 = vst [vmem:[#allocation96_spill] sm:$0xff] %v9776_v16  ;;  %14755 = vst [vmem:[#allocation280_spill] sm:$0xff] %v9802_v62  ;;  %v14782_v62 = vld [vmem:[#allocation111_spill] sm:$0xff]  ;;  %v9885_v52 = vadd.f32 %v8357_v31, %v14785_v27  ;;  %v9903_v27 = vrot.slane %v8930_v55, %v8353_v29  ;;  %v14807_v58 = vld [vmem:[#allocation122_spill] sm:$0xff] }
 0x3a3   : > { %14756 = vst [vmem:[#allocation281_spill] sm:$0xff] %v9804_v49  ;;  %14768 = vst [vmem:[#allocation105_spill] sm:$0xff] %v9830_v20  ;;  %3125 = vbcast.lane.b32.xlu1 %v9793_v47, 256  ;;  %2334 = vbcast.lane.b32.xlu0 %v9762_v22, 272  ;;  %v14775_v22 = vld [vmem:[#allocation109_spill] sm:$0xff]  ;;  %v9875_v28 = vadd.f32 %v14782_v62, %v8364_v35  ;;  %v14789_v20 = vld [vmem:[#allocation114_spill] sm:$0xff] }
 0x3a4   : > { %14770 = vst [vmem:[#allocation106_spill] sm:$0xff] %v9838_v41  ;;  %14772 = vst [vmem:[#allocation107_spill] sm:$0xff] %v9842_v43  ;;  %v9851_v49 = vadd.f32 %v14775_v22, %v8359_v32  ;;  %v9895_v33 = vadd.f32 %v8362_v34, %v14789_v20  ;;  %v14793_v22 = vld [vmem:[#allocation115_spill] sm:$0xff]  ;;  %v14795_v41 = vld [vmem:[#allocation116_spill] sm:$0xff]  ;;  %v9915_v20 = vadd.f32 %v14797_v6, %v8359_v32 }
 0x3a5   : > { %14774 = vst [vmem:[#allocation108_spill] sm:$0xff] %v9847_v63  ;;  %v9853_v1 = vpop.permute.xlu1 %2072  ;;  %v9855_v56 = vpop.permute.xlu0 %2068  ;;  %14779 = vst [vmem:[#allocation284_spill] sm:$0xff] %v9865_v57  ;;  %v9911_v62 = vadd.f32 %v8357_v31, %v14795_v41  ;;  %v14799_v63 = vld [vmem:[#allocation118_spill] sm:$0xff]  ;;  %v14803_v57 = vld [vmem:[#allocation120_spill] sm:$0xff] }
 0x3a6   : > { %14776 = vst [vmem:[#allocation109_spill] sm:$0xff] %v9851_v49  ;;  %14777 = vst [vmem:[#allocation282_spill] sm:$0xff] %v9853_v1  ;;  %v14780_v1 = vld [vmem:[#allocation110_spill] sm:$0xff]  ;;  %v9919_v49 = vadd.f32 %v8362_v34, %v14799_v63  ;;  %v9929_v41 = vadd.f32 %v8357_v31, %v14803_v57  ;;  %v14805_v43 = vld [vmem:[#allocation121_spill] sm:$0xff] }
 0x3a7   : > { %14778 = vst [vmem:[#allocation283_spill] sm:$0xff] %v9855_v56  ;;  %v9871_v56 = vadd.f32 %v8362_v34, %v14780_v1  ;;  %14783 = vst [vmem:[#allocation111_spill] sm:$0xff] %v9875_v28  ;;  %2364 = vbcast.lane.b32.xlu1 %v9859_v9, 256  ;;  %3129 = vbcast.lane.b32.xlu0 %v9793_v47, 264  ;;  %v14787_v1 = vld [vmem:[#allocation113_spill] sm:$0xff]  ;;  %v14809_v57 = vld [vmem:[#allocation123_spill] sm:$0xff] }
 0x3a8   : > { %14784 = vst [vmem:[#allocation285_spill] sm:$0xff] %v9879_v60  ;;  %14786 = vst [vmem:[#allocation112_spill] sm:$0xff] %v9885_v52  ;;  %v9889_v16 = vadd.f32 %v14787_v1, %v8359_v32  ;;  %v9907_v1 = vadd.f32 %v14793_v22, %v8364_v35  ;;  %v9925_v22 = vadd.f32 %v14801_v45, %v8364_v35  ;;  %v14819_v52 = vld [vmem:[#allocation127_spill] sm:$0xff] }
 0x3a9   : > { %14781 = vst [vmem:[#allocation110_spill] sm:$0xff] %v9871_v56  ;;  %14790 = vst [vmem:[#allocation114_spill] sm:$0xff] %v9895_v33  ;;  %v9897_v13 = vpop.permute.xlu1 %2083  ;;  %v9899_v54 = vpop.permute.xlu0 %2079  ;;  %v9937_v56 = vadd.f32 %v14805_v43, %v8359_v32  ;;  %v9941_v45 = vadd.f32 %v8362_v34, %v14807_v58  ;;  %v9946_v60 = vadd.f32 %v14809_v57, %v8364_v35 }
 0x3aa   : > { %14788 = vst [vmem:[#allocation113_spill] sm:$0xff] %v9889_v16  ;;  %14791 = vst [vmem:[#allocation286_spill] sm:$0xff] %v9897_v13  ;;  %v9958_v43 = vrot.slane %v8930_v55, %v8366_v36  ;;  %v14815_v16 = vld [vmem:[#allocation125_spill] sm:$0xff]  ;;  %v9980_v33 = vadd.f32 %v14819_v52, %v8364_v35 }
 0x3ab   : > { %14792 = vst [vmem:[#allocation287_spill] sm:$0xff] %v9899_v54  ;;  %14794 = vst [vmem:[#allocation115_spill] sm:$0xff] %v9907_v1  ;;  %2383 = vbcast.lane.b32.xlu1 %v9903_v27, 256  ;;  %2368 = vbcast.lane.b32.xlu0 %v9859_v9, 264  ;;  %v14811_v54 = vld [vmem:[#allocation124_spill] sm:$0xff] }
 0x3ac   : > { %14796 = vst [vmem:[#allocation116_spill] sm:$0xff] %v9911_v62  ;;  %14798 = vst [vmem:[#allocation117_spill] sm:$0xff] %v9915_v20  ;;  %v9950_v13 = vadd.f32 %v8357_v31, %v14811_v54  ;;  %v14821_v54 = vld [vmem:[#allocation128_spill] sm:$0xff]  ;;  %v14837_v20 = vld [vmem:[#allocation135_spill] sm:$0xff] }
 0x3ad   : > { %14800 = vst [vmem:[#allocation118_spill] sm:$0xff] %v9919_v49  ;;  %14802 = vst [vmem:[#allocation119_spill] sm:$0xff] %v9925_v22  ;;  %v9952_v6 = vpop.permute.xlu1 %2091  ;;  %v9954_v63 = vpop.permute.xlu0 %2087  ;;  %v14825_v22 = vld [vmem:[#allocation130_spill] sm:$0xff]  ;;  %v14839_v1 = vld [vmem:[#allocation136_spill] sm:$0xff] }
 0x3ae   : > { %14804 = vst [vmem:[#allocation120_spill] sm:$0xff] %v9929_v41  ;;  %14806 = vst [vmem:[#allocation121_spill] sm:$0xff] %v9937_v56  ;;  %v14823_v41 = vld [vmem:[#allocation129_spill] sm:$0xff]  ;;  %v9994_v28 = vadd.f32 %v8362_v34, %v14825_v22  ;;  %v14831_v56 = vld [vmem:[#allocation132_spill] sm:$0xff] }
 0x3af   : > { %14808 = vst [vmem:[#allocation122_spill] sm:$0xff] %v9941_v45  ;;  %14810 = vst [vmem:[#allocation123_spill] sm:$0xff] %v9946_v60  ;;  %2402 = vbcast.lane.b32.xlu1 %v9958_v43, 256  ;;  %2387 = vbcast.lane.b32.xlu0 %v9903_v27, 264  ;;  %v9990_v49 = vadd.f32 %v14823_v41, %v8359_v32  ;;  %v14829_v45 = vld [vmem:[#allocation131_spill] sm:$0xff]  ;;  %v10006_v58 = vadd.f32 %v8357_v31, %v14831_v56  ;;  %v14841_v60 = vld [vmem:[#allocation137_spill] sm:$0xff] }
 0x3b0   : > { %14812 = vst [vmem:[#allocation124_spill] sm:$0xff] %v9950_v13  ;;  %14813 = vst [vmem:[#allocation288_spill] sm:$0xff] %v9952_v6  ;;  %v9968_v6 = vadd.f32 %v14815_v16, %v8359_v32  ;;  %v9984_v16 = vadd.f32 %v8357_v31, %v14821_v54  ;;  %v10002_v54 = vadd.f32 %v14829_v45, %v8364_v35  ;;  %v14835_v13 = vld [vmem:[#allocation134_spill] sm:$0xff] }
 0x3b1   : > { %14814 = vst [vmem:[#allocation289_spill] sm:$0xff] %v9954_v63  ;;  %v14817_v63 = vld [vmem:[#allocation126_spill] sm:$0xff]  ;;  %14820 = vst [vmem:[#allocation127_spill] sm:$0xff] %v9980_v33  ;;  %v9996_v57 = vpop.permute.xlu1 %2102  ;;  %v9998_v52 = vpop.permute.xlu0 %2098  ;;  %v10014_v22 = vadd.f32 %v8362_v34, %v14835_v13  ;;  %v10020_v45 = vadd.f32 %v14837_v20, %v8364_v35  ;;  %v10024_v56 = vadd.f32 %v8357_v31, %v14839_v1 }
 0x3b2   : > { %14816 = vst [vmem:[#allocation125_spill] sm:$0xff] %v9968_v6  ;;  %v9972_v53 = vadd.f32 %v8362_v34, %v14817_v63  ;;  %14822 = vst [vmem:[#allocation128_spill] sm:$0xff] %v9984_v16  ;;  %v14833_v63 = vld [vmem:[#allocation133_spill] sm:$0xff]  ;;  %v10032_v6 = vadd.f32 %v14841_v60, %v8359_v32  ;;  %v14843_v62 = vld [vmem:[#allocation138_spill] sm:$0xff] }
 0x3b3   : > { %14824 = vst [vmem:[#allocation129_spill] sm:$0xff] %v9990_v49  ;;  %14826 = vst [vmem:[#allocation130_spill] sm:$0xff] %v9994_v28  ;;  %v10010_v41 = vadd.f32 %v14833_v63, %v8359_v32  ;;  %3133 = vbcast.lane.b32.xlu1 %v9793_v47, 272  ;;  %2406 = vbcast.lane.b32.xlu0 %v9958_v43, 264  ;;  %v10036_v20 = vadd.f32 %v8362_v34, %v14843_v62  ;;  %v14851_v49 = vld [vmem:[#allocation141_spill] sm:$0xff]  ;;  %v14853_v33 = vld [vmem:[#allocation142_spill] sm:$0xff] }
 0x3b4   : > { %14818 = vst [vmem:[#allocation126_spill] sm:$0xff] %v9972_v53  ;;  %14827 = vst [vmem:[#allocation290_spill] sm:$0xff] %v9996_v57  ;;  %v10046_v63 = vadd.f32 %v8357_v31, %v14847_v12  ;;  %v10060_v12 = vadd.f32 %v14851_v49, %v8359_v32  ;;  %v14855_v28 = vld [vmem:[#allocation143_spill] sm:$0xff]  ;;  %v14863_v1 = vld [vmem:[#allocation146_spill] sm:$0xff] }
 0x3b5   : > { %14828 = vst [vmem:[#allocation291_spill] sm:$0xff] %v9998_v52  ;;  %14830 = vst [vmem:[#allocation131_spill] sm:$0xff] %v10002_v54  ;;  %v14845_v52 = vld [vmem:[#allocation139_spill] sm:$0xff]  ;;  %v10048_v13 = vpop.permute.xlu1 %2110  ;;  %v10050_v60 = vpop.permute.xlu0 %2106  ;;  %v10072_v53 = vadd.f32 %v14855_v28, %v8364_v35  ;;  %v10090_v28 = vrot.slane %v8930_v55, %v8369_v38 }
 0x3b6   : > { %14832 = vst [vmem:[#allocation132_spill] sm:$0xff] %v10006_v58  ;;  %14834 = vst [vmem:[#allocation133_spill] sm:$0xff] %v10010_v41  ;;  %v10042_v57 = vadd.f32 %v14845_v52, %v8364_v35  ;;  %v14857_v52 = vld [vmem:[#allocation144_spill] sm:$0xff]  ;;  %v14865_v16 = vld [vmem:[#allocation147_spill] sm:$0xff] }
 0x3b7   : > { %14836 = vst [vmem:[#allocation134_spill] sm:$0xff] %v10014_v22  ;;  %14838 = vst [vmem:[#allocation135_spill] sm:$0xff] %v10020_v45  ;;  %2391 = vbcast.lane.b32.xlu1 %v9903_v27, 272  ;;  %2372 = vbcast.lane.b32.xlu0 %v9859_v9, 272  ;;  %v10076_v49 = vadd.f32 %v8357_v31, %v14857_v52  ;;  %v10094_v52 = vadd.f32 %v8362_v34, %v14863_v1  ;;  %v14871_v41 = vld [vmem:[#allocation150_spill] sm:$0xff]  ;;  %v14873_v54 = vld [vmem:[#allocation151_spill] sm:$0xff] }
 0x3b8   : > { %14840 = vst [vmem:[#allocation136_spill] sm:$0xff] %v10024_v56  ;;  %14842 = vst [vmem:[#allocation137_spill] sm:$0xff] %v10032_v6  ;;  %v14859_v56 = vld [vmem:[#allocation145_spill] sm:$0xff]  ;;  %v10112_v1 = vadd.f32 %v8362_v34, %v14871_v41  ;;  %v10124_v6 = vadd.f32 %v8357_v31, %v8876_v25  ;;  %v14876_v58 = vld [vmem:[#allocation152_spill] sm:$0xff]  ;;  %v10145_v25 = vrot.slane %v8930_v55, %v8372_v40 }
 0x3b9   : > { %14844 = vst [vmem:[#allocation138_spill] sm:$0xff] %v10036_v20  ;;  %14846 = vst [vmem:[#allocation139_spill] sm:$0xff] %v10042_v57  ;;  %v10082_v22 = vadd.f32 %v14859_v56, %v8359_v32  ;;  %v10084_v45 = vpop.permute.xlu1 %2121  ;;  %v10086_v62 = vpop.permute.xlu0 %2117  ;;  %v10098_v20 = vadd.f32 %v14865_v16, %v8364_v35  ;;  %v10116_v16 = vadd.f32 %v14873_v54, %v8364_v35  ;;  %v14878_v54 = vld [vmem:[#allocation153_spill] sm:$0xff] }
 0x3ba   : > { %14848 = vst [vmem:[#allocation140_spill] sm:$0xff] %v10046_v63  ;;  %14849 = vst [vmem:[#allocation292_spill] sm:$0xff] %v10048_v13  ;;  %v10064_v13 = vadd.f32 %v8362_v34, %v14853_v33  ;;  %v14867_v33 = vld [vmem:[#allocation148_spill] sm:$0xff]  ;;  %v14869_v63 = vld [vmem:[#allocation149_spill] sm:$0xff]  ;;  %v10128_v41 = vadd.f32 %v14876_v58, %v8359_v32  ;;  %v10161_v58 = vrot.slane %v9040_v19, %v8346_v24 }
 0x3bb   : > { %14850 = vst [vmem:[#allocation293_spill] sm:$0xff] %v10050_v60  ;;  %14852 = vst [vmem:[#allocation141_spill] sm:$0xff] %v10060_v12  ;;  %v10102_v56 = vadd.f32 %v8357_v31, %v14867_v33  ;;  %v10106_v57 = vadd.f32 %v14869_v63, %v8359_v32  ;;  %2425 = vbcast.lane.b32.xlu1 %v10090_v28, 264  ;;  %2421 = vbcast.lane.b32.xlu0 %v10090_v28, 256 }
 0x3bc   : > { %14854 = vst [vmem:[#allocation142_spill] sm:$0xff] %v10064_v13  ;;  %14856 = vst [vmem:[#allocation143_spill] sm:$0xff] %v10072_v53  ;;  %v10133_v12 = vadd.f32 %v8362_v34, %v14878_v54  ;;  %v14884_v53 = vld [vmem:[#allocation155_spill] sm:$0xff] }
 0x3bd   : > { %14858 = vst [vmem:[#allocation144_spill] sm:$0xff] %v10076_v49  ;;  %14860 = vst [vmem:[#allocation145_spill] sm:$0xff] %v10082_v22  ;;  %v10139_v33 = vpop.permute.xlu1 %2129  ;;  %v10141_v63 = vpop.permute.xlu0 %2125  ;;  %v14886_v22 = vld [vmem:[#allocation156_spill] sm:$0xff] }
 0x3be   : > { %14861 = vst [vmem:[#allocation294_spill] sm:$0xff] %v10084_v45  ;;  %14862 = vst [vmem:[#allocation295_spill] sm:$0xff] %v10086_v62  ;;  %v14880_v62 = vld [vmem:[#allocation154_spill] sm:$0xff]  ;;  %v10167_v13 = vadd.f32 %v14886_v22, %v8359_v32 }
 0x3bf   : > { %14864 = vst [vmem:[#allocation146_spill] sm:$0xff] %v10094_v52  ;;  %14866 = vst [vmem:[#allocation147_spill] sm:$0xff] %v10098_v20  ;;  %v10137_v45 = vadd.f32 %v14880_v62, %v8364_v35  ;;  %2440 = vbcast.lane.b32.xlu1 %v10145_v25, 256  ;;  %2410 = vbcast.lane.b32.xlu0 %v9958_v43, 272  ;;  %v14888_v62 = vld [vmem:[#allocation157_spill] sm:$0xff]  ;;  %v14892_v52 = vld [vmem:[#allocation159_spill] sm:$0xff] }
 0x3c0   : > { %14868 = vst [vmem:[#allocation148_spill] sm:$0xff] %v10102_v56  ;;  %14870 = vst [vmem:[#allocation149_spill] sm:$0xff] %v10106_v57  ;;  %v14890_v56 = vld [vmem:[#allocation158_spill] sm:$0xff]  ;;  %v10181_v49 = vadd.f32 %v8357_v31, %v14892_v52  ;;  %v14904_v20 = vld [vmem:[#allocation164_spill] sm:$0xff] }
 0x3c1   : > { %14872 = vst [vmem:[#allocation150_spill] sm:$0xff] %v10112_v1  ;;  %14874 = vst [vmem:[#allocation151_spill] sm:$0xff] %v10116_v16  ;;  %v10177_v57 = vadd.f32 %v14890_v56, %v8364_v35  ;;  %v10183_v54 = vpop.permute.xlu1 %2140  ;;  %v10185_v22 = vpop.permute.xlu0 %2136  ;;  %v14900_v16 = vld [vmem:[#allocation162_spill] sm:$0xff] }
 0x3c2   : > { %14875 = vst [vmem:[#allocation296_spill] sm:$0xff] %v10124_v6  ;;  %14877 = vst [vmem:[#allocation152_spill] sm:$0xff] %v10128_v41  ;;  %v14896_v6 = vld [vmem:[#allocation160_spill] sm:$0xff]  ;;  %v14898_v41 = vld [vmem:[#allocation161_spill] sm:$0xff]  ;;  %v10197_v56 = vadd.f32 %v14900_v16, %v8364_v35 }
 0x3c3   : > { %14879 = vst [vmem:[#allocation153_spill] sm:$0xff] %v10133_v12  ;;  %14881 = vst [vmem:[#allocation154_spill] sm:$0xff] %v10137_v45  ;;  %v10193_v1 = vadd.f32 %v8362_v34, %v14898_v41  ;;  %v14902_v12 = vld [vmem:[#allocation163_spill] sm:$0xff]  ;;  %v14908_v41 = vld [vmem:[#allocation166_spill] sm:$0xff]  ;;  %2444 = vbcast.lane.b32.xlu0 %v10145_v25, 264  ;;  %2516 = vbcast.lane.b32.xlu1 %v10161_v58, 256 }
 0x3c4   : > { %14882 = vst [vmem:[#allocation297_spill] sm:$0xff] %v10139_v33  ;;  %14883 = vst [vmem:[#allocation298_spill] sm:$0xff] %v10141_v63  ;;  %v10155_v33 = vadd.f32 %v8357_v31, %v14884_v53  ;;  %v10171_v53 = vadd.f32 %v8362_v34, %v14888_v62  ;;  %v10189_v62 = vadd.f32 %v14896_v6, %v8359_v32  ;;  %v14906_v6 = vld [vmem:[#allocation165_spill] sm:$0xff]  ;;  %v14910_v45 = vld [vmem:[#allocation167_spill] sm:$0xff] }
 0x3c5   : > { %14887 = vst [vmem:[#allocation156_spill] sm:$0xff] %v10167_v13  ;;  %14891 = vst [vmem:[#allocation158_spill] sm:$0xff] %v10177_v57  ;;  %v10201_v52 = vadd.f32 %v8357_v31, %v14902_v12  ;;  %v10214_v63 = vadd.f32 %v14908_v41, %v8364_v35  ;;  %v10234_v14 = vpop.permute.xlu1 %2148  ;;  %v10236_v12 = vpop.permute.xlu0 %2144  ;;  %v14918_v57 = vld [vmem:[#allocation170_spill] sm:$0xff]  ;;  %v14920_v16 = vld [vmem:[#allocation171_spill] sm:$0xff] }
 0x3c6   : > { %14885 = vst [vmem:[#allocation155_spill] sm:$0xff] %v10155_v33  ;;  %14889 = vst [vmem:[#allocation157_spill] sm:$0xff] %v10171_v53  ;;  %v14912_v33 = vld [vmem:[#allocation168_spill] sm:$0xff]  ;;  %v10251_v13 = vadd.f32 %v14918_v57, %v8364_v35  ;;  %v10259_v41 = vadd.f32 %v8357_v31, %v14920_v16  ;;  %v14924_v57 = vld [vmem:[#allocation173_spill] sm:$0xff]  ;;  %v10280_v16 = vrot.slane %v8930_v55, %v8375_v42 }
 0x3c7   : > { %14893 = vst [vmem:[#allocation159_spill] sm:$0xff] %v10181_v49  ;;  %14894 = vst [vmem:[#allocation299_spill] sm:$0xff] %v10183_v54  ;;  %v10210_v54 = vadd.f32 %v8362_v34, %v14906_v6  ;;  %v10226_v6 = vadd.f32 %v14912_v33, %v8359_v32  ;;  %2520 = vbcast.lane.b32.xlu0 %v10161_v58, 264  ;;  %v10263_v49 = vadd.f32 %v14922_v26, %v8359_v32  ;;  %v14931_v26 = vld [vmem:[#allocation175_spill] sm:$0xff]  ;;  %v14933_v53 = vld [vmem:[#allocation176_spill] sm:$0xff] }
 0x3c8   : > { %14895 = vst [vmem:[#allocation300_spill] sm:$0xff] %v10185_v22  ;;  %14897 = vst [vmem:[#allocation160_spill] sm:$0xff] %v10189_v62  ;;  %v10206_v22 = vadd.f32 %v14904_v20, %v8359_v32  ;;  %v10222_v20 = vadd.f32 %v8357_v31, %v14910_v45  ;;  %v10240_v45 = vrot.slane %v9040_v19, %v8353_v29 }
 0x3c9   : > { %14899 = vst [vmem:[#allocation161_spill] sm:$0xff] %v10193_v1  ;;  %14901 = vst [vmem:[#allocation162_spill] sm:$0xff] %v10197_v56  ;;  %v10274_v33 = vpop.permute.xlu1 %2159  ;;  %v10276_v60 = vpop.permute.xlu0 %2155  ;;  %v14938_v1 = vld [vmem:[#allocation178_spill] sm:$0xff] }
 0x3ca   : > { %14903 = vst [vmem:[#allocation163_spill] sm:$0xff] %v10201_v52  ;;  %14905 = vst [vmem:[#allocation164_spill] sm:$0xff] %v10206_v22  ;;  %2535 = vbcast.lane.b32.xlu1 %v10240_v45, 256  ;;  %v10301_v56 = vadd.f32 %v14938_v1, %v8364_v35  ;;  %v10317_v1 = vrot.slane %v8930_v55, %v8380_v46 }
 0x3cb   : > { %14907 = vst [vmem:[#allocation165_spill] sm:$0xff] %v10210_v54  ;;  %14909 = vst [vmem:[#allocation166_spill] sm:$0xff] %v10214_v63  ;;  %v10268_v54 = vadd.f32 %v8362_v34, %v14924_v57  ;;  %v14926_v63 = vld [vmem:[#allocation174_spill] sm:$0xff]  ;;  %v10288_v57 = vadd.f32 %v14933_v53, %v8359_v32  ;;  %v14942_v53 = vld [vmem:[#allocation180_spill] sm:$0xff]  ;;  %2539 = vbcast.lane.b32.xlu0 %v10240_v45, 264 }
 0x3cc   : > { %14911 = vst [vmem:[#allocation167_spill] sm:$0xff] %v10222_v20  ;;  %14913 = vst [vmem:[#allocation168_spill] sm:$0xff] %v10226_v6  ;;  %v10272_v52 = vadd.f32 %v14926_v63, %v8364_v35  ;;  %v10284_v20 = vadd.f32 %v8357_v31, %v14931_v26  ;;  %v10296_v6 = vrot.slane %v8932_v39, %v8385_v48  ;;  %v14940_v26 = vld [vmem:[#allocation179_spill] sm:$0xff] }
 0x3cd   : > { %14915 = vst [vmem:[#allocation169_spill] sm:$0xff] %v10232_v21  ;;  %14916 = vst [vmem:[#allocation301_spill] sm:$0xff] %v10234_v14  ;;  %v14935_v21 = vld [vmem:[#allocation177_spill] sm:$0xff]  ;;  %v10305_v62 = vadd.f32 %v8357_v31, %v14940_v26  ;;  %v10321_v26 = vrot.slane %v8930_v55, %v8385_v48 }
 0x3ce   : > { %14917 = vst [vmem:[#allocation302_spill] sm:$0xff] %v10236_v12  ;;  %14919 = vst [vmem:[#allocation170_spill] sm:$0xff] %v10251_v13  ;;  %v10292_v63 = vadd.f32 %v8362_v34, %v14935_v21  ;;  %3137 = vbcast.lane.b32.xlu1 %v9793_v47, 280  ;;  %v14946_v13 = vld [vmem:[#allocation181_spill] sm:$0xff]  ;;  %v14948_v47 = vld [vmem:[#allocation182_spill] sm:$0xff]  ;;  %v10333_v21 = vpop.permute.xlu1 %2167 }
 0x3cf   : > { %14921 = vst [vmem:[#allocation171_spill] sm:$0xff] %v10259_v41  ;;  %14923 = vst [vmem:[#allocation172_spill] sm:$0xff] %v10263_v49  ;;  %v10331_v39 = vadd.f32 %v14948_v47, %v8364_v35  ;;  %v10335_v41 = vpop.permute.xlu0 %2163  ;;  %v14954_v49 = vld [vmem:[#allocation184_spill] sm:$0xff]  ;;  %2376 = vbcast.lane.b32.xlu0 %v9859_v9, 280  ;;  %v14960_v47 = vld [vmem:[#allocation187_spill] sm:$0xff] }
 0x3d0   : > { %14925 = vst [vmem:[#allocation173_spill] sm:$0xff] %v10268_v54  ;;  %14927 = vst [vmem:[#allocation174_spill] sm:$0xff] %v10272_v52  ;;  %v14952_v54 = vld [vmem:[#allocation183_spill] sm:$0xff]  ;;  %v10355_v55 = vadd.f32 %v14954_v49, %v8359_v32  ;;  %v10369_v52 = vadd.f32 %v8357_v31, %v14960_v47  ;;  %v14962_v49 = vld [vmem:[#allocation188_spill] sm:$0xff] }
 0x3d1   : > { %14928 = vst [vmem:[#allocation303_spill] sm:$0xff] %v10274_v33  ;;  %14929 = vst [vmem:[#allocation304_spill] sm:$0xff] %v10276_v60  ;;  %v10309_v60 = vadd.f32 %v14942_v53, %v8359_v32  ;;  %v10327_v33 = vadd.f32 %v8362_v34, %v14946_v13  ;;  %v10342_v22 = vadd.f32 %v8357_v31, %v14952_v54  ;;  %v14956_v54 = vld [vmem:[#allocation185_spill] sm:$0xff]  ;;  %v14958_v13 = vld [vmem:[#allocation186_spill] sm:$0xff] }
 0x3d2   : > { %14930 = vst [vmem:[#allocation305_spill] sm:$0xff] %v10280_v16  ;;  %14932 = vst [vmem:[#allocation175_spill] sm:$0xff] %v10284_v20  ;;  %2395 = vbcast.lane.b32.xlu1 %v9903_v27, 280  ;;  %v10361_v53 = vadd.f32 %v8362_v34, %v14956_v54  ;;  %v10385_v20 = vpop.permute.xlu1 %2178  ;;  %v14972_v9 = vld [vmem:[#allocation192_spill] sm:$0xff]  ;;  %v14989_v12 = vld [vmem:[#allocation199_spill] sm:$0xff] }
 0x3d3   : > { %14934 = vst [vmem:[#allocation176_spill] sm:$0xff] %v10288_v57  ;;  %14936 = vst [vmem:[#allocation177_spill] sm:$0xff] %v10292_v63  ;;  %v10365_v63 = vadd.f32 %v14958_v13, %v8364_v35  ;;  %v10387_v47 = vpop.permute.xlu0 %2174  ;;  %v10396_v27 = vadd.f32 %v14972_v9, %v8359_v32  ;;  %v14978_v57 = vld [vmem:[#allocation195_spill] sm:$0xff]  ;;  %2429 = vbcast.lane.b32.xlu0 %v10090_v28, 272 }
 0x3d4   : > { %14937 = vst [vmem:[#allocation306_spill] sm:$0xff] %v10296_v6  ;;  %14939 = vst [vmem:[#allocation178_spill] sm:$0xff] %v10301_v56  ;;  %v14966_v56 = vld [vmem:[#allocation190_spill] sm:$0xff] }
 0x3d5   : > { %14941 = vst [vmem:[#allocation179_spill] sm:$0xff] %v10305_v62  ;;  %14943 = vst [vmem:[#allocation180_spill] sm:$0xff] %v10309_v60  ;;  %v10373_v62 = vadd.f32 %v14962_v49, %v8359_v32  ;;  %v14964_v60 = vld [vmem:[#allocation189_spill] sm:$0xff]  ;;  %v10383_v13 = vadd.f32 %v14966_v56, %v8364_v35  ;;  %v14970_v49 = vld [vmem:[#allocation191_spill] sm:$0xff] }
 0x3d6   : > { %14944 = vst [vmem:[#allocation307_spill] sm:$0xff] %v10317_v1  ;;  %14945 = vst [vmem:[#allocation308_spill] sm:$0xff] %v10321_v26  ;;  %v10379_v54 = vadd.f32 %v8362_v34, %v14964_v60  ;;  %v14974_v60 = vld [vmem:[#allocation193_spill] sm:$0xff]  ;;  %v6729_v56 = vld [vmem:[%s10348_s13] sm:$0xff]  ;;  %2459 = vbcast.lane.b32.xlu1 %v10280_v16, 256  ;;  %v10425_v26 = vpop.permute.xlu1 %2186 }
 0x3d7   : > { %14947 = vst [vmem:[#allocation181_spill] sm:$0xff] %v10327_v33  ;;  %14949 = vst [vmem:[#allocation182_spill] sm:$0xff] %v10331_v39  ;;  %v10400_v33 = vadd.f32 %v8362_v34, %v14974_v60  ;;  %v6730_v39 = vld [vmem:[%s10348_s13 + $0x8] sm:$0xff]  ;;  %v6731_v60 = vld [vmem:[%s10348_s13 + $0x10] sm:$0xff]  ;;  %2463 = vbcast.lane.b32.xlu0 %v10280_v16, 264 }
 0x3d8   : > { %14950 = vst [vmem:[#allocation309_spill] sm:$0xff] %v10333_v21  ;;  %14951 = vst [vmem:[#allocation310_spill] sm:$0xff] %v10335_v41  ;;  %v10392_v41 = vadd.f32 %v8357_v31, %v14970_v49  ;;  %v10411_v49 = vadd.f32 %v8357_v31, %v14978_v57  ;;  %v7626_v9 = vpack.c.bf16 %v6730_v39, %v6729_v56  ;;  %v10427_v39 = vpop.permute.xlu0 %2182  ;;  %v15020_v16 = vld [vmem:[#allocation214_spill] sm:$0xff] }
 0x3d9   : > { %14953 = vst [vmem:[#allocation183_spill] sm:$0xff] %v10342_v22  ;;  %14955 = vst [vmem:[#allocation184_spill] sm:$0xff] %v10355_v55  ;;  %v14980_v55 = vld [vmem:[#allocation196_spill] sm:$0xff]  ;;  %v10431_v56 = vrot.slane %v9040_v19, %v8366_v36  ;;  %v6732_v22 = vld [vmem:[%s10348_s13 + $0x18] sm:$0xff] }
 0x3da   : > { %14957 = vst [vmem:[#allocation185_spill] sm:$0xff] %v10361_v53  ;;  %14959 = vst [vmem:[#allocation186_spill] sm:$0xff] %v10365_v63  ;;  %v10423_v14 = vadd.f32 %v14980_v55, %v8359_v32  ;;  %7627 = vmatprep.subr.bf16.mxu0 %v7626_v9  ;;  %7658 = vmatprep.subr.bf16.mxu1 %v7626_v9  ;;  %v7630_v57 = vpack.c.bf16 %v6732_v22, %v6731_v60  ;;  %v14997_v60 = vld [vmem:[#allocation203_spill] sm:$0xff]  ;;  %v15004_v22 = vld [vmem:[#allocation205_spill] sm:$0xff] }
 0x3db   : > { %14961 = vst [vmem:[#allocation187_spill] sm:$0xff] %v10369_v52  ;;  %14963 = vst [vmem:[#allocation188_spill] sm:$0xff] %v10373_v62  ;;  %7629 = vmatpush3.bf16.msra.mxu0 %v7626_v9  ;;  %7666 = vmatpush3.bf16.msra.mxu1 %v7626_v9  ;;  %v14987_v52 = vld [vmem:[#allocation198_spill] sm:$0xff]  ;;  %v14991_v9 = vld [vmem:[#allocation200_spill] sm:$0xff] }
 0x3dc   : > { %14965 = vst [vmem:[#allocation189_spill] sm:$0xff] %v10379_v54  ;;  %14967 = vst [vmem:[#allocation190_spill] sm:$0xff] %v10383_v13  ;;  %v10446_v62 = vadd.f32 %v14987_v52, %v8364_v35  ;;  %2554 = vbcast.lane.b32.xlu1 %v10431_v56, 256  ;;  %v14993_v54 = vld [vmem:[#allocation201_spill] sm:$0xff]  ;;  %v14995_v52 = vld [vmem:[#allocation202_spill] sm:$0xff]  ;;  %7631 = vmatprep.subr.bf16.mxu0 %v7630_v57 }
 0x3dd   : > { %14968 = vst [vmem:[#allocation311_spill] sm:$0xff] %v10385_v20  ;;  %14969 = vst [vmem:[#allocation312_spill] sm:$0xff] %v10387_v47  ;;  %v14976_v47 = vld [vmem:[#allocation194_spill] sm:$0xff]  ;;  %v14985_v20 = vld [vmem:[#allocation197_spill] sm:$0xff]  ;;  %v10460_v13 = vadd.f32 %v8362_v34, %v14993_v54  ;;  %v10477_v54 = vpop.permute.xlu0 %2193  ;;  %7659 = vmatprep.subr.bf16.mxu1 %v7630_v57  ;;  %2558 = vbcast.lane.b32.xlu0 %v10431_v56, 264 }
 0x3de   : > { %14971 = vst [vmem:[#allocation191_spill] sm:$0xff] %v10392_v41  ;;  %14973 = vst [vmem:[#allocation192_spill] sm:$0xff] %v10396_v27  ;;  %v10407_v21 = vadd.f32 %v14976_v47, %v8364_v35  ;;  %v10438_v55 = vadd.f32 %v8362_v34, %v14985_v20  ;;  %v10452_v20 = vadd.f32 %v8357_v31, %v14989_v12  ;;  %v15003_v41 = vld [vmem:[#allocation213_spill] sm:$0xff]  ;;  %v15008_v53 = vld [vmem:[#allocation207_spill] sm:$0xff] }
 0x3df   : > { %14975 = vst [vmem:[#allocation193_spill] sm:$0xff] %v10400_v33  ;;  %14979 = vst [vmem:[#allocation195_spill] sm:$0xff] %v10411_v49  ;;  %v10456_v47 = vadd.f32 %v14991_v9, %v8359_v32  ;;  %v10464_v49 = vadd.f32 %v14995_v52, %v8364_v35  ;;  %v10469_v12 = vadd.f32 %v8357_v31, %v14997_v60  ;;  %v14999_v33 = vld [vmem:[#allocation204_spill] sm:$0xff]  ;;  %7633 = vmatpush3.bf16.msra.mxu0 %v7630_v57 }
 0x3e0   : > { %14977 = vst [vmem:[#allocation194_spill] sm:$0xff] %v10407_v21  ;;  %14981 = vst [vmem:[#allocation196_spill] sm:$0xff] %v10423_v14  ;;  %v10473_v9 = vadd.f32 %v14999_v33, %v8359_v32  ;;  %v10475_v21 = vpop.permute.xlu1 %2197  ;;  %v10481_v27 = vrot.slane %v15003_v41, %v8346_v24  ;;  %v10486_v60 = vadd.f32 %v8362_v34, %v15004_v22  ;;  %v15006_v14 = vld [vmem:[#allocation206_spill] sm:$0xff]  ;;  %7667 = vmatpush3.bf16.msra.mxu1 %v7630_v57  ;;  %v15010_v52 = vld [vmem:[#allocation208_spill] sm:$0xff] }
 0x3e1   : > { %14982 = vst [vmem:[#allocation313_spill] sm:$0xff] %v10425_v26  ;;  %14983 = vst [vmem:[#allocation314_spill] sm:$0xff] %v10427_v39  ;;  %v10490_v33 = vadd.f32 %v15006_v14, %v8364_v35  ;;  %v10494_v63 = vadd.f32 %v8357_v31, %v15008_v53  ;;  %v15012_v22 = vld [vmem:[#allocation209_spill] sm:$0xff]  ;;  %v15016_v39 = vld [vmem:[#allocation211_spill] sm:$0xff] }
 0x3e2   : > { %14984 = vst [vmem:[#allocation315_spill] sm:$0xff] %v10431_v56  ;;  %14986 = vst [vmem:[#allocation197_spill] sm:$0xff] %v10438_v55  ;;  %v10501_v55 = vadd.f32 %v15010_v52, %v8359_v32  ;;  %v10505_v26 = vadd.f32 %v8362_v34, %v15012_v22  ;;  %2668 = vbcast.lane.b32.xlu1 %v10481_v27, 256  ;;  %v6735_v53 = vld [vmem:[%s10348_s13 + $0x30] sm:$0xff]  ;;  %v6736_v57 = vld [vmem:[%s10348_s13 + $0x38] sm:$0xff]  ;;  %2672 = vbcast.lane.b32.xlu0 %v10481_v27, 264 }
 0x3e3   : > { %14988 = vst [vmem:[#allocation198_spill] sm:$0xff] %v10446_v62  ;;  %14990 = vst [vmem:[#allocation199_spill] sm:$0xff] %v10452_v20  ;;  %v15014_v62 = vld [vmem:[#allocation210_spill] sm:$0xff]  ;;  %v7638_v22 = vpack.c.bf16 %v6736_v57, %v6735_v53 }
 0x3e4   : > { %14992 = vst [vmem:[#allocation200_spill] sm:$0xff] %v10456_v47  ;;  %14994 = vst [vmem:[#allocation201_spill] sm:$0xff] %v10460_v13  ;;  %v10517_v56 = vadd.f32 %v15014_v62, %v8364_v35  ;;  %v10519_v24 = vpop.permute.xlu1 %2205  ;;  %v10532_v62 = vadd.f32 %v8357_v31, %v15016_v39  ;;  %v15018_v13 = vld [vmem:[#allocation212_spill] sm:$0xff]  ;;  %v10546_v39 = vadd.f32 %v8362_v34, %v15020_v16 }
 0x3e5   : > { %14996 = vst [vmem:[#allocation202_spill] sm:$0xff] %v10464_v49  ;;  %14998 = vst [vmem:[#allocation203_spill] sm:$0xff] %v10469_v12  ;;  %v10540_v49 = vadd.f32 %v15018_v13, %v8359_v32  ;;  %v10558_v13 = vrot.slane %v15003_v41, %v8366_v36  ;;  %v10571_v12 = vrot.slane %v15003_v41, %v8369_v38  ;;  %v15032_v47 = vld [vmem:[#allocation216_spill] sm:$0xff] }
 0x3e6   : > { %15000 = vst [vmem:[#allocation204_spill] sm:$0xff] %v10473_v9  ;;  %15001 = vst [vmem:[#allocation316_spill] sm:$0xff] %v10475_v21  ;;  %v6734_v21 = vld [vmem:[%s10348_s13 + $0x28] sm:$0xff]  ;;  %v10554_v9 = vrot.slane %v9040_v19, %v8369_v38  ;;  %v10595_v53 = vadd.f32 %v8357_v31, %v15032_v47  ;;  %v15039_v47 = vld [vmem:[#allocation219_spill] sm:$0xff] }
 0x3e7   : > { %15002 = vst [vmem:[#allocation317_spill] sm:$0xff] %v10477_v54  ;;  %15005 = vst [vmem:[#allocation205_spill] sm:$0xff] %v10486_v60  ;;  %v6733_v54 = vld [vmem:[%s10348_s13 + $0x20] sm:$0xff] }
 0x3e8   : > { %15007 = vst [vmem:[#allocation206_spill] sm:$0xff] %v10490_v33  ;;  %15009 = vst [vmem:[#allocation207_spill] sm:$0xff] %v10494_v63  ;;  %v7634_v14 = vpack.c.bf16 %v6734_v21, %v6733_v54  ;;  %v10521_v21 = vpop.permute.xlu0 %2201  ;;  %v10525_v54 = vrot.slane %v15003_v41, %v8353_v29  ;;  %v10561_v57 = vpop.permute.xlu1 %2216  ;;  %v10584_v63 = vrot.slane %v9040_v19, %v8380_v46  ;;  %v6737_v60 = vld [vmem:[%s10348_s13 + $0x40] sm:$0xff]  ;;  %v6738_v33 = vld [vmem:[%s10348_s13 + $0x48] sm:$0xff] }
 0x3e9   : > { %15011 = vst [vmem:[#allocation208_spill] sm:$0xff] %v10501_v55  ;;  %15013 = vst [vmem:[#allocation209_spill] sm:$0xff] %v10505_v26  ;;  %v10575_v26 = vrot.slane %v9040_v19, %v8375_v42  ;;  %v10588_v55 = vrot.slane %v15003_v41, %v8375_v42  ;;  %v7642_v42 = vpack.c.bf16 %v6738_v33, %v6737_v60  ;;  %v15042_v60 = vld [vmem:[#allocation220_spill] sm:$0xff] }
 0x3ea   : > { %15015 = vst [vmem:[#allocation210_spill] sm:$0xff] %v10517_v56  ;;  %7635 = vmatprep.subr.bf16.mxu0 %v7634_v14  ;;  %7660 = vmatprep.subr.bf16.mxu1 %v7634_v14  ;;  %15017 = vst [vmem:[#allocation211_spill] sm:$0xff] %v10532_v62  ;;  %v10580_v56 = vrot.slane %v15003_v41, %v8372_v40  ;;  %v15035_v62 = vld [vmem:[#allocation217_spill] sm:$0xff]  ;;  %v10622_v33 = vadd.f32 %v8357_v31, %v15042_v60 }
 0x3eb   : > { %7637 = vmatpush3.bf16.msra.mxu0 %v7634_v14  ;;  %7668 = vmatpush3.bf16.msra.mxu1 %v7634_v14  ;;  %15019 = vst [vmem:[#allocation212_spill] sm:$0xff] %v10540_v49  ;;  %15021 = vst [vmem:[#allocation214_spill] sm:$0xff] %v10546_v39  ;;  %v15022_v14 = vld [vmem:[#allocation215_spill] sm:$0xff]  ;;  %v10613_v49 = vadd.f32 %v15039_v47, %v8364_v35  ;;  %v15054_v39 = vld [vmem:[#allocation225_spill] sm:$0xff] }
 0x3ec   : > { %2687 = vbcast.lane.b32.xlu1 %v10525_v54, 256  ;;  %v10550_v52 = vadd.f32 %v15022_v14, %v8364_v35  ;;  %15024 = vst [vmem:[#allocation318_spill] sm:$0xff] %v10554_v9  ;;  %15025 = vst [vmem:[#allocation319_spill] sm:$0xff] %v10558_v13  ;;  %v10563_v16 = vpop.permute.xlu0 %2212  ;;  %v10567_v14 = vrot.slane %v9040_v19, %v8372_v40  ;;  %7639 = vmatprep.subr.bf16.mxu0 %v7638_v22 }
 0x3ed   : > { %15027 = vst [vmem:[#allocation321_spill] sm:$0xff] %v10571_v12  ;;  %15028 = vst [vmem:[#allocation322_spill] sm:$0xff] %v10575_v26  ;;  %7661 = vmatprep.subr.bf16.mxu1 %v7638_v22  ;;  %2691 = vbcast.lane.b32.xlu0 %v10525_v54, 264  ;;  %v10601_v40 = vrot.slane %v9040_v19, %v8385_v48  ;;  %v15046_v48 = vld [vmem:[#allocation222_spill] sm:$0xff]  ;;  %v6740_v26 = vld [vmem:[%s10348_s13 + $0x58] sm:$0xff] }
 0x3ee   : > { %15023 = vst [vmem:[#allocation215_spill] sm:$0xff] %v10550_v52  ;;  %15026 = vst [vmem:[#allocation320_spill] sm:$0xff] %v10567_v14  ;;  %v10630_v47 = vadd.f32 %v8362_v34, %v15046_v48  ;;  %v10647_v48 = vadd.f32 %v15054_v39, %v8359_v32  ;;  %v15060_v12 = vld [vmem:[#allocation230_spill] sm:$0xff]  ;;  %v10704_v39 = vadd.f32 %v9178_v30, %v8359_v32 }
 0x3ef   : > { %15029 = vst [vmem:[#allocation323_spill] sm:$0xff] %v10580_v56  ;;  %15030 = vst [vmem:[#allocation324_spill] sm:$0xff] %v10584_v63  ;;  %7641 = vmatpush3.bf16.msra.mxu0 %v7638_v22  ;;  %7669 = vmatpush3.bf16.msra.mxu1 %v7638_v22  ;;  %v10605_v22 = vadd.f32 %v15035_v62, %v8359_v32  ;;  %v10617_v63 = vrot.slane %v15003_v41, %v8380_v46  ;;  %v15044_v62 = vld [vmem:[#allocation221_spill] sm:$0xff]  ;;  %v15050_v46 = vld [vmem:[#allocation223_spill] sm:$0xff] }
 0x3f0   : > { %15031 = vst [vmem:[#allocation325_spill] sm:$0xff] %v10588_v55  ;;  %15033 = vst [vmem:[#allocation216_spill] sm:$0xff] %v10595_v53  ;;  %2345 = vbcast.lane.b32.xlu1 %v10296_v6, 256  ;;  %v15037_v55 = vld [vmem:[#allocation218_spill] sm:$0xff]  ;;  %v10634_v56 = vpop.permute.xlu0 %2220  ;;  %7643 = vmatprep.subr.bf16.mxu0 %v7642_v42  ;;  %v10639_v60 = vadd.f32 %v15050_v46, %v8364_v35  ;;  %v15052_v41 = vld [vmem:[#allocation224_spill] sm:$0xff]  ;;  %v10685_v53 = vadd.f32 %v8362_v34, %v9148_v0 }
 0x3f1   : > { %15034 = vst [vmem:[#allocation326_spill] sm:$0xff] %v10601_v40  ;;  %15036 = vst [vmem:[#allocation217_spill] sm:$0xff] %v10605_v22  ;;  %v10609_v20 = vadd.f32 %v8362_v34, %v15037_v55  ;;  %v10626_v55 = vadd.f32 %v15044_v62, %v8359_v32  ;;  %v10632_v40 = vpop.permute.xlu1 %2224  ;;  %7662 = vmatprep.subr.bf16.mxu1 %v7642_v42  ;;  %v10643_v62 = vadd.f32 %v8357_v31, %v15052_v41  ;;  %v15058_v46 = vld [vmem:[#allocation228_spill] sm:$0xff]  ;;  %v6744_v0 = vld [vmem:[%s10348_s13 + $0x78] sm:$0xff] }
 0x3f2   : > { %15040 = vst [vmem:[#allocation219_spill] sm:$0xff] %v10613_v49  ;;  %15041 = vst [vmem:[#allocation327_spill] sm:$0xff] %v10617_v63  ;;  %v6739_v63 = vld [vmem:[%s10348_s13 + $0x50] sm:$0xff]  ;;  %v10658_v52 = vadd.f32 %v15058_v46, %v8364_v35  ;;  %2349 = vbcast.lane.b32.xlu0 %v10296_v6, 264  ;;  %v6742_v6 = vld [vmem:[%s10348_s13 + $0x68] sm:$0xff]  ;;  %v10721_v30 = vadd.f32 %v9264_v17, %v8359_v32  ;;  %v10738_v17 = vadd.f32 %v8357_v31, %v9351_v8 }
 0x3f3   : > { %15038 = vst [vmem:[#allocation218_spill] sm:$0xff] %v10609_v20  ;;  %15043 = vst [vmem:[#allocation220_spill] sm:$0xff] %v10622_v33  ;;  %7645 = vmatpush3.bf16.msra.mxu0 %v7642_v42  ;;  %7670 = vmatpush3.bf16.msra.mxu1 %v7642_v42  ;;  %v7646_v41 = vpack.c.bf16 %v6740_v26, %v6739_v63  ;;  %v15063_v33 = vld [vmem:[#allocation246_spill] sm:$0xff]  ;;  %v15088_v49 = vld [vmem:[#allocation275_spill] sm:$0xff] }
 0x3f4   : > { %15045 = vst [vmem:[#allocation221_spill] sm:$0xff] %v10626_v55  ;;  %15047 = vst [vmem:[#allocation222_spill] sm:$0xff] %v10630_v47  ;;  %2414 = vbcast.lane.b32.xlu1 %v9958_v43, 280  ;;  %v15061_v43 = vld [vmem:[#allocation231_spill] sm:$0xff]  ;;  %v10678_v42 = vpop.permute.xlu0 %2231  ;;  %v10693_v55 = vadd.f32 %v15063_v33, %v8364_v35  ;;  %v10708_v33 = vadd.f32 %v8362_v34, %v9239_v50  ;;  %v10745_v50 = vadd.f32 %v9353_v15, %v8359_v32  ;;  %v15096_v20 = vld [vmem:[#allocation280_spill] sm:$0xff] }
 0x3f5   : > { %15048 = vst [vmem:[#allocation328_spill] sm:$0xff] %v10632_v40  ;;  %15049 = vst [vmem:[#allocation329_spill] sm:$0xff] %v10634_v56  ;;  %v15056_v56 = vld [vmem:[#allocation227_spill] sm:$0xff]  ;;  %v10674_v63 = vadd.f32 %v15061_v43, %v8359_v32  ;;  %v10676_v26 = vpop.permute.xlu1 %2235  ;;  %7647 = vmatprep.subr.bf16.mxu0 %v7646_v41  ;;  %7663 = vmatprep.subr.bf16.mxu1 %v7646_v41  ;;  %v6741_v43 = vld [vmem:[%s10348_s13 + $0x60] sm:$0xff]  ;;  %v10763_v15 = vadd.f32 %v9439_v18, %v8359_v32 }
 0x3f6   : > { %15051 = vst [vmem:[#allocation223_spill] sm:$0xff] %v10639_v60  ;;  %15053 = vst [vmem:[#allocation224_spill] sm:$0xff] %v10643_v62  ;;  %v10654_v19 = vadd.f32 %v8362_v34, %v15056_v56  ;;  %v10667_v56 = vadd.f32 %v8357_v31, %v15060_v12  ;;  %2448 = vbcast.lane.b32.xlu0 %v10145_v25, 272  ;;  %v7650_v40 = vpack.c.bf16 %v6742_v6, %v6741_v43  ;;  %v6743_v12 = vld [vmem:[%s10348_s13 + $0x70] sm:$0xff] }
 0x3f7   : > { %15055 = vst [vmem:[#allocation225_spill] sm:$0xff] %v10647_v48  ;;  %15059 = vst [vmem:[#allocation228_spill] sm:$0xff] %v10658_v52  ;;  %7649 = vmatpush3.bf16.msra.mxu0 %v7646_v41  ;;  %7671 = vmatpush3.bf16.msra.mxu1 %v7646_v41  ;;  %v10700_v41 = vadd.f32 %v8357_v31, %v9176_v11  ;;  %v10713_v6 = vadd.f32 %v9241_v37, %v8364_v35  ;;  %v15082_v52 = vld [vmem:[#allocation272_spill] sm:$0xff]  ;;  %v15084_v48 = vld [vmem:[#allocation273_spill] sm:$0xff] }
 0x3f8   : > { %15057 = vst [vmem:[#allocation227_spill] sm:$0xff] %v10654_v19  ;;  %15062 = vst [vmem:[#allocation230_spill] sm:$0xff] %v10685_v53  ;;  %2478 = vbcast.lane.b32.xlu1 %v10317_v1, 256  ;;  %v10717_v11 = vadd.f32 %v8357_v31, %v9262_v51  ;;  %v10725_v46 = vpop.permute.xlu0 %2239  ;;  %7651 = vmatprep.subr.bf16.mxu0 %v7650_v40  ;;  %v10730_v37 = vadd.f32 %v8362_v34, %v9323_v23  ;;  %v15086_v60 = vld [vmem:[#allocation274_spill] sm:$0xff]  ;;  %v15112_v53 = vld [vmem:[#allocation288_spill] sm:$0xff] }
 0x3f9   : > { %15064 = vst [vmem:[#allocation231_spill] sm:$0xff] %v10693_v55  ;;  %15065 = vst [vmem:[#allocation246_spill] sm:$0xff] %v10708_v33  ;;  %v10723_v43 = vpop.permute.xlu1 %2243  ;;  %7664 = vmatprep.subr.bf16.mxu1 %v7650_v40  ;;  %v10734_v51 = vadd.f32 %v9325_v61, %v8364_v35  ;;  %v10749_v23 = vadd.f32 %v8362_v34, %v9412_v59  ;;  %v7654_v8 = vpack.c.bf16 %v6744_v0, %v6743_v12  ;;  %v15080_v0 = vld [vmem:[#allocation271_spill] sm:$0xff]  ;;  %v15100_v33 = vld [vmem:[#allocation282_spill] sm:$0xff] }
 0x3fa   : > { %15066 = vst [vmem:[#allocation330_spill] sm:$0xff] %v10713_v6  ;;  %15067 = vst [vmem:[#allocation331_spill] sm:$0xff] %v10730_v37  ;;  %2482 = vbcast.lane.b32.xlu0 %v10317_v1, 264  ;;  %v10759_v61 = vadd.f32 %v8357_v31, %v9437_v10  ;;  %v10767_v59 = vadd.f32 %v8362_v34, %v9498_v4  ;;  %v10786_v62 = vadd.f32 %v9500_v7, %v8364_v35  ;;  %v15078_v4 = vld [vmem:[#allocation270_spill] sm:$0xff]  ;;  %v15098_v37 = vld [vmem:[#allocation281_spill] sm:$0xff] }
 0x3fb   : > { %15068 = vst [vmem:[#allocation332_spill] sm:$0xff] %v10734_v51  ;;  %15069 = vst [vmem:[#allocation333_spill] sm:$0xff] %v10738_v17  ;;  %7653 = vmatpush3.bf16.msra.mxu0 %v7650_v40  ;;  %7672 = vmatpush3.bf16.msra.mxu1 %v7650_v40  ;;  %v10755_v40 = vadd.f32 %v9414_v3, %v8364_v35  ;;  %v10796_v18 = vadd.f32 %v8357_v31, %v9526_v5  ;;  %v15109_v6 = vld [vmem:[#allocation285_spill] sm:$0xff]  ;;  %v11054_v17 = vstv %s10963_s14 }
 0x3fc   : > { %15070 = vst [vmem:[#allocation334_spill] sm:$0xff] %v10749_v23  ;;  %2524 = vbcast.lane.b32.xlu1 %v10161_v58, 272  ;;  %15072 = vst [vmem:[#allocation336_spill] sm:$0xff] %v10759_v61  ;;  %v10775_v10 = vpop.permute.xlu0 %2250  ;;  %7655 = vmatprep.subr.bf16.mxu0 %v7654_v8  ;;  %v10800_v7 = vadd.f32 %v9528_v2, %v8359_v32  ;;  %v10804_v12 = vadd.f32 %v8362_v34, %v9584_v44 }
 0x3fd   : > { %15071 = vst [vmem:[#allocation335_spill] sm:$0xff] %v10755_v40  ;;  %15073 = vst [vmem:[#allocation337_spill] sm:$0xff] %v10767_v59  ;;  %v10773_v19 = vpop.permute.xlu1 %2254  ;;  %7665 = vmatprep.subr.bf16.mxu1 %v7654_v8  ;;  %v10808_v3 = vadd.f32 %v15078_v4, %v8364_v35  ;;  %v10816_v5 = vadd.f32 %v8357_v31, %v15080_v0  ;;  %v10820_v2 = vadd.f32 %v15082_v52, %v8359_v32  ;;  %v15090_v0 = vld [vmem:[#allocation276_spill] sm:$0xff]  ;;  %v15092_v52 = vld [vmem:[#allocation277_spill] sm:$0xff] }
 0x3fe   : > { %15074 = vst [vmem:[#allocation338_spill] sm:$0xff] %v10786_v62  ;;  %2543 = vbcast.lane.b32.xlu0 %v10240_v45, 272  ;;  %15075 = vst [vmem:[#allocation339_spill] sm:$0xff] %v10796_v18  ;;  %v10824_v44 = vadd.f32 %v8362_v34, %v15084_v48  ;;  %v10828_v4 = vadd.f32 %v15086_v60, %v8364_v35  ;;  %v10833_v22 = vadd.f32 %v8357_v31, %v15088_v49  ;;  %v15094_v60 = vld [vmem:[#allocation278_spill] sm:$0xff]  ;;  %v15106_v40 = vld [vmem:[#allocation287_spill] sm:$0xff] }
 0x3ff   : > { %7657 = vmatpush3.bf16.msra.mxu0 %v7654_v8  ;;  %7673 = vmatpush3.bf16.msra.mxu1 %v7654_v8  ;;  %15076 = vst [vmem:[#allocation340_spill] sm:$0xff] %v10800_v7  ;;  %15077 = vst [vmem:[#allocation341_spill] sm:$0xff] %v10804_v12  ;;  %v10837_v59 = vadd.f32 %v15090_v0, %v8359_v32  ;;  %v10841_v23 = vadd.f32 %v8362_v34, %v15092_v52  ;;  %v15168_v7 = vld [vmem:[#allocation317_spill] sm:$0xff] }
 0x400   : > { %2573 = vbcast.lane.b32.xlu1 %v10554_v9, 256  ;;  %15079 = vst [vmem:[#allocation270_spill] sm:$0xff] %v10808_v3  ;;  %v10812_v8 = vpop.permute.xlu0 %2258  ;;  %15081 = vst [vmem:[#allocation271_spill] sm:$0xff] %v10816_v5  ;;  %v10847_v48 = vadd.f32 %v15094_v60, %v8364_v35  ;;  %v10851_v49 = vadd.f32 %v8357_v31, %v15096_v20  ;;  %v10855_v0 = vadd.f32 %v15098_v37, %v8359_v32  ;;  %v15102_v60 = vld [vmem:[#allocation283_spill] sm:$0xff]  ;;  %v15104_v37 = vld [vmem:[#allocation286_spill] sm:$0xff] }
 0x401   : > { %v10810_v47 = vpop.permute.xlu1 %2262  ;;  %15083 = vst [vmem:[#allocation272_spill] sm:$0xff] %v10820_v2  ;;  %15085 = vst [vmem:[#allocation273_spill] sm:$0xff] %v10824_v44  ;;  %v10859_v52 = vadd.f32 %v8362_v34, %v15100_v33  ;;  %v10878_v12 = vadd.f32 %v15102_v60, %v8364_v35  ;;  %v10888_v62 = vadd.f32 %v8357_v31, %v15104_v37  ;;  %v15114_v33 = vld [vmem:[#allocation289_spill] sm:$0xff]  ;;  %v15127_v5 = vld [vmem:[#allocation308_spill] sm:$0xff] }
 0x402   : > { %15087 = vst [vmem:[#allocation274_spill] sm:$0xff] %v10828_v4  ;;  %15089 = vst [vmem:[#allocation275_spill] sm:$0xff] %v10833_v22  ;;  %2577 = vbcast.lane.b32.xlu0 %v10554_v9, 264  ;;  %v10892_v60 = vadd.f32 %v15106_v40, %v8359_v32  ;;  %v10904_v55 = vrot.slane %v15109_v6, %v8353_v29  ;;  %v10908_v37 = vadd.f32 %v8362_v34, %v15112_v53  ;;  %v15122_v53 = vld [vmem:[#allocation293_spill] sm:$0xff]  ;;  %v15129_v3 = vld [vmem:[#allocation284_spill] sm:$0xff] }
 0x403   : > { %15091 = vst [vmem:[#allocation276_spill] sm:$0xff] %v10837_v59  ;;  %15093 = vst [vmem:[#allocation277_spill] sm:$0xff] %v10841_v23  ;;  %v10912_v40 = vadd.f32 %v15114_v33, %v8364_v35  ;;  %v10929_v22 = vadd.f32 %v15122_v53, %v8364_v35  ;;  %v15124_v33 = vld [vmem:[#allocation294_spill] sm:$0xff]  ;;  %v10947_v53 = vrot.slane %v15129_v3, %v8353_v29  ;;  %v15133_v2 = vld [vmem:[#allocation295_spill] sm:$0xff] }
 0x404   : > { %2706 = vbcast.lane.b32.xlu1 %v10558_v13, 256  ;;  %15095 = vst [vmem:[#allocation278_spill] sm:$0xff] %v10847_v48  ;;  %15097 = vst [vmem:[#allocation280_spill] sm:$0xff] %v10851_v49  ;;  %v10867_v20 = vpop.permute.xlu0 %2269  ;;  %v10933_v59 = vadd.f32 %v8357_v31, %v15124_v33  ;;  %v10951_v33 = vrot.slane %v15109_v6, %v8369_v38  ;;  %v10967_v29 = vrot.slane %v15129_v3, %v8366_v36  ;;  %v15139_v38 = vld [vmem:[#allocation298_spill] sm:$0xff] }
 0x405   : > { %15099 = vst [vmem:[#allocation281_spill] sm:$0xff] %v10855_v0  ;;  %15101 = vst [vmem:[#allocation282_spill] sm:$0xff] %v10859_v52  ;;  %v10865_v51 = vpop.permute.xlu1 %2273  ;;  %v15116_v52 = vld [vmem:[#allocation290_spill] sm:$0xff]  ;;  %v15118_v0 = vld [vmem:[#allocation291_spill] sm:$0xff] }
 0x406   : > { %15103 = vst [vmem:[#allocation283_spill] sm:$0xff] %v10878_v12  ;;  %2710 = vbcast.lane.b32.xlu0 %v10558_v13, 264  ;;  %15105 = vst [vmem:[#allocation286_spill] sm:$0xff] %v10888_v62  ;;  %v10916_v49 = vadd.f32 %v8357_v31, %v15116_v52  ;;  %v10920_v4 = vadd.f32 %v15118_v0, %v8359_v32  ;;  %v15126_v52 = vld [vmem:[#allocation305_spill] sm:$0xff]  ;;  %v10939_v0 = vrot.slane %v15109_v6, %v8366_v36  ;;  %v15138_v36 = vld [vmem:[#allocation315_spill] sm:$0xff] }
 0x407   : > { %15107 = vst [vmem:[#allocation287_spill] sm:$0xff] %v10892_v60  ;;  %15111 = vst [vmem:[#allocation342_spill] sm:$0xff] %v10904_v55  ;;  %v10957_v13 = vadd.f32 %v15133_v2, %v8359_v32  ;;  %v10984_v12 = vadd.f32 %v15139_v38, %v8364_v35  ;;  %v15143_v2 = vld [vmem:[#allocation300_spill] sm:$0xff]  ;;  %v15145_v60 = vld [vmem:[#allocation301_spill] sm:$0xff] }
 0x408   : > { %2433 = vbcast.lane.b32.xlu1 %v10090_v28, 280  ;;  %v10896_v44 = vpop.permute.xlu0 %2277  ;;  %v15108_v28 = vld [vmem:[#allocation4_spill] sm:$0xff]  ;;  %15113 = vst [vmem:[#allocation288_spill] sm:$0xff] %v10908_v37  ;;  %15115 = vst [vmem:[#allocation289_spill] sm:$0xff] %v10912_v40  ;;  %v10992_v62 = vadd.f32 %v15143_v2, %v8359_v32  ;;  %v15149_v38 = vld [vmem:[#allocation303_spill] sm:$0xff] }
 0x409   : > { %v10894_v23 = vpop.permute.xlu1 %2281  ;;  %v10900_v48 = vrot.slane %v15109_v6, %v15108_v28  ;;  %15117 = vst [vmem:[#allocation290_spill] sm:$0xff] %v10916_v49  ;;  %15119 = vst [vmem:[#allocation291_spill] sm:$0xff] %v10920_v4  ;;  %v15159_v40 = vld [vmem:[#allocation312_spill] sm:$0xff] }
 0x40a   : > { %15123 = vst [vmem:[#allocation293_spill] sm:$0xff] %v10929_v22  ;;  %15125 = vst [vmem:[#allocation294_spill] sm:$0xff] %v10933_v59  ;;  %2467 = vbcast.lane.b32.xlu0 %v15126_v52, 272  ;;  %v15141_v52 = vld [vmem:[#allocation299_spill] sm:$0xff]  ;;  %v15147_v59 = vld [vmem:[#allocation302_spill] sm:$0xff]  ;;  %v11005_v22 = vadd.f32 %v8357_v31, %v15149_v38 }
 0x40b   : > { %15110 = vst [vmem:[#allocation4_spill] sm:$0xff] %v10900_v48  ;;  %v15120_v48 = vld [vmem:[#allocation292_spill] sm:$0xff]  ;;  %15128 = vst [vmem:[#allocation343_spill] sm:$0xff] %v10939_v0  ;;  %v10988_v6 = vadd.f32 %v8357_v31, %v15141_v52 }
 0x40c   : > { %v10925_v55 = vadd.f32 %v8362_v34, %v15120_v48  ;;  %2497 = vbcast.lane.b32.xlu1 %v15127_v5, 256  ;;  %v10943_v48 = vrot.slane %v15129_v3, %v15108_v28  ;;  %15131 = vst [vmem:[#allocation345_spill] sm:$0xff] %v10947_v53  ;;  %15132 = vst [vmem:[#allocation346_spill] sm:$0xff] %v10951_v33  ;;  %v10961_v28 = vpop.permute.xlu0 %2288  ;;  %v15136_v33 = vld [vmem:[#allocation297_spill] sm:$0xff]  ;;  %v15151_v52 = vld [vmem:[#allocation304_spill] sm:$0xff] }
 0x40d   : > { %15134 = vst [vmem:[#allocation295_spill] sm:$0xff] %v10957_v13  ;;  %v10959_v0 = vpop.permute.xlu1 %2292  ;;  %15135 = vst [vmem:[#allocation347_spill] sm:$0xff] %v10967_v29  ;;  %v10978_v53 = vadd.f32 %v8362_v34, %v15136_v33  ;;  %v10996_v33 = vadd.f32 %v8362_v34, %v15145_v60  ;;  %v11009_v49 = vadd.f32 %v15151_v52, %v8359_v32  ;;  %v15153_v60 = vld [vmem:[#allocation309_spill] sm:$0xff]  ;;  %v15155_v3 = vld [vmem:[#allocation310_spill] sm:$0xff] }
 0x40e   : > { %15121 = vst [vmem:[#allocation292_spill] sm:$0xff] %v10925_v55  ;;  %15130 = vst [vmem:[#allocation344_spill] sm:$0xff] %v10943_v48  ;;  %2501 = vbcast.lane.b32.xlu0 %v15127_v5, 264  ;;  %v11001_v55 = vadd.f32 %v15147_v59, %v8364_v35  ;;  %v11017_v37 = vadd.f32 %v8362_v34, %v15153_v60  ;;  %v11021_v59 = vadd.f32 %v15155_v3, %v8364_v35  ;;  %v15157_v13 = vld [vmem:[#allocation311_spill] sm:$0xff]  ;;  %v15161_v48 = vld [vmem:[#allocation313_spill] sm:$0xff] }
 0x40f   : > { %15137 = vst [vmem:[#allocation297_spill] sm:$0xff] %v10978_v53  ;;  %15140 = vst [vmem:[#allocation298_spill] sm:$0xff] %v10984_v12  ;;  %v11025_v38 = vadd.f32 %v8357_v31, %v15157_v13  ;;  %v11029_v52 = vadd.f32 %v15159_v40, %v8359_v32  ;;  %v15163_v60 = vld [vmem:[#allocation314_spill] sm:$0xff]  ;;  %v15165_v3 = vld [vmem:[#allocation316_spill] sm:$0xff]  ;;  %v11075_v40 = vadd.f32 %v10521_v21, %v8364_v35 }
 0x410   : > { %2562 = vbcast.lane.b32.xlu1 %v15138_v36, 272  ;;  %15142 = vst [vmem:[#allocation299_spill] sm:$0xff] %v10988_v6  ;;  %15144 = vst [vmem:[#allocation300_spill] sm:$0xff] %v10992_v62  ;;  %v11013_v4 = vpop.permute.xlu0 %2296  ;;  %v11034_v36 = vadd.f32 %v8362_v34, %v15161_v48  ;;  %v11038_v5 = vadd.f32 %v15163_v60, %v8364_v35  ;;  %v11042_v18 = vadd.f32 %v8357_v31, %v15165_v3  ;;  %v15174_v60 = vld [vmem:[#allocation328_spill] sm:$0xff]  ;;  %v15176_v29 = vld [vmem:[#allocation329_spill] sm:$0xff] }
 0x411   : > { %15146 = vst [vmem:[#allocation301_spill] sm:$0xff] %v10996_v33  ;;  %15148 = vst [vmem:[#allocation302_spill] sm:$0xff] %v11001_v55  ;;  %v11011_v2 = vpop.permute.xlu1 %2300  ;;  %v11079_v48 = vadd.f32 %v8357_v31, %v10561_v57  ;;  %v11087_v53 = vadd.f32 %v8362_v34, %v15174_v60  ;;  %v11095_v21 = vadd.f32 %v8357_v31, %v10676_v26  ;;  %v15257_v62 = vld [vmem:[#allocation275_spill] sm:$0xff] }
 0x412   : > { %15150 = vst [vmem:[#allocation303_spill] sm:$0xff] %v11005_v22  ;;  %15152 = vst [vmem:[#allocation304_spill] sm:$0xff] %v11009_v49  ;;  %2592 = vbcast.lane.b32.xlu0 %v10567_v14, 256  ;;  %v11065_v22 = vadd.f32 %v15168_v7, %v8359_v32  ;;  %v11083_v7 = vadd.f32 %v10563_v16, %v8359_v32  ;;  %v11099_v57 = vadd.f32 %v10678_v42, %v8359_v32 }
 0x413   : > { %15154 = vst [vmem:[#allocation309_spill] sm:$0xff] %v11017_v37  ;;  %15156 = vst [vmem:[#allocation310_spill] sm:$0xff] %v11021_v59  ;;  %v11103_v16 = vadd.f32 %v8362_v34, %v10723_v43  ;;  %v11107_v60 = vadd.f32 %v10725_v46, %v8364_v35  ;;  %v11115_v26 = vadd.f32 %v10775_v10, %v8359_v32  ;;  %v15258_v12 = vmax.f32 %v15257_v62, 0.0  ;;  %v15259_v62 = vld [vmem:[#allocation263_spill] sm:$0xff] }
 0x414   : > { %15158 = vst [vmem:[#allocation311_spill] sm:$0xff] %v11025_v38  ;;  %15160 = vst [vmem:[#allocation312_spill] sm:$0xff] %v11029_v52  ;;  %2596 = vbcast.lane.b32.xlu1 %v10567_v14, 264  ;;  %v2308_v61 = vpop.permute.xlu0 %2307  ;;  %v11071_v14 = vadd.f32 %v8362_v34, %v10519_v24  ;;  %v11091_v24 = vadd.f32 %v15176_v29, %v8364_v35  ;;  %v11111_v29 = vadd.f32 %v8357_v31, %v10773_v19  ;;  %v15187_v19 = vld [vmem:[#allocation321_spill] sm:$0xff] }
 0x415   : > { %15162 = vst [vmem:[#allocation313_spill] sm:$0xff] %v11034_v36  ;;  %15164 = vst [vmem:[#allocation314_spill] sm:$0xff] %v11038_v5  ;;  %v2312_v3 = vpop.permute.xlu1 %2311  ;;  %v11120_v36 = vadd.f32 %v8362_v34, %v10810_v47  ;;  %v11124_v43 = vadd.f32 %v10812_v8, %v8364_v35  ;;  %v11128_v46 = vadd.f32 %v8357_v31, %v10865_v51  ;;  %v15200_v47 = vld [vmem:[#allocation264_spill] sm:$0xff] }
 0x416   : > { %15166 = vst [vmem:[#allocation316_spill] sm:$0xff] %v11042_v18  ;;  %15167 = vst [vmem:[#allocation348_spill] sm:$0xff] %v11054_v17  ;;  %2676 = vbcast.lane.b32.xlu0 %v10481_v27, 272  ;;  %v11153_v51 = vadd.f32 %v10867_v20, %v8359_v32  ;;  %v11159_v10 = vadd.f32 %v8362_v34, %v10894_v23  ;;  %v11167_v5 = vadd.f32 %v8357_v31, %v10959_v0  ;;  %v15272_v17 = vld [vmem:[#allocation32_spill] sm:$0xff] }
 0x417   : > { %15169 = vst [vmem:[#allocation317_spill] sm:$0xff] %v11065_v22  ;;  %15170 = vst [vmem:[#allocation349_spill] sm:$0xff] %v11071_v14  ;;  %v11163_v22 = vadd.f32 %v10896_v44, %v8364_v35  ;;  %v11171_v20 = vadd.f32 %v10961_v28, %v8359_v32  ;;  %v11175_v38 = vadd.f32 %v8362_v34, %v11011_v2 }
 0x418   : > { %2695 = vbcast.lane.b32.xlu1 %v10525_v54, 272  ;;  %15171 = vst [vmem:[#allocation350_spill] sm:$0xff] %v11075_v40  ;;  %15172 = vst [vmem:[#allocation351_spill] sm:$0xff] %v11079_v48  ;;  %v2316_v18 = vpop.permute.xlu0 %2315  ;;  %v11182_v23 = vadd.f32 %v8357_v31, %v2312_v3  ;;  %v11185_v44 = vadd.f32 %v2308_v61, %v8359_v32  ;;  %v15202_v3 = vld [vmem:[#allocation268_spill] sm:$0xff]  ;;  %v15221_v48 = vld [vmem:[#allocation266_spill] sm:$0xff] }
 0x419   : > { %15173 = vst [vmem:[#allocation352_spill] sm:$0xff] %v11083_v7  ;;  %15175 = vst [vmem:[#allocation328_spill] sm:$0xff] %v11087_v53  ;;  %v2320_v13 = vpop.permute.xlu1 %2319  ;;  %v11195_v2 = vadd.f32 %v2316_v18, %v8364_v35  ;;  %v15206_v18 = vld [vmem:[#allocation18_spill] sm:$0xff]  ;;  %v15222_v7 = vmax.f32 %v15221_v48, 0.0  ;;  %v15229_v48 = vld [vmem:[#allocation21_spill] sm:$0xff] }
 0x41a   : > { %15177 = vst [vmem:[#allocation329_spill] sm:$0xff] %v11091_v24  ;;  %15178 = vst [vmem:[#allocation353_spill] sm:$0xff] %v11095_v21  ;;  %2725 = vbcast.lane.b32.xlu0 %v15187_v19, 256  ;;  %v15189_v21 = vld [vmem:[#allocation306_spill] sm:$0xff]  ;;  %v11192_v28 = vadd.f32 %v8362_v34, %v2320_v13 }
 0x41b   : > { %15179 = vst [vmem:[#allocation354_spill] sm:$0xff] %v11099_v57  ;;  %15180 = vst [vmem:[#allocation355_spill] sm:$0xff] %v11103_v16  ;;  %v15204_v13 = vld [vmem:[#allocation14_spill] sm:$0xff] }
 0x41c   : > { %15181 = vst [vmem:[#allocation356_spill] sm:$0xff] %v11107_v60  ;;  %15182 = vst [vmem:[#allocation357_spill] sm:$0xff] %v11111_v29  ;;  %2729 = vbcast.lane.b32.xlu1 %v15187_v19, 264  ;;  %v11142_v37 = vpop.permute.xlu0 %2326  ;;  %v15214_v53 = vld [vmem:[#allocation34_spill] sm:$0xff] }
 0x41d   : > { %15183 = vst [vmem:[#allocation358_spill] sm:$0xff] %v11115_v26  ;;  %15184 = vst [vmem:[#allocation359_spill] sm:$0xff] %v11120_v36  ;;  %v11140_v52 = vpop.permute.xlu1 %2330  ;;  %v15207_v26 = vmax.f32 %v15206_v18, 0.0  ;;  %v15216_v18 = vmax.f32 %v10674_v63, 0.0  ;;  %v15220_v63 = vmax.f32 %v10763_v15, 0.0  ;;  %v15227_v15 = vld [vmem:[#allocation17_spill] sm:$0xff] }
 0x41e   : > { %15185 = vst [vmem:[#allocation360_spill] sm:$0xff] %v11124_v43  ;;  %15186 = vst [vmem:[#allocation361_spill] sm:$0xff] %v11128_v46  ;;  %2353 = vbcast.lane.b32.xlu0 %v15189_v21, 272  ;;  %v15203_v46 = vmax.f32 %v15202_v3, 0.0  ;;  %v15205_v43 = vmax.f32 %v15204_v13, 0.0  ;;  %v15215_v13 = vmax.f32 %v15214_v53, 0.0 }
 0x41f   : > { %15188 = vst [vmem:[#allocation321_spill] sm:$0xff] %v11153_v51  ;;  %15190 = vst [vmem:[#allocation362_spill] sm:$0xff] %v11159_v10  ;;  %v15212_v51 = vld [vmem:[#allocation30_spill] sm:$0xff]  ;;  %v15219_v53 = vmax.f32 %v10745_v50, 0.0  ;;  %v15274_v21 = vld [vmem:[#allocation36_spill] sm:$0xff] }
 0x420   : > { %2452 = vbcast.lane.b32.xlu1 %v10145_v25, 280  ;;  %15191 = vst [vmem:[#allocation363_spill] sm:$0xff] %v11163_v22  ;;  %15192 = vst [vmem:[#allocation364_spill] sm:$0xff] %v11167_v5  ;;  %v11179_v25 = vadd.f32 %v11013_v4, %v8364_v35  ;;  %v11189_v8 = vpop.permute.xlu0 %2334  ;;  %v15201_v4 = vmax.f32 %v15200_v47, 0.0  ;;  %v15208_v47 = vld [vmem:[#allocation22_spill] sm:$0xff]  ;;  %v15213_v57 = vmax.f32 %v15212_v51, 0.0 }
 0x421   : > { %15193 = vst [vmem:[#allocation365_spill] sm:$0xff] %v11171_v20  ;;  %15194 = vst [vmem:[#allocation366_spill] sm:$0xff] %v11175_v38  ;;  %v11187_v0 = vpop.permute.xlu1 %3125  ;;  %v15218_v51 = vmax.f32 %v10721_v30, 0.0  ;;  %v15270_v20 = vld [vmem:[#allocation28_spill] sm:$0xff] }
 0x422   : > { %15195 = vst [vmem:[#allocation367_spill] sm:$0xff] %v11179_v25  ;;  %15196 = vst [vmem:[#allocation368_spill] sm:$0xff] %v11182_v23  ;;  %v4168_v42 = vmul.f32 %v15201_v4, %v11187_v0  ;;  %v4172_v36 = vmul.f32 %v15203_v46, %v11187_v0  ;;  %2486 = vbcast.lane.b32.xlu0 %v10317_v1, 272  ;;  %v4176_v29 = vmul.f32 %v15205_v43, %v11187_v0  ;;  %v15210_v46 = vld [vmem:[#allocation26_spill] sm:$0xff] }
 0x423   : > { %15197 = vst [vmem:[#allocation369_spill] sm:$0xff] %v11185_v44  ;;  %15198 = vst [vmem:[#allocation370_spill] sm:$0xff] %v11192_v28  ;;  %v4180_v16 = vmul.f32 %v15207_v26, %v11187_v0  ;;  %v15209_v4 = vmax.f32 %v15208_v47, 0.0  ;;  %v15211_v3 = vmax.f32 %v15210_v46, 0.0  ;;  %v4196_v43 = vmul.f32 %v15215_v13, %v11187_v0  ;;  %v15290_v25 = vld [vmem:[#allocation274_spill] sm:$0xff] }
 0x424   : > { %15199 = vst [vmem:[#allocation371_spill] sm:$0xff] %v11195_v2  ;;  %2528 = vbcast.lane.b32.xlu1 %v10161_v58, 280  ;;  %v4192_v58 = vmul.f32 %v15213_v57, %v11187_v0  ;;  %v11227_v26 = vmul.f32 %v15216_v18, %v11187_v0  ;;  %v11229_v47 = vpop.permute.xlu0 %3129  ;;  %v4432_v57 = vmul.f32 %v15218_v51, %v11187_v0  ;;  %v15225_v51 = vld [vmem:[#allocation13_spill] sm:$0xff] }
 0x425   : > { %v4184_v60 = vmul.f32 %v15209_v4, %v11187_v0  ;;  %v4188_v61 = vmul.f32 %v15211_v3, %v11187_v0  ;;  %v2365_v24 = vpop.permute.xlu1 %2364  ;;  %v15217_v4 = vmax.f32 %v10704_v39, 0.0  ;;  %v4436_v3 = vmul.f32 %v15219_v53, %v11187_v0 }
 0x426   : > { %v11243_v13 = vmul.f32 %v15220_v63, %v11187_v0  ;;  %v3496_v18 = vadd.f32 %v2365_v24, %v8359_v32  ;;  %v4169_v39 = vmul.f32 %v15222_v7, %v11229_v47  ;;  %v15226_v14 = vmax.f32 %v15225_v51, 0.0  ;;  %2547 = vbcast.lane.b32.xlu0 %v10240_v45, 280  ;;  %v15235_v45 = vld [vmem:[#allocation33_spill] sm:$0xff] }
 0x427   : > { %v4428_v46 = vmul.f32 %v15217_v4, %v11187_v0  ;;  %v15223_v4 = vld [vmem:[#allocation267_spill] sm:$0xff]  ;;  %v15228_v24 = vmax.f32 %v15227_v15, 0.0  ;;  %v15230_v7 = vmax.f32 %v15229_v48, 0.0  ;;  %v15236_v49 = vmax.f32 %v15235_v45, 0.0 }
 0x428   : > { %v15224_v2 = vmax.f32 %v15223_v4, 0.0  ;;  %v4177_v50 = vmul.f32 %v15226_v14, %v11229_v47  ;;  %2581 = vbcast.lane.b32.xlu1 %v10554_v9, 272  ;;  %v4008_v51 = vmax.f32 %v3496_v18, 0.0  ;;  %v15233_v14 = vld [vmem:[#allocation29_spill] sm:$0xff]  ;;  %v11273_v55 = vadd.f32 %v4169_v39, %v4168_v42  ;;  %v15237_v42 = vld [vmem:[#allocation322_spill] sm:$0xff] }
 0x429   : > { %v4181_v63 = vmul.f32 %v15228_v24, %v11229_v47  ;;  %v4185_v40 = vmul.f32 %v15230_v7, %v11229_v47  ;;  %v15234_v53 = vmax.f32 %v15233_v14, 0.0  ;;  %v4197_v33 = vmul.f32 %v15236_v49, %v11229_v47  ;;  %v2384_v15 = vpop.permute.xlu1 %2383  ;;  %v2369_v24 = vpop.permute.xlu0 %2368 }
 0x42a   : > { %v4173_v30 = vmul.f32 %v15224_v2, %v11229_v47  ;;  %v15231_v2 = vld [vmem:[#allocation25_spill] sm:$0xff]  ;;  %v11277_v48 = vadd.f32 %v4177_v50, %v4176_v29  ;;  %v4520_v18 = vmul.f32 %v4008_v51, %v11187_v0  ;;  %2611 = vbcast.lane.b32.xlu0 %v15237_v42, 256 }
 0x42b   : > { %v15232_v4 = vmax.f32 %v15231_v2, 0.0  ;;  %v4193_v10 = vmul.f32 %v15234_v53, %v11229_v47  ;;  %v11279_v7 = vadd.f32 %v4181_v63, %v4180_v16  ;;  %v11281_v2 = vadd.f32 %v4185_v40, %v4184_v60 }
 0x42c   : > { %v11275_v6 = vadd.f32 %v4173_v30, %v4172_v36  ;;  %v3500_v53 = vadd.f32 %v2384_v15, %v8359_v32  ;;  %2615 = vbcast.lane.b32.xlu1 %v15237_v42, 264  ;;  %v11293_v16 = vadd.f32 %v4197_v33, %v4196_v43  ;;  %v15238_v40 = vmax.f32 %v10667_v56, 0.0  ;;  %v15243_v43 = vld [vmem:[#allocation336_spill] sm:$0xff] }
 0x42d   : > { %v4189_v59 = vmul.f32 %v15232_v4, %v11229_v47  ;;  %v3497_v4 = vadd.f32 %v8357_v31, %v2369_v24  ;;  %v11291_v36 = vadd.f32 %v4193_v10, %v4192_v58  ;;  %v15240_v30 = vmax.f32 %v10717_v11, 0.0  ;;  %v2403_v63 = vpop.permute.xlu1 %2402  ;;  %v2388_v51 = vpop.permute.xlu0 %2387  ;;  %v15241_v10 = vld [vmem:[#allocation333_spill] sm:$0xff]  ;;  %v15245_v15 = vld [vmem:[#allocation340_spill] sm:$0xff] }
 0x42e   : > { %v4425_v60 = vmul.f32 %v15238_v40, %v11229_v47  ;;  %v4012_v29 = vmax.f32 %v3500_v53, 0.0  ;;  %v15242_v33 = vmax.f32 %v15241_v10, 0.0  ;;  %v15244_v56 = vmax.f32 %v15243_v43, 0.0  ;;  %v15247_v53 = vld [vmem:[#allocation339_spill] sm:$0xff] }
 0x42f   : > { %v11286_v14 = vadd.f32 %v4189_v59, %v4188_v61  ;;  %v4009_v39 = vmax.f32 %v3497_v4, 0.0  ;;  %v15239_v59 = vmax.f32 %v10700_v41, 0.0  ;;  %v4433_v50 = vmul.f32 %v15240_v30, %v11229_v47  ;;  %v15249_v43 = vld [vmem:[#allocation319_spill] sm:$0xff] }
 0x430   : > { %v4437_v58 = vmul.f32 %v15242_v33, %v11229_v47  ;;  %v11310_v45 = vmul.f32 %v15244_v56, %v11229_v47  ;;  %v15246_v24 = vmax.f32 %v15245_v15, 0.0  ;;  %v15248_v11 = vmax.f32 %v15247_v53, 0.0  ;;  %2714 = vbcast.lane.b32.xlu0 %v15249_v43, 272  ;;  %v15250_v56 = vld [vmem:[#allocation323_spill] sm:$0xff]  ;;  %v15251_v15 = vld [vmem:[#allocation272_spill] sm:$0xff] }
 0x431   : > { %v4429_v61 = vmul.f32 %v15239_v59, %v11229_v47  ;;  %v4524_v40 = vmul.f32 %v4012_v29, %v11187_v0  ;;  %v4521_v59 = vmul.f32 %v4009_v39, %v11229_v47  ;;  %v3504_v30 = vadd.f32 %v2403_v63, %v8359_v32  ;;  %2744 = vbcast.lane.b32.xlu1 %v15250_v56, 256  ;;  %v15255_v39 = vld [vmem:[#allocation276_spill] sm:$0xff] }
 0x432   : > { %v11315_v41 = vmul.f32 %v15246_v24, %v11187_v0  ;;  %v11320_v4 = vmul.f32 %v15248_v11, %v11229_v47  ;;  %v3501_v10 = vadd.f32 %v8357_v31, %v2388_v51  ;;  %v15252_v24 = vmax.f32 %v15251_v15, 0.0  ;;  %v15253_v11 = vld [vmem:[#allocation271_spill] sm:$0xff]  ;;  %v11349_v15 = vpop.permute.xlu1 %3133 }
 0x433   : > { %v15254_v29 = vmax.f32 %v15253_v11, 0.0  ;;  %v15256_v63 = vmax.f32 %v15255_v39, 0.0  ;;  %v5472_v33 = vadd.f32 %v4521_v59, %v4520_v18  ;;  %v4016_v5 = vmax.f32 %v3504_v30, 0.0 }
 0x434   : > { %v11332_v53 = vmul.f32 %v15252_v24, %v11187_v0  ;;  %v4013_v22 = vmax.f32 %v3501_v10, 0.0  ;;  %v11347_v43 = vmul.f32 %v15258_v12, %v11229_v47  ;;  %v2407_v24 = vpop.permute.xlu0 %2406  ;;  %v5256_v11 = vadd.f32 %v4425_v60, %v11227_v26  ;;  %2748 = vbcast.lane.b32.xlu0 %v15250_v56, 264  ;;  %v15261_v26 = vld [vmem:[#allocation4_spill] sm:$0xff] }
 0x435   : > { %v11337_v49 = vmul.f32 %v15254_v29, %v11229_v47  ;;  %v11342_v51 = vmul.f32 %v15256_v63, %v11187_v0  ;;  %v5265_v29 = vadd.f32 %v4429_v61, %v4428_v46  ;;  %v11352_v42 = vadd.f32 %v4433_v50, %v4432_v57  ;;  %2820 = vbcast.lane.b32.xlu1 %v15261_v26, 256  ;;  %v15262_v46 = vld [vmem:[#allocation12_spill] sm:$0xff] }
 0x436   : > { %v11354_v9 = vadd.f32 %v4437_v58, %v4436_v3  ;;  %v4528_v39 = vmul.f32 %v4016_v5, %v11187_v0  ;;  %v4525_v18 = vmul.f32 %v4013_v22, %v11229_v47  ;;  %v3505_v59 = vadd.f32 %v8357_v31, %v2407_v24  ;;  %v15264_v5 = vld [vmem:[#allocation16_spill] sm:$0xff] }
 0x437   : > { %v15260_v12 = vmax.f32 %v15259_v62, 0.0  ;;  %v15263_v57 = vmax.f32 %v15262_v46, 0.0  ;;  %v15265_v60 = vmax.f32 %v15264_v5, 0.0  ;;  %v15266_v61 = vld [vmem:[#allocation20_spill] sm:$0xff]  ;;  %v15271_v56 = vmax.f32 %v15270_v20, 0.0  ;;  %v2392_v46 = vpop.permute.xlu1 %2391 }
 0x438   : > { %v15267_v50 = vmax.f32 %v15266_v61, 0.0  ;;  %v5481_v63 = vadd.f32 %v4525_v18, %v4524_v40  ;;  %v4017_v24 = vmax.f32 %v3505_v59, 0.0  ;;  %v15268_v62 = vld [vmem:[#allocation24_spill] sm:$0xff]  ;;  %v15273_v5 = vmax.f32 %v15272_v17, 0.0  ;;  %2824 = vbcast.lane.b32.xlu0 %v15261_v26, 264 }
 0x439   : > { %v4170_v30 = vmul.f32 %v15260_v12, %v11349_v15  ;;  %v4174_v3 = vmul.f32 %v15263_v57, %v11349_v15  ;;  %v4178_v22 = vmul.f32 %v15265_v60, %v11349_v15  ;;  %v15269_v12 = vmax.f32 %v15268_v62, 0.0  ;;  %v2373_v57 = vpop.permute.xlu0 %2372 }
 0x43a   : > { %v4182_v58 = vmul.f32 %v15267_v50, %v11349_v15  ;;  %v4190_v1 = vmul.f32 %v15271_v56, %v11349_v15  ;;  %v4194_v60 = vmul.f32 %v15273_v5, %v11349_v15  ;;  %v15275_v61 = vmax.f32 %v15274_v21, 0.0  ;;  %v15276_v21 = vld [vmem:[#allocation342_spill] sm:$0xff] }
 0x43b   : > { %v4186_v10 = vmul.f32 %v15269_v12, %v11349_v15  ;;  %v11387_v40 = vadd.f32 %v11273_v55, %v4170_v30  ;;  %v11390_v18 = vadd.f32 %v11275_v6, %v4174_v3  ;;  %v4529_v59 = vmul.f32 %v4017_v24, %v11229_v47  ;;  %2839 = vbcast.lane.b32.xlu1 %v15276_v21, 256 }
 0x43c   : > { %v4198_v50 = vmul.f32 %v15275_v61, %v11349_v15  ;;  %v3502_v20 = vadd.f32 %v2392_v46, %v8364_v35  ;;  %v3498_v56 = vadd.f32 %v2373_v57, %v8364_v35  ;;  %v11396_v62 = vadd.f32 %v11277_v48, %v4178_v22  ;;  %v2426_v22 = vpop.permute.xlu1 %2425  ;;  %2843 = vbcast.lane.b32.xlu0 %v15276_v21, 264  ;;  %v15292_v21 = vld [vmem:[#allocation278_spill] sm:$0xff] }
 0x43d   : > { %v11402_v55 = vadd.f32 %v11279_v7, %v4182_v58  ;;  %v11405_v6 = vadd.f32 %v11281_v2, %v4186_v10  ;;  %v11408_v30 = vadd.f32 %v11286_v14, %v4190_v1  ;;  %v5490_v3 = vadd.f32 %v4529_v59, %v4528_v39  ;;  %v2422_v46 = vpop.permute.xlu0 %2421  ;;  %v15277_v7 = vld [vmem:[#allocation231_spill] sm:$0xff]  ;;  %v15279_v2 = vld [vmem:[#allocation330_spill] sm:$0xff]  ;;  %v15281_v14 = vld [vmem:[#allocation332_spill] sm:$0xff] }
 0x43e   : > { %v4014_v24 = vmax.f32 %v3502_v20, 0.0  ;;  %v4010_v12 = vmax.f32 %v3498_v56, 0.0  ;;  %v11411_v48 = vadd.f32 %v11291_v36, %v4194_v60  ;;  %v11414_v57 = vadd.f32 %v11293_v16, %v4198_v50  ;;  %v15283_v20 = vld [vmem:[#allocation279_spill] sm:$0xff] }
 0x43f   : > { %v15278_v58 = vmax.f32 %v15277_v7, 0.0  ;;  %v15280_v10 = vmax.f32 %v15279_v2, 0.0  ;;  %v15282_v39 = vmax.f32 %v15281_v14, 0.0  ;;  %v3509_v59 = vadd.f32 %v8357_v31, %v2426_v22  ;;  %2338 = vbcast.lane.b32.xlu1 %v15283_v20, 280  ;;  %v15284_v56 = vld [vmem:[#allocation335_spill] sm:$0xff]  ;;  %v15286_v2 = vld [vmem:[#allocation338_spill] sm:$0xff] }
 0x440   : > { %v4526_v36 = vmul.f32 %v4014_v24, %v11349_v15  ;;  %v4522_v60 = vmul.f32 %v4010_v12, %v11349_v15  ;;  %v3508_v16 = vadd.f32 %v2422_v46, %v8359_v32  ;;  %v15285_v7 = vmax.f32 %v15284_v56, 0.0  ;;  %v15288_v12 = vld [vmem:[#allocation270_spill] sm:$0xff]  ;;  %v2441_v38 = vpop.permute.xlu1 %2440 }
 0x441   : > { %v4426_v5 = vmul.f32 %v15278_v58, %v11349_v15  ;;  %v4430_v1 = vmul.f32 %v15280_v10, %v11349_v15  ;;  %v4434_v61 = vmul.f32 %v15282_v39, %v11349_v15  ;;  %v15287_v10 = vmax.f32 %v15286_v2, 0.0  ;;  %v2411_v20 = vpop.permute.xlu0 %2410 }
 0x442   : > { %v4438_v58 = vmul.f32 %v15285_v7, %v11349_v15  ;;  %v15289_v14 = vmax.f32 %v15288_v12, 0.0  ;;  %v11441_v39 = vadd.f32 %v5481_v63, %v4526_v36  ;;  %v11443_v46 = vadd.f32 %v5472_v33, %v4522_v60 }
 0x443   : > { %v4442_v24 = vmul.f32 %v15287_v10, %v11349_v15  ;;  %v4021_v17 = vmax.f32 %v3509_v59, 0.0  ;;  %v4020_v50 = vmax.f32 %v3508_v16, 0.0  ;;  %v15291_v56 = vmax.f32 %v15290_v25, 0.0  ;;  %v15294_v25 = vld [vmem:[#allocation305_spill] sm:$0xff]  ;;  %v15295_v16 = vld [vmem:[#allocation308_spill] sm:$0xff] }
 0x444   : > { %v4446_v22 = vmul.f32 %v15289_v14, %v11349_v15  ;;  %v15293_v2 = vmax.f32 %v15292_v21, 0.0  ;;  %v11451_v26 = vadd.f32 %v5256_v11, %v4426_v5  ;;  %v11453_v12 = vadd.f32 %v5265_v29, %v4430_v1  ;;  %2471 = vbcast.lane.b32.xlu0 %v15294_v25, 280  ;;  %2505 = vbcast.lane.b32.xlu1 %v15295_v16, 272 }
 0x445   : > { %v4450_v7 = vmul.f32 %v15291_v56, %v11349_v15  ;;  %v4533_v63 = vmul.f32 %v4021_v17, %v11229_v47  ;;  %v4532_v33 = vmul.f32 %v4020_v50, %v11187_v0  ;;  %v3512_v36 = vadd.f32 %v2441_v38, %v8359_v32  ;;  %v2445_v14 = vpop.permute.xlu0 %2444 }
 0x446   : > { %v4454_v10 = vmul.f32 %v15293_v2, %v11349_v15  ;;  %v3506_v60 = vadd.f32 %v2411_v20, %v8364_v35  ;;  %v11463_v21 = vadd.f32 %v11352_v42, %v4434_v61  ;;  %v11466_v11 = vadd.f32 %v11354_v9, %v4438_v58  ;;  %v2517_v42 = vpop.permute.xlu1 %2516  ;;  %v15299_v20 = vld [vmem:[#allocation320_spill] sm:$0xff] }
 0x447   : > { %v5292_v29 = vadd.f32 %v11310_v45, %v11243_v13  ;;  %v11472_v38 = vadd.f32 %v8357_v31, %v11140_v52  ;;  %v11474_v17 = vadd.f32 %v4533_v63, %v4532_v33  ;;  %v5301_v1 = vadd.f32 %v11320_v4, %v11315_v41  ;;  %v15331_v63 = vld [vmem:[#allocation265_spill] sm:$0xff] }
 0x448   : > { %v4018_v5 = vmax.f32 %v3506_v60, 0.0  ;;  %v4024_v50 = vmax.f32 %v3512_v36, 0.0  ;;  %v5310_v9 = vadd.f32 %v11337_v49, %v11332_v53  ;;  %v5319_v13 = vadd.f32 %v11347_v43, %v11342_v51  ;;  %2600 = vbcast.lane.b32.xlu1 %v15299_v20, 272 }
 0x449   : > { %15296 = vst [vmem:[#allocation264_spill] sm:$0xff] %v11472_v38  ;;  %v11478_v61 = vadd.f32 %v5292_v29, %v4442_v24  ;;  %v11486_v52 = vadd.f32 %v11142_v37, %v8359_v32  ;;  %v3513_v58 = vadd.f32 %v8357_v31, %v2445_v14  ;;  %v3528_v41 = vadd.f32 %v2517_v42, %v8359_v32  ;;  %v15298_v24 = vld [vmem:[#allocation315_spill] sm:$0xff]  ;;  %v15309_v42 = vld [vmem:[#allocation324_spill] sm:$0xff] }
 0x44a   : > { %v4530_v45 = vmul.f32 %v4018_v5, %v11349_v15  ;;  %2566 = vbcast.lane.b32.xlu0 %v15298_v24, 280  ;;  %v11494_v49 = vadd.f32 %v5301_v1, %v4446_v22  ;;  %v11496_v53 = vadd.f32 %v5310_v9, %v4450_v7  ;;  %v11498_v43 = vadd.f32 %v5319_v13, %v4454_v10  ;;  %v2521_v22 = vpop.permute.xlu0 %2520  ;;  %v2536_v60 = vpop.permute.xlu1 %2535  ;;  %v15303_v7 = vld [vmem:[#allocation229_spill] sm:$0xff]  ;;  %v15306_v1 = vld [vmem:[#allocation226_spill] sm:$0xff] }
 0x44b   : > { %15297 = vst [vmem:[#allocation268_spill] sm:$0xff] %v11486_v52  ;;  %v4025_v56 = vmax.f32 %v3513_v58, 0.0  ;;  %v4040_v2 = vmax.f32 %v3528_v41, 0.0  ;;  %v11506_v33 = vadd.f32 %v11189_v8, %v8364_v35  ;;  %v4536_v36 = vmul.f32 %v4024_v50, %v11187_v0  ;;  %v15310_v9 = vld [vmem:[#allocation233_spill] sm:$0xff]  ;;  %v15313_v58 = vld [vmem:[#allocation235_spill] sm:$0xff] }
 0x44c   : > { %15300 = vst [vmem:[#allocation14_spill] sm:$0xff] %v11496_v53  ;;  %15301 = vst [vmem:[#allocation18_spill] sm:$0xff] %v11498_v43  ;;  %v11501_v51 = vadd.f32 %v5490_v3, %v4530_v45  ;;  %v15304_v10 = vmax.f32 %v15303_v7, 0.0  ;;  %v3529_v29 = vadd.f32 %v8357_v31, %v2521_v22  ;;  %v3532_v5 = vadd.f32 %v2536_v60, %v8359_v32 }
 0x44d   : > { %15302 = vst [vmem:[#allocation22_spill] sm:$0xff] %v11506_v33  ;;  %v4537_v3 = vmul.f32 %v4025_v56, %v11229_v47  ;;  %v15307_v14 = vmax.f32 %v15306_v1, 0.0  ;;  %2634 = vbcast.lane.b32.xlu1 %v15309_v42, 264  ;;  %v15311_v13 = vmax.f32 %v15310_v9, 0.0  ;;  %v15314_v41 = vmax.f32 %v15313_v58, 0.0  ;;  %v15316_v56 = vld [vmem:[#allocation234_spill] sm:$0xff] }
 0x44e   : > { %v11512_v25 = vmul.f32 %v15304_v10, %v11187_v0  ;;  %2630 = vbcast.lane.b32.xlu0 %v15309_v42, 256  ;;  %v15317_v22 = vmax.f32 %v15316_v56, 0.0  ;;  %v4552_v10 = vmul.f32 %v4040_v2, %v11187_v0  ;;  %v4041_v1 = vmax.f32 %v3529_v29, 0.0  ;;  %v2540_v59 = vpop.permute.xlu0 %2539  ;;  %v11548_v58 = vpop.permute.xlu1 %3137  ;;  %v15328_v2 = vld [vmem:[#allocation241_spill] sm:$0xff] }
 0x44f   : > { %v11520_v8 = vmul.f32 %v15307_v14, %v11229_v47  ;;  %v11528_v45 = vmul.f32 %v15311_v13, %v11349_v15  ;;  %v11533_v24 = vmul.f32 %v15314_v41, %v11187_v0  ;;  %v11540_v7 = vadd.f32 %v4537_v3, %v4536_v36  ;;  %v15319_v14 = vld [vmem:[#allocation237_spill] sm:$0xff]  ;;  %v15322_v41 = vld [vmem:[#allocation239_spill] sm:$0xff]  ;;  %v15325_v36 = vld [vmem:[#allocation238_spill] sm:$0xff] }
 0x450   : > { %15305 = vst [vmem:[#allocation26_spill] sm:$0xff] %v11512_v25  ;;  %v11538_v60 = vmul.f32 %v15317_v22, %v11229_v47  ;;  %v15320_v9 = vmax.f32 %v15319_v14, 0.0  ;;  %v4044_v37 = vmax.f32 %v3532_v5, 0.0  ;;  %v15323_v4 = vmax.f32 %v15322_v41, 0.0 }
 0x451   : > { %15308 = vst [vmem:[#allocation30_spill] sm:$0xff] %v11520_v8  ;;  %15312 = vst [vmem:[#allocation34_spill] sm:$0xff] %v11528_v45  ;;  %v15326_v3 = vmax.f32 %v15325_v36, 0.0  ;;  %v15329_v29 = vmax.f32 %v15328_v2, 0.0  ;;  %v4553_v5 = vmul.f32 %v4041_v1, %v11229_v47  ;;  %v15332_v50 = vmax.f32 %v15331_v63, 0.0  ;;  %2699 = vbcast.lane.b32.xlu1 %v10525_v54, 280 }
 0x452   : > { %15315 = vst [vmem:[#allocation266_spill] sm:$0xff] %v11533_v24  ;;  %15318 = vst [vmem:[#allocation267_spill] sm:$0xff] %v11538_v60  ;;  %v11546_v13 = vmul.f32 %v15320_v9, %v11349_v15  ;;  %v11553_v56 = vmul.f32 %v15323_v4, %v11187_v0  ;;  %v3533_v9 = vadd.f32 %v8357_v31, %v2540_v59  ;;  %v15333_v4 = vld [vmem:[#allocation243_spill] sm:$0xff]  ;;  %2680 = vbcast.lane.b32.xlu0 %v10481_v27, 280  ;;  %v15344_v54 = vld [vmem:[#allocation242_spill] sm:$0xff] }
 0x453   : > { %v11558_v22 = vmul.f32 %v15326_v3, %v11229_v47  ;;  %v11563_v14 = vmul.f32 %v15329_v29, %v11349_v15  ;;  %v4171_v41 = vmul.f32 %v15332_v50, %v11548_v58  ;;  %v15334_v28 = vmax.f32 %v15333_v4, 0.0  ;;  %v15336_v3 = vld [vmem:[#allocation11_spill] sm:$0xff] }
 0x454   : > { %15321 = vst [vmem:[#allocation13_spill] sm:$0xff] %v11546_v13  ;;  %15324 = vst [vmem:[#allocation17_spill] sm:$0xff] %v11553_v56  ;;  %v15337_v1 = vmax.f32 %v15336_v3, 0.0  ;;  %v15338_v59 = vld [vmem:[#allocation15_spill] sm:$0xff]  ;;  %v4045_v38 = vmax.f32 %v3533_v9, 0.0  ;;  %v15345_v52 = vmax.f32 %v15344_v54, 0.0 }
 0x455   : > { %15327 = vst [vmem:[#allocation21_spill] sm:$0xff] %v11558_v22  ;;  %15330 = vst [vmem:[#allocation25_spill] sm:$0xff] %v11563_v14  ;;  %v11573_v23 = vmul.f32 %v15334_v28, %v11187_v0  ;;  %v15339_v29 = vmax.f32 %v15338_v59, 0.0  ;;  %v15340_v50 = vld [vmem:[#allocation19_spill] sm:$0xff]  ;;  %v11587_v28 = vadd.f32 %v4553_v5, %v4552_v10  ;;  %v2377_v59 = vpop.permute.xlu0 %2376  ;;  %v4682_v14 = vadd.f32 %v11387_v40, %v4171_v41  ;;  %v15347_v10 = vld [vmem:[#allocation245_spill] sm:$0xff] }
 0x456   : > { %v4175_v2 = vmul.f32 %v15337_v1, %v11548_v58  ;;  %v15341_v44 = vmax.f32 %v15340_v50, 0.0  ;;  %v15342_v36 = vld [vmem:[#allocation23_spill] sm:$0xff]  ;;  %v11595_v3 = vmul.f32 %v15345_v52, %v11229_v47  ;;  %v4556_v1 = vmul.f32 %v4044_v37, %v11187_v0  ;;  %2733 = vbcast.lane.b32.xlu0 %v15187_v19, 272  ;;  %v15350_v37 = vld [vmem:[#allocation325_spill] sm:$0xff]  ;;  %v15351_v13 = vld [vmem:[#allocation248_spill] sm:$0xff] }
 0x457   : > { %15335 = vst [vmem:[#allocation29_spill] sm:$0xff] %v11573_v23  ;;  %v4179_v63 = vmul.f32 %v15339_v29, %v11548_v58  ;;  %v15343_v27 = vmax.f32 %v15342_v36, 0.0  ;;  %v2396_v29 = vpop.permute.xlu1 %2395  ;;  %v15348_v5 = vmax.f32 %v15347_v10, 0.0  ;;  %v4557_v36 = vmul.f32 %v4045_v38, %v11229_v47  ;;  %2763 = vbcast.lane.b32.xlu1 %v15350_v37, 256  ;;  %v15359_v22 = vld [vmem:[#allocation35_spill] sm:$0xff] }
 0x458   : > { %v4183_v4 = vmul.f32 %v15341_v44, %v11548_v58  ;;  %15346 = vst [vmem:[#allocation33_spill] sm:$0xff] %v11595_v3  ;;  %v4691_v44 = vadd.f32 %v11390_v18, %v4175_v2  ;;  %v3499_v50 = vadd.f32 %v8362_v34, %v2377_v59  ;;  %v3503_v52 = vadd.f32 %v8362_v34, %v2396_v29 }
 0x459   : > { %v4187_v33 = vmul.f32 %v15343_v27, %v11548_v58  ;;  %v11603_v9 = vmul.f32 %v15348_v5, %v11349_v15  ;;  %v4700_v27 = vadd.f32 %v11396_v62, %v4179_v63  ;;  %v4683_v40 = vrot.slane %v4682_v14, 4  ;;  %v2430_v5 = vpop.permute.xlu0 %2429 }
 0x45a   : > { %v4692_v41 = vrot.slane %v4691_v44, 4  ;;  %v4709_v18 = vadd.f32 %v11402_v55, %v4183_v4  ;;  %v11615_v54 = vadd.f32 %v4557_v36, %v4556_v1  ;;  %v4011_v38 = vmax.f32 %v3499_v50, 0.0  ;;  %2767 = vbcast.lane.b32.xlu0 %v15350_v37, 264  ;;  %v15354_v1 = vld [vmem:[#allocation343_spill] sm:$0xff] }
 0x45b   : > { %15349 = vst [vmem:[#allocation333_spill] sm:$0xff] %v11603_v9  ;;  %v11613_v2 = vadd.f32 %v11405_v6, %v4187_v33  ;;  %v4015_v10 = vmax.f32 %v3503_v52, 0.0  ;;  %v4701_v59 = vrot.slane %v4700_v27, 4  ;;  %v2460_v29 = vpop.permute.xlu1 %2459  ;;  %v4684_v9 = vadd.f32 %v4683_v40, %v4682_v14  ;;  %2858 = vbcast.lane.b32.xlu1 %v15354_v1, 256  ;;  %v15355_v40 = vld [vmem:[#allocation27_spill] sm:$0xff] }
 0x45c   : > { %v4693_v62 = vadd.f32 %v4692_v41, %v4691_v44  ;;  %v4710_v63 = vrot.slane %v4709_v18, 4  ;;  %v15352_v45 = vmax.f32 %v15351_v13, 0.0  ;;  %v4523_v55 = vmul.f32 %v4011_v38, %v11548_v58 }
 0x45d   : > { %v4527_v6 = vmul.f32 %v4015_v10, %v11548_v58  ;;  %v3510_v33 = vadd.f32 %v2430_v5, %v8364_v35  ;;  %v3516_v4 = vadd.f32 %v2460_v29, %v8359_v32  ;;  %v4685_v14 = vrot.slane %v4684_v9, 2  ;;  %v2464_v10 = vpop.permute.xlu0 %2463  ;;  %v15357_v29 = vld [vmem:[#allocation31_spill] sm:$0xff] }
 0x45e   : > { %v11620_v3 = vmul.f32 %v15352_v45, %v11187_v0  ;;  %v4694_v44 = vrot.slane %v4693_v62, 2  ;;  %v4702_v36 = vadd.f32 %v4701_v59, %v4700_v27  ;;  %v4711_v50 = vadd.f32 %v4710_v63, %v4709_v18  ;;  %2862 = vbcast.lane.b32.xlu0 %v15354_v1, 264 }
 0x45f   : > { %v5474_v13 = vadd.f32 %v11443_v46, %v4523_v55  ;;  %v5483_v45 = vadd.f32 %v11441_v39, %v4527_v6  ;;  %v4022_v52 = vmax.f32 %v3510_v33, 0.0  ;;  %v15356_v41 = vmax.f32 %v15355_v40, 0.0  ;;  %v2555_v5 = vpop.permute.xlu1 %2554 }
 0x460   : > { %15353 = vst [vmem:[#allocation336_spill] sm:$0xff] %v11620_v3  ;;  %v15358_v3 = vmax.f32 %v15357_v29, 0.0  ;;  %v15360_v27 = vmax.f32 %v15359_v22, 0.0  ;;  %v4686_v46 = vadd.f32 %v4685_v14, %v4684_v9  ;;  %v4703_v59 = vrot.slane %v4702_v36, 2 }
 0x461   : > { %v4191_v38 = vmul.f32 %v15356_v41, %v11548_v58  ;;  %v5475_v39 = vrot.slane %v5474_v13, 4  ;;  %v5484_v63 = vrot.slane %v5483_v45, 4  ;;  %v4534_v55 = vmul.f32 %v4022_v52, %v11349_v15  ;;  %v2559_v52 = vpop.permute.xlu0 %2558 }
 0x462   : > { %v11636_v23 = vmul.f32 %v15358_v3, %v11548_v58  ;;  %v11641_v18 = vmul.f32 %v15360_v27, %v11548_v58  ;;  %v4028_v6 = vmax.f32 %v3516_v4, 0.0  ;;  %v3517_v33 = vadd.f32 %v8357_v31, %v2464_v10  ;;  %v15361_v3 = vld [vmem:[#allocation344_spill] sm:$0xff] }
 0x463   : > { %v3536_v40 = vadd.f32 %v2555_v5, %v8359_v32  ;;  %2972 = vbcast.lane.b32.xlu1 %v15361_v3, 256  ;;  %v4695_v41 = vadd.f32 %v4694_v44, %v4693_v62  ;;  %v4712_v29 = vrot.slane %v4711_v50, 2  ;;  %v5476_v22 = vadd.f32 %v5475_v39, %v5474_v13  ;;  %v2669_v4 = vpop.permute.xlu1 %2668  ;;  %2976 = vbcast.lane.b32.xlu0 %v15361_v3, 264 }
 0x464   : > { %v5485_v27 = vadd.f32 %v5484_v63, %v5483_v45  ;;  %v11649_v9 = vadd.f32 %v11474_v17, %v4534_v55  ;;  %v4687_v14 = vrot.slane %v4686_v46, 1  ;;  %v4029_v56 = vmax.f32 %v3517_v33, 0.0  ;;  %v15362_v17 = vld [vmem:[#allocation345_spill] sm:$0xff] }
 0x465   : > { %v4048_v60 = vmax.f32 %v3536_v40, 0.0  ;;  %v4704_v24 = vadd.f32 %v4703_v59, %v4702_v36  ;;  %v4719_v10 = vrot.slane %v11613_v2, 4  ;;  %v5477_v5 = vrot.slane %v5476_v22, 2 }
 0x466   : > { %v5486_v8 = vrot.slane %v5485_v27, 2  ;;  %v3537_v1 = vadd.f32 %v8357_v31, %v2559_v52  ;;  %v3560_v62 = vadd.f32 %v2669_v4, %v8359_v32  ;;  %v4540_v44 = vmul.f32 %v4028_v6, %v11187_v0  ;;  %v2673_v52 = vpop.permute.xlu0 %2672 }
 0x467   : > { %v4541_v13 = vmul.f32 %v4029_v56, %v11229_v47  ;;  %2991 = vbcast.lane.b32.xlu1 %v15362_v17, 256  ;;  %v4696_v45 = vrot.slane %v4695_v41, 1  ;;  %v4713_v39 = vadd.f32 %v4712_v29, %v4711_v50  ;;  %v5478_v63 = vadd.f32 %v5477_v5, %v5476_v22  ;;  %v2688_v4 = vpop.permute.xlu1 %2687  ;;  %2995 = vbcast.lane.b32.xlu0 %v15362_v17, 264 }
 0x468   : > { %v5487_v36 = vadd.f32 %v5486_v8, %v5485_v27  ;;  %v4049_v59 = vmax.f32 %v3537_v1, 0.0  ;;  %v11658_v55 = vadd.f32 %v4687_v14, %v4686_v46  ;;  %v4560_v40 = vmul.f32 %v4048_v60, %v11187_v0  ;;  %v15363_v1 = vld [vmem:[#allocation306_spill] sm:$0xff] }
 0x469   : > { %v11660_v33 = vadd.f32 %v4541_v13, %v4540_v44  ;;  %v4705_v6 = vrot.slane %v4704_v24, 1  ;;  %v4720_v56 = vadd.f32 %v4719_v10, %v11613_v2  ;;  %v5479_v25 = vrot.slane %v5478_v63, 1 }
 0x46a   : > { %v5488_v3 = vrot.slane %v5487_v36, 1  ;;  %v4561_v43 = vmul.f32 %v4049_v59, %v11229_v47  ;;  %v4072_v53 = vmax.f32 %v3560_v62, 0.0  ;;  %v3561_v50 = vadd.f32 %v8357_v31, %v2673_v52  ;;  %v2692_v5 = vpop.permute.xlu0 %2691  ;;  %v15364_v59 = vld [vmem:[#allocation348_spill] sm:$0xff] }
 0x46b   : > { %v3564_v8 = vadd.f32 %v2688_v4, %v8359_v32  ;;  %2357 = vbcast.lane.b32.xlu1 %v15363_v1, 280  ;;  %v4714_v46 = vrot.slane %v4713_v39, 1  ;;  %v4721_v60 = vrot.slane %v4720_v56, 2  ;;  %v5480_v29 = vadd.f32 %v5479_v25, %v5478_v63  ;;  %v2346_v62 = vpop.permute.xlu1 %2345  ;;  %v15366_v63 = vld [vmem:[#allocation318_spill] sm:$0xff] }
 0x46c   : > { %v5489_v22 = vadd.f32 %v5488_v3, %v5487_v36  ;;  %v11669_v27 = vadd.f32 %v4561_v43, %v4560_v40  ;;  %v4727_v2 = vadd.f32 %v11408_v30, %v4191_v38  ;;  %v4073_v14 = vmax.f32 %v3561_v50, 0.0  ;;  %v15365_v38 = vld [vmem:[#allocation307_spill] sm:$0xff] }
 0x46d   : > { %v4076_v10 = vmax.f32 %v3564_v8, 0.0  ;;  %v11672_v44 = vadd.f32 %v4696_v45, %v4695_v41  ;;  %v4736_v13 = vadd.f32 %v11411_v48, %v11636_v23  ;;  %v5921_v52 = vadd.f32 %v15364_v59, %v5480_v29  ;;  %2490 = vbcast.lane.b32.xlu0 %v15365_v38, 280 }
 0x46e   : > { %v3565_v4 = vadd.f32 %v8357_v31, %v2692_v5  ;;  %v3492_v25 = vadd.f32 %v2346_v62, %v8359_v32  ;;  %v4722_v3 = vadd.f32 %v4721_v60, %v4720_v56  ;;  %v4584_v43 = vmul.f32 %v4072_v53, %v11187_v0  ;;  %v2350_v1 = vpop.permute.xlu0 %2349 }
 0x46f   : > { %v4585_v30 = vmul.f32 %v4073_v14, %v11229_v47  ;;  %2585 = vbcast.lane.b32.xlu1 %v15366_v63, 280  ;;  %v4706_v41 = vadd.f32 %v4705_v6, %v4704_v24  ;;  %v4728_v45 = vrot.slane %v4727_v2, 4  ;;  %v7402_v36 = vmul.f32 -1.442695, %v5921_v52  ;;  %v2415_v56 = vpop.permute.xlu1 %2414 }
 0x470   : > { %v5922_v23 = vadd.f32 %v15364_v59, %v5489_v22  ;;  %v4077_v48 = vmax.f32 %v3565_v4, 0.0  ;;  %v4715_v40 = vadd.f32 %v4714_v46, %v4713_v39  ;;  %v4004_v8 = vmax.f32 %v3492_v25, 0.0  ;;  %v15367_v22 = vld [vmem:[#allocation322_spill] sm:$0xff] }
 0x471   : > { %v11684_v50 = vadd.f32 %v4585_v30, %v4584_v43  ;;  %v4729_v60 = vadd.f32 %v4728_v45, %v4727_v2  ;;  %v4737_v53 = vrot.slane %v4736_v13, 4  ;;  %v4588_v29 = vmul.f32 %v4076_v10, %v11187_v0  ;;  %2619 = vbcast.lane.b32.xlu0 %v15367_v22, 272  ;;  %v15368_v39 = vld [vmem:[#allocation326_spill] sm:$0xff] }
 0x472   : > { %v4589_v14 = vmul.f32 %v4077_v48, %v11229_v47  ;;  %v3493_v5 = vadd.f32 %v8357_v31, %v2350_v1  ;;  %v4723_v24 = vrot.slane %v4722_v3, 1  ;;  %7698 = vpow2.f32 %v7402_v36  ;;  %v2449_v30 = vpop.permute.xlu0 %2448 }
 0x473   : > { %v3507_v6 = vadd.f32 %v8362_v34, %v2415_v56  ;;  %2649 = vbcast.lane.b32.xlu1 %v15368_v39, 256  ;;  %v4730_v46 = vrot.slane %v4729_v60, 2  ;;  %v4738_v62 = vadd.f32 %v4737_v53, %v4736_v13  ;;  %v7403_v52 = vmul.f32 -1.442695, %v5922_v23  ;;  %v2479_v38 = vpop.permute.xlu1 %2478  ;;  %v15369_v56 = vld [vmem:[#allocation319_spill] sm:$0xff] }
 0x474   : > { %v11692_v4 = vadd.f32 %v4589_v14, %v4588_v29  ;;  %v4005_v2 = vmax.f32 %v3493_v5, 0.0  ;;  %v4745_v10 = vadd.f32 %v11414_v57, %v11641_v18  ;;  %v4516_v25 = vmul.f32 %v4004_v8, %v11187_v0 }
 0x475   : > { %v4019_v43 = vmax.f32 %v3507_v6, 0.0  ;;  %v4731_v63 = vadd.f32 %v4730_v46, %v4729_v60  ;;  %v4739_v45 = vrot.slane %v4738_v62, 2  ;;  %v3514_v48 = vadd.f32 %v2449_v30, %v8364_v35  ;;  %2653 = vbcast.lane.b32.xlu0 %v15368_v39, 264 }
 0x476   : > { %v4517_v36 = vmul.f32 %v4005_v2, %v11229_v47  ;;  %v3520_v13 = vadd.f32 %v2479_v38, %v8359_v32  ;;  %v4746_v23 = vrot.slane %v4745_v10, 4  ;;  %v4724_v57 = vadd.f32 %v4723_v24, %v4722_v3  ;;  %v2483_v6 = vpop.permute.xlu0 %2482 }
 0x477   : > { %v4531_v1 = vmul.f32 %v4019_v43, %v11548_v58  ;;  %2718 = vbcast.lane.b32.xlu1 %v15369_v56, 280  ;;  %v4732_v18 = vrot.slane %v4731_v63, 1  ;;  %v4740_v8 = vadd.f32 %v4739_v45, %v4738_v62  ;;  %7700 = vpow2.f32 %v7403_v52  ;;  %v2525_v46 = vpop.permute.xlu1 %2524 }
 0x478   : > { %v11703_v53 = vadd.f32 %v4517_v36, %v4516_v25  ;;  %v4026_v60 = vmax.f32 %v3514_v48, 0.0  ;;  %v4747_v29 = vadd.f32 %v4746_v23, %v4745_v10  ;;  %v4032_v5 = vmax.f32 %v3520_v13, 0.0  ;;  %v15371_v10 = vld [vmem:[#allocation323_spill] sm:$0xff] }
 0x479   : > { %v5492_v14 = vadd.f32 %v11501_v51, %v4531_v1  ;;  %v4741_v2 = vrot.slane %v4740_v8, 1  ;;  %v5833_v43 = vadd.f32 %v15364_v59, %v11658_v55  ;;  %v3521_v3 = vadd.f32 %v8357_v31, %v2483_v6  ;;  %2752 = vbcast.lane.b32.xlu0 %v15371_v10, 272  ;;  %v15372_v51 = vld [vmem:[#allocation327_spill] sm:$0xff] }
 0x47a   : > { %15370 = vst [vmem:[#allocation340_spill] sm:$0xff] %v11703_v53  ;;  %v4538_v30 = vmul.f32 %v4026_v60, %v11349_v15  ;;  %v3530_v24 = vadd.f32 %v2525_v46, %v8364_v35  ;;  %v5834_v62 = vadd.f32 %v15364_v59, %v11672_v44  ;;  %v4733_v25 = vadd.f32 %v4732_v18, %v4731_v63  ;;  %v2544_v56 = vpop.permute.xlu0 %2543 }
 0x47b   : > { %v5493_v52 = vrot.slane %v5492_v14, 4  ;;  %2782 = vbcast.lane.b32.xlu1 %v15372_v51, 256  ;;  %v4748_v38 = vrot.slane %v4747_v29, 2  ;;  %v5835_v45 = vadd.f32 %v15364_v59, %v4706_v41  ;;  %v4033_v36 = vmax.f32 %v3521_v3, 0.0  ;;  %v2574_v60 = vpop.permute.xlu1 %2573 }
 0x47c   : > { %v11717_v55 = vadd.f32 %v11540_v7, %v4538_v30  ;;  %v4042_v48 = vmax.f32 %v3530_v24, 0.0  ;;  %v5836_v13 = vadd.f32 %v15364_v59, %v4715_v40  ;;  %v7699_v23 = vpop.eup %7698  ;;  %v4544_v44 = vmul.f32 %v4032_v5, %v11187_v0  ;;  %v15374_v40 = vld [vmem:[#allocation4_spill] sm:$0xff] }
 0x47d   : > { %v5494_v1 = vadd.f32 %v5493_v52, %v5492_v14  ;;  %v4742_v6 = vadd.f32 %v4741_v2, %v4740_v8  ;;  %v4749_v46 = vadd.f32 %v4748_v38, %v4747_v29  ;;  %v4545_v63 = vmul.f32 %v4033_v36, %v11229_v47  ;;  %2786 = vbcast.lane.b32.xlu0 %v15372_v51, 264 }
 0x47e   : > { %15373 = vst [vmem:[#allocation339_spill] sm:$0xff] %v11717_v55  ;;  %v4554_v18 = vmul.f32 %v4042_v48, %v11349_v15  ;;  %v3534_v41 = vadd.f32 %v2544_v56, %v8364_v35  ;;  %v5837_v7 = vadd.f32 %v15364_v59, %v4724_v57  ;;  %v3540_v3 = vadd.f32 %v2574_v60, %v8359_v32  ;;  %v2578_v57 = vpop.permute.xlu0 %2577 }
 0x47f   : > { %v5495_v30 = vrot.slane %v5494_v1, 2  ;;  %2828 = vbcast.lane.b32.xlu1 %v15374_v40, 272  ;;  %v4750_v14 = vrot.slane %v4749_v46, 1  ;;  %v5838_v5 = vadd.f32 %v15364_v59, %v4733_v25  ;;  %v6433_v8 = vadd.f32 1.0, %v7699_v23  ;;  %v2707_v36 = vpop.permute.xlu1 %2706 }
 0x480   : > { %v11729_v29 = vadd.f32 %v4545_v63, %v4544_v44  ;;  %v11732_v2 = vadd.f32 %v11587_v28, %v4554_v18  ;;  %v4046_v24 = vmax.f32 %v3534_v41, 0.0  ;;  %v4052_v38 = vmax.f32 %v3540_v3, 0.0  ;;  %v15377_v63 = vld [vmem:[#allocation342_spill] sm:$0xff] }
 0x481   : > { %v5496_v52 = vadd.f32 %v5495_v30, %v5494_v1  ;;  %v4751_v48 = vadd.f32 %v4750_v14, %v4749_v46  ;;  %v7314_v56 = vmul.f32 -1.442695, %v5833_v43  ;;  %v11734_v60 = vpop.eup %7700  ;;  %v3541_v51 = vadd.f32 %v8357_v31, %v2578_v57  ;;  %2847 = vbcast.lane.b32.xlu0 %v15377_v63, 272  ;;  %v15378_v28 = vld [vmem:[#allocation346_spill] sm:$0xff] }
 0x482   : > { %15375 = vst [vmem:[#allocation272_spill] sm:$0xff] %v11729_v29  ;;  %15376 = vst [vmem:[#allocation271_spill] sm:$0xff] %v11732_v2  ;;  %v4558_v40 = vmul.f32 %v4046_v24, %v11349_v15  ;;  %v3568_v25 = vadd.f32 %v2707_v36, %v8359_v32  ;;  %v7315_v23 = vmul.f32 -1.442695, %v5834_v62  ;;  %v5839_v1 = vadd.f32 %v15364_v59, %v4742_v6  ;;  %v2711_v3 = vpop.permute.xlu0 %2710 }
 0x483   : > { %v5497_v44 = vrot.slane %v5496_v52, 1  ;;  %2877 = vbcast.lane.b32.xlu1 %v15378_v28, 256  ;;  %v5840_v18 = vadd.f32 %v15364_v59, %v4751_v48  ;;  %7702 = vpow2.f32 %v7314_v56  ;;  %v4053_v46 = vmax.f32 %v3541_v51, 0.0  ;;  %v2434_v14 = vpop.permute.xlu1 %2433  ;;  %v15380_v51 = vld [vmem:[#allocation347_spill] sm:$0xff] }
 0x484   : > { %v11744_v43 = vadd.f32 %v11615_v54, %v4558_v40  ;;  %v4080_v41 = vmax.f32 %v3568_v25, 0.0  ;;  %7704 = vpow2.f32 %v7315_v23  ;;  %v7316_v62 = vmul.f32 -1.442695, %v5835_v45  ;;  %v15382_v23 = vld [vmem:[#allocation230_spill] sm:$0xff] }
 0x485   : > { %v5498_v30 = vadd.f32 %v5497_v44, %v5496_v52  ;;  %v7317_v24 = vmul.f32 -1.442695, %v5836_v13  ;;  %v7318_v57 = vmul.f32 -1.442695, %v5837_v7  ;;  %v4564_v36 = vmul.f32 %v4052_v38, %v11187_v0  ;;  %2881 = vbcast.lane.b32.xlu0 %v15378_v28, 264 }
 0x486   : > { %15379 = vst [vmem:[#allocation276_spill] sm:$0xff] %v11744_v43  ;;  %v4565_v63 = vmul.f32 %v4053_v46, %v11229_v47  ;;  %v3569_v6 = vadd.f32 %v8357_v31, %v2711_v3  ;;  %v3511_v48 = vadd.f32 %v8362_v34, %v2434_v14  ;;  %v4592_v54 = vmul.f32 %v4080_v41, %v11187_v0  ;;  %v2468_v56 = vpop.permute.xlu0 %2467 }
 0x487   : > { %3010 = vbcast.lane.b32.xlu1 %v15380_v51, 256  ;;  %7706 = vpow2.f32 %v7316_v62  ;;  %v7319_v40 = vmul.f32 -1.442695, %v5838_v5  ;;  %v7320_v52 = vmul.f32 -1.442695, %v5839_v1  ;;  %v5923_v38 = vadd.f32 %v15364_v59, %v5498_v30  ;;  %v15386_v30 = vld [vmem:[#allocation331_spill] sm:$0xff] }
 0x488   : > { %v11753_v45 = vadd.f32 %v4565_v63, %v4564_v36  ;;  %v4081_v13 = vmax.f32 %v3569_v6, 0.0  ;;  %v4023_v7 = vmax.f32 %v3511_v48, 0.0  ;;  %7708 = vpow2.f32 %v7317_v24  ;;  %v15384_v63 = vld [vmem:[#allocation246_spill] sm:$0xff] }
 0x489   : > { %7710 = vpow2.f32 %v7318_v57  ;;  %v7321_v25 = vmul.f32 -1.442695, %v5840_v18  ;;  %v15383_v44 = vmax.f32 %v15382_v23, 0.0  ;;  %v3518_v5 = vadd.f32 %v2468_v56, %v8364_v35  ;;  %v15388_v24 = vld [vmem:[#allocation334_spill] sm:$0xff]  ;;  %3014 = vbcast.lane.b32.xlu0 %v15380_v51, 264 }
 0x48a   : > { %15381 = vst [vmem:[#allocation275_spill] sm:$0xff] %v11753_v45  ;;  %v4593_v41 = vmul.f32 %v4081_v13, %v11229_v47  ;;  %v4535_v3 = vmul.f32 %v4023_v7, %v11548_v58  ;;  %7712 = vpow2.f32 %v7319_v40  ;;  %v15385_v1 = vmax.f32 %v15384_v63, 0.0  ;;  %v15391_v7 = vld [vmem:[#allocation337_spill] sm:$0xff] }
 0x48b   : > { %v4427_v46 = vmul.f32 %v15383_v44, %v11548_v58  ;;  %7714 = vrcp.f32 %v6433_v8  ;;  %v15387_v62 = vmax.f32 %v15386_v30, 0.0  ;;  %v15389_v57 = vmax.f32 %v15388_v24, 0.0  ;;  %2509 = vbcast.lane.b32.xlu1 %v15295_v16, 280  ;;  %v15393_v44 = vld [vmem:[#allocation247_spill] sm:$0xff] }
 0x48c   : > { %v4431_v14 = vmul.f32 %v15385_v1, %v11548_v58  ;;  %v11773_v6 = vadd.f32 %v4593_v41, %v4592_v54  ;;  %v5501_v8 = vadd.f32 %v11649_v9, %v4535_v3  ;;  %v4030_v48 = vmax.f32 %v3518_v5, 0.0 }
 0x48d   : > { %v4435_v18 = vmul.f32 %v15387_v62, %v11548_v58  ;;  %v4439_v36 = vmul.f32 %v15389_v57, %v11548_v58  ;;  %7716 = vpow2.f32 %v7320_v52  ;;  %v7703_v40 = vpop.eup %7702  ;;  %v11776_v13 = vmul.f32 -1.442695, %v5923_v38  ;;  %v15395_v52 = vld [vmem:[#allocation341_spill] sm:$0xff]  ;;  %2604 = vbcast.lane.b32.xlu0 %v15299_v20, 280 }
 0x48e   : > { %15390 = vst [vmem:[#allocation263_spill] sm:$0xff] %v11773_v6  ;;  %7718 = vpow2.f32 %v7321_v25  ;;  %v15392_v56 = vmax.f32 %v15391_v7, 0.0  ;;  %v15394_v63 = vmax.f32 %v15393_v44, 0.0  ;;  %v7705_v16 = vpop.eup %7704  ;;  %v5502_v54 = vrot.slane %v5501_v8, 4  ;;  %v15454_v6 = vld [vmem:[#allocation13_spill] sm:$0xff] }
 0x48f   : > { %v4542_v41 = vmul.f32 %v4030_v48, %v11349_v15  ;;  %v6345_v9 = vadd.f32 1.0, %v7703_v40  ;;  %v15396_v3 = vmax.f32 %v15395_v52, 0.0  ;;  %v6346_v25 = vadd.f32 1.0, %v7705_v16  ;;  %2638 = vbcast.lane.b32.xlu1 %v15309_v42, 272 }
 0x490   : > { %v4443_v23 = vmul.f32 %v15392_v56, %v11548_v58  ;;  %v11784_v1 = vmul.f32 %v15394_v63, %v11229_v47  ;;  %v5258_v5 = vadd.f32 %v11451_v26, %v4427_v46  ;;  %v5267_v30 = vadd.f32 %v11453_v12, %v4431_v14 }
 0x491   : > { %v11790_v38 = vmul.f32 %v15396_v3, %v11548_v58  ;;  %v5276_v62 = vadd.f32 %v11463_v21, %v4435_v18  ;;  %v5503_v24 = vadd.f32 %v5502_v54, %v5501_v8  ;;  %v11798_v57 = vadd.f32 %v11660_v33, %v4542_v41  ;;  %v7707_v40 = vpop.eup %7706  ;;  %2737 = vbcast.lane.b32.xlu0 %v15187_v19, 280  ;;  %v15399_v19 = vld [vmem:[#allocation273_spill] sm:$0xff] }
 0x492   : > { %7720 = vrcp.f32 %v6345_v9  ;;  %v5285_v48 = vadd.f32 %v11466_v11, %v4439_v36  ;;  %v5259_v7 = vrot.slane %v5258_v5, 4  ;;  %v5268_v26 = vrot.slane %v5267_v30, 4  ;;  %v7709_v12 = vpop.eup %7708 }
 0x493   : > { %15397 = vst [vmem:[#allocation12_spill] sm:$0xff] %v11798_v57  ;;  %7722 = vrcp.f32 %v6346_v25  ;;  %v5277_v46 = vrot.slane %v5276_v62, 4  ;;  %v5504_v14 = vrot.slane %v5503_v24, 2  ;;  %v6347_v21 = vadd.f32 1.0, %v7707_v40  ;;  %v7711_v56 = vpop.eup %7710  ;;  %2771 = vbcast.lane.b32.xlu1 %v15350_v37, 272  ;;  %v15447_v37 = vld [vmem:[#allocation267_spill] sm:$0xff] }
 0x494   : > { %v5286_v18 = vrot.slane %v5285_v48, 4  ;;  %v5294_v20 = vadd.f32 %v11478_v61, %v4443_v23  ;;  %v6348_v8 = vadd.f32 1.0, %v7709_v12  ;;  %v5260_v44 = vadd.f32 %v5259_v7, %v5258_v5  ;;  %v7713_v11 = vpop.eup %7712 }
 0x495   : > { %v5269_v33 = vadd.f32 %v5268_v26, %v5267_v30  ;;  %v5278_v63 = vadd.f32 %v5277_v46, %v5276_v62  ;;  %v5505_v36 = vadd.f32 %v5504_v14, %v5503_v24  ;;  %v6349_v16 = vadd.f32 1.0, %v7711_v56  ;;  %v11804_v41 = vpop.eup %7714  ;;  %v15401_v46 = vld [vmem:[#allocation277_spill] sm:$0xff] }
 0x496   : > { %7724 = vrcp.f32 %v6347_v21  ;;  %v5287_v54 = vadd.f32 %v5286_v18, %v5285_v48  ;;  %15398 = vst [vmem:[#allocation16_spill] sm:$0xff] %v11804_v41  ;;  %v6350_v9 = vadd.f32 1.0, %v7713_v11  ;;  %v5261_v61 = vrot.slane %v5260_v44, 2  ;;  %v15446_v41 = vld [vmem:[#allocation266_spill] sm:$0xff] }
 0x497   : > { %7726 = vrcp.f32 %v6348_v8  ;;  %v5270_v23 = vrot.slane %v5269_v33, 2  ;;  %v7717_v52 = vpop.eup %7716  ;;  %v5506_v3 = vrot.slane %v5505_v36, 1  ;;  %v15400_v25 = vmax.f32 %v15399_v19, 0.0 }
 0x498   : > { %7728 = vrcp.f32 %v6349_v16  ;;  %v5279_v30 = vrot.slane %v5278_v63, 2  ;;  %v7719_v62 = vpop.eup %7718  ;;  %v6351_v24 = vadd.f32 1.0, %v7717_v52  ;;  %v5262_v48 = vadd.f32 %v5261_v61, %v5260_v44 }
 0x499   : > { %v4451_v5 = vmul.f32 %v15400_v25, %v11548_v58  ;;  %7730 = vrcp.f32 %v6350_v9  ;;  %v5271_v40 = vadd.f32 %v5270_v23, %v5269_v33  ;;  %v5507_v7 = vadd.f32 %v5506_v3, %v5505_v36 }
 0x49a   : > { %v6352_v26 = vadd.f32 1.0, %v7719_v62  ;;  %v15402_v12 = vmax.f32 %v15401_v46, 0.0  ;;  %v5280_v21 = vadd.f32 %v5279_v30, %v5278_v63  ;;  %7732 = vrcp.f32 %v6351_v24  ;;  %v15403_v62 = vld [vmem:[#allocation14_spill] sm:$0xff] }
 0x49b   : > { %v5263_v18 = vrot.slane %v5262_v48, 1  ;;  %v5272_v56 = vrot.slane %v5271_v40, 1  ;;  %v5288_v8 = vrot.slane %v5287_v54, 2  ;;  %v5924_v16 = vadd.f32 %v15364_v59, %v5507_v7  ;;  %v15404_v7 = vld [vmem:[#allocation18_spill] sm:$0xff] }
 0x49c   : > { %v4455_v14 = vmul.f32 %v15402_v12, %v11548_v58  ;;  %v7721_v11 = vpop.eup %7720  ;;  %7734 = vrcp.f32 %v6352_v26  ;;  %v5281_v9 = vrot.slane %v5280_v21, 1  ;;  %v5295_v44 = vrot.slane %v5294_v20, 4 }
 0x49d   : > { %v7723_v33 = vpop.eup %7722  ;;  %v5264_v36 = vadd.f32 %v5263_v18, %v5262_v48  ;;  %v5273_v61 = vadd.f32 %v5272_v56, %v5271_v40  ;;  %v5289_v23 = vadd.f32 %v5288_v8, %v5287_v54  ;;  %v5303_v52 = vadd.f32 %v11494_v49, %v11790_v38 }
 0x49e   : > { %7736 = vpow2.f32 %v11776_v13  ;;  %v6874_v63 = vsel %vm6873_vm1, %v7723_v33, %v7721_v11  ;;  %v5282_v3 = vadd.f32 %v5281_v9, %v5280_v21  ;;  %v5296_v19 = vadd.f32 %v5295_v44, %v5294_v20 }
 0x49f   : > { %v5290_v25 = vrot.slane %v5289_v23, 1  ;;  %v5304_v30 = vrot.slane %v5303_v52, 4  ;;  %v5312_v24 = vadd.f32 %v15403_v62, %v4451_v5  ;;  %v5321_v26 = vadd.f32 %v15404_v7, %v4455_v14 }
 0x4a0   : > { %v7725_v46 = vpop.eup %7724  ;;  %v7405_v12 = vmul.f32 -1.442695, %v5924_v16  ;;  %v5297_v48 = vrot.slane %v5296_v19, 2  ;;  %v5897_v54 = vadd.f32 %v15364_v59, %v5264_v36  ;;  %v5898_v40 = vadd.f32 %v15364_v59, %v5273_v61 }
 0x4a1   : > { %v7727_v49 = vpop.eup %7726  ;;  %v6876_v13 = vsel %vm6875_vm2, %v7725_v46, %v6874_v63  ;;  %v5291_v38 = vadd.f32 %v5290_v25, %v5289_v23  ;;  %v5305_v18 = vadd.f32 %v5304_v30, %v5303_v52  ;;  %v5313_v21 = vrot.slane %v5312_v24, 4 }
 0x4a2   : > { %v7729_v20 = vpop.eup %7728  ;;  %v6878_v56 = vsel %vm6877_vm3, %v7727_v49, %v6876_v13  ;;  %v5298_v8 = vadd.f32 %v5297_v48, %v5296_v19  ;;  %v5322_v5 = vrot.slane %v5321_v26, 4  ;;  %v5899_v14 = vadd.f32 %v15364_v59, %v5282_v3  ;;  %v2498_v49 = vpop.permute.xlu1 %2497 }
 0x4a3   : > { %v7731_v11 = vpop.eup %7730  ;;  %v6880_v16 = vsel %vm6879_vm4, %v7729_v20, %v6878_v56  ;;  %v5306_v9 = vrot.slane %v5305_v18, 2  ;;  %v5314_v44 = vadd.f32 %v5313_v21, %v5312_v24  ;;  %v5900_v33 = vadd.f32 %v15364_v59, %v5291_v38 }
 0x4a4   : > { %v6882_v36 = vsel %vm6881_vm5, %v7731_v11, %v6880_v16  ;;  %v5299_v61 = vrot.slane %v5298_v8, 1  ;;  %v5323_v23 = vadd.f32 %v5322_v5, %v5321_v26  ;;  %v7378_v52 = vmul.f32 -1.442695, %v5897_v54  ;;  %v7733_v63 = vpop.eup %7732 }
 0x4a5   : > { %v5307_v25 = vadd.f32 %v5306_v9, %v5305_v18  ;;  %v5315_v30 = vrot.slane %v5314_v44, 2  ;;  %v7379_v62 = vmul.f32 -1.442695, %v5898_v40  ;;  %v7380_v19 = vmul.f32 -1.442695, %v5899_v14 }
 0x4a6   : > { %v7735_v7 = vpop.eup %7734  ;;  %v6884_v3 = vsel %vm6883_vm6, %v7733_v63, %v6882_v36  ;;  %v5300_v46 = vadd.f32 %v5299_v61, %v5298_v8  ;;  %v5324_v48 = vrot.slane %v5323_v23, 2  ;;  %7738 = vpow2.f32 %v7378_v52 }
 0x4a7   : > { %v6886_v24 = vsel %vm6885_vm7, %v7735_v7, %v6884_v3  ;;  %v5308_v13 = vrot.slane %v5307_v25, 1  ;;  %v5316_v38 = vadd.f32 %v5315_v30, %v5314_v44  ;;  %7740 = vpow2.f32 %v7379_v62  ;;  %v15407_v44 = vld [vmem:[#allocation232_spill] sm:$0xff] }
 0x4a8   : > { %v11829_v21 = vpop.eup %7736  ;;  %7586 = vmatprep.mubr.f32.mxu0 %v6886_v24  ;;  %v5325_v26 = vadd.f32 %v5324_v48, %v5323_v23  ;;  %v5901_v54 = vadd.f32 %v15364_v59, %v5300_v46  ;;  %7742 = vpow2.f32 %v7380_v19  ;;  %v7381_v40 = vmul.f32 -1.442695, %v5900_v33  ;;  %v15413_v7 = vld [vmem:[#allocation244_spill] sm:$0xff] }
 0x4a9   : > { %15405 = vst [vmem:[#allocation20_spill] sm:$0xff] %v11829_v21  ;;  %7744 = vpow2.f32 %v7405_v12  ;;  %v5309_v18 = vadd.f32 %v5308_v13, %v5307_v25  ;;  %v5317_v20 = vrot.slane %v5316_v38, 1  ;;  %v3524_v56 = vadd.f32 %v2498_v49, %v8359_v32  ;;  %v15409_v12 = vld [vmem:[#allocation236_spill] sm:$0xff]  ;;  %v15415_v49 = vld [vmem:[#allocation250_spill] sm:$0xff] }
 0x4aa   : > { %v11834_v8 = vadd.f32 1.0, %v11734_v60  ;;  %v5326_v5 = vrot.slane %v5325_v26, 1  ;;  %7746 = vpow2.f32 %v7381_v40  ;;  %v7382_v14 = vmul.f32 -1.442695, %v5901_v54  ;;  %v15411_v60 = vld [vmem:[#allocation240_spill] sm:$0xff] }
 0x4ab   : > { %v5318_v11 = vadd.f32 %v5317_v20, %v5316_v38  ;;  %v5902_v16 = vadd.f32 %v15364_v59, %v5309_v18  ;;  %v4036_v9 = vmax.f32 %v3524_v56, 0.0  ;;  %v15408_v36 = vmax.f32 %v15407_v44, 0.0  ;;  %v15417_v38 = vld [vmem:[#allocation249_spill] sm:$0xff]  ;;  %v15419_v40 = vld [vmem:[#allocation252_spill] sm:$0xff] }
 0x4ac   : > { %15406 = vst [vmem:[#allocation24_spill] sm:$0xff] %v11834_v8  ;;  %v5327_v33 = vadd.f32 %v5326_v5, %v5325_v26  ;;  %7748 = vpow2.f32 %v7382_v14  ;;  %v15410_v23 = vmax.f32 %v15409_v12, 0.0  ;;  %v15412_v63 = vmax.f32 %v15411_v60, 0.0  ;;  %v15421_v5 = vld [vmem:[#allocation251_spill] sm:$0xff]  ;;  %v15425_v12 = vld [vmem:[#allocation253_spill] sm:$0xff]  ;;  %v15453_v8 = vld [vmem:[#allocation34_spill] sm:$0xff] }
 0x4ad   : > { %v4203_v61 = vmul.f32 %v15408_v36, %v11548_v58  ;;  %v5903_v30 = vadd.f32 %v15364_v59, %v5318_v11  ;;  %v7383_v62 = vmul.f32 -1.442695, %v5902_v16  ;;  %v11848_v19 = vmul.f32 %v4036_v9, %v11187_v0  ;;  %v15423_v16 = vld [vmem:[#allocation254_spill] sm:$0xff] }
 0x4ae   : > { %v4207_v52 = vmul.f32 %v15410_v23, %v11548_v58  ;;  %v4211_v25 = vmul.f32 %v15412_v63, %v11548_v58  ;;  %v15414_v3 = vmax.f32 %v15413_v7, 0.0  ;;  %v5904_v48 = vadd.f32 %v15364_v59, %v5327_v33  ;;  %v15427_v63 = vld [vmem:[#allocation256_spill] sm:$0xff] }
 0x4af   : > { %v15416_v24 = vmax.f32 %v15415_v49, 0.0  ;;  %v15418_v26 = vmax.f32 %v15417_v38, 0.0  ;;  %v15420_v18 = vmax.f32 %v15419_v40, 0.0  ;;  %7750 = vpow2.f32 %v7383_v62 }
 0x4b0   : > { %v4215_v46 = vmul.f32 %v15414_v3, %v11548_v58  ;;  %v7384_v56 = vmul.f32 -1.442695, %v5903_v30  ;;  %v15422_v14 = vmax.f32 %v15421_v5, 0.0  ;;  %v15424_v9 = vmax.f32 %v15423_v16, 0.0  ;;  %v7739_v36 = vpop.eup %7738  ;;  %v15429_v30 = vld [vmem:[#allocation255_spill] sm:$0xff] }
 0x4b1   : > { %v4218_v13 = vmul.f32 %v15416_v24, %v11349_v15  ;;  %v4219_v54 = vmul.f32 %v15418_v26, %v11548_v58  ;;  %v4220_v20 = vmul.f32 %v15420_v18, %v11187_v0  ;;  %v7385_v33 = vmul.f32 -1.442695, %v5904_v48  ;;  %v7741_v24 = vpop.eup %7740  ;;  %v15431_v26 = vld [vmem:[#allocation258_spill] sm:$0xff]  ;;  %v15433_v48 = vld [vmem:[#allocation257_spill] sm:$0xff] }
 0x4b2   : > { %v4221_v11 = vmul.f32 %v15422_v14, %v11229_v47  ;;  %v4222_v44 = vmul.f32 %v15424_v9, %v11349_v15  ;;  %v15426_v23 = vmax.f32 %v15425_v12, 0.0  ;;  %v15428_v7 = vmax.f32 %v15427_v63, 0.0  ;;  %v7743_v16 = vpop.eup %7742  ;;  %v15435_v12 = vld [vmem:[#allocation260_spill] sm:$0xff] }
 0x4b3   : > { %v15430_v62 = vmax.f32 %v15429_v30, 0.0  ;;  %7752 = vpow2.f32 %v7384_v56  ;;  %v6409_v38 = vadd.f32 1.0, %v7739_v36  ;;  %v15432_v40 = vmax.f32 %v15431_v26, 0.0  ;;  %v15437_v56 = vld [vmem:[#allocation259_spill] sm:$0xff]  ;;  %v11896_v30 = vpop.eup %7744  ;;  %v15440_v26 = vld [vmem:[#allocation262_spill] sm:$0xff] }
 0x4b4   : > { %v4223_v60 = vmul.f32 %v15426_v23, %v11548_v58  ;;  %v4224_v3 = vmul.f32 %v15428_v7, %v11187_v0  ;;  %v15434_v5 = vmax.f32 %v15433_v48, 0.0  ;;  %7754 = vpow2.f32 %v7385_v33  ;;  %15439 = vst [vmem:[#allocation28_spill] sm:$0xff] %v11896_v30  ;;  %v15442_v33 = vld [vmem:[#allocation261_spill] sm:$0xff]  ;;  %v15452_v30 = vld [vmem:[#allocation336_spill] sm:$0xff] }
 0x4b5   : > { %v4225_v49 = vmul.f32 %v15430_v62, %v11229_v47  ;;  %v4226_v18 = vmul.f32 %v15432_v40, %v11349_v15  ;;  %v6410_v9 = vadd.f32 1.0, %v7741_v24  ;;  %v15436_v23 = vmax.f32 %v15435_v12, 0.0  ;;  %v7747_v12 = vpop.eup %7746 }
 0x4b6   : > { %v11884_v14 = vmul.f32 %v15434_v5, %v11548_v58  ;;  %v15438_v36 = vmax.f32 %v15437_v56, 0.0  ;;  %v6411_v62 = vadd.f32 1.0, %v7743_v16  ;;  %7756 = vrcp.f32 %v6409_v38  ;;  %v15445_v56 = vld [vmem:[#allocation30_spill] sm:$0xff]  ;;  %v15448_v16 = vld [vmem:[#allocation17_spill] sm:$0xff] }
 0x4b7   : > { %v11889_v63 = vmul.f32 %v15436_v23, %v11187_v0  ;;  %v15441_v40 = vmax.f32 %v15440_v26, 0.0  ;;  %v15443_v24 = vmax.f32 %v15442_v33, 0.0  ;;  %7758 = vrcp.f32 %v6410_v9  ;;  %v15444_v23 = vld [vmem:[#allocation26_spill] sm:$0xff]  ;;  %v15449_v38 = vld [vmem:[#allocation21_spill] sm:$0xff] }
 0x4b8   : > { %v11894_v7 = vmul.f32 %v15438_v36, %v11229_v47  ;;  %v4752_v36 = vadd.f32 %v15445_v56, %v15444_v23  ;;  %v4761_v42 = vadd.f32 %v15447_v37, %v15446_v41  ;;  %v4770_v57 = vadd.f32 %v15449_v38, %v15448_v16  ;;  %v15450_v26 = vld [vmem:[#allocation29_spill] sm:$0xff] }
 0x4b9   : > { %v11901_v48 = vmul.f32 %v15441_v40, %v11349_v15  ;;  %v11906_v5 = vmul.f32 %v15443_v24, %v11548_v58  ;;  %v6412_v51 = vadd.f32 1.0, %v7747_v12  ;;  %7760 = vrcp.f32 %v6411_v62  ;;  %v15451_v40 = vld [vmem:[#allocation33_spill] sm:$0xff]  ;;  %v7749_v24 = vpop.eup %7748 }
 0x4ba   : > { %v4779_v28 = vadd.f32 %v15451_v40, %v15450_v26  ;;  %v4788_v33 = vadd.f32 %v11784_v1, %v15452_v30  ;;  %v4753_v9 = vadd.f32 %v4752_v36, %v15453_v8  ;;  %v4762_v21 = vadd.f32 %v4761_v42, %v15454_v6  ;;  %v15455_v23 = vld [vmem:[#allocation25_spill] sm:$0xff]  ;;  %v7751_v40 = vpop.eup %7750 }
 0x4bb   : > { %v4771_v56 = vadd.f32 %v4770_v57, %v15455_v23  ;;  %v4797_v10 = vadd.f32 %v4221_v11, %v4220_v20  ;;  %v6413_v37 = vadd.f32 1.0, %v7749_v24  ;;  %7762 = vrcp.f32 %v6412_v51  ;;  %v15456_v41 = vld [vmem:[#allocation333_spill] sm:$0xff] }
 0x4bc   : > { %v4780_v16 = vadd.f32 %v4779_v28, %v15456_v41  ;;  %v4789_v12 = vadd.f32 %v4788_v33, %v4218_v13  ;;  %v4754_v62 = vadd.f32 %v4753_v9, %v4203_v61  ;;  %v4763_v38 = vadd.f32 %v4762_v21, %v4207_v52 }
 0x4bd   : > { %v4772_v39 = vadd.f32 %v4771_v56, %v4211_v25  ;;  %v4798_v26 = vadd.f32 %v4797_v10, %v4222_v44  ;;  %7764 = vrcp.f32 %v6413_v37  ;;  %v4806_v22 = vadd.f32 %v4225_v49, %v4224_v3  ;;  %v7753_v57 = vpop.eup %7752 }
 0x4be   : > { %v4781_v1 = vadd.f32 %v4780_v16, %v4215_v46  ;;  %v4790_v30 = vadd.f32 %v4789_v12, %v4219_v54  ;;  %v6414_v8 = vadd.f32 1.0, %v7751_v40  ;;  %v4755_v36 = vrot.slane %v4754_v62, 4  ;;  %v7755_v28 = vpop.eup %7754 }
 0x4bf   : > { %v4764_v42 = vrot.slane %v4763_v38, 4  ;;  %v4773_v6 = vrot.slane %v4772_v39, 4  ;;  %v4799_v51 = vadd.f32 %v4798_v26, %v4223_v60  ;;  %v4807_v24 = vadd.f32 %v4806_v22, %v4226_v18 }
 0x4c0   : > { %v4782_v20 = vrot.slane %v4781_v1, 4  ;;  %v4791_v11 = vrot.slane %v4790_v30, 4  ;;  %v6415_v13 = vadd.f32 1.0, %v7753_v57  ;;  %7766 = vrcp.f32 %v6414_v8  ;;  %v7757_v10 = vpop.eup %7756 }
 0x4c1   : > { %v4756_v21 = vadd.f32 %v4755_v36, %v4754_v62  ;;  %v4765_v61 = vadd.f32 %v4764_v42, %v4763_v38  ;;  %v6416_v52 = vadd.f32 1.0, %v7755_v28  ;;  %v4774_v25 = vadd.f32 %v4773_v6, %v4772_v39  ;;  %v7759_v44 = vpop.eup %7758 }
 0x4c2   : > { %v4783_v46 = vadd.f32 %v4782_v20, %v4781_v1  ;;  %v4792_v54 = vadd.f32 %v4791_v11, %v4790_v30  ;;  %7768 = vrcp.f32 %v6415_v13  ;;  %v4800_v33 = vrot.slane %v4799_v51, 4 }
 0x4c3   : > { %v4757_v3 = vrot.slane %v4756_v21, 2  ;;  %v4766_v49 = vrot.slane %v4765_v61, 2  ;;  %v7761_v9 = vpop.eup %7760  ;;  %7770 = vrcp.f32 %v6416_v52  ;;  %v6936_v60 = vsel %vm6873_vm1, %v7759_v44, %v7757_v10 }
 0x4c4   : > { %v4775_v22 = vrot.slane %v4774_v25, 2  ;;  %v4784_v18 = vrot.slane %v4783_v46, 2  ;;  %v6937_v23 = vsel %vm6875_vm2, %v7761_v9, %v6936_v60  ;;  %v4793_v41 = vrot.slane %v4792_v54, 2 }
 0x4c5   : > { %v4758_v56 = vadd.f32 %v4757_v3, %v4756_v21  ;;  %v4767_v37 = vadd.f32 %v4766_v49, %v4765_v61  ;;  %v7763_v16 = vpop.eup %7762  ;;  %v4801_v62 = vadd.f32 %v4800_v33, %v4799_v51  ;;  %v4808_v38 = vadd.f32 %v4807_v24, %v11884_v14 }
 0x4c6   : > { %v4776_v39 = vadd.f32 %v4775_v22, %v4774_v25  ;;  %v4785_v12 = vadd.f32 %v4784_v18, %v4783_v46  ;;  %v6938_v26 = vsel %vm6877_vm3, %v7763_v16, %v6937_v23  ;;  %v4794_v30 = vadd.f32 %v4793_v41, %v4792_v54 }
 0x4c7   : > { %v4759_v40 = vrot.slane %v4758_v56, 1  ;;  %v4768_v1 = vrot.slane %v4767_v37, 1  ;;  %v7765_v8 = vpop.eup %7764  ;;  %v4802_v6 = vrot.slane %v4801_v62, 2  ;;  %v4809_v57 = vrot.slane %v4808_v38, 4 }
 0x4c8   : > { %v4777_v36 = vrot.slane %v4776_v39, 1  ;;  %v4786_v42 = vrot.slane %v4785_v12, 1  ;;  %v6939_v20 = vsel %vm6879_vm4, %v7765_v8, %v6938_v26  ;;  %v4795_v13 = vrot.slane %v4794_v30, 1 }
 0x4c9   : > { %v4760_v11 = vadd.f32 %v4759_v40, %v4758_v56  ;;  %v4769_v28 = vadd.f32 %v4768_v1, %v4767_v37  ;;  %v4803_v51 = vadd.f32 %v4802_v6, %v4801_v62  ;;  %v4810_v10 = vadd.f32 %v4809_v57, %v4808_v38  ;;  %v15457_v40 = vld [vmem:[#allocation281_spill] sm:$0xff] }
 0x4ca   : > { %v4778_v21 = vadd.f32 %v4777_v36, %v4776_v39  ;;  %v4787_v61 = vadd.f32 %v4786_v42, %v4785_v12  ;;  %v7767_v14 = vpop.eup %7766  ;;  %v4796_v24 = vadd.f32 %v4795_v13, %v4794_v30  ;;  %v4815_v52 = vadd.f32 %v11894_v7, %v11889_v63  ;;  %v15463_v13 = vld [vmem:[#allocation282_spill] sm:$0xff] }
 0x4cb   : > { %v5841_v25 = vadd.f32 %v15364_v59, %v4760_v11  ;;  %v5842_v46 = vadd.f32 %v15364_v59, %v4769_v28  ;;  %v6940_v54 = vsel %vm6881_vm5, %v7767_v14, %v6939_v20  ;;  %v4804_v44 = vrot.slane %v4803_v51, 1  ;;  %v15461_v20 = vld [vmem:[#allocation283_spill] sm:$0xff] }
 0x4cc   : > { %v4811_v3 = vrot.slane %v4810_v10, 2  ;;  %v5843_v49 = vadd.f32 %v15364_v59, %v4778_v21  ;;  %v7769_v33 = vpop.eup %7768  ;;  %v4816_v9 = vadd.f32 %v4815_v52, %v11901_v48  ;;  %v5844_v60 = vadd.f32 %v15364_v59, %v4787_v61  ;;  %v15467_v52 = vld [vmem:[#allocation286_spill] sm:$0xff] }
 0x4cd   : > { %v5845_v22 = vadd.f32 %v15364_v59, %v4796_v24  ;;  %v7322_v18 = vmul.f32 -1.442695, %v5841_v25  ;;  %v7771_v23 = vpop.eup %7770  ;;  %v6941_v63 = vsel %vm6883_vm6, %v7769_v33, %v6940_v54  ;;  %v4805_v7 = vadd.f32 %v4804_v44, %v4803_v51  ;;  %v15469_v44 = vld [vmem:[#allocation289_spill] sm:$0xff]  ;;  %v15471_v33 = vld [vmem:[#allocation288_spill] sm:$0xff] }
 0x4ce   : > { %v4812_v56 = vadd.f32 %v4811_v3, %v4810_v10  ;;  %v7323_v37 = vmul.f32 -1.442695, %v5842_v46  ;;  %v6942_v41 = vsel %vm6885_vm7, %v7771_v23, %v6941_v63  ;;  %v4817_v16 = vadd.f32 %v4816_v9, %v11906_v5  ;;  %v15459_v5 = vld [vmem:[#allocation280_spill] sm:$0xff]  ;;  %v15465_v10 = vld [vmem:[#allocation287_spill] sm:$0xff] }
 0x4cf   : > { %7772 = vpow2.f32 %v7322_v18  ;;  %v7324_v39 = vmul.f32 -1.442695, %v5843_v49  ;;  %7598 = vmatprep.mubr.f32.mxu1 %v6942_v41  ;;  %v5846_v48 = vadd.f32 %v15364_v59, %v4805_v7  ;;  %v7325_v62 = vmul.f32 -1.442695, %v5844_v60  ;;  %v15475_v7 = vld [vmem:[#allocation290_spill] sm:$0xff]  ;;  %v15477_v41 = vld [vmem:[#allocation293_spill] sm:$0xff] }
 0x4d0   : > { %v4813_v12 = vrot.slane %v4812_v56, 1  ;;  %7774 = vpow2.f32 %v7323_v37  ;;  %v4818_v38 = vrot.slane %v4817_v16, 4  ;;  %v7326_v26 = vmul.f32 -1.442695, %v5845_v22  ;;  %v15473_v22 = vld [vmem:[#allocation291_spill] sm:$0xff] }
 0x4d1   : > { %7776 = vpow2.f32 %v7324_v39  ;;  %v15458_v1 = vmax.f32 %v15457_v40, 0.0  ;;  %v7327_v36 = vmul.f32 -1.442695, %v5846_v48  ;;  %v15460_v42 = vmax.f32 %v15459_v5, 0.0 }
 0x4d2   : > { %v4814_v8 = vadd.f32 %v4813_v12, %v4812_v56  ;;  %7778 = vpow2.f32 %v7325_v62  ;;  %v4819_v57 = vadd.f32 %v4818_v38, %v4817_v16  ;;  %v15462_v11 = vmax.f32 %v15461_v20, 0.0  ;;  %v15479_v12 = vld [vmem:[#allocation292_spill] sm:$0xff] }
 0x4d3   : > { %v11943_v30 = vmul.f32 %v15458_v1, %v11187_v0  ;;  %v4457_v6 = vmul.f32 %v15460_v42, %v11229_v47  ;;  %7780 = vpow2.f32 %v7326_v26  ;;  %v15464_v21 = vmax.f32 %v15463_v13, 0.0  ;;  %v15481_v26 = vld [vmem:[#allocation295_spill] sm:$0xff]  ;;  %v15485_v42 = vld [vmem:[#allocation298_spill] sm:$0xff]  ;;  %v15487_v13 = vld [vmem:[#allocation297_spill] sm:$0xff] }
 0x4d4   : > { %v11951_v28 = vmul.f32 %v15462_v11, %v11349_v15  ;;  %v5847_v51 = vadd.f32 %v15364_v59, %v4814_v8  ;;  %7782 = vpow2.f32 %v7327_v36  ;;  %v15466_v14 = vmax.f32 %v15465_v10, 0.0  ;;  %v15483_v8 = vld [vmem:[#allocation294_spill] sm:$0xff]  ;;  %v15489_v10 = vld [vmem:[#allocation300_spill] sm:$0xff] }
 0x4d5   : > { %v11956_v61 = vmul.f32 %v15464_v21, %v11548_v58  ;;  %v15468_v25 = vmax.f32 %v15467_v52, 0.0  ;;  %v4820_v54 = vrot.slane %v4819_v57, 2  ;;  %v15470_v3 = vmax.f32 %v15469_v44, 0.0  ;;  %v15491_v52 = vld [vmem:[#allocation299_spill] sm:$0xff] }
 0x4d6   : > { %v4460_v24 = vmul.f32 %v15466_v14, %v11187_v0  ;;  %v15472_v9 = vmax.f32 %v15471_v33, 0.0  ;;  %v15474_v18 = vmax.f32 %v15473_v22, 0.0  ;;  %v7328_v63 = vmul.f32 -1.442695, %v5847_v51  ;;  %v15493_v33 = vld [vmem:[#allocation302_spill] sm:$0xff] }
 0x4d7   : > { %v4461_v46 = vmul.f32 %v15468_v25, %v11229_v47  ;;  %v4462_v49 = vmul.f32 %v15470_v3, %v11349_v15  ;;  %v15476_v56 = vmax.f32 %v15475_v7, 0.0  ;;  %v15478_v16 = vmax.f32 %v15477_v41, 0.0 }
 0x4d8   : > { %v11971_v60 = vmul.f32 %v15472_v9, %v11548_v58  ;;  %v4464_v23 = vmul.f32 %v15474_v18, %v11187_v0  ;;  %v15480_v48 = vmax.f32 %v15479_v12, 0.0  ;;  %v4821_v38 = vadd.f32 %v4820_v54, %v4819_v57  ;;  %v15495_v18 = vld [vmem:[#allocation301_spill] sm:$0xff] }
 0x4d9   : > { %v4465_v37 = vmul.f32 %v15476_v56, %v11229_v47  ;;  %v4466_v39 = vmul.f32 %v15478_v16, %v11349_v15  ;;  %v15482_v40 = vmax.f32 %v15481_v26, 0.0  ;;  %v15484_v36 = vmax.f32 %v15483_v8, 0.0  ;;  %v7773_v44 = vpop.eup %7772  ;;  %v15497_v56 = vld [vmem:[#allocation304_spill] sm:$0xff]  ;;  %v15499_v26 = vld [vmem:[#allocation303_spill] sm:$0xff] }
 0x4da   : > { %v4467_v62 = vmul.f32 %v15480_v48, %v11548_v58  ;;  %v15486_v20 = vmax.f32 %v15485_v42, 0.0  ;;  %7784 = vpow2.f32 %v7328_v63  ;;  %v15488_v21 = vmax.f32 %v15487_v13, 0.0  ;;  %v7775_v12 = vpop.eup %7774  ;;  %v15503_v13 = vld [vmem:[#allocation309_spill] sm:$0xff] }
 0x4db   : > { %v4468_v1 = vmul.f32 %v15482_v40, %v11187_v0  ;;  %v4469_v5 = vmul.f32 %v15484_v36, %v11229_v47  ;;  %v15490_v57 = vmax.f32 %v15489_v10, 0.0  ;;  %v15492_v25 = vmax.f32 %v15491_v52, 0.0  ;;  %v15501_v36 = vld [vmem:[#allocation310_spill] sm:$0xff] }
 0x4dc   : > { %v4470_v11 = vmul.f32 %v15486_v20, %v11349_v15  ;;  %v4471_v51 = vmul.f32 %v15488_v21, %v11548_v58  ;;  %v4822_v3 = vrot.slane %v4821_v38, 1  ;;  %v15494_v9 = vmax.f32 %v15493_v33, 0.0  ;;  %v15505_v33 = vld [vmem:[#allocation312_spill] sm:$0xff] }
 0x4dd   : > { %v4472_v14 = vmul.f32 %v15490_v57, %v11187_v0  ;;  %v4473_v54 = vmul.f32 %v15492_v25, %v11229_v47  ;;  %v15496_v63 = vmax.f32 %v15495_v18, 0.0  ;;  %v15498_v41 = vmax.f32 %v15497_v56, 0.0  ;;  %v7777_v57 = vpop.eup %7776 }
 0x4de   : > { %v4474_v22 = vmul.f32 %v15494_v9, %v11349_v15  ;;  %v6353_v48 = vadd.f32 1.0, %v7773_v44  ;;  %v15500_v40 = vmax.f32 %v15499_v26, 0.0  ;;  %v15502_v42 = vmax.f32 %v15501_v36, 0.0  ;;  %v15507_v44 = vld [vmem:[#allocation311_spill] sm:$0xff] }
 0x4df   : > { %v4475_v7 = vmul.f32 %v15496_v63, %v11548_v58  ;;  %v4476_v16 = vmul.f32 %v15498_v41, %v11187_v0  ;;  %v15504_v21 = vmax.f32 %v15503_v13, 0.0  ;;  %v4823_v52 = vadd.f32 %v4822_v3, %v4821_v38  ;;  %v7779_v41 = vpop.eup %7778  ;;  %v15511_v13 = vld [vmem:[#allocation313_spill] sm:$0xff] }
 0x4e0   : > { %v4477_v8 = vmul.f32 %v15500_v40, %v11229_v47  ;;  %v4478_v20 = vmul.f32 %v15502_v42, %v11349_v15  ;;  %v6354_v25 = vadd.f32 1.0, %v7775_v12  ;;  %v15506_v9 = vmax.f32 %v15505_v33, 0.0  ;;  %v15509_v40 = vld [vmem:[#allocation314_spill] sm:$0xff]  ;;  %v7781_v3 = vpop.eup %7780 }
 0x4e1   : > { %v4479_v10 = vmul.f32 %v15504_v21, %v11548_v58  ;;  %v15508_v63 = vmax.f32 %v15507_v44, 0.0  ;;  %v6355_v26 = vadd.f32 1.0, %v7777_v57  ;;  %7786 = vrcp.f32 %v6353_v48  ;;  %v7783_v57 = vpop.eup %7782 }
 0x4e2   : > { %v4480_v18 = vmul.f32 %v15506_v9, %v11187_v0  ;;  %v15510_v36 = vmax.f32 %v15509_v40, 0.0  ;;  %v15512_v21 = vmax.f32 %v15511_v13, 0.0  ;;  %v5848_v12 = vadd.f32 %v15364_v59, %v4823_v52  ;;  %v15513_v9 = vld [vmem:[#allocation317_spill] sm:$0xff]  ;;  %v15515_v40 = vld [vmem:[#allocation316_spill] sm:$0xff]  ;;  %v15517_v13 = vld [vmem:[#allocation350_spill] sm:$0xff] }
 0x4e3   : > { %v4481_v56 = vmul.f32 %v15508_v63, %v11229_v47  ;;  %v6356_v33 = vadd.f32 1.0, %v7779_v41  ;;  %7788 = vrcp.f32 %v6354_v25  ;;  %v15514_v44 = vmax.f32 %v15513_v9, 0.0  ;;  %v15519_v25 = vld [vmem:[#allocation349_spill] sm:$0xff] }
 0x4e4   : > { %v4482_v42 = vmul.f32 %v15510_v36, %v11349_v15  ;;  %v12033_v38 = vmul.f32 %v15512_v21, %v11548_v58  ;;  %v6357_v48 = vadd.f32 1.0, %v7781_v3  ;;  %7790 = vrcp.f32 %v6355_v26 }
 0x4e5   : > { %v4484_v63 = vmul.f32 %v15514_v44, %v11187_v0  ;;  %v15516_v36 = vmax.f32 %v15515_v40, 0.0  ;;  %v15518_v21 = vmax.f32 %v15517_v13, 0.0  ;;  %v7329_v17 = vmul.f32 -1.442695, %v5848_v12  ;;  %v7785_v13 = vpop.eup %7784 }
 0x4e6   : > { %v6358_v52 = vadd.f32 1.0, %v7783_v57  ;;  %7792 = vrcp.f32 %v6356_v33  ;;  %v15520_v41 = vmax.f32 %v15519_v25, 0.0  ;;  %v5328_v26 = vadd.f32 %v4457_v6, %v11943_v30 }
 0x4e7   : > { %v4485_v45 = vmul.f32 %v15516_v36, %v11229_v47  ;;  %v12045_v43 = vmul.f32 %v15518_v21, %v11349_v15  ;;  %7794 = vrcp.f32 %v6357_v48  ;;  %v5337_v3 = vadd.f32 %v4461_v46, %v4460_v24 }
 0x4e8   : > { %v12050_v9 = vmul.f32 %v15520_v41, %v11548_v58  ;;  %v5346_v44 = vadd.f32 %v4465_v37, %v4464_v23  ;;  %7796 = vpow2.f32 %v7329_v17  ;;  %v5355_v40 = vadd.f32 %v4469_v5, %v4468_v1 }
 0x4e9   : > { %v5364_v36 = vadd.f32 %v4473_v54, %v4472_v14  ;;  %v5373_v2 = vadd.f32 %v4477_v8, %v4476_v16  ;;  %7798 = vrcp.f32 %v6358_v52  ;;  %v5329_v12 = vadd.f32 %v5328_v26, %v11951_v28 }
 0x4ea   : > { %v5338_v57 = vadd.f32 %v5337_v3, %v4462_v49  ;;  %v5347_v33 = vadd.f32 %v5346_v44, %v4466_v39  ;;  %v6359_v21 = vadd.f32 1.0, %v7785_v13  ;;  %v5356_v29 = vadd.f32 %v5355_v40, %v4470_v11 }
 0x4eb   : > { %v5365_v25 = vadd.f32 %v5364_v36, %v4474_v22  ;;  %v5374_v41 = vadd.f32 %v5373_v2, %v4478_v20  ;;  %v5330_v48 = vadd.f32 %v5329_v12, %v11956_v61  ;;  %v5382_v24 = vadd.f32 %v4481_v56, %v4480_v18  ;;  %v7787_v37 = vpop.eup %7786 }
 0x4ec   : > { %v5339_v30 = vadd.f32 %v5338_v57, %v11971_v60  ;;  %v5348_v6 = vadd.f32 %v5347_v33, %v4467_v62  ;;  %7800 = vrcp.f32 %v6359_v21  ;;  %v5357_v17 = vadd.f32 %v5356_v29, %v4471_v51 }
 0x4ed   : > { %v5366_v46 = vadd.f32 %v5365_v25, %v4475_v7  ;;  %v5375_v23 = vadd.f32 %v5374_v41, %v4479_v10  ;;  %v5331_v1 = vrot.slane %v5330_v48, 4  ;;  %v5383_v49 = vadd.f32 %v5382_v24, %v4482_v42  ;;  %v7789_v39 = vpop.eup %7788 }
 0x4ee   : > { %v5340_v5 = vrot.slane %v5339_v30, 4  ;;  %v5349_v28 = vrot.slane %v5348_v6, 4  ;;  %v5358_v14 = vrot.slane %v5357_v17, 4  ;;  %v5391_v2 = vadd.f32 %v4485_v45, %v4484_v63  ;;  %v7791_v22 = vpop.eup %7790 }
 0x4ef   : > { %v5367_v11 = vrot.slane %v5366_v46, 4  ;;  %v5376_v54 = vrot.slane %v5375_v23, 4  ;;  %v6887_v61 = vsel %vm6873_vm1, %v7789_v39, %v7787_v37  ;;  %v5332_v60 = vadd.f32 %v5331_v1, %v5330_v48 }
 0x4f0   : > { %v5341_v62 = vadd.f32 %v5340_v5, %v5339_v30  ;;  %v5350_v16 = vadd.f32 %v5349_v28, %v5348_v6  ;;  %v7793_v8 = vpop.eup %7792  ;;  %v6888_v29 = vsel %vm6875_vm2, %v7791_v22, %v6887_v61  ;;  %v5359_v51 = vadd.f32 %v5358_v14, %v5357_v17 }
 0x4f1   : > { %v5368_v7 = vadd.f32 %v5367_v11, %v5366_v46  ;;  %v5377_v20 = vadd.f32 %v5376_v54, %v5375_v23  ;;  %v7795_v10 = vpop.eup %7794  ;;  %v6889_v18 = vsel %vm6877_vm3, %v7793_v8, %v6888_v29  ;;  %v5333_v56 = vrot.slane %v5332_v60, 2 }
 0x4f2   : > { %v5342_v42 = vrot.slane %v5341_v62, 2  ;;  %v5351_v52 = vrot.slane %v5350_v16, 2  ;;  %v7797_v26 = vpop.eup %7796  ;;  %v6890_v45 = vsel %vm6879_vm4, %v7795_v10, %v6889_v18  ;;  %v5360_v63 = vrot.slane %v5359_v51, 2 }
 0x4f3   : > { %v5369_v3 = vrot.slane %v5368_v7, 2  ;;  %v5378_v44 = vrot.slane %v5377_v20, 2  ;;  %v7799_v40 = vpop.eup %7798  ;;  %v6360_v36 = vadd.f32 1.0, %v7797_v26  ;;  %v5334_v13 = vadd.f32 %v5333_v56, %v5332_v60  ;;  %v15521_v56 = vld [vmem:[#allocation58_spill] sm:$0xff] }
 0x4f4   : > { %v5343_v12 = vadd.f32 %v5342_v42, %v5341_v62  ;;  %v5352_v57 = vadd.f32 %v5351_v52, %v5350_v16  ;;  %v6891_v33 = vsel %vm6881_vm5, %v7799_v40, %v6890_v45  ;;  %v5361_v21 = vadd.f32 %v5360_v63, %v5359_v51  ;;  %v15523_v63 = vld [vmem:[#allocation57_spill] sm:$0xff]  ;;  %v15525_v40 = vld [vmem:[#allocation60_spill] sm:$0xff] }
 0x4f5   : > { %v5370_v25 = vadd.f32 %v5369_v3, %v5368_v7  ;;  %v5379_v41 = vadd.f32 %v5378_v44, %v5377_v20  ;;  %7802 = vrcp.f32 %v6360_v36  ;;  %v5335_v48 = vrot.slane %v5334_v13, 1 }
 0x4f6   : > { %v5344_v30 = vrot.slane %v5343_v12, 1  ;;  %v5353_v6 = vrot.slane %v5352_v57, 1  ;;  %v7801_v24 = vpop.eup %7800  ;;  %v5362_v17 = vrot.slane %v5361_v21, 1  ;;  %v5384_v37 = vadd.f32 %v5383_v49, %v12033_v38 }
 0x4f7   : > { %v5371_v46 = vrot.slane %v5370_v25, 1  ;;  %v5380_v23 = vrot.slane %v5379_v41, 1  ;;  %v6892_v1 = vsel %vm6883_vm6, %v7801_v24, %v6891_v33  ;;  %v5336_v5 = vadd.f32 %v5335_v48, %v5334_v13 }
 0x4f8   : > { %v5345_v28 = vadd.f32 %v5344_v30, %v5343_v12  ;;  %v5354_v39 = vadd.f32 %v5353_v6, %v5352_v57  ;;  %v5363_v14 = vadd.f32 %v5362_v17, %v5361_v21  ;;  %v5385_v22 = vrot.slane %v5384_v37, 4  ;;  %v15527_v12 = vld [vmem:[#allocation59_spill] sm:$0xff]  ;;  %v15531_v6 = vld [vmem:[#allocation269_spill] sm:$0xff] }
 0x4f9   : > { %v5372_v11 = vadd.f32 %v5371_v46, %v5370_v25  ;;  %v5381_v54 = vadd.f32 %v5380_v23, %v5379_v41  ;;  %v5392_v61 = vadd.f32 %v5391_v2, %v12045_v43  ;;  %v5905_v60 = vadd.f32 %v15364_v59, %v5336_v5  ;;  %v15529_v41 = vld [vmem:[#allocation61_spill] sm:$0xff] }
 0x4fa   : > { %v5906_v62 = vadd.f32 %v15364_v59, %v5345_v28  ;;  %v5907_v16 = vadd.f32 %v15364_v59, %v5354_v39  ;;  %v5386_v8 = vadd.f32 %v5385_v22, %v5384_v37  ;;  %v5908_v38 = vadd.f32 %v15364_v59, %v5363_v14  ;;  %v15533_v37 = vld [vmem:[#allocation63_spill] sm:$0xff]  ;;  %v15535_v14 = vld [vmem:[#allocation62_spill] sm:$0xff]  ;;  %v15537_v22 = vld [vmem:[#allocation65_spill] sm:$0xff] }
 0x4fb   : > { %v5909_v49 = vadd.f32 %v15364_v59, %v5372_v11  ;;  %v5910_v29 = vadd.f32 %v15364_v59, %v5381_v54  ;;  %v5393_v51 = vadd.f32 %v5392_v61, %v12050_v9  ;;  %v7386_v7 = vmul.f32 -1.442695, %v5905_v60 }
 0x4fc   : > { %v7387_v20 = vmul.f32 -1.442695, %v5906_v62  ;;  %v7388_v10 = vmul.f32 -1.442695, %v5907_v16  ;;  %v5387_v18 = vrot.slane %v5386_v8, 2  ;;  %v15522_v42 = vmax.f32 %v15521_v56, 0.0 }
 0x4fd   : > { %v7389_v43 = vmul.f32 -1.442695, %v5908_v38  ;;  %v7390_v2 = vmul.f32 -1.442695, %v5909_v49  ;;  %v5394_v26 = vrot.slane %v5393_v51, 4  ;;  %7804 = vpow2.f32 %v7386_v7  ;;  %v15541_v38 = vld [vmem:[#allocation67_spill] sm:$0xff] }
 0x4fe   : > { %v12074_v52 = vmul.f32 %v15522_v42, %v11187_v0  ;;  %v7391_v45 = vmul.f32 -1.442695, %v5910_v29  ;;  %v15524_v3 = vmax.f32 %v15523_v63, 0.0  ;;  %v5388_v9 = vadd.f32 %v5387_v18, %v5386_v8  ;;  %v15543_v7 = vld [vmem:[#allocation66_spill] sm:$0xff]  ;;  %v15545_v18 = vld [vmem:[#allocation69_spill] sm:$0xff]  ;;  %v15547_v56 = vld [vmem:[#allocation68_spill] sm:$0xff] }
 0x4ff   : > { %7806 = vpow2.f32 %v7387_v20  ;;  %v15526_v36 = vmax.f32 %v15525_v40, 0.0  ;;  %v15528_v57 = vmax.f32 %v15527_v12, 0.0  ;;  %v7803_v21 = vpop.eup %7802  ;;  %v5395_v25 = vadd.f32 %v5394_v26, %v5393_v51  ;;  %v15549_v63 = vld [vmem:[#allocation71_spill] sm:$0xff]  ;;  %v15551_v40 = vld [vmem:[#allocation70_spill] sm:$0xff] }
 0x500   : > { %v12079_v44 = vmul.f32 %v15524_v3, %v11229_v47  ;;  %7808 = vpow2.f32 %v7388_v10  ;;  %v15530_v48 = vmax.f32 %v15529_v41, 0.0  ;;  %v15532_v24 = vmax.f32 %v15531_v6, 0.0 }
 0x501   : > { %v12084_v13 = vmul.f32 %v15526_v36, %v11349_v15  ;;  %v12089_v33 = vmul.f32 %v15528_v57, %v11548_v58  ;;  %v6893_v46 = vsel %vm6885_vm7, %v7803_v21, %v6892_v1  ;;  %v5389_v23 = vrot.slane %v5388_v9, 1  ;;  %v15539_v1 = vld [vmem:[#allocation64_spill] sm:$0xff]  ;;  %v15553_v57 = vld [vmem:[#allocation73_spill] sm:$0xff] }
 0x502   : > { %v4236_v30 = vmul.f32 %v15530_v48, %v11187_v0  ;;  %v4237_v17 = vmul.f32 %v15532_v24, %v11229_v47  ;;  %7810 = vpow2.f32 %v7389_v43  ;;  %v15534_v5 = vmax.f32 %v15533_v37, 0.0  ;;  %7587 = vmatmul.mubr.f32.vlgmr.msra.gmra.mrb[4].mxu0 %v6893_v46  ;;  %v15555_v48 = vld [vmem:[#allocation72_spill] sm:$0xff]  ;;  %v15557_v46 = vld [vmem:[#allocation75_spill] sm:$0xff] }
 0x503   : > { %v5396_v39 = vrot.slane %v5395_v25, 2  ;;  %7812 = vpow2.f32 %v7390_v2  ;;  %v15536_v11 = vmax.f32 %v15535_v14, 0.0  ;;  %v15538_v61 = vmax.f32 %v15537_v22, 0.0  ;;  %v15561_v22 = vld [vmem:[#allocation77_spill] sm:$0xff] }
 0x504   : > { %v4238_v28 = vmul.f32 %v15534_v5, %v11349_v15  ;;  %v5390_v62 = vadd.f32 %v5389_v23, %v5388_v9  ;;  %7814 = vpow2.f32 %v7391_v45  ;;  %v15540_v16 = vmax.f32 %v15539_v1, 0.0  ;;  %v15559_v5 = vld [vmem:[#allocation74_spill] sm:$0xff]  ;;  %v15563_v1 = vld [vmem:[#allocation76_spill] sm:$0xff] }
 0x505   : > { %v12104_v54 = vmul.f32 %v15536_v11, %v11548_v58  ;;  %v4240_v60 = vmul.f32 %v15538_v61, %v11187_v0  ;;  %v15542_v49 = vmax.f32 %v15541_v38, 0.0  ;;  %v5397_v51 = vadd.f32 %v5396_v39, %v5395_v25 }
 0x506   : > { %v4241_v8 = vmul.f32 %v15540_v16, %v11229_v47  ;;  %v15544_v20 = vmax.f32 %v15543_v7, 0.0  ;;  %v15546_v43 = vmax.f32 %v15545_v18, 0.0  ;;  %v15548_v42 = vmax.f32 %v15547_v56, 0.0  ;;  %v15567_v56 = vld [vmem:[#allocation78_spill] sm:$0xff] }
 0x507   : > { %v4242_v29 = vmul.f32 %v15542_v49, %v11349_v15  ;;  %v5911_v45 = vadd.f32 %v15364_v59, %v5390_v62  ;;  %v15550_v3 = vmax.f32 %v15549_v63, 0.0  ;;  %v15552_v36 = vmax.f32 %v15551_v40, 0.0  ;;  %v15565_v49 = vld [vmem:[#allocation79_spill] sm:$0xff]  ;;  %v7805_v18 = vpop.eup %7804 }
 0x508   : > { %v4243_v10 = vmul.f32 %v15544_v20, %v11548_v58  ;;  %v4244_v2 = vmul.f32 %v15546_v43, %v11187_v0  ;;  %v4245_v26 = vmul.f32 %v15548_v42, %v11229_v47  ;;  %v15554_v21 = vmax.f32 %v15553_v57, 0.0 }
 0x509   : > { %v4246_v9 = vmul.f32 %v15550_v3, %v11349_v15  ;;  %v4247_v12 = vmul.f32 %v15552_v36, %v11548_v58  ;;  %v5398_v41 = vrot.slane %v5397_v51, 1  ;;  %v15556_v6 = vmax.f32 %v15555_v48, 0.0  ;;  %v15571_v36 = vld [vmem:[#allocation80_spill] sm:$0xff]  ;;  %v7807_v48 = vpop.eup %7806 }
 0x50a   : > { %v4248_v25 = vmul.f32 %v15554_v21, %v11187_v0  ;;  %v15558_v23 = vmax.f32 %v15557_v46, 0.0  ;;  %v15560_v39 = vmax.f32 %v15559_v5, 0.0  ;;  %v7392_v11 = vmul.f32 -1.442695, %v5911_v45  ;;  %v15569_v45 = vld [vmem:[#allocation81_spill] sm:$0xff]  ;;  %v15573_v46 = vld [vmem:[#allocation83_spill] sm:$0xff] }
 0x50b   : > { %v4249_v24 = vmul.f32 %v15556_v6, %v11229_v47  ;;  %v15562_v61 = vmax.f32 %v15561_v22, 0.0  ;;  %v15564_v16 = vmax.f32 %v15563_v1, 0.0  ;;  %v15566_v7 = vmax.f32 %v15565_v49, 0.0  ;;  %v7809_v22 = vpop.eup %7808 }
 0x50c   : > { %v4250_v37 = vmul.f32 %v15558_v23, %v11349_v15  ;;  %v4251_v14 = vmul.f32 %v15560_v39, %v11548_v58  ;;  %v5399_v43 = vadd.f32 %v5398_v41, %v5397_v51  ;;  %v15568_v42 = vmax.f32 %v15567_v56, 0.0  ;;  %v15575_v51 = vld [vmem:[#allocation82_spill] sm:$0xff] }
 0x50d   : > { %v4252_v62 = vmul.f32 %v15562_v61, %v11187_v0  ;;  %v4253_v38 = vmul.f32 %v15564_v16, %v11229_v47  ;;  %v4254_v20 = vmul.f32 %v15566_v7, %v11349_v15  ;;  %v15570_v3 = vmax.f32 %v15569_v45, 0.0  ;;  %v15577_v16 = vld [vmem:[#allocation85_spill] sm:$0xff] }
 0x50e   : > { %v4255_v63 = vmul.f32 %v15568_v42, %v11548_v58  ;;  %v15572_v57 = vmax.f32 %v15571_v36, 0.0  ;;  %7816 = vpow2.f32 %v7392_v11  ;;  %v6417_v6 = vadd.f32 1.0, %v7805_v18  ;;  %v15579_v11 = vld [vmem:[#allocation84_spill] sm:$0xff]  ;;  %v7811_v42 = vpop.eup %7810 }
 0x50f   : > { %v4256_v40 = vmul.f32 %v15570_v3, %v11187_v0  ;;  %v15574_v23 = vmax.f32 %v15573_v46, 0.0  ;;  %v15576_v41 = vmax.f32 %v15575_v51, 0.0  ;;  %v5912_v61 = vadd.f32 %v15364_v59, %v5399_v43  ;;  %v15581_v3 = vld [vmem:[#allocation87_spill] sm:$0xff]  ;;  %v15583_v46 = vld [vmem:[#allocation86_spill] sm:$0xff] }
 0x510   : > { %v4257_v21 = vmul.f32 %v15572_v57, %v11229_v47  ;;  %v6418_v1 = vadd.f32 1.0, %v7807_v48  ;;  %v15578_v49 = vmax.f32 %v15577_v16, 0.0  ;;  %v15580_v18 = vmax.f32 %v15579_v11, 0.0 }
 0x511   : > { %v4258_v5 = vmul.f32 %v15574_v23, %v11349_v15  ;;  %v12167_v39 = vmul.f32 %v15576_v41, %v11548_v58  ;;  %v6419_v45 = vadd.f32 1.0, %v7809_v22  ;;  %7818 = vrcp.f32 %v6417_v6  ;;  %v7813_v23 = vpop.eup %7812 }
 0x512   : > { %v4260_v7 = vmul.f32 %v15578_v49, %v11187_v0  ;;  %v4261_v56 = vmul.f32 %v15580_v18, %v11229_v47  ;;  %v15582_v36 = vmax.f32 %v15581_v3, 0.0  ;;  %v15584_v43 = vmax.f32 %v15583_v46, 0.0  ;;  %v7815_v49 = vpop.eup %7814 }
 0x513   : > { %v7393_v51 = vmul.f32 -1.442695, %v5912_v61  ;;  %v6420_v41 = vadd.f32 1.0, %v7811_v42  ;;  %7820 = vrcp.f32 %v6418_v1  ;;  %v4824_v16 = vadd.f32 %v12079_v44, %v12074_v52 }
 0x514   : > { %v12179_v57 = vmul.f32 %v15582_v36, %v11349_v15  ;;  %v12184_v48 = vmul.f32 %v15584_v43, %v11548_v58  ;;  %v6421_v22 = vadd.f32 1.0, %v7813_v23  ;;  %7822 = vrcp.f32 %v6419_v45 }
 0x515   : > { %v4833_v6 = vadd.f32 %v4237_v17, %v4236_v30  ;;  %v4842_v11 = vadd.f32 %v4241_v8, %v4240_v60  ;;  %7824 = vpow2.f32 %v7393_v51  ;;  %v6422_v18 = vadd.f32 1.0, %v7815_v49 }
 0x516   : > { %v4825_v3 = vadd.f32 %v4824_v16, %v12084_v13  ;;  %v4851_v36 = vadd.f32 %v4245_v26, %v4244_v2  ;;  %7826 = vrcp.f32 %v6420_v41  ;;  %v4860_v55 = vadd.f32 %v4249_v24, %v4248_v25 }
 0x517   : > { %v4834_v46 = vadd.f32 %v4833_v6, %v4238_v28  ;;  %v4843_v43 = vadd.f32 %v4842_v11, %v4242_v29  ;;  %7828 = vrcp.f32 %v6421_v22  ;;  %v4869_v42 = vadd.f32 %v4253_v38, %v4252_v62 }
 0x518   : > { %v4826_v61 = vadd.f32 %v4825_v3, %v12089_v33  ;;  %v4852_v1 = vadd.f32 %v4851_v36, %v4246_v9  ;;  %7830 = vrcp.f32 %v6422_v18  ;;  %v4861_v30 = vadd.f32 %v4860_v55, %v4250_v37  ;;  %v7817_v13 = vpop.eup %7816 }
 0x519   : > { %v4835_v52 = vadd.f32 %v4834_v46, %v12104_v54  ;;  %v4844_v44 = vadd.f32 %v4843_v43, %v4243_v10  ;;  %v4870_v8 = vadd.f32 %v4869_v42, %v4254_v20  ;;  %v4878_v45 = vadd.f32 %v4257_v21, %v4256_v40 }
 0x51a   : > { %v4827_v17 = vrot.slane %v4826_v61, 4  ;;  %v4853_v60 = vadd.f32 %v4852_v1, %v4247_v12  ;;  %v4862_v28 = vadd.f32 %v4861_v30, %v4251_v14  ;;  %v4887_v29 = vadd.f32 %v4261_v56, %v4260_v7 }
 0x51b   : > { %v4836_v2 = vrot.slane %v4835_v52, 4  ;;  %v4845_v26 = vrot.slane %v4844_v44, 4  ;;  %v6423_v25 = vadd.f32 1.0, %v7817_v13  ;;  %v4871_v33 = vadd.f32 %v4870_v8, %v4255_v63  ;;  %v7819_v9 = vpop.eup %7818 }
 0x51c   : > { %v4828_v24 = vadd.f32 %v4827_v17, %v4826_v61  ;;  %v4854_v23 = vrot.slane %v4853_v60, 4  ;;  %v4863_v51 = vrot.slane %v4862_v28, 4  ;;  %v4879_v54 = vadd.f32 %v4878_v45, %v4258_v5 }
 0x51d   : > { %v4837_v62 = vadd.f32 %v4836_v2, %v4835_v52  ;;  %v4846_v38 = vadd.f32 %v4845_v26, %v4844_v44  ;;  %v7821_v10 = vpop.eup %7820  ;;  %7832 = vrcp.f32 %v6423_v25  ;;  %v4872_v37 = vrot.slane %v4871_v33, 4 }
 0x51e   : > { %v4829_v55 = vrot.slane %v4828_v24, 2  ;;  %v4855_v12 = vadd.f32 %v4854_v23, %v4853_v60  ;;  %v7823_v20 = vpop.eup %7822  ;;  %v6943_v40 = vsel %vm6873_vm1, %v7821_v10, %v7819_v9  ;;  %v4864_v7 = vadd.f32 %v4863_v51, %v4862_v28 }
 0x51f   : > { %v4838_v21 = vrot.slane %v4837_v62, 2  ;;  %v4847_v14 = vrot.slane %v4846_v38, 2  ;;  %v7825_v56 = vpop.eup %7824  ;;  %v6944_v41 = vsel %vm6875_vm2, %v7823_v20, %v6943_v40  ;;  %v4873_v49 = vadd.f32 %v4872_v37, %v4871_v33 }
 0x520   : > { %v4830_v63 = vadd.f32 %v4829_v55, %v4828_v24  ;;  %v4856_v16 = vrot.slane %v4855_v12, 2  ;;  %v7827_v22 = vpop.eup %7826  ;;  %v6424_v6 = vadd.f32 1.0, %v7825_v56  ;;  %v4865_v18 = vrot.slane %v4864_v7, 2 }
 0x521   : > { %v4839_v5 = vadd.f32 %v4838_v21, %v4837_v62  ;;  %v4848_v11 = vadd.f32 %v4847_v14, %v4846_v38  ;;  %v7829_v3 = vpop.eup %7828  ;;  %v6945_v36 = vsel %vm6877_vm3, %v7827_v22, %v6944_v41  ;;  %v4874_v61 = vrot.slane %v4873_v49, 2 }
 0x522   : > { %v4831_v46 = vrot.slane %v4830_v63, 1  ;;  %v4857_v43 = vadd.f32 %v4856_v16, %v4855_v12  ;;  %v7831_v1 = vpop.eup %7830  ;;  %7834 = vrcp.f32 %v6424_v6  ;;  %v6946_v42 = vsel %vm6879_vm4, %v7829_v3, %v6945_v36 }
 0x523   : > { %v4840_v52 = vrot.slane %v4839_v5, 1  ;;  %v4849_v44 = vrot.slane %v4848_v11, 1  ;;  %v6947_v30 = vsel %vm6881_vm5, %v7831_v1, %v6946_v42  ;;  %v4866_v8 = vadd.f32 %v4865_v18, %v4864_v7  ;;  %v2563_v7 = vpop.permute.xlu1 %2562 }
 0x524   : > { %v4832_v17 = vadd.f32 %v4831_v46, %v4830_v63  ;;  %v4858_v60 = vrot.slane %v4857_v43, 1  ;;  %v4875_v2 = vadd.f32 %v4874_v61, %v4873_v49  ;;  %v4880_v26 = vadd.f32 %v4879_v54, %v12167_v39  ;;  %v15585_v61 = vld [vmem:[#allocation38_spill] sm:$0xff] }
 0x525   : > { %v4841_v45 = vadd.f32 %v4840_v52, %v4839_v5  ;;  %v4850_v13 = vadd.f32 %v4849_v44, %v4848_v11  ;;  %v4867_v25 = vrot.slane %v4866_v8, 1  ;;  %v4888_v24 = vadd.f32 %v4887_v29, %v12179_v57  ;;  %v2502_v29 = vpop.permute.xlu0 %2501 }
 0x526   : > { %v4859_v28 = vadd.f32 %v4858_v60, %v4857_v43  ;;  %v5849_v23 = vadd.f32 %v15364_v59, %v4832_v17  ;;  %v4876_v33 = vrot.slane %v4875_v2, 1  ;;  %v4881_v9 = vrot.slane %v4880_v26, 4 }
 0x527   : > { %v5850_v62 = vadd.f32 %v15364_v59, %v4841_v45  ;;  %v5851_v38 = vadd.f32 %v15364_v59, %v4850_v13  ;;  %v7833_v51 = vpop.eup %7832  ;;  %v4868_v10 = vadd.f32 %v4867_v25, %v4866_v8  ;;  %v4889_v55 = vadd.f32 %v4888_v24, %v12184_v48  ;;  %v15589_v8 = vld [vmem:[#allocation40_spill] sm:$0xff] }
 0x528   : > { %v5852_v12 = vadd.f32 %v15364_v59, %v4859_v28  ;;  %v7330_v37 = vmul.f32 -1.442695, %v5849_v23  ;;  %v6948_v39 = vsel %vm6883_vm6, %v7833_v51, %v6947_v30  ;;  %v4877_v54 = vadd.f32 %v4876_v33, %v4875_v2  ;;  %v15587_v30 = vld [vmem:[#allocation37_spill] sm:$0xff]  ;;  %v15591_v28 = vld [vmem:[#allocation39_spill] sm:$0xff]  ;;  %v15593_v23 = vld [vmem:[#allocation42_spill] sm:$0xff] }
 0x529   : > { %v4882_v20 = vadd.f32 %v4881_v9, %v4880_v26  ;;  %v7331_v57 = vmul.f32 -1.442695, %v5850_v62  ;;  %v4890_v40 = vrot.slane %v4889_v55, 4  ;;  %v5853_v21 = vadd.f32 %v15364_v59, %v4868_v10  ;;  %v15596_v51 = vld [vmem:[#allocation41_spill] sm:$0xff] }
 0x52a   : > { %7836 = vpow2.f32 %v7330_v37  ;;  %v7332_v14 = vmul.f32 -1.442695, %v5851_v38  ;;  %v5854_v41 = vadd.f32 %v15364_v59, %v4877_v54  ;;  %v7333_v48 = vmul.f32 -1.442695, %v5852_v12  ;;  %v15598_v12 = vld [vmem:[#allocation44_spill] sm:$0xff] }
 0x52b   : > { %v4883_v56 = vrot.slane %v4882_v20, 2  ;;  %7838 = vpow2.f32 %v7331_v57  ;;  %v4891_v63 = vadd.f32 %v4890_v40, %v4889_v55  ;;  %v7334_v16 = vmul.f32 -1.442695, %v5853_v21  ;;  %v15601_v57 = vld [vmem:[#allocation43_spill] sm:$0xff] }
 0x52c   : > { %7840 = vpow2.f32 %v7332_v14  ;;  %v3525_v49 = vadd.f32 %v8357_v31, %v2502_v29  ;;  %v7835_v22 = vpop.eup %7834  ;;  %v7335_v5 = vmul.f32 -1.442695, %v5854_v41  ;;  %v3538_v11 = vadd.f32 %v2563_v7, %v8364_v35  ;;  %v15605_v41 = vld [vmem:[#allocation45_spill] sm:$0xff] }
 0x52d   : > { %v4884_v6 = vadd.f32 %v4883_v56, %v4882_v20  ;;  %7842 = vpow2.f32 %v7333_v48  ;;  %v6949_v18 = vsel %vm6885_vm7, %v7835_v22, %v6948_v39  ;;  %v4892_v3 = vrot.slane %v4891_v63, 2  ;;  %v15609_v22 = vld [vmem:[#allocation47_spill] sm:$0xff] }
 0x52e   : > { %7844 = vpow2.f32 %v7334_v16  ;;  %v4037_v36 = vmax.f32 %v3525_v49, 0.0  ;;  %7599 = vmatmul.mubr.f32.vlgmr.msra.gmra.mrb[16].mxu1 %v6949_v18  ;;  %v4050_v43 = vmax.f32 %v3538_v11, 0.0  ;;  %v15586_v1 = vmax.f32 %v15585_v61, 0.0  ;;  %v15607_v16 = vld [vmem:[#allocation48_spill] sm:$0xff]  ;;  %v15613_v61 = vld [vmem:[#allocation49_spill] sm:$0xff] }
 0x52f   : > { %v4885_v46 = vrot.slane %v4884_v6, 1  ;;  %7846 = vpow2.f32 %v7335_v5  ;;  %v4893_v52 = vadd.f32 %v4892_v3, %v4891_v63  ;;  %v15588_v17 = vmax.f32 %v15587_v30, 0.0 }
 0x530   : > { %v12212_v42 = vmul.f32 %v15586_v1, %v11187_v0  ;;  %v4549_v44 = vmul.f32 %v4037_v36, %v11229_v47  ;;  %v15590_v45 = vmax.f32 %v15589_v8, 0.0  ;;  %v4562_v26 = vmul.f32 %v4050_v43, %v11349_v15  ;;  %v15611_v36 = vld [vmem:[#allocation50_spill] sm:$0xff]  ;;  %v15615_v8 = vld [vmem:[#allocation52_spill] sm:$0xff] }
 0x531   : > { %v4265_v60 = vmul.f32 %v15588_v17, %v11229_v47  ;;  %v4886_v2 = vadd.f32 %v4885_v46, %v4884_v6  ;;  %v15592_v25 = vmax.f32 %v15591_v28, 0.0  ;;  %v15594_v33 = vmax.f32 %v15593_v23, 0.0 }
 0x532   : > { %v12221_v13 = vmul.f32 %v15590_v45, %v11349_v15  ;;  %v4894_v62 = vrot.slane %v4893_v52, 1  ;;  %v12233_v38 = vadd.f32 %v4549_v44, %v11848_v19  ;;  %v15597_v10 = vmax.f32 %v15596_v51, 0.0  ;;  %v15603_v19 = vld [vmem:[#allocation46_spill] sm:$0xff] }
 0x533   : > { %v12227_v24 = vmul.f32 %v15592_v25, %v11548_v58  ;;  %v4268_v9 = vmul.f32 %v15594_v33, %v11187_v0  ;;  %v15599_v37 = vmax.f32 %v15598_v12, 0.0  ;;  %v5855_v54 = vadd.f32 %v15364_v59, %v4886_v2  ;;  %v15621_v12 = vld [vmem:[#allocation53_spill] sm:$0xff] }
 0x534   : > { %15595 = vst [vmem:[#allocation32_spill] sm:$0xff] %v12233_v38  ;;  %v4269_v55 = vmul.f32 %v15597_v10, %v11229_v47  ;;  %v12243_v20 = vadd.f32 %v11669_v27, %v4562_v26  ;;  %v15602_v29 = vmax.f32 %v15601_v57, 0.0  ;;  %v15604_v21 = vmax.f32 %v15603_v19, 0.0  ;;  %v7837_v7 = vpop.eup %7836  ;;  %v15617_v26 = vld [vmem:[#allocation51_spill] sm:$0xff] }
 0x535   : > { %v4270_v39 = vmul.f32 %v15599_v37, %v11349_v15  ;;  %v4895_v56 = vadd.f32 %v4894_v62, %v4893_v52  ;;  %v15606_v48 = vmax.f32 %v15605_v41, 0.0  ;;  %v15608_v49 = vmax.f32 %v15607_v16, 0.0  ;;  %v7839_v11 = vpop.eup %7838  ;;  %v15619_v62 = vld [vmem:[#allocation54_spill] sm:$0xff]  ;;  %v15625_v16 = vld [vmem:[#allocation55_spill] sm:$0xff] }
 0x536   : > { %15600 = vst [vmem:[#allocation36_spill] sm:$0xff] %v12243_v20  ;;  %v12248_v40 = vmul.f32 %v15602_v29, %v11548_v58  ;;  %v4272_v14 = vmul.f32 %v15604_v21, %v11187_v0  ;;  %v15610_v6 = vmax.f32 %v15609_v22, 0.0  ;;  %v7336_v18 = vmul.f32 -1.442695, %v5855_v54  ;;  %v7841_v44 = vpop.eup %7840  ;;  %v15623_v21 = vld [vmem:[#allocation56_spill] sm:$0xff] }
 0x537   : > { %v4273_v63 = vmul.f32 %v15606_v48, %v11229_v47  ;;  %v4274_v27 = vmul.f32 %v15608_v49, %v11349_v15  ;;  %v6361_v3 = vadd.f32 1.0, %v7837_v7  ;;  %v15612_v46 = vmax.f32 %v15611_v36, 0.0  ;;  %v7843_v23 = vpop.eup %7842 }
 0x538   : > { %v12262_v5 = vmul.f32 %v15610_v6, %v11548_v58  ;;  %v15614_v1 = vmax.f32 %v15613_v61, 0.0  ;;  %v5856_v30 = vadd.f32 %v15364_v59, %v4895_v56  ;;  %v6362_v17 = vadd.f32 1.0, %v7839_v11  ;;  %v7845_v57 = vpop.eup %7844  ;;  %v15627_v6 = vld [vmem:[#allocation89_spill] sm:$0xff] }
 0x539   : > { %v4276_v43 = vmul.f32 %v15612_v46, %v11187_v0  ;;  %v15616_v45 = vmax.f32 %v15615_v8, 0.0  ;;  %v15618_v28 = vmax.f32 %v15617_v26, 0.0  ;;  %7848 = vpow2.f32 %v7336_v18  ;;  %v7847_v41 = vpop.eup %7846  ;;  %v15629_v46 = vld [vmem:[#allocation88_spill] sm:$0xff]  ;;  %v15635_v26 = vld [vmem:[#allocation93_spill] sm:$0xff] }
 0x53a   : > { %v4277_v52 = vmul.f32 %v15614_v1, %v11229_v47  ;;  %v6363_v33 = vadd.f32 1.0, %v7841_v44  ;;  %v15620_v51 = vmax.f32 %v15619_v62, 0.0  ;;  %v15622_v37 = vmax.f32 %v15621_v12, 0.0  ;;  %v15631_v1 = vld [vmem:[#allocation91_spill] sm:$0xff]  ;;  %v15637_v62 = vld [vmem:[#allocation92_spill] sm:$0xff] }
 0x53b   : > { %v4278_v2 = vmul.f32 %v15616_v45, %v11349_v15  ;;  %v4279_v25 = vmul.f32 %v15618_v28, %v11548_v58  ;;  %v7337_v29 = vmul.f32 -1.442695, %v5856_v30  ;;  %v6364_v19 = vadd.f32 1.0, %v7843_v23 }
 0x53c   : > { %v4280_v10 = vmul.f32 %v15620_v51, %v11187_v0  ;;  %v4281_v54 = vmul.f32 %v15622_v37, %v11229_v47  ;;  %7850 = vrcp.f32 %v6361_v3  ;;  %v15624_v7 = vmax.f32 %v15623_v21, 0.0  ;;  %v15639_v37 = vld [vmem:[#allocation95_spill] sm:$0xff]  ;;  %v15641_v21 = vld [vmem:[#allocation94_spill] sm:$0xff] }
 0x53d   : > { %v6365_v48 = vadd.f32 1.0, %v7845_v57  ;;  %7852 = vrcp.f32 %v6362_v17  ;;  %v15626_v49 = vmax.f32 %v15625_v16, 0.0  ;;  %v15628_v11 = vmax.f32 %v15627_v6, 0.0  ;;  %v15633_v17 = vld [vmem:[#allocation90_spill] sm:$0xff]  ;;  %v15645_v6 = vld [vmem:[#allocation96_spill] sm:$0xff] }
 0x53e   : > { %v4282_v56 = vmul.f32 %v15624_v7, %v11349_v15  ;;  %7854 = vpow2.f32 %v7337_v29  ;;  %v6366_v36 = vadd.f32 1.0, %v7847_v41  ;;  %v15630_v3 = vmax.f32 %v15629_v46, 0.0  ;;  %v15643_v41 = vld [vmem:[#allocation97_spill] sm:$0xff] }
 0x53f   : > { %v4283_v22 = vmul.f32 %v15626_v49, %v11548_v58  ;;  %v4284_v18 = vmul.f32 %v15628_v11, %v11187_v0  ;;  %v15632_v44 = vmax.f32 %v15631_v1, 0.0  ;;  %7856 = vrcp.f32 %v6363_v33 }
 0x540   : > { %v4285_v61 = vmul.f32 %v15630_v3, %v11229_v47  ;;  %v15634_v8 = vmax.f32 %v15633_v17, 0.0  ;;  %v15636_v28 = vmax.f32 %v15635_v26, 0.0  ;;  %v15638_v51 = vmax.f32 %v15637_v62, 0.0  ;;  %v15647_v3 = vld [vmem:[#allocation99_spill] sm:$0xff] }
 0x541   : > { %v4286_v30 = vmul.f32 %v15632_v44, %v11349_v15  ;;  %7858 = vrcp.f32 %v6364_v19  ;;  %v15640_v57 = vmax.f32 %v15639_v37, 0.0  ;;  %v15642_v33 = vmax.f32 %v15641_v21, 0.0  ;;  %v15649_v44 = vld [vmem:[#allocation98_spill] sm:$0xff] }
 0x542   : > { %v4287_v45 = vmul.f32 %v15634_v8, %v11548_v58  ;;  %v4288_v23 = vmul.f32 %v15636_v28, %v11187_v0  ;;  %v4289_v12 = vmul.f32 %v15638_v51, %v11229_v47  ;;  %v15644_v16 = vmax.f32 %v15643_v41, 0.0 }
 0x543   : > { %v4290_v29 = vmul.f32 %v15640_v57, %v11349_v15  ;;  %v4291_v7 = vmul.f32 %v15642_v33, %v11548_v58  ;;  %7860 = vrcp.f32 %v6365_v48  ;;  %v15646_v11 = vmax.f32 %v15645_v6, 0.0  ;;  %v7849_v6 = vpop.eup %7848 }
 0x544   : > { %v4292_v49 = vmul.f32 %v15644_v16, %v11187_v0  ;;  %v15648_v19 = vmax.f32 %v15647_v3, 0.0  ;;  %v15650_v17 = vmax.f32 %v15649_v44, 0.0  ;;  %7862 = vrcp.f32 %v6366_v36 }
 0x545   : > { %v4293_v46 = vmul.f32 %v15646_v11, %v11229_v47  ;;  %v4896_v26 = vadd.f32 %v4265_v60, %v12212_v42  ;;  %v4905_v28 = vadd.f32 %v4269_v55, %v4268_v9  ;;  %v4914_v62 = vadd.f32 %v4273_v63, %v4272_v14 }
 0x546   : > { %v12322_v1 = vmul.f32 %v15648_v19, %v11349_v15  ;;  %v12327_v8 = vmul.f32 %v15650_v17, %v11548_v58  ;;  %v4923_v48 = vadd.f32 %v4277_v52, %v4276_v43  ;;  %v4932_v51 = vadd.f32 %v4281_v54, %v4280_v10  ;;  %v7851_v17 = vpop.eup %7850 }
 0x547   : > { %v4941_v37 = vadd.f32 %v4285_v61, %v4284_v18  ;;  %v4950_v57 = vadd.f32 %v4289_v12, %v4288_v23  ;;  %v4897_v21 = vadd.f32 %v4896_v26, %v12221_v13  ;;  %v4906_v33 = vadd.f32 %v4905_v28, %v4270_v39  ;;  %v7853_v55 = vpop.eup %7852 }
 0x548   : > { %v4915_v41 = vadd.f32 %v4914_v62, %v4274_v27  ;;  %v4959_v16 = vadd.f32 %v4293_v46, %v4292_v49  ;;  %v4924_v11 = vadd.f32 %v4923_v48, %v4278_v2  ;;  %v4933_v3 = vadd.f32 %v4932_v51, %v4282_v56  ;;  %v7855_v27 = vpop.eup %7854 }
 0x549   : > { %v4942_v19 = vadd.f32 %v4941_v37, %v4286_v30  ;;  %v4951_v44 = vadd.f32 %v4950_v57, %v4290_v29  ;;  %v6367_v36 = vadd.f32 1.0, %v7849_v6  ;;  %v4898_v42 = vadd.f32 %v4897_v21, %v12227_v24  ;;  %v7857_v10 = vpop.eup %7856 }
 0x54a   : > { %v4907_v60 = vadd.f32 %v4906_v33, %v12248_v40  ;;  %v4916_v9 = vadd.f32 %v4915_v41, %v12262_v5  ;;  %v4925_v14 = vadd.f32 %v4924_v11, %v4279_v25  ;;  %v4934_v63 = vadd.f32 %v4933_v3, %v4283_v22 }
 0x54b   : > { %v4943_v13 = vadd.f32 %v4942_v19, %v4287_v45  ;;  %v4952_v39 = vadd.f32 %v4951_v44, %v4291_v7  ;;  %7864 = vrcp.f32 %v6367_v36  ;;  %v6894_v43 = vsel %vm6873_vm1, %v7853_v55, %v7851_v17  ;;  %v7859_v61 = vpop.eup %7858 }
 0x54c   : > { %v4899_v52 = vrot.slane %v4898_v42, 4  ;;  %v4908_v2 = vrot.slane %v4907_v60, 4  ;;  %v6368_v54 = vadd.f32 1.0, %v7855_v27  ;;  %v4917_v56 = vrot.slane %v4916_v9, 4 }
 0x54d   : > { %v4926_v18 = vrot.slane %v4925_v14, 4  ;;  %v4935_v24 = vrot.slane %v4934_v63, 4  ;;  %v6895_v40 = vsel %vm6875_vm2, %v7857_v10, %v6894_v43  ;;  %v4944_v25 = vrot.slane %v4943_v13, 4  ;;  %v7861_v22 = vpop.eup %7860 }
 0x54e   : > { %v4900_v5 = vadd.f32 %v4899_v52, %v4898_v42  ;;  %v4909_v30 = vadd.f32 %v4908_v2, %v4907_v60  ;;  %7866 = vrcp.f32 %v6368_v54  ;;  %v6896_v45 = vsel %vm6877_vm3, %v7859_v61, %v6895_v40  ;;  %v7863_v29 = vpop.eup %7862 }
 0x54f   : > { %v4918_v23 = vadd.f32 %v4917_v56, %v4916_v9  ;;  %v4927_v12 = vadd.f32 %v4926_v18, %v4925_v14  ;;  %v6897_v7 = vsel %vm6879_vm4, %v7861_v22, %v6896_v45  ;;  %v4936_v26 = vadd.f32 %v4935_v24, %v4934_v63 }
 0x550   : > { %v4901_v49 = vrot.slane %v4900_v5, 2  ;;  %v4910_v46 = vrot.slane %v4909_v30, 2  ;;  %v6898_v28 = vsel %vm6881_vm5, %v7863_v29, %v6897_v7  ;;  %v4945_v51 = vadd.f32 %v4944_v25, %v4943_v13 }
 0x551   : > { %v4919_v62 = vrot.slane %v4918_v23, 2  ;;  %v4928_v48 = vrot.slane %v4927_v12, 2  ;;  %v4937_v21 = vrot.slane %v4936_v26, 2  ;;  %v4953_v33 = vrot.slane %v4952_v39, 4 }
 0x552   : > { %v4902_v37 = vadd.f32 %v4901_v49, %v4900_v5  ;;  %v4911_v57 = vadd.f32 %v4910_v46, %v4909_v30  ;;  %v4946_v11 = vrot.slane %v4945_v51, 2  ;;  %v4960_v3 = vadd.f32 %v4959_v16, %v12322_v1 }
 0x553   : > { %v4920_v41 = vadd.f32 %v4919_v62, %v4918_v23  ;;  %v4929_v6 = vadd.f32 %v4928_v48, %v4927_v12  ;;  %v4938_v17 = vadd.f32 %v4937_v21, %v4936_v26  ;;  %v4954_v36 = vadd.f32 %v4953_v33, %v4952_v39  ;;  %v15651_v62 = vld [vmem:[#allocation101_spill] sm:$0xff] }
 0x554   : > { %v4903_v19 = vrot.slane %v4902_v37, 1  ;;  %v4912_v44 = vrot.slane %v4911_v57, 1  ;;  %v4947_v9 = vadd.f32 %v4946_v11, %v4945_v51  ;;  %v4961_v55 = vadd.f32 %v4960_v3, %v12327_v8 }
 0x555   : > { %v4921_v42 = vrot.slane %v4920_v41, 1  ;;  %v4930_v60 = vrot.slane %v4929_v6, 1  ;;  %v7865_v14 = vpop.eup %7864  ;;  %v4939_v27 = vrot.slane %v4938_v17, 1  ;;  %v4955_v43 = vrot.slane %v4954_v36, 2 }
 0x556   : > { %v4904_v63 = vadd.f32 %v4903_v19, %v4902_v37  ;;  %v4913_v13 = vadd.f32 %v4912_v44, %v4911_v57  ;;  %v6899_v52 = vsel %vm6883_vm6, %v7865_v14, %v6898_v28  ;;  %v4948_v54 = vrot.slane %v4947_v9, 1  ;;  %v15653_v37 = vld [vmem:[#allocation100_spill] sm:$0xff]  ;;  %v15657_v19 = vld [vmem:[#allocation102_spill] sm:$0xff] }
 0x557   : > { %v4922_v2 = vadd.f32 %v4921_v42, %v4920_v41  ;;  %v4931_v10 = vadd.f32 %v4930_v60, %v4929_v6  ;;  %v4940_v1 = vadd.f32 %v4939_v27, %v4938_v17  ;;  %v4956_v16 = vadd.f32 %v4955_v43, %v4954_v36  ;;  %v15655_v6 = vld [vmem:[#allocation103_spill] sm:$0xff]  ;;  %v15659_v36 = vld [vmem:[#allocation105_spill] sm:$0xff] }
 0x558   : > { %v4962_v56 = vrot.slane %v4961_v55, 4  ;;  %v5857_v39 = vadd.f32 %v15364_v59, %v4904_v63  ;;  %v7867_v18 = vpop.eup %7866  ;;  %v4949_v24 = vadd.f32 %v4948_v54, %v4947_v9  ;;  %v5858_v61 = vadd.f32 %v15364_v59, %v4913_v13  ;;  %v15661_v9 = vld [vmem:[#allocation104_spill] sm:$0xff]  ;;  %v15663_v27 = vld [vmem:[#allocation107_spill] sm:$0xff] }
 0x559   : > { %v5859_v8 = vadd.f32 %v15364_v59, %v4922_v2  ;;  %v5860_v40 = vadd.f32 %v15364_v59, %v4931_v10  ;;  %v6900_v5 = vsel %vm6885_vm7, %v7867_v18, %v6899_v52  ;;  %v4957_v30 = vrot.slane %v4956_v16, 1  ;;  %v15665_v2 = vld [vmem:[#allocation106_spill] sm:$0xff] }
 0x55a   : > { %v4963_v25 = vadd.f32 %v4962_v56, %v4961_v55  ;;  %v5861_v22 = vadd.f32 %v15364_v59, %v4940_v1  ;;  %7589 = vmatprep.mubr.f32.mxu0 %v6900_v5  ;;  %v5862_v45 = vadd.f32 %v15364_v59, %v4949_v24  ;;  %v7338_v23 = vmul.f32 -1.442695, %v5857_v39  ;;  %v15667_v1 = vld [vmem:[#allocation109_spill] sm:$0xff]  ;;  %v15669_v39 = vld [vmem:[#allocation108_spill] sm:$0xff] }
 0x55b   : > { %v7339_v12 = vmul.f32 -1.442695, %v5858_v61  ;;  %v7340_v29 = vmul.f32 -1.442695, %v5859_v8  ;;  %v4958_v7 = vadd.f32 %v4957_v30, %v4956_v16  ;;  %v7341_v46 = vmul.f32 -1.442695, %v5860_v40 }
 0x55c   : > { %v4964_v49 = vrot.slane %v4963_v25, 2  ;;  %v7342_v26 = vmul.f32 -1.442695, %v5861_v22  ;;  %7868 = vpow2.f32 %v7338_v23  ;;  %v7343_v28 = vmul.f32 -1.442695, %v5862_v45  ;;  %v15671_v8 = vld [vmem:[#allocation111_spill] sm:$0xff] }
 0x55d   : > { %v15652_v48 = vmax.f32 %v15651_v62, 0.0  ;;  %v15654_v57 = vmax.f32 %v15653_v37, 0.0  ;;  %v5863_v41 = vadd.f32 %v15364_v59, %v4958_v7  ;;  %7870 = vpow2.f32 %v7339_v12  ;;  %v15673_v30 = vld [vmem:[#allocation110_spill] sm:$0xff]  ;;  %v15675_v45 = vld [vmem:[#allocation113_spill] sm:$0xff] }
 0x55e   : > { %v4965_v33 = vadd.f32 %v4964_v49, %v4963_v25  ;;  %v15656_v11 = vmax.f32 %v15655_v6, 0.0  ;;  %7872 = vpow2.f32 %v7340_v29  ;;  %v15658_v44 = vmax.f32 %v15657_v19, 0.0  ;;  %v15677_v29 = vld [vmem:[#allocation112_spill] sm:$0xff] }
 0x55f   : > { %v4296_v51 = vmul.f32 %v15652_v48, %v11187_v0  ;;  %v4297_v21 = vmul.f32 %v15654_v57, %v11229_v47  ;;  %v15660_v42 = vmax.f32 %v15659_v36, 0.0  ;;  %v15662_v55 = vmax.f32 %v15661_v9, 0.0  ;;  %v15681_v48 = vld [vmem:[#allocation114_spill] sm:$0xff]  ;;  %v15687_v36 = vld [vmem:[#allocation119_spill] sm:$0xff] }
 0x560   : > { %v4298_v3 = vmul.f32 %v15656_v11, %v11349_v15  ;;  %v12362_v17 = vmul.f32 %v15658_v44, %v11548_v58  ;;  %v4966_v63 = vrot.slane %v4965_v33, 1  ;;  %7874 = vpow2.f32 %v7341_v46  ;;  %v15679_v46 = vld [vmem:[#allocation115_spill] sm:$0xff]  ;;  %v15685_v11 = vld [vmem:[#allocation116_spill] sm:$0xff] }
 0x561   : > { %v4300_v60 = vmul.f32 %v15660_v42, %v11187_v0  ;;  %v4301_v14 = vmul.f32 %v15662_v55, %v11229_v47  ;;  %v7344_v13 = vmul.f32 -1.442695, %v5863_v41  ;;  %v15664_v43 = vmax.f32 %v15663_v27, 0.0  ;;  %v15689_v55 = vld [vmem:[#allocation118_spill] sm:$0xff]  ;;  %v15691_v27 = vld [vmem:[#allocation121_spill] sm:$0xff] }
 0x562   : > { %7876 = vpow2.f32 %v7342_v26  ;;  %v15666_v10 = vmax.f32 %v15665_v2, 0.0  ;;  %v15668_v16 = vmax.f32 %v15667_v1, 0.0  ;;  %v15670_v18 = vmax.f32 %v15669_v39, 0.0 }
 0x563   : > { %v4302_v52 = vmul.f32 %v15664_v43, %v11349_v15  ;;  %v4967_v61 = vadd.f32 %v4966_v63, %v4965_v33  ;;  %7878 = vpow2.f32 %v7343_v28  ;;  %v15672_v40 = vmax.f32 %v15671_v8, 0.0  ;;  %v15683_v33 = vld [vmem:[#allocation117_spill] sm:$0xff] }
 0x564   : > { %v4303_v54 = vmul.f32 %v15666_v10, %v11548_v58  ;;  %v4304_v56 = vmul.f32 %v15668_v16, %v11187_v0  ;;  %v4305_v24 = vmul.f32 %v15670_v18, %v11229_v47  ;;  %v15674_v25 = vmax.f32 %v15673_v30, 0.0  ;;  %v15693_v10 = vld [vmem:[#allocation120_spill] sm:$0xff]  ;;  %v15695_v18 = vld [vmem:[#allocation123_spill] sm:$0xff] }
 0x565   : > { %v4306_v5 = vmul.f32 %v15672_v40, %v11349_v15  ;;  %7880 = vpow2.f32 %v7344_v13  ;;  %v15676_v23 = vmax.f32 %v15675_v45, 0.0  ;;  %v15678_v7 = vmax.f32 %v15677_v29, 0.0  ;;  %v15697_v40 = vld [vmem:[#allocation122_spill] sm:$0xff]  ;;  %v15699_v45 = vld [vmem:[#allocation125_spill] sm:$0xff] }
 0x566   : > { %v4307_v22 = vmul.f32 %v15674_v25, %v11548_v58  ;;  %v15680_v26 = vmax.f32 %v15679_v46, 0.0  ;;  %v5864_v62 = vadd.f32 %v15364_v59, %v4967_v61  ;;  %v15682_v37 = vmax.f32 %v15681_v48, 0.0  ;;  %v15701_v46 = vld [vmem:[#allocation124_spill] sm:$0xff] }
 0x567   : > { %v4308_v12 = vmul.f32 %v15676_v23, %v11187_v0  ;;  %v4309_v49 = vmul.f32 %v15678_v7, %v11229_v47  ;;  %v15684_v41 = vmax.f32 %v15683_v33, 0.0  ;;  %v15686_v19 = vmax.f32 %v15685_v11, 0.0  ;;  %v7869_v7 = vpop.eup %7868 }
 0x568   : > { %v4310_v28 = vmul.f32 %v15680_v26, %v11349_v15  ;;  %v4311_v57 = vmul.f32 %v15682_v37, %v11548_v58  ;;  %v15688_v42 = vmax.f32 %v15687_v36, 0.0  ;;  %v15690_v63 = vmax.f32 %v15689_v55, 0.0  ;;  %v15707_v36 = vld [vmem:[#allocation129_spill] sm:$0xff] }
 0x569   : > { %v4312_v6 = vmul.f32 %v15684_v41, %v11187_v0  ;;  %v4313_v44 = vmul.f32 %v15686_v19, %v11229_v47  ;;  %v15692_v43 = vmax.f32 %v15691_v27, 0.0  ;;  %v15694_v1 = vmax.f32 %v15693_v10, 0.0  ;;  %v15705_v41 = vld [vmem:[#allocation126_spill] sm:$0xff] }
 0x56a   : > { %v4314_v9 = vmul.f32 %v15688_v42, %v11349_v15  ;;  %v12413_v13 = vmul.f32 %v15690_v63, %v11548_v58  ;;  %v7345_v39 = vmul.f32 -1.442695, %v5864_v62  ;;  %v15696_v61 = vmax.f32 %v15695_v18, 0.0  ;;  %v15703_v62 = vld [vmem:[#allocation127_spill] sm:$0xff]  ;;  %v7871_v63 = vpop.eup %7870 }
 0x56b   : > { %v4316_v2 = vmul.f32 %v15692_v43, %v11187_v0  ;;  %v4317_v16 = vmul.f32 %v15694_v1, %v11229_v47  ;;  %v15698_v30 = vmax.f32 %v15697_v40, 0.0  ;;  %v15700_v23 = vmax.f32 %v15699_v45, 0.0  ;;  %v15709_v43 = vld [vmem:[#allocation128_spill] sm:$0xff]  ;;  %v15711_v18 = vld [vmem:[#allocation131_spill] sm:$0xff] }
 0x56c   : > { %v4318_v8 = vmul.f32 %v15696_v61, %v11349_v15  ;;  %v15702_v26 = vmax.f32 %v15701_v46, 0.0  ;;  %v15704_v37 = vmax.f32 %v15703_v62, 0.0  ;;  %v15706_v11 = vmax.f32 %v15705_v41, 0.0 }
 0x56d   : > { %v12427_v25 = vmul.f32 %v15698_v30, %v11548_v58  ;;  %v4320_v29 = vmul.f32 %v15700_v23, %v11187_v0  ;;  %v15708_v42 = vmax.f32 %v15707_v36, 0.0  ;;  %7882 = vpow2.f32 %v7345_v39  ;;  %v7873_v30 = vpop.eup %7872  ;;  %v15713_v23 = vld [vmem:[#allocation130_spill] sm:$0xff] }
 0x56e   : > { %v4321_v48 = vmul.f32 %v15702_v26, %v11229_v47  ;;  %v4322_v33 = vmul.f32 %v15704_v37, %v11349_v15  ;;  %v12441_v19 = vmul.f32 %v15706_v11, %v11548_v58  ;;  %v6369_v27 = vadd.f32 1.0, %v7869_v7  ;;  %v7875_v39 = vpop.eup %7874 }
 0x56f   : > { %v4324_v55 = vmul.f32 %v15708_v42, %v11187_v0  ;;  %v15710_v10 = vmax.f32 %v15709_v43, 0.0  ;;  %v15712_v61 = vmax.f32 %v15711_v18, 0.0  ;;  %v6370_v45 = vadd.f32 1.0, %v7871_v63  ;;  %v7877_v36 = vpop.eup %7876 }
 0x570   : > { %v15714_v46 = vmax.f32 %v15713_v23, 0.0  ;;  %v4968_v62 = vadd.f32 %v4297_v21, %v4296_v51  ;;  %v4977_v37 = vadd.f32 %v4301_v14, %v4300_v60  ;;  %v6371_v7 = vadd.f32 1.0, %v7873_v30  ;;  %v7879_v18 = vpop.eup %7878 }
 0x571   : > { %v4325_v1 = vmul.f32 %v15710_v10, %v11229_v47  ;;  %v12452_v40 = vmul.f32 %v15712_v61, %v11349_v15  ;;  %7884 = vrcp.f32 %v6369_v27  ;;  %v4986_v41 = vadd.f32 %v4305_v24, %v4304_v56  ;;  %v7881_v23 = vpop.eup %7880 }
 0x572   : > { %v12457_v26 = vmul.f32 %v15714_v46, %v11548_v58  ;;  %v4995_v11 = vadd.f32 %v4309_v49, %v4308_v12  ;;  %v6372_v42 = vadd.f32 1.0, %v7875_v39  ;;  %7886 = vrcp.f32 %v6370_v45 }
 0x573   : > { %v4969_v43 = vadd.f32 %v4968_v62, %v4298_v3  ;;  %v4978_v10 = vadd.f32 %v4977_v37, %v4302_v52  ;;  %v6373_v61 = vadd.f32 1.0, %v7877_v36  ;;  %7888 = vrcp.f32 %v6371_v7 }
 0x574   : > { %v4987_v63 = vadd.f32 %v4986_v41, %v4306_v5  ;;  %v4996_v20 = vadd.f32 %v4995_v11, %v4310_v28  ;;  %v6374_v46 = vadd.f32 1.0, %v7879_v18  ;;  %7890 = vrcp.f32 %v6372_v42 }
 0x575   : > { %v4970_v51 = vadd.f32 %v4969_v43, %v12362_v17  ;;  %v4979_v21 = vadd.f32 %v4978_v10, %v4303_v54  ;;  %v6375_v60 = vadd.f32 1.0, %v7881_v23  ;;  %7892 = vrcp.f32 %v6373_v61 }
 0x576   : > { %v4988_v14 = vadd.f32 %v4987_v63, %v4307_v22  ;;  %v4997_v56 = vadd.f32 %v4996_v20, %v4311_v57  ;;  %7894 = vrcp.f32 %v6374_v46  ;;  %v5004_v3 = vadd.f32 %v4313_v44, %v4312_v6 }
 0x577   : > { %v4971_v24 = vrot.slane %v4970_v51, 4  ;;  %v4980_v12 = vrot.slane %v4979_v21, 4  ;;  %7896 = vrcp.f32 %v6375_v60  ;;  %v5013_v27 = vadd.f32 %v4317_v16, %v4316_v2  ;;  %v7883_v62 = vpop.eup %7882 }
 0x578   : > { %v4989_v52 = vrot.slane %v4988_v14, 4  ;;  %v4998_v49 = vrot.slane %v4997_v56, 4  ;;  %v5005_v30 = vadd.f32 %v5004_v3, %v4314_v9  ;;  %v5022_v45 = vadd.f32 %v4321_v48, %v4320_v29 }
 0x579   : > { %v4972_v5 = vadd.f32 %v4971_v24, %v4970_v51  ;;  %v4981_v28 = vadd.f32 %v4980_v12, %v4979_v21  ;;  %v5014_v54 = vadd.f32 %v5013_v27, %v4318_v8  ;;  %v5031_v39 = vadd.f32 %v4325_v1, %v4324_v55 }
 0x57a   : > { %v4990_v37 = vadd.f32 %v4989_v52, %v4988_v14  ;;  %v4999_v17 = vadd.f32 %v4998_v49, %v4997_v56  ;;  %v6376_v7 = vadd.f32 1.0, %v7883_v62  ;;  %v5006_v57 = vadd.f32 %v5005_v30, %v12413_v13 }
 0x57b   : > { %v4973_v22 = vrot.slane %v4972_v5, 2  ;;  %v4982_v20 = vrot.slane %v4981_v28, 2  ;;  %v7885_v41 = vpop.eup %7884  ;;  %v5015_v11 = vadd.f32 %v5014_v54, %v12427_v25  ;;  %v5023_v2 = vadd.f32 %v5022_v45, %v4322_v33  ;;  %v2593_v45 = vpop.permute.xlu0 %2592 }
 0x57c   : > { %v4991_v6 = vrot.slane %v4990_v37, 2  ;;  %v5000_v44 = vrot.slane %v4999_v17, 2  ;;  %v7887_v16 = vpop.eup %7886  ;;  %7898 = vrcp.f32 %v6376_v7  ;;  %v5007_v48 = vrot.slane %v5006_v57, 4 }
 0x57d   : > { %v4974_v9 = vadd.f32 %v4973_v22, %v4972_v5  ;;  %v4983_v29 = vadd.f32 %v4982_v20, %v4981_v28  ;;  %v7889_v36 = vpop.eup %7888  ;;  %v6901_v8 = vsel %vm6873_vm1, %v7887_v16, %v7885_v41  ;;  %v5016_v42 = vrot.slane %v5015_v11, 4 }
 0x57e   : > { %v4992_v55 = vadd.f32 %v4991_v6, %v4990_v37  ;;  %v5001_v1 = vadd.f32 %v5000_v44, %v4999_v17  ;;  %v7891_v43 = vpop.eup %7890  ;;  %v6902_v13 = vsel %vm6875_vm2, %v7889_v36, %v6901_v8  ;;  %v5008_v61 = vadd.f32 %v5007_v48, %v5006_v57 }
 0x57f   : > { %v4975_v10 = vrot.slane %v4974_v9, 1  ;;  %v4984_v18 = vrot.slane %v4983_v29, 1  ;;  %v7893_v63 = vpop.eup %7892  ;;  %v6903_v25 = vsel %vm6877_vm3, %v7891_v43, %v6902_v13  ;;  %v5017_v46 = vadd.f32 %v5016_v42, %v5015_v11 }
 0x580   : > { %v4993_v33 = vrot.slane %v4992_v55, 1  ;;  %v5002_v23 = vrot.slane %v5001_v1, 1  ;;  %v7895_v51 = vpop.eup %7894  ;;  %v6904_v21 = vsel %vm6879_vm4, %v7893_v63, %v6903_v25  ;;  %v5009_v56 = vrot.slane %v5008_v61, 2 }
 0x581   : > { %v4976_v60 = vadd.f32 %v4975_v10, %v4974_v9  ;;  %v4985_v14 = vadd.f32 %v4984_v18, %v4983_v29  ;;  %v7897_v24 = vpop.eup %7896  ;;  %v6905_v12 = vsel %vm6881_vm5, %v7895_v51, %v6904_v21  ;;  %v5018_v49 = vrot.slane %v5017_v46, 2  ;;  %v2597_v9 = vpop.permute.xlu1 %2596 }
 0x582   : > { %v4994_v3 = vadd.f32 %v4993_v33, %v4992_v55  ;;  %v5003_v52 = vadd.f32 %v5002_v23, %v5001_v1  ;;  %v6906_v27 = vsel %vm6883_vm6, %v7897_v24, %v6905_v12  ;;  %v5010_v5 = vadd.f32 %v5009_v56, %v5008_v61  ;;  %v15715_v33 = vld [vmem:[#allocation133_spill] sm:$0xff]  ;;  %v15719_v12 = vld [vmem:[#allocation135_spill] sm:$0xff] }
 0x583   : > { %v5024_v28 = vadd.f32 %v5023_v2, %v12441_v19  ;;  %v5032_v30 = vadd.f32 %v5031_v39, %v12452_v40  ;;  %v5019_v62 = vadd.f32 %v5018_v49, %v5017_v46  ;;  %v5865_v37 = vadd.f32 %v15364_v59, %v4976_v60  ;;  %v15717_v60 = vld [vmem:[#allocation132_spill] sm:$0xff]  ;;  %v15721_v49 = vld [vmem:[#allocation134_spill] sm:$0xff] }
 0x584   : > { %v5866_v17 = vadd.f32 %v15364_v59, %v4985_v14  ;;  %v5867_v54 = vadd.f32 %v15364_v59, %v4994_v3  ;;  %v5011_v7 = vrot.slane %v5010_v5, 1  ;;  %v5868_v57 = vadd.f32 %v15364_v59, %v5003_v52 }
 0x585   : > { %v5025_v22 = vrot.slane %v5024_v28, 4  ;;  %v5033_v20 = vadd.f32 %v5032_v30, %v12457_v26  ;;  %v5020_v41 = vrot.slane %v5019_v62, 1  ;;  %v7346_v6 = vmul.f32 -1.442695, %v5865_v37 }
 0x586   : > { %v7347_v44 = vmul.f32 -1.442695, %v5866_v17  ;;  %v3544_v19 = vadd.f32 %v2593_v45, %v8359_v32  ;;  %v7899_v40 = vpop.eup %7898  ;;  %v5012_v39 = vadd.f32 %v5011_v7, %v5010_v5  ;;  %v7348_v16 = vmul.f32 -1.442695, %v5867_v54  ;;  %v15723_v45 = vld [vmem:[#allocation137_spill] sm:$0xff]  ;;  %v15725_v17 = vld [vmem:[#allocation136_spill] sm:$0xff] }
 0x587   : > { %v5026_v11 = vadd.f32 %v5025_v22, %v5024_v28  ;;  %v5034_v2 = vrot.slane %v5033_v20, 4  ;;  %v6907_v29 = vsel %vm6885_vm7, %v7899_v40, %v6906_v27  ;;  %v5021_v48 = vadd.f32 %v5020_v41, %v5019_v62  ;;  %v15732_v40 = vld [vmem:[#allocation141_spill] sm:$0xff] }
 0x588   : > { %7900 = vpow2.f32 %v7346_v6  ;;  %v7349_v36 = vmul.f32 -1.442695, %v5868_v57  ;;  %7590 = vmatmul.mubr.f32.gmra.mrb[6].mxu0 %v6907_v29  ;;  %v5869_v55 = vadd.f32 %v15364_v59, %v5012_v39  ;;  %v4056_v42 = vmax.f32 %v3544_v19, 0.0  ;;  %v15730_v6 = vld [vmem:[#allocation138_spill] sm:$0xff] }
 0x589   : > { %v5027_v26 = vrot.slane %v5026_v11, 2  ;;  %v5035_v8 = vadd.f32 %v5034_v2, %v5033_v20  ;;  %7902 = vpow2.f32 %v7347_v44  ;;  %v5870_v1 = vadd.f32 %v15364_v59, %v5021_v48  ;;  %v15728_v20 = vld [vmem:[#allocation139_spill] sm:$0xff] }
 0x58a   : > { %7904 = vpow2.f32 %v7348_v16  ;;  %v3545_v43 = vadd.f32 %v8357_v31, %v2597_v9  ;;  %v7350_v18 = vmul.f32 -1.442695, %v5869_v55  ;;  %v4568_v63 = vmul.f32 %v4056_v42, %v11187_v0  ;;  %v15734_v9 = vld [vmem:[#allocation140_spill] sm:$0xff] }
 0x58b   : > { %v5028_v13 = vadd.f32 %v5027_v26, %v5026_v11  ;;  %v5036_v10 = vrot.slane %v5035_v8, 2  ;;  %7906 = vpow2.f32 %v7349_v36  ;;  %v7351_v61 = vmul.f32 -1.442695, %v5870_v1  ;;  %v15736_v36 = vld [vmem:[#allocation143_spill] sm:$0xff]  ;;  %v15738_v1 = vld [vmem:[#allocation142_spill] sm:$0xff] }
 0x58c   : > { %v4057_v25 = vmax.f32 %v3545_v43, 0.0  ;;  %v15716_v23 = vmax.f32 %v15715_v33, 0.0  ;;  %7908 = vpow2.f32 %v7350_v18  ;;  %v15718_v14 = vmax.f32 %v15717_v60, 0.0  ;;  %v15744_v33 = vld [vmem:[#allocation147_spill] sm:$0xff] }
 0x58d   : > { %v5029_v51 = vrot.slane %v5028_v13, 1  ;;  %v5037_v21 = vadd.f32 %v5036_v10, %v5035_v8  ;;  %7910 = vpow2.f32 %v7351_v61  ;;  %v15720_v3 = vmax.f32 %v15719_v12, 0.0  ;;  %v15742_v61 = vld [vmem:[#allocation144_spill] sm:$0xff]  ;;  %v15746_v12 = vld [vmem:[#allocation146_spill] sm:$0xff] }
 0x58e   : > { %v12484_v46 = vmul.f32 %v15716_v23, %v11187_v0  ;;  %v4329_v56 = vmul.f32 %v15718_v14, %v11229_v47  ;;  %v4569_v24 = vmul.f32 %v4057_v25, %v11229_v47  ;;  %v15722_v27 = vmax.f32 %v15721_v49, 0.0 }
 0x58f   : > { %v12493_v52 = vmul.f32 %v15720_v3, %v11349_v15  ;;  %v5030_v28 = vadd.f32 %v5029_v51, %v5028_v13  ;;  %v5038_v30 = vrot.slane %v5037_v21, 1  ;;  %v15724_v62 = vmax.f32 %v15723_v45, 0.0  ;;  %v15740_v13 = vld [vmem:[#allocation145_spill] sm:$0xff] }
 0x590   : > { %v12498_v5 = vmul.f32 %v15722_v27, %v11548_v58  ;;  %v15726_v54 = vmax.f32 %v15725_v17, 0.0  ;;  %v12506_v22 = vadd.f32 %v4569_v24, %v4568_v63  ;;  %v15729_v57 = vmax.f32 %v15728_v20, 0.0  ;;  %v15750_v17 = vld [vmem:[#allocation148_spill] sm:$0xff] }
 0x591   : > { %v4332_v37 = vmul.f32 %v15724_v62, %v11187_v0  ;;  %v15731_v44 = vmax.f32 %v15730_v6, 0.0  ;;  %v15733_v39 = vmax.f32 %v15732_v40, 0.0  ;;  %v5039_v2 = vadd.f32 %v5038_v30, %v5037_v21  ;;  %v15748_v30 = vld [vmem:[#allocation149_spill] sm:$0xff] }
 0x592   : > { %v4333_v7 = vmul.f32 %v15726_v54, %v11229_v47  ;;  %15727 = vst [vmem:[#allocation231_spill] sm:$0xff] %v12506_v22  ;;  %v4334_v41 = vmul.f32 %v15729_v57, %v11349_v15  ;;  %v5871_v16 = vadd.f32 %v15364_v59, %v5030_v28  ;;  %v15735_v29 = vmax.f32 %v15734_v9, 0.0  ;;  %v7901_v55 = vpop.eup %7900  ;;  %v15752_v57 = vld [vmem:[#allocation151_spill] sm:$0xff] }
 0x593   : > { %v12514_v19 = vmul.f32 %v15731_v44, %v11548_v58  ;;  %v4336_v11 = vmul.f32 %v15733_v39, %v11187_v0  ;;  %v15737_v26 = vmax.f32 %v15736_v36, 0.0  ;;  %v15739_v42 = vmax.f32 %v15738_v1, 0.0  ;;  %v7903_v21 = vpop.eup %7902 }
 0x594   : > { %v4337_v48 = vmul.f32 %v15735_v29, %v11229_v47  ;;  %v15741_v10 = vmax.f32 %v15740_v13, 0.0  ;;  %v15743_v63 = vmax.f32 %v15742_v61, 0.0  ;;  %v15745_v23 = vmax.f32 %v15744_v33, 0.0  ;;  %v7905_v27 = vpop.eup %7904 }
 0x595   : > { %v4338_v8 = vmul.f32 %v15737_v26, %v11349_v15  ;;  %v4339_v43 = vmul.f32 %v15739_v42, %v11548_v58  ;;  %v5872_v60 = vadd.f32 %v15364_v59, %v5039_v2  ;;  %v7352_v14 = vmul.f32 -1.442695, %v5871_v16  ;;  %v7907_v40 = vpop.eup %7906  ;;  %v15754_v16 = vld [vmem:[#allocation150_spill] sm:$0xff]  ;;  %v15756_v26 = vld [vmem:[#allocation152_spill] sm:$0xff] }
 0x596   : > { %v4340_v18 = vmul.f32 %v15741_v10, %v11187_v0  ;;  %v4341_v25 = vmul.f32 %v15743_v63, %v11229_v47  ;;  %v4342_v51 = vmul.f32 %v15745_v23, %v11349_v15  ;;  %v6377_v24 = vadd.f32 1.0, %v7901_v55  ;;  %v15758_v42 = vld [vmem:[#allocation296_spill] sm:$0xff]  ;;  %v7909_v61 = vpop.eup %7908  ;;  %v15760_v63 = vld [vmem:[#allocation154_spill] sm:$0xff] }
 0x597   : > { %v15747_v3 = vmax.f32 %v15746_v12, 0.0  ;;  %v6378_v28 = vadd.f32 1.0, %v7903_v21  ;;  %v15749_v45 = vmax.f32 %v15748_v30, 0.0  ;;  %v15751_v54 = vmax.f32 %v15750_v17, 0.0  ;;  %v15762_v21 = vld [vmem:[#allocation153_spill] sm:$0xff] }
 0x598   : > { %v15753_v6 = vmax.f32 %v15752_v57, 0.0  ;;  %7912 = vpow2.f32 %v7352_v14  ;;  %v7353_v39 = vmul.f32 -1.442695, %v5872_v60  ;;  %v6379_v2 = vadd.f32 1.0, %v7905_v27  ;;  %v7911_v27 = vpop.eup %7910  ;;  %v15768_v57 = vld [vmem:[#allocation158_spill] sm:$0xff] }
 0x599   : > { %v4343_v49 = vmul.f32 %v15747_v3, %v11548_v58  ;;  %v4344_v62 = vmul.f32 %v15749_v45, %v11187_v0  ;;  %v4345_v20 = vmul.f32 %v15751_v54, %v11229_v47  ;;  %v15755_v9 = vmax.f32 %v15754_v16, 0.0  ;;  %v15766_v45 = vld [vmem:[#allocation155_spill] sm:$0xff]  ;;  %v15770_v16 = vld [vmem:[#allocation157_spill] sm:$0xff] }
 0x59a   : > { %v4346_v44 = vmul.f32 %v15753_v6, %v11349_v15  ;;  %v6380_v36 = vadd.f32 1.0, %v7907_v40  ;;  %7914 = vrcp.f32 %v6377_v24  ;;  %v15757_v55 = vmax.f32 %v15756_v26, 0.0  ;;  %v15764_v24 = vld [vmem:[#allocation156_spill] sm:$0xff] }
 0x59b   : > { %v4347_v29 = vmul.f32 %v15755_v9, %v11548_v58  ;;  %v15759_v13 = vmax.f32 %v15758_v42, 0.0  ;;  %7916 = vpow2.f32 %v7353_v39  ;;  %v15761_v33 = vmax.f32 %v15760_v63, 0.0 }
 0x59c   : > { %v4348_v1 = vmul.f32 %v15757_v55, %v11187_v0  ;;  %v15763_v60 = vmax.f32 %v15762_v21, 0.0  ;;  %v15765_v12 = vmax.f32 %v15764_v24, 0.0  ;;  %v6381_v30 = vadd.f32 1.0, %v7909_v61  ;;  %v15772_v55 = vld [vmem:[#allocation160_spill] sm:$0xff] }
 0x59d   : > { %v4349_v10 = vmul.f32 %v15759_v13, %v11229_v47  ;;  %v4350_v23 = vmul.f32 %v15761_v33, %v11349_v15  ;;  %7918 = vrcp.f32 %v6378_v28  ;;  %v15767_v17 = vmax.f32 %v15766_v45, 0.0  ;;  %v15774_v28 = vld [vmem:[#allocation159_spill] sm:$0xff]  ;;  %v15776_v33 = vld [vmem:[#allocation162_spill] sm:$0xff] }
 0x59e   : > { %v4351_v14 = vmul.f32 %v15763_v60, %v11548_v58  ;;  %v4352_v3 = vmul.f32 %v15765_v12, %v11187_v0  ;;  %v15769_v6 = vmax.f32 %v15768_v57, 0.0  ;;  %v6382_v39 = vadd.f32 1.0, %v7911_v27 }
 0x59f   : > { %v4353_v54 = vmul.f32 %v15767_v17, %v11229_v47  ;;  %7920 = vrcp.f32 %v6379_v2  ;;  %v15771_v9 = vmax.f32 %v15770_v16, 0.0  ;;  %v15773_v42 = vmax.f32 %v15772_v55, 0.0  ;;  %v15778_v2 = vld [vmem:[#allocation161_spill] sm:$0xff] }
 0x5a0   : > { %v4354_v40 = vmul.f32 %v15769_v6, %v11349_v15  ;;  %7922 = vrcp.f32 %v6380_v36  ;;  %v15775_v61 = vmax.f32 %v15774_v28, 0.0  ;;  %v15777_v21 = vmax.f32 %v15776_v33, 0.0 }
 0x5a1   : > { %v4355_v26 = vmul.f32 %v15771_v9, %v11548_v58  ;;  %v4356_v13 = vmul.f32 %v15773_v42, %v11187_v0  ;;  %v15779_v24 = vmax.f32 %v15778_v2, 0.0  ;;  %7924 = vrcp.f32 %v6381_v30 }
 0x5a2   : > { %v4357_v63 = vmul.f32 %v15775_v61, %v11229_v47  ;;  %v12587_v60 = vmul.f32 %v15777_v21, %v11349_v15  ;;  %v5040_v27 = vadd.f32 %v4329_v56, %v12484_v46  ;;  %v5049_v45 = vadd.f32 %v4333_v7, %v4332_v37  ;;  %v7913_v2 = vpop.eup %7912 }
 0x5a3   : > { %v12592_v12 = vmul.f32 %v15779_v24, %v11548_v58  ;;  %v5058_v17 = vadd.f32 %v4337_v48, %v4336_v11  ;;  %7926 = vrcp.f32 %v6382_v39  ;;  %v5067_v36 = vadd.f32 %v4341_v25, %v4340_v18 }
 0x5a4   : > { %v5076_v57 = vadd.f32 %v4345_v20, %v4344_v62  ;;  %v5085_v6 = vadd.f32 %v4349_v10, %v4348_v1  ;;  %v5041_v16 = vadd.f32 %v5040_v27, %v12493_v52  ;;  %v5050_v9 = vadd.f32 %v5049_v45, %v4334_v41  ;;  %v7915_v7 = vpop.eup %7914 }
 0x5a5   : > { %v5059_v55 = vadd.f32 %v5058_v17, %v4338_v8  ;;  %v5094_v42 = vadd.f32 %v4353_v54, %v4352_v3  ;;  %v5068_v28 = vadd.f32 %v5067_v36, %v4342_v51  ;;  %v5103_v21 = vadd.f32 %v4357_v63, %v4356_v13  ;;  %v7917_v52 = vpop.eup %7916 }
 0x5a6   : > { %v5077_v61 = vadd.f32 %v5076_v57, %v4346_v44  ;;  %v5086_v33 = vadd.f32 %v5085_v6, %v4350_v23  ;;  %v5042_v30 = vadd.f32 %v5041_v16, %v12498_v5  ;;  %v5051_v46 = vadd.f32 %v5050_v9, %v12514_v19 }
 0x5a7   : > { %v5060_v56 = vadd.f32 %v5059_v55, %v4339_v43  ;;  %v5095_v37 = vadd.f32 %v5094_v42, %v4354_v40  ;;  %v6383_v11 = vadd.f32 1.0, %v7913_v2  ;;  %v5069_v48 = vadd.f32 %v5068_v28, %v4343_v49  ;;  %v7919_v20 = vpop.eup %7918 }
 0x5a8   : > { %v5078_v18 = vadd.f32 %v5077_v61, %v4347_v29  ;;  %v5087_v25 = vadd.f32 %v5086_v33, %v4351_v14  ;;  %v5043_v41 = vrot.slane %v5042_v30, 4  ;;  %v5052_v8 = vrot.slane %v5051_v46, 4 }
 0x5a9   : > { %v5061_v62 = vrot.slane %v5060_v56, 4  ;;  %v5096_v51 = vadd.f32 %v5095_v37, %v4355_v26  ;;  %v6384_v44 = vadd.f32 1.0, %v7917_v52  ;;  %7928 = vrcp.f32 %v6383_v11  ;;  %v7921_v5 = vpop.eup %7920 }
 0x5aa   : > { %v5070_v1 = vrot.slane %v5069_v48, 4  ;;  %v5079_v10 = vrot.slane %v5078_v18, 4  ;;  %v6908_v19 = vsel %vm6873_vm1, %v7919_v20, %v7915_v7  ;;  %v5044_v43 = vadd.f32 %v5043_v41, %v5042_v30  ;;  %v7923_v54 = vpop.eup %7922 }
 0x5ab   : > { %v5053_v23 = vadd.f32 %v5052_v8, %v5051_v46  ;;  %v5062_v3 = vadd.f32 %v5061_v62, %v5060_v56  ;;  %7930 = vrcp.f32 %v6384_v44  ;;  %v6909_v49 = vsel %vm6875_vm2, %v7921_v5, %v6908_v19  ;;  %v7925_v40 = vpop.eup %7924 }
 0x5ac   : > { %v5071_v29 = vadd.f32 %v5070_v1, %v5069_v48  ;;  %v5080_v14 = vadd.f32 %v5079_v10, %v5078_v18  ;;  %v6910_v39 = vsel %vm6877_vm3, %v7923_v54, %v6909_v49  ;;  %v5045_v26 = vrot.slane %v5044_v43, 2 }
 0x5ad   : > { %v5054_v13 = vrot.slane %v5053_v23, 2  ;;  %v5063_v63 = vrot.slane %v5062_v3, 2  ;;  %v7927_v24 = vpop.eup %7926  ;;  %v6911_v27 = vsel %vm6879_vm4, %v7925_v40, %v6910_v39  ;;  %v5088_v36 = vrot.slane %v5087_v25, 4 }
 0x5ae   : > { %v5072_v45 = vrot.slane %v5071_v29, 2  ;;  %v5081_v17 = vrot.slane %v5080_v14, 2  ;;  %v6912_v57 = vsel %vm6881_vm5, %v7927_v24, %v6911_v27  ;;  %v5046_v6 = vadd.f32 %v5045_v26, %v5044_v43  ;;  %v12612_v24 = vpop.permute.xlu0 %2676 }
 0x5af   : > { %v5055_v16 = vadd.f32 %v5054_v13, %v5053_v23  ;;  %v5064_v9 = vadd.f32 %v5063_v63, %v5062_v3  ;;  %v5089_v28 = vadd.f32 %v5088_v36, %v5087_v25  ;;  %v5097_v61 = vrot.slane %v5096_v51, 4 }
 0x5b0   : > { %v5073_v55 = vadd.f32 %v5072_v45, %v5071_v29  ;;  %v5082_v42 = vadd.f32 %v5081_v17, %v5080_v14  ;;  %v5047_v33 = vrot.slane %v5046_v6, 1  ;;  %v5104_v46 = vadd.f32 %v5103_v21, %v12587_v60  ;;  %v15780_v17 = vld [vmem:[#allocation164_spill] sm:$0xff] }
 0x5b1   : > { %v5056_v2 = vrot.slane %v5055_v16, 1  ;;  %v5065_v30 = vrot.slane %v5064_v9, 1  ;;  %v5090_v7 = vrot.slane %v5089_v28, 2  ;;  %v5098_v11 = vadd.f32 %v5097_v61, %v5096_v51 }
 0x5b2   : > { %v5074_v56 = vrot.slane %v5073_v55, 1  ;;  %v5083_v37 = vrot.slane %v5082_v42, 1  ;;  %v5048_v48 = vadd.f32 %v5047_v33, %v5046_v6  ;;  %v5105_v41 = vadd.f32 %v5104_v46, %v12592_v12  ;;  %v12618_v6 = vpop.permute.xlu1 %2695  ;;  %v15786_v46 = vld [vmem:[#allocation165_spill] sm:$0xff] }
 0x5b3   : > { %v5057_v18 = vadd.f32 %v5056_v2, %v5055_v16  ;;  %v5066_v52 = vadd.f32 %v5065_v30, %v5064_v9  ;;  %v7929_v8 = vpop.eup %7928  ;;  %v5091_v44 = vadd.f32 %v5090_v7, %v5089_v28  ;;  %v5099_v25 = vrot.slane %v5098_v11, 2  ;;  %v15782_v9 = vld [vmem:[#allocation163_spill] sm:$0xff]  ;;  %v15784_v28 = vld [vmem:[#allocation166_spill] sm:$0xff] }
 0x5b4   : > { %v5075_v62 = vadd.f32 %v5074_v56, %v5073_v55  ;;  %v5084_v20 = vadd.f32 %v5083_v37, %v5082_v42  ;;  %v6913_v1 = vsel %vm6883_vm6, %v7929_v8, %v6912_v57  ;;  %v5106_v10 = vrot.slane %v5105_v41, 4 }
 0x5b5   : > { %v5873_v5 = vadd.f32 %v15364_v59, %v5048_v48  ;;  %v5874_v60 = vadd.f32 %v15364_v59, %v5057_v18  ;;  %v7931_v21 = vpop.eup %7930  ;;  %v5092_v19 = vrot.slane %v5091_v44, 1  ;;  %v5100_v51 = vadd.f32 %v5099_v25, %v5098_v11  ;;  %v15788_v11 = vld [vmem:[#allocation168_spill] sm:$0xff] }
 0x5b6   : > { %v5875_v43 = vadd.f32 %v15364_v59, %v5066_v52  ;;  %v5876_v23 = vadd.f32 %v15364_v59, %v5075_v62  ;;  %v6914_v12 = vsel %vm6885_vm7, %v7931_v21, %v6913_v1  ;;  %v5107_v3 = vadd.f32 %v5106_v10, %v5105_v41  ;;  %v15790_v52 = vld [vmem:[#allocation167_spill] sm:$0xff]  ;;  %v15794_v1 = vld [vmem:[#allocation169_spill] sm:$0xff]  ;;  %v15796_v21 = vld [vmem:[#allocation172_spill] sm:$0xff] }
 0x5b7   : > { %v5877_v54 = vadd.f32 %v15364_v59, %v5084_v20  ;;  %v7354_v49 = vmul.f32 -1.442695, %v5873_v5  ;;  %7592 = vmatprep.mubr.f32.mxu0 %v6914_v12  ;;  %v5093_v29 = vadd.f32 %v5092_v19, %v5091_v44  ;;  %v5101_v14 = vrot.slane %v5100_v51, 1  ;;  %v15792_v20 = vld [vmem:[#allocation170_spill] sm:$0xff] }
 0x5b8   : > { %v7355_v40 = vmul.f32 -1.442695, %v5874_v60  ;;  %v7356_v39 = vmul.f32 -1.442695, %v5875_v43  ;;  %v5108_v26 = vrot.slane %v5107_v3, 2  ;;  %v15781_v36 = vmax.f32 %v15780_v17, 0.0 }
 0x5b9   : > { %7932 = vpow2.f32 %v7354_v49  ;;  %v7357_v13 = vmul.f32 -1.442695, %v5876_v23  ;;  %v7358_v63 = vmul.f32 -1.442695, %v5877_v54  ;;  %v5102_v27 = vadd.f32 %v5101_v14, %v5100_v51  ;;  %v15798_v43 = vld [vmem:[#allocation171_spill] sm:$0xff]  ;;  %v15802_v14 = vld [vmem:[#allocation173_spill] sm:$0xff] }
 0x5ba   : > { %v5878_v45 = vadd.f32 %v15364_v59, %v5093_v29  ;;  %7934 = vpow2.f32 %v7355_v40  ;;  %v4360_v57 = vmul.f32 %v15781_v36, %v11187_v0  ;;  %v5109_v16 = vadd.f32 %v5108_v26, %v5107_v3  ;;  %v15800_v3 = vld [vmem:[#allocation174_spill] sm:$0xff]  ;;  %v12657_v29 = vpop.permute.xlu0 %2725  ;;  %v15804_v26 = vld [vmem:[#allocation176_spill] sm:$0xff]  ;;  %v12668_v36 = vpop.permute.xlu1 %2729 }
 0x5bb   : > { %7936 = vpow2.f32 %v7356_v39  ;;  %v15783_v55 = vmax.f32 %v15782_v9, 0.0  ;;  %v15785_v61 = vmax.f32 %v15784_v28, 0.0  ;;  %v5879_v2 = vadd.f32 %v15364_v59, %v5102_v27  ;;  %v15806_v27 = vld [vmem:[#allocation175_spill] sm:$0xff]  ;;  %v15808_v9 = vld [vmem:[#allocation178_spill] sm:$0xff] }
 0x5bc   : > { %7938 = vpow2.f32 %v7357_v13  ;;  %v7359_v30 = vmul.f32 -1.442695, %v5878_v45  ;;  %v15787_v56 = vmax.f32 %v15786_v46, 0.0  ;;  %v5110_v7 = vrot.slane %v5109_v16, 1  ;;  %v15812_v46 = vld [vmem:[#allocation180_spill] sm:$0xff] }
 0x5bd   : > { %v4361_v42 = vmul.f32 %v15783_v55, %v11229_v47  ;;  %v12626_v33 = vmul.f32 %v15785_v61, %v11349_v15  ;;  %7940 = vpow2.f32 %v7358_v63  ;;  %v15789_v48 = vmax.f32 %v15788_v11, 0.0  ;;  %v15810_v61 = vld [vmem:[#allocation177_spill] sm:$0xff]  ;;  %v15814_v11 = vld [vmem:[#allocation179_spill] sm:$0xff] }
 0x5be   : > { %v12632_v37 = vmul.f32 %v15787_v56, %v11548_v58  ;;  %v15791_v41 = vmax.f32 %v15790_v52, 0.0  ;;  %7942 = vpow2.f32 %v7359_v30  ;;  %v7360_v62 = vmul.f32 -1.442695, %v5879_v2 }
 0x5bf   : > { %v4364_v18 = vmul.f32 %v15789_v48, %v11187_v0  ;;  %v15793_v44 = vmax.f32 %v15792_v20, 0.0  ;;  %v15795_v10 = vmax.f32 %v15794_v1, 0.0  ;;  %v5111_v60 = vadd.f32 %v5110_v7, %v5109_v16 }
 0x5c0   : > { %v4365_v8 = vmul.f32 %v15791_v41, %v11229_v47  ;;  %v15797_v19 = vmax.f32 %v15796_v21, 0.0  ;;  %v15799_v23 = vmax.f32 %v15798_v43, 0.0  ;;  %v15801_v54 = vmax.f32 %v15800_v3, 0.0  ;;  %v15816_v41 = vld [vmem:[#allocation182_spill] sm:$0xff]  ;;  %v15822_v3 = vld [vmem:[#allocation183_spill] sm:$0xff] }
 0x5c1   : > { %v4366_v25 = vmul.f32 %v15793_v44, %v11349_v15  ;;  %v12646_v5 = vmul.f32 %v15795_v10, %v11548_v58  ;;  %7944 = vpow2.f32 %v7360_v62  ;;  %v15803_v40 = vmax.f32 %v15802_v14, 0.0  ;;  %v15818_v44 = vld [vmem:[#allocation181_spill] sm:$0xff] }
 0x5c2   : > { %v4368_v51 = vmul.f32 %v15797_v19, %v11187_v0  ;;  %v4369_v12 = vmul.f32 %v15799_v23, %v11229_v47  ;;  %v4370_v49 = vmul.f32 %v15801_v54, %v11349_v15  ;;  %v15805_v13 = vmax.f32 %v15804_v26, 0.0 }
 0x5c3   : > { %v4371_v39 = vmul.f32 %v15803_v40, %v11548_v58  ;;  %v15807_v45 = vmax.f32 %v15806_v27, 0.0  ;;  %v5880_v16 = vadd.f32 %v15364_v59, %v5111_v60  ;;  %v15809_v55 = vmax.f32 %v15808_v9, 0.0  ;;  %v15820_v60 = vld [vmem:[#allocation184_spill] sm:$0xff]  ;;  %v7933_v43 = vpop.eup %7932  ;;  %v15824_v40 = vld [vmem:[#allocation186_spill] sm:$0xff]  ;;  %v15826_v27 = vld [vmem:[#allocation185_spill] sm:$0xff] }
 0x5c4   : > { %v4372_v63 = vmul.f32 %v15805_v13, %v11187_v0  ;;  %v15811_v2 = vmax.f32 %v15810_v61, 0.0  ;;  %v15813_v56 = vmax.f32 %v15812_v46, 0.0  ;;  %v15815_v48 = vmax.f32 %v15814_v11, 0.0 }
 0x5c5   : > { %v4373_v17 = vmul.f32 %v15807_v45, %v11229_v47  ;;  %v4374_v28 = vmul.f32 %v15809_v55, %v11349_v15  ;;  %v15817_v62 = vmax.f32 %v15816_v41, 0.0  ;;  %v15819_v1 = vmax.f32 %v15818_v44, 0.0  ;;  %v7935_v55 = vpop.eup %7934  ;;  %v15832_v41 = vld [vmem:[#allocation190_spill] sm:$0xff] }
 0x5c6   : > { %v4375_v30 = vmul.f32 %v15811_v2, %v11548_v58  ;;  %v4376_v7 = vmul.f32 %v15813_v56, %v11187_v0  ;;  %v4377_v52 = vmul.f32 %v15815_v48, %v11229_v47  ;;  %v15821_v21 = vmax.f32 %v15820_v60, 0.0  ;;  %v15828_v2 = vld [vmem:[#allocation188_spill] sm:$0xff] }
 0x5c7   : > { %v4378_v20 = vmul.f32 %v15817_v62, %v11349_v15  ;;  %v4379_v10 = vmul.f32 %v15819_v1, %v11548_v58  ;;  %v7361_v23 = vmul.f32 -1.442695, %v5880_v16  ;;  %v15823_v54 = vmax.f32 %v15822_v3, 0.0  ;;  %v15830_v16 = vld [vmem:[#allocation187_spill] sm:$0xff]  ;;  %v7937_v1 = vpop.eup %7936 }
 0x5c8   : > { %v4380_v19 = vmul.f32 %v15821_v21, %v11187_v0  ;;  %v15825_v26 = vmax.f32 %v15824_v40, 0.0  ;;  %v15827_v45 = vmax.f32 %v15826_v27, 0.0  ;;  %v6385_v61 = vadd.f32 1.0, %v7933_v43  ;;  %v15834_v21 = vld [vmem:[#allocation189_spill] sm:$0xff]  ;;  %v15836_v43 = vld [vmem:[#allocation192_spill] sm:$0xff]  ;;  %v12718_v27 = vpop.permute.xlu0 %2353 }
 0x5c9   : > { %v4381_v14 = vmul.f32 %v15823_v54, %v11229_v47  ;;  %v15829_v46 = vmax.f32 %v15828_v2, 0.0  ;;  %v15831_v11 = vmax.f32 %v15830_v16, 0.0  ;;  %v15833_v62 = vmax.f32 %v15832_v41, 0.0  ;;  %15838 = vst [vmem:[#allocation330_spill] sm:$0xff] %v12718_v27 }
 0x5ca   : > { %v4382_v13 = vmul.f32 %v15825_v26, %v11349_v15  ;;  %v12701_v9 = vmul.f32 %v15827_v45, %v11548_v58  ;;  %7946 = vpow2.f32 %v7361_v23  ;;  %v6386_v60 = vadd.f32 1.0, %v7935_v55  ;;  %v7939_v45 = vpop.eup %7938  ;;  %v15841_v23 = vld [vmem:[#allocation194_spill] sm:$0xff] }
 0x5cb   : > { %v4384_v56 = vmul.f32 %v15829_v46, %v11187_v0  ;;  %v4385_v48 = vmul.f32 %v15831_v11, %v11229_v47  ;;  %v4386_v44 = vmul.f32 %v15833_v62, %v11349_v15  ;;  %v15835_v3 = vmax.f32 %v15834_v21, 0.0  ;;  %v15839_v46 = vld [vmem:[#allocation191_spill] sm:$0xff]  ;;  %v12728_v62 = vpop.permute.xlu1 %2452  ;;  %v7941_v21 = vpop.eup %7940 }
 0x5cc   : > { %v15837_v40 = vmax.f32 %v15836_v43, 0.0  ;;  %v6387_v2 = vadd.f32 1.0, %v7937_v1  ;;  %7948 = vrcp.f32 %v6385_v61  ;;  %v15840_v16 = vmax.f32 %v15839_v46, 0.0  ;;  %15843 = vst [vmem:[#allocation332_spill] sm:$0xff] %v12728_v62  ;;  %v15844_v43 = vld [vmem:[#allocation193_spill] sm:$0xff]  ;;  %v7943_v1 = vpop.eup %7942 }
 0x5cd   : > { %v4387_v54 = vmul.f32 %v15835_v3, %v11548_v58  ;;  %v15842_v55 = vmax.f32 %v15841_v23, 0.0  ;;  %v6388_v3 = vadd.f32 1.0, %v7939_v45  ;;  %7950 = vrcp.f32 %v6386_v60  ;;  %v7945_v34 = vpop.eup %7944 }
 0x5ce   : > { %v4388_v26 = vmul.f32 %v15837_v40, %v11187_v0  ;;  %v4389_v11 = vmul.f32 %v15840_v16, %v11229_v47  ;;  %v15845_v40 = vmax.f32 %v15844_v43, 0.0  ;;  %v5112_v61 = vadd.f32 %v4361_v42, %v4360_v57  ;;  %v12737_v42 = vpop.permute.xlu0 %2486 }
 0x5cf   : > { %v12726_v41 = vmul.f32 %v15842_v55, %v11349_v15  ;;  %v6389_v38 = vadd.f32 1.0, %v7941_v21  ;;  %7952 = vrcp.f32 %v6387_v2  ;;  %v5121_v46 = vadd.f32 %v4365_v8, %v4364_v18  ;;  %v12740_v2 = vpop.permute.xlu1 %2528 }
 0x5d0   : > { %v12733_v22 = vmul.f32 %v15845_v40, %v11548_v58  ;;  %v5130_v16 = vadd.f32 %v4369_v12, %v4368_v51  ;;  %v6390_v53 = vadd.f32 1.0, %v7943_v1  ;;  %7954 = vrcp.f32 %v6388_v3 }
 0x5d1   : > { %v5113_v23 = vadd.f32 %v5112_v61, %v12626_v33  ;;  %v5139_v55 = vadd.f32 %v4373_v17, %v4372_v63  ;;  %7956 = vrcp.f32 %v6389_v38  ;;  %v5122_v45 = vadd.f32 %v5121_v46, %v4366_v25 }
 0x5d2   : > { %v5131_v60 = vadd.f32 %v5130_v16, %v4370_v49  ;;  %v5148_v62 = vadd.f32 %v4377_v52, %v4376_v7  ;;  %v6391_v27 = vadd.f32 1.0, %v7945_v34  ;;  %7958 = vrcp.f32 %v6390_v53 }
 0x5d3   : > { %v5114_v43 = vadd.f32 %v5113_v23, %v12632_v37  ;;  %v5140_v57 = vadd.f32 %v5139_v55, %v4374_v28  ;;  %v5123_v18 = vadd.f32 %v5122_v45, %v12646_v5  ;;  %v5157_v12 = vadd.f32 %v4381_v14, %v4380_v19 }
 0x5d4   : > { %v5132_v8 = vadd.f32 %v5131_v60, %v4371_v39  ;;  %v5149_v51 = vadd.f32 %v5148_v62, %v4378_v20  ;;  %7960 = vrcp.f32 %v6391_v27  ;;  %v5166_v25 = vadd.f32 %v4385_v48, %v4384_v56  ;;  %v7947_v17 = vpop.eup %7946  ;;  %v12743_v48 = vpop.permute.xlu0 %2547 }
 0x5d5   : > { %v5115_v33 = vrot.slane %v5114_v43, 4  ;;  %v5141_v38 = vadd.f32 %v5140_v57, %v4375_v30  ;;  %v5124_v49 = vrot.slane %v5123_v18, 4  ;;  %v5158_v53 = vadd.f32 %v5157_v12, %v4382_v13 }
 0x5d6   : > { %v5133_v63 = vrot.slane %v5132_v8, 4  ;;  %v5150_v34 = vadd.f32 %v5149_v51, %v4379_v10  ;;  %v5167_v7 = vadd.f32 %v5166_v25, %v4386_v44  ;;  %v5175_v52 = vadd.f32 %v4389_v11, %v4388_v26  ;;  %v7949_v21 = vpop.eup %7948  ;;  %v12746_v26 = vpop.permute.xlu1 %2581 }
 0x5d7   : > { %v5116_v37 = vadd.f32 %v5115_v33, %v5114_v43  ;;  %v5142_v28 = vrot.slane %v5141_v38, 4  ;;  %v6392_v5 = vadd.f32 1.0, %v7947_v17  ;;  %v5125_v39 = vadd.f32 %v5124_v49, %v5123_v18  ;;  %v7951_v14 = vpop.eup %7950 }
 0x5d8   : > { %v5134_v20 = vadd.f32 %v5133_v63, %v5132_v8  ;;  %v5151_v19 = vrot.slane %v5150_v34, 4  ;;  %v5159_v30 = vadd.f32 %v5158_v53, %v12701_v9  ;;  %v5168_v56 = vadd.f32 %v5167_v7, %v4387_v54  ;;  %v12752_v53 = vpop.permute.xlu0 %2611 }
 0x5d9   : > { %v5117_v62 = vrot.slane %v5116_v37, 2  ;;  %v5143_v27 = vadd.f32 %v5142_v28, %v5141_v38  ;;  %v7953_v10 = vpop.eup %7952  ;;  %7962 = vrcp.f32 %v6392_v5  ;;  %v6915_v13 = vsel %vm6873_vm1, %v7951_v14, %v7949_v21 }
 0x5da   : > { %v5126_v3 = vrot.slane %v5125_v39, 2  ;;  %v5135_v44 = vrot.slane %v5134_v20, 2  ;;  %v7955_v11 = vpop.eup %7954  ;;  %v6916_v40 = vsel %vm6875_vm2, %v7953_v10, %v6915_v13  ;;  %v5152_v46 = vadd.f32 %v5151_v19, %v5150_v34  ;;  %v12755_v21 = vpop.permute.xlu1 %2615 }
 0x5db   : > { %v5118_v61 = vadd.f32 %v5117_v62, %v5116_v37  ;;  %v5144_v1 = vrot.slane %v5143_v27, 2  ;;  %v7957_v16 = vpop.eup %7956  ;;  %v6917_v9 = vsel %vm6877_vm3, %v7955_v11, %v6916_v40  ;;  %v5160_v55 = vrot.slane %v5159_v30, 4 }
 0x5dc   : > { %v5127_v54 = vadd.f32 %v5126_v3, %v5125_v39  ;;  %v5136_v23 = vadd.f32 %v5135_v44, %v5134_v20  ;;  %v7959_v45 = vpop.eup %7958  ;;  %v6918_v60 = vsel %vm6879_vm4, %v7957_v16, %v6917_v9  ;;  %v5153_v18 = vrot.slane %v5152_v46, 2  ;;  %v12767_v9 = vpop.permute.xlu0 %2714 }
 0x5dd   : > { %v5119_v43 = vrot.slane %v5118_v61, 1  ;;  %v5145_v57 = vadd.f32 %v5144_v1, %v5143_v27  ;;  %v6919_v8 = vsel %vm6881_vm5, %v7959_v45, %v6918_v60  ;;  %v5161_v33 = vadd.f32 %v5160_v55, %v5159_v30  ;;  %15846 = vst [vmem:[#allocation279_spill] sm:$0xff] %v12767_v9 }
 0x5de   : > { %v5128_v51 = vrot.slane %v5127_v54, 1  ;;  %v5137_v12 = vrot.slane %v5136_v23, 1  ;;  %v7961_v38 = vpop.eup %7960  ;;  %v5154_v63 = vadd.f32 %v5153_v18, %v5152_v46  ;;  %v5169_v34 = vrot.slane %v5168_v56, 4  ;;  %v12769_v55 = vpop.permute.xlu1 %2744 }
 0x5df   : > { %v5120_v25 = vadd.f32 %v5119_v43, %v5118_v61  ;;  %v5146_v49 = vrot.slane %v5145_v57, 1  ;;  %v6920_v17 = vsel %vm6883_vm6, %v7961_v38, %v6919_v8  ;;  %v5162_v7 = vrot.slane %v5161_v33, 2  ;;  %15847 = vst [vmem:[#allocation335_spill] sm:$0xff] %v12769_v55 }
 0x5e0   : > { %v5129_v37 = vadd.f32 %v5128_v51, %v5127_v54  ;;  %v5138_v28 = vadd.f32 %v5137_v12, %v5136_v23  ;;  %v5155_v39 = vrot.slane %v5154_v63, 1  ;;  %v5170_v20 = vadd.f32 %v5169_v34, %v5168_v56  ;;  %v15848_v12 = vld [vmem:[#allocation196_spill] sm:$0xff] }
 0x5e1   : > { %v5147_v5 = vadd.f32 %v5146_v49, %v5145_v57  ;;  %v5176_v19 = vadd.f32 %v5175_v52, %v12726_v41  ;;  %v5163_v14 = vadd.f32 %v5162_v7, %v5161_v33  ;;  %v5881_v62 = vadd.f32 %v15364_v59, %v5120_v25  ;;  %v15852_v7 = vld [vmem:[#allocation198_spill] sm:$0xff] }
 0x5e2   : > { %v5882_v27 = vadd.f32 %v15364_v59, %v5129_v37  ;;  %v5883_v30 = vadd.f32 %v15364_v59, %v5138_v28  ;;  %v5156_v10 = vadd.f32 %v5155_v39, %v5154_v63  ;;  %v5171_v13 = vrot.slane %v5170_v20, 2  ;;  %v15850_v37 = vld [vmem:[#allocation195_spill] sm:$0xff] }
 0x5e3   : > { %v5177_v3 = vadd.f32 %v5176_v19, %v12733_v22  ;;  %v5884_v44 = vadd.f32 %v15364_v59, %v5147_v5  ;;  %v7963_v11 = vpop.eup %7962  ;;  %v5164_v40 = vrot.slane %v5163_v14, 1  ;;  %v7362_v61 = vmul.f32 -1.442695, %v5881_v62  ;;  %v15856_v62 = vld [vmem:[#allocation197_spill] sm:$0xff] }
 0x5e4   : > { %v7363_v1 = vmul.f32 -1.442695, %v5882_v27  ;;  %v3562_v41 = vadd.f32 %v12612_v24, %v8364_v35  ;;  %v6921_v52 = vsel %vm6885_vm7, %v7963_v11, %v6920_v17  ;;  %v5172_v56 = vadd.f32 %v5171_v13, %v5170_v20  ;;  %v12791_v20 = vpop.permute.xlu0 %2748 }
 0x5e5   : > { %v5178_v46 = vrot.slane %v5177_v3, 4  ;;  %v5885_v16 = vadd.f32 %v15364_v59, %v5156_v10  ;;  %7593 = vmatmul.mubr.f32.gmra.mrb[8].mxu0 %v6921_v52  ;;  %v5165_v54 = vadd.f32 %v5164_v40, %v5163_v14  ;;  %7964 = vpow2.f32 %v7362_v61  ;;  %15854 = vst [vmem:[#allocation338_spill] sm:$0xff] %v12791_v20  ;;  %v12802_v10 = vpop.permute.xlu1 %2820  ;;  %v15861_v61 = vld [vmem:[#allocation199_spill] sm:$0xff]  ;;  %v15864_v52 = vld [vmem:[#allocation202_spill] sm:$0xff] }
 0x5e6   : > { %v7364_v22 = vmul.f32 -1.442695, %v5883_v30  ;;  %v7365_v23 = vmul.f32 -1.442695, %v5884_v44  ;;  %v5173_v45 = vrot.slane %v5172_v56, 1  ;;  %7966 = vpow2.f32 %v7363_v1  ;;  %15858 = vst [vmem:[#allocation274_spill] sm:$0xff] %v12802_v10 }
 0x5e7   : > { %v5179_v60 = vadd.f32 %v5178_v46, %v5177_v3  ;;  %v7366_v43 = vmul.f32 -1.442695, %v5885_v16  ;;  %v5886_v24 = vadd.f32 %v15364_v59, %v5165_v54  ;;  %v4074_v57 = vmax.f32 %v3562_v41, 0.0  ;;  %v15859_v44 = vld [vmem:[#allocation200_spill] sm:$0xff]  ;;  %v15866_v16 = vld [vmem:[#allocation201_spill] sm:$0xff] }
 0x5e8   : > { %7968 = vpow2.f32 %v7364_v22  ;;  %v3566_v18 = vadd.f32 %v12618_v6, %v8364_v35  ;;  %v5174_v8 = vadd.f32 %v5173_v45, %v5172_v56  ;;  %v15849_v33 = vmax.f32 %v15848_v12, 0.0 }
 0x5e9   : > { %v5180_v51 = vrot.slane %v5179_v60, 2  ;;  %7970 = vpow2.f32 %v7365_v23  ;;  %v7367_v25 = vmul.f32 -1.442695, %v5886_v24  ;;  %v4586_v49 = vmul.f32 %v4074_v57, %v11349_v15  ;;  %v15868_v23 = vld [vmem:[#allocation204_spill] sm:$0xff]  ;;  %v15870_v24 = vld [vmem:[#allocation203_spill] sm:$0xff] }
 0x5ea   : > { %v12777_v38 = vmul.f32 %v15849_v33, %v11187_v0  ;;  %7972 = vpow2.f32 %v7366_v43  ;;  %v4078_v63 = vmax.f32 %v3566_v18, 0.0  ;;  %v5887_v17 = vadd.f32 %v15364_v59, %v5174_v8  ;;  %v15872_v18 = vld [vmem:[#allocation206_spill] sm:$0xff]  ;;  %v15874_v33 = vld [vmem:[#allocation205_spill] sm:$0xff] }
 0x5eb   : > { %v5181_v34 = vadd.f32 %v5180_v51, %v5179_v60  ;;  %v15851_v28 = vmax.f32 %v15850_v37, 0.0  ;;  %v15853_v5 = vmax.f32 %v15852_v7, 0.0  ;;  %7974 = vpow2.f32 %v7367_v25 }
 0x5ec   : > { %v12794_v19 = vadd.f32 %v11684_v50, %v4586_v49  ;;  %v4590_v14 = vmul.f32 %v4078_v63, %v11349_v15  ;;  %v15857_v27 = vmax.f32 %v15856_v62, 0.0  ;;  %v7368_v3 = vmul.f32 -1.442695, %v5887_v17  ;;  %v15876_v63 = vld [vmem:[#allocation208_spill] sm:$0xff] }
 0x5ed   : > { %v12784_v6 = vmul.f32 %v15851_v28, %v11229_v47  ;;  %v12789_v39 = vmul.f32 %v15853_v5, %v11349_v15  ;;  %v5182_v13 = vrot.slane %v5181_v34, 1  ;;  %v15860_v11 = vmax.f32 %v15859_v44, 0.0  ;;  %v15880_v5 = vld [vmem:[#allocation210_spill] sm:$0xff]  ;;  %v15882_v44 = vld [vmem:[#allocation209_spill] sm:$0xff] }
 0x5ee   : > { %15855 = vst [vmem:[#allocation270_spill] sm:$0xff] %v12794_v19  ;;  %v12800_v30 = vmul.f32 %v15857_v27, %v11548_v58  ;;  %v15862_v1 = vmax.f32 %v15861_v61, 0.0  ;;  %v12811_v41 = vadd.f32 %v11692_v4, %v4590_v14  ;;  %v15865_v56 = vmax.f32 %v15864_v52, 0.0 }
 0x5ef   : > { %v4396_v40 = vmul.f32 %v15860_v11, %v11187_v0  ;;  %v15867_v54 = vmax.f32 %v15866_v16, 0.0  ;;  %v15869_v45 = vmax.f32 %v15868_v23, 0.0  ;;  %v5183_v43 = vadd.f32 %v5182_v13, %v5181_v34  ;;  %v7965_v12 = vpop.eup %7964  ;;  %v15878_v34 = vld [vmem:[#allocation207_spill] sm:$0xff]  ;;  %v12851_v16 = vpop.permute.xlu0 %2824 }
 0x5f0   : > { %v4397_v50 = vmul.f32 %v15862_v1, %v11229_v47  ;;  %15863 = vst [vmem:[#allocation278_spill] sm:$0xff] %v12811_v41  ;;  %v4398_v46 = vmul.f32 %v15865_v56, %v11349_v15  ;;  %7976 = vpow2.f32 %v7368_v3  ;;  %v15871_v57 = vmax.f32 %v15870_v24, 0.0  ;;  %v7967_v27 = vpop.eup %7966  ;;  %v15884_v1 = vld [vmem:[#allocation212_spill] sm:$0xff]  ;;  %15886 = vst [vmem:[#allocation305_spill] sm:$0xff] %v12851_v16  ;;  %v15906_v41 = vld [vmem:[#allocation223_spill] sm:$0xff] }
 0x5f1   : > { %v12819_v22 = vmul.f32 %v15867_v54, %v11548_v58  ;;  %v4400_v60 = vmul.f32 %v15869_v45, %v11187_v0  ;;  %v15873_v8 = vmax.f32 %v15872_v18, 0.0  ;;  %v15875_v25 = vmax.f32 %v15874_v33, 0.0  ;;  %v15887_v45 = vld [vmem:[#allocation211_spill] sm:$0xff] }
 0x5f2   : > { %v4401_v4 = vmul.f32 %v15871_v57, %v11229_v47  ;;  %v15877_v17 = vmax.f32 %v15876_v63, 0.0  ;;  %v15879_v28 = vmax.f32 %v15878_v34, 0.0  ;;  %v15881_v14 = vmax.f32 %v15880_v5, 0.0  ;;  %v7969_v54 = vpop.eup %7968  ;;  %v15889_v18 = vld [vmem:[#allocation215_spill] sm:$0xff]  ;;  %v12862_v63 = vpop.permute.xlu1 %2839  ;;  %v15894_v5 = vld [vmem:[#allocation217_spill] sm:$0xff] }
 0x5f3   : > { %v4402_v51 = vmul.f32 %v15873_v8, %v11349_v15  ;;  %v12833_v49 = vmul.f32 %v15875_v25, %v11548_v58  ;;  %v5888_v13 = vadd.f32 %v15364_v59, %v5183_v43  ;;  %v6393_v3 = vadd.f32 1.0, %v7965_v12  ;;  %v15891_v12 = vld [vmem:[#allocation214_spill] sm:$0xff]  ;;  %15893 = vst [vmem:[#allocation308_spill] sm:$0xff] %v12862_v63 }
 0x5f4   : > { %v4404_v37 = vmul.f32 %v15877_v17, %v11187_v0  ;;  %v4405_v7 = vmul.f32 %v15879_v28, %v11229_v47  ;;  %v4406_v62 = vmul.f32 %v15881_v14, %v11349_v15  ;;  %v15883_v11 = vmax.f32 %v15882_v44, 0.0  ;;  %v7971_v17 = vpop.eup %7970 }
 0x5f5   : > { %v15885_v52 = vmax.f32 %v15884_v1, 0.0  ;;  %v6394_v23 = vadd.f32 1.0, %v7967_v27  ;;  %v15888_v24 = vmax.f32 %v15887_v45, 0.0  ;;  %v15890_v43 = vmax.f32 %v15889_v18, 0.0  ;;  %v7973_v44 = vpop.eup %7972  ;;  %v15896_v1 = vld [vmem:[#allocation216_spill] sm:$0xff] }
 0x5f6   : > { %v4407_v61 = vmul.f32 %v15883_v11, %v11548_v58  ;;  %v15892_v33 = vmax.f32 %v15891_v12, 0.0  ;;  %v7369_v34 = vmul.f32 -1.442695, %v5888_v13  ;;  %v6395_v28 = vadd.f32 1.0, %v7969_v54  ;;  %v15900_v13 = vld [vmem:[#allocation218_spill] sm:$0xff] }
 0x5f7   : > { %v4408_v56 = vmul.f32 %v15885_v52, %v11187_v0  ;;  %v4409_v57 = vmul.f32 %v15888_v24, %v11229_v47  ;;  %v4410_v8 = vmul.f32 %v15890_v43, %v11349_v15  ;;  %7978 = vrcp.f32 %v6393_v3  ;;  %v15898_v24 = vld [vmem:[#allocation219_spill] sm:$0xff] }
 0x5f8   : > { %v4411_v25 = vmul.f32 %v15892_v33, %v11548_v58  ;;  %v15895_v14 = vmax.f32 %v15894_v5, 0.0  ;;  %v6396_v11 = vadd.f32 1.0, %v7971_v17  ;;  %7980 = vrcp.f32 %v6394_v23  ;;  %v15902_v33 = vld [vmem:[#allocation221_spill] sm:$0xff]  ;;  %v7975_v17 = vpop.eup %7974  ;;  %v15904_v23 = vld [vmem:[#allocation220_spill] sm:$0xff] }
 0x5f9   : > { %v15897_v52 = vmax.f32 %v15896_v1, 0.0  ;;  %v15899_v18 = vmax.f32 %v15898_v24, 0.0  ;;  %7982 = vpow2.f32 %v7369_v34  ;;  %v6397_v12 = vadd.f32 1.0, %v7973_v44  ;;  %v15908_v34 = vld [vmem:[#allocation222_spill] sm:$0xff] }
 0x5fa   : > { %v4412_v27 = vmul.f32 %v15895_v14, %v11187_v0  ;;  %v15901_v3 = vmax.f32 %v15900_v13, 0.0  ;;  %v15903_v5 = vmax.f32 %v15902_v33, 0.0  ;;  %7984 = vrcp.f32 %v6395_v28  ;;  %v15912_v28 = vld [vmem:[#allocation224_spill] sm:$0xff] }
 0x5fb   : > { %v4413_v45 = vmul.f32 %v15897_v52, %v11229_v47  ;;  %v4414_v43 = vmul.f32 %v15899_v18, %v11349_v15  ;;  %v15905_v1 = vmax.f32 %v15904_v23, 0.0  ;;  %v15907_v24 = vmax.f32 %v15906_v41, 0.0  ;;  %v15915_v41 = vld [vmem:[#allocation228_spill] sm:$0xff] }
 0x5fc   : > { %v4415_v54 = vmul.f32 %v15901_v3, %v11548_v58  ;;  %v4416_v14 = vmul.f32 %v15903_v5, %v11187_v0  ;;  %v15909_v44 = vmax.f32 %v15908_v34, 0.0  ;;  %v6398_v13 = vadd.f32 1.0, %v7975_v17  ;;  %v15910_v3 = vld [vmem:[#allocation225_spill] sm:$0xff]  ;;  %v15917_v34 = vld [vmem:[#allocation227_spill] sm:$0xff] }
 0x5fd   : > { %v4417_v52 = vmul.f32 %v15905_v1, %v11229_v47  ;;  %v4418_v18 = vmul.f32 %v15907_v24, %v11349_v15  ;;  %7986 = vrcp.f32 %v6396_v11  ;;  %v15911_v33 = vmax.f32 %v15910_v3, 0.0  ;;  %v12896_v1 = vpop.permute.xlu0 %2843  ;;  %v12910_v3 = vpop.permute.xlu1 %2338 }
 0x5fe   : > { %v12888_v19 = vmul.f32 %v15909_v44, %v11548_v58  ;;  %v15913_v63 = vmax.f32 %v15912_v28, 0.0  ;;  %15914 = vst [vmem:[#allocation315_spill] sm:$0xff] %v12896_v1  ;;  %7988 = vrcp.f32 %v6397_v12  ;;  %v15916_v24 = vmax.f32 %v15915_v41, 0.0  ;;  %15919 = vst [vmem:[#allocation320_spill] sm:$0xff] %v12910_v3 }
 0x5ff   : > { %v4420_v5 = vmul.f32 %v15911_v33, %v11187_v0  ;;  %v15918_v17 = vmax.f32 %v15917_v34, 0.0  ;;  %v5184_v44 = vadd.f32 %v12784_v6, %v12777_v38  ;;  %v7977_v33 = vpop.eup %7976  ;;  %7990 = vrcp.f32 %v6398_v13 }
 0x600   : > { %v4421_v23 = vmul.f32 %v15913_v63, %v11229_v47  ;;  %v12901_v16 = vmul.f32 %v15916_v24, %v11349_v15  ;;  %v5193_v63 = vadd.f32 %v4397_v50, %v4396_v40  ;;  %v5202_v28 = vadd.f32 %v4401_v4, %v4400_v60 }
 0x601   : > { %v12906_v11 = vmul.f32 %v15918_v17, %v11548_v58  ;;  %v5211_v12 = vadd.f32 %v4405_v7, %v4404_v37  ;;  %v6399_v1 = vadd.f32 1.0, %v7977_v33  ;;  %v5185_v41 = vadd.f32 %v5184_v44, %v12789_v39  ;;  %v7979_v3 = vpop.eup %7978  ;;  %v12916_v4 = vpop.permute.xlu0 %2471 }
 0x602   : > { %v5220_v24 = vadd.f32 %v4409_v57, %v4408_v56  ;;  %v5229_v10 = vadd.f32 %v4413_v45, %v4412_v27  ;;  %v5194_v20 = vadd.f32 %v5193_v63, %v4398_v46  ;;  %v5203_v55 = vadd.f32 %v5202_v28, %v4402_v51  ;;  %v7981_v39 = vpop.eup %7980 }
 0x603   : > { %v5212_v34 = vadd.f32 %v5211_v12, %v4406_v62  ;;  %v5238_v17 = vadd.f32 %v4417_v52, %v4416_v14  ;;  %7992 = vrcp.f32 %v6399_v1  ;;  %v5186_v9 = vadd.f32 %v5185_v41, %v12800_v30  ;;  %v12918_v62 = vpop.permute.xlu1 %2505  ;;  %v7983_v56 = vpop.eup %7982 }
 0x604   : > { %v5221_v38 = vadd.f32 %v5220_v24, %v4410_v8  ;;  %v5230_v6 = vadd.f32 %v5229_v10, %v4414_v43  ;;  %v5195_v13 = vadd.f32 %v5194_v20, %v12819_v22  ;;  %v5204_v40 = vadd.f32 %v5203_v55, %v12833_v49  ;;  %v7985_v20 = vpop.eup %7984 }
 0x605   : > { %v5213_v50 = vadd.f32 %v5212_v34, %v4407_v61  ;;  %v5239_v60 = vadd.f32 %v5238_v17, %v4418_v18  ;;  %v5187_v37 = vrot.slane %v5186_v9, 4  ;;  %v5247_v7 = vadd.f32 %v4421_v23, %v4420_v5  ;;  %v12924_v33 = vpop.permute.xlu0 %2566 }
 0x606   : > { %v5222_v46 = vadd.f32 %v5221_v38, %v4411_v25  ;;  %v5231_v51 = vadd.f32 %v5230_v6, %v4415_v54  ;;  %v6922_v30 = vsel %vm6873_vm1, %v7981_v39, %v7979_v3  ;;  %v5196_v10 = vrot.slane %v5195_v13, 4 }
 0x607   : > { %v5205_v57 = vrot.slane %v5204_v40, 4  ;;  %v5214_v8 = vrot.slane %v5213_v50, 4  ;;  %v6400_v22 = vadd.f32 1.0, %v7983_v56  ;;  %v5188_v55 = vadd.f32 %v5187_v37, %v5186_v9  ;;  %v7987_v27 = vpop.eup %7986  ;;  %v12927_v24 = vpop.permute.xlu1 %2600 }
 0x608   : > { %v5223_v49 = vrot.slane %v5222_v46, 4  ;;  %v5232_v61 = vrot.slane %v5231_v51, 4  ;;  %v6923_v45 = vsel %vm6875_vm2, %v7985_v20, %v6922_v30  ;;  %v5197_v43 = vadd.f32 %v5196_v10, %v5195_v13  ;;  %v7989_v14 = vpop.eup %7988 }
 0x609   : > { %v5206_v25 = vadd.f32 %v5205_v57, %v5204_v40  ;;  %v5215_v54 = vadd.f32 %v5214_v8, %v5213_v50  ;;  %7994 = vrcp.f32 %v6400_v22  ;;  %v6924_v52 = vsel %vm6877_vm3, %v7987_v27, %v6923_v45  ;;  %v7991_v23 = vpop.eup %7990 }
 0x60a   : > { %v5189_v18 = vrot.slane %v5188_v55, 2  ;;  %v5224_v5 = vadd.f32 %v5223_v49, %v5222_v46  ;;  %v6925_v1 = vsel %vm6879_vm4, %v7989_v14, %v6924_v52  ;;  %v5198_v44 = vrot.slane %v5197_v43, 2 }
 0x60b   : > { %v5207_v3 = vrot.slane %v5206_v25, 2  ;;  %v5216_v9 = vrot.slane %v5215_v54, 2  ;;  %v6926_v63 = vsel %vm6881_vm5, %v7991_v23, %v6925_v1  ;;  %v5233_v41 = vadd.f32 %v5232_v61, %v5231_v51 }
 0x60c   : > { %v5190_v28 = vadd.f32 %v5189_v18, %v5188_v55  ;;  %v5225_v12 = vrot.slane %v5224_v5, 2  ;;  %v5199_v34 = vadd.f32 %v5198_v44, %v5197_v43  ;;  %v5240_v6 = vadd.f32 %v5239_v60, %v12888_v19  ;;  %v12933_v60 = vpop.permute.xlu0 %2630 }
 0x60d   : > { %v5208_v17 = vadd.f32 %v5207_v3, %v5206_v25  ;;  %v5217_v38 = vadd.f32 %v5216_v9, %v5215_v54  ;;  %v7993_v13 = vpop.eup %7992  ;;  %v5234_v39 = vrot.slane %v5233_v41, 2  ;;  %v5248_v37 = vadd.f32 %v5247_v7, %v12901_v16  ;;  %v12936_v7 = vpop.permute.xlu1 %2634 }
 0x60e   : > { %v5191_v40 = vrot.slane %v5190_v28, 1  ;;  %v5226_v50 = vadd.f32 %v5225_v12, %v5224_v5  ;;  %v6927_v46 = vsel %vm6883_vm6, %v7993_v13, %v6926_v63  ;;  %v5200_v56 = vrot.slane %v5199_v34, 1 }
 0x60f   : > { %v5209_v30 = vrot.slane %v5208_v17, 1  ;;  %v5218_v10 = vrot.slane %v5217_v38, 1  ;;  %v5235_v8 = vadd.f32 %v5234_v39, %v5233_v41  ;;  %v5241_v20 = vrot.slane %v5240_v6, 4 }
 0x610   : > { %v5192_v57 = vadd.f32 %v5191_v40, %v5190_v28  ;;  %v5227_v51 = vrot.slane %v5226_v50, 1  ;;  %v5201_v22 = vadd.f32 %v5200_v56, %v5199_v34  ;;  %v5249_v19 = vadd.f32 %v5248_v37, %v12906_v11  ;;  %v12948_v13 = vpop.permute.xlu0 %2680 }
 0x611   : > { %v5210_v55 = vadd.f32 %v5209_v30, %v5208_v17  ;;  %v5219_v49 = vadd.f32 %v5218_v10, %v5217_v38  ;;  %v5236_v27 = vrot.slane %v5235_v8, 1  ;;  %v5242_v45 = vadd.f32 %v5241_v20, %v5240_v6  ;;  %v15920_v17 = vld [vmem:[#allocation10_spill] sm:$0xff]  ;;  %v15921_v38 = vld [vmem:[#allocation213_spill] sm:$0xff]  ;;  %v12952_v37 = vpop.permute.xlu1 %2699  ;;  %v15922_v30 = vld [vmem:[#allocation7_spill] sm:$0xff] }
 0x612   : > { %v5228_v61 = vadd.f32 %v5227_v51, %v5226_v50  ;;  %v5889_v16 = vadd.f32 %v15364_v59, %v5192_v57  ;;  %v5250_v43 = vrot.slane %v5249_v19, 4  ;;  %v5890_v25 = vadd.f32 %v15364_v59, %v5201_v22  ;;  %v15923_v10 = vld [vmem:[#allocation285_spill] sm:$0xff] }
 0x613   : > { %v5891_v54 = vadd.f32 %v15364_v59, %v5210_v55  ;;  %v5892_v14 = vadd.f32 %v15364_v59, %v5219_v49  ;;  %v7995_v52 = vpop.eup %7994  ;;  %v5237_v18 = vadd.f32 %v5236_v27, %v5235_v8  ;;  %v5243_v5 = vrot.slane %v5242_v45, 2  ;;  %v15925_v49 = vld [vmem:[#allocation332_spill] sm:$0xff] }
 0x614   : > { %v5893_v11 = vadd.f32 %v15364_v59, %v5228_v61  ;;  %v7370_v23 = vmul.f32 -1.442695, %v5889_v16  ;;  %v6928_v1 = vsel %vm6885_vm7, %v7995_v52, %v6927_v46  ;;  %v5251_v44 = vadd.f32 %v5250_v43, %v5249_v19  ;;  %v15926_v19 = vld [vmem:[#allocation5_spill] sm:$0xff] }
 0x615   : > { %v7371_v3 = vmul.f32 -1.442695, %v5890_v25  ;;  %v7372_v9 = vmul.f32 -1.442695, %v5891_v54  ;;  %7595 = vmatprep.mubr.f32.mxu0 %v6928_v1  ;;  %v5244_v63 = vadd.f32 %v5243_v5, %v5242_v45  ;;  %v5894_v28 = vadd.f32 %v15364_v59, %v5237_v18  ;;  %v15927_v54 = vld [vmem:[#allocation343_spill] sm:$0xff]  ;;  %v12975_v18 = vpop.permute.xlu0 %2733  ;;  %v15928_v1 = vld [vmem:[#allocation6_spill] sm:$0xff] }
 0x616   : > { %7996 = vpow2.f32 %v7370_v23  ;;  %v7373_v12 = vmul.f32 -1.442695, %v5892_v14  ;;  %v5252_v41 = vrot.slane %v5251_v44, 2  ;;  %v7374_v34 = vmul.f32 -1.442695, %v5893_v11 }
 0x617   : > { %7998 = vpow2.f32 %v7371_v3  ;;  %v12946_v6 = vrot.slane %v15921_v38, %v15920_v17  ;;  %v5245_v40 = vrot.slane %v5244_v63, 1  ;;  %v7375_v50 = vmul.f32 -1.442695, %v5894_v28  ;;  %v12982_v3 = vpop.permute.xlu1 %2763 }
 0x618   : > { %8000 = vpow2.f32 %v7372_v9  ;;  %v3572_v39 = vadd.f32 %v12657_v29, %v8359_v32  ;;  %v5253_v46 = vadd.f32 %v5252_v41, %v5251_v44  ;;  %v3573_v56 = vadd.f32 %v8357_v31, %v12668_v36  ;;  %v15924_v29 = vld [vmem:[#allocation330_spill] sm:$0xff]  ;;  %v15929_v44 = vld [vmem:[#allocation284_spill] sm:$0xff] }
 0x619   : > { %8002 = vpow2.f32 %v7373_v12  ;;  %2801 = vbcast.lane.b32.xlu0 %v12946_v6, 256  ;;  %2805 = vbcast.lane.b32.xlu1 %v12946_v6, 264  ;;  %v12960_v57 = vrot.slane %v15923_v10, %v15922_v30  ;;  %v5246_v51 = vadd.f32 %v5245_v40, %v5244_v63  ;;  %v3494_v20 = vadd.f32 %v15924_v29, %v8364_v35  ;;  %v15930_v41 = vld [vmem:[#allocation340_spill] sm:$0xff] }
 0x61a   : > { %8004 = vpow2.f32 %v7374_v34  ;;  %v4084_v8 = vmax.f32 %v3572_v39, 0.0  ;;  %v5254_v22 = vrot.slane %v5253_v46, 1  ;;  %v4085_v55 = vmax.f32 %v3573_v56, 0.0  ;;  %v15932_v56 = vld [vmem:[#allocation339_spill] sm:$0xff] }
 0x61b   : > { %8006 = vpow2.f32 %v7375_v50  ;;  %v3515_v61 = vadd.f32 %v15926_v19, %v15925_v49  ;;  %v5895_v27 = vadd.f32 %v15364_v59, %v5246_v51  ;;  %v4006_v45 = vmax.f32 %v3494_v20, 0.0 }
 0x61c   : > { %v4596_v36 = vmul.f32 %v4084_v8, %v11187_v0  ;;  %v3522_v16 = vadd.f32 %v12737_v42, %v8364_v35  ;;  %v5255_v43 = vadd.f32 %v5254_v22, %v5253_v46  ;;  %v4597_v25 = vmul.f32 %v4085_v55, %v11229_v47  ;;  %v15933_v8 = vld [vmem:[#allocation344_spill] sm:$0xff] }
 0x61d   : > { %2866 = vbcast.lane.b32.xlu0 %v15927_v54, 272  ;;  %2896 = vbcast.lane.b32.xlu1 %v12960_v57, 256  ;;  %v4027_v14 = vmax.f32 %v3515_v61, 0.0  ;;  %v3531_v52 = vadd.f32 %v15926_v19, %v12740_v2  ;;  %v7376_v5 = vmul.f32 -1.442695, %v5895_v27  ;;  %v4518_v11 = vmul.f32 %v4006_v45, %v11349_v15  ;;  %v15934_v55 = vld [vmem:[#allocation272_spill] sm:$0xff] }
 0x61e   : > { %v4034_v23 = vmax.f32 %v3522_v16, 0.0  ;;  %v12980_v42 = vrot.slane %v15929_v44, %v15928_v1  ;;  %v5896_v9 = vadd.f32 %v15364_v59, %v5255_v43  ;;  %v12985_v63 = vadd.f32 %v4597_v25, %v4596_v36  ;;  %v15936_v16 = vld [vmem:[#allocation271_spill] sm:$0xff]  ;;  %v13004_v25 = vpop.permute.xlu0 %2767 }
 0x61f   : > { %v4539_v28 = vmul.f32 %v4027_v14, %v11548_v58  ;;  %v4043_v12 = vmax.f32 %v3531_v52, 0.0  ;;  %8008 = vpow2.f32 %v7376_v5  ;;  %v12989_v34 = vadd.f32 %v15930_v41, %v4518_v11  ;;  %v15938_v41 = vld [vmem:[#allocation276_spill] sm:$0xff] }
 0x620   : > { %v7997_v2 = vpop.eup %7996  ;;  %v4546_v38 = vmul.f32 %v4034_v23, %v11349_v15  ;;  %v3535_v40 = vadd.f32 %v15926_v19, %v12743_v48  ;;  %v7377_v39 = vmul.f32 -1.442695, %v5896_v9  ;;  %v3542_v48 = vadd.f32 %v12746_v26, %v8364_v35  ;;  %v13007_v23 = vpop.permute.xlu1 %2858 }
 0x621   : > { %15931 = vst [vmem:[#allocation229_spill] sm:$0xff] %v12989_v34  ;;  %v7999_v50 = vpop.eup %7998  ;;  %v6401_v46 = vadd.f32 1.0, %v7997_v2  ;;  %v5510_v51 = vadd.f32 %v15932_v56, %v4539_v28  ;;  %2900 = vbcast.lane.b32.xlu0 %v12960_v57, 264  ;;  %2980 = vbcast.lane.b32.xlu1 %v15933_v8, 272  ;;  %v4555_v29 = vmul.f32 %v4043_v12, %v11548_v58  ;;  %v15937_v12 = vld [vmem:[#allocation345_spill] sm:$0xff] }
 0x622   : > { %v8001_v20 = vpop.eup %8000  ;;  %v6402_v22 = vadd.f32 1.0, %v7999_v50  ;;  %v12999_v49 = vadd.f32 %v15934_v55, %v4546_v38  ;;  %v4047_v61 = vmax.f32 %v3535_v40, 0.0  ;;  %8010 = vpow2.f32 %v7377_v39 }
 0x623   : > { %v8003_v27 = vpop.eup %8002  ;;  %v6403_v36 = vadd.f32 1.0, %v8001_v20  ;;  %v5511_v45 = vrot.slane %v5510_v51, 4  ;;  %v5546_v43 = vadd.f32 %v15936_v16, %v4555_v29  ;;  %8012 = vrcp.f32 %v6401_v46  ;;  %v15942_v16 = vld [vmem:[#allocation279_spill] sm:$0xff] }
 0x624   : > { %15935 = vst [vmem:[#allocation226_spill] sm:$0xff] %v12999_v49  ;;  %v8005_v14 = vpop.eup %8004  ;;  %v6404_v52 = vadd.f32 1.0, %v8003_v27  ;;  %v4559_v5 = vmul.f32 %v4047_v61, %v11548_v58  ;;  %v4054_v11 = vmax.f32 %v3542_v48, 0.0  ;;  %8014 = vrcp.f32 %v6402_v22  ;;  %v15941_v61 = vld [vmem:[#allocation322_spill] sm:$0xff]  ;;  %v13022_v27 = vpop.permute.xlu0 %2862 }
 0x625   : > { %v8007_v1 = vpop.eup %8006  ;;  %v6405_v9 = vadd.f32 1.0, %v8005_v14  ;;  %v5512_v26 = vadd.f32 %v5511_v45, %v5510_v51  ;;  %v5547_v28 = vrot.slane %v5546_v43, 4  ;;  %2999 = vbcast.lane.b32.xlu0 %v15937_v12, 272  ;;  %3029 = vbcast.lane.b32.xlu1 %v12980_v42, 256  ;;  %8016 = vrcp.f32 %v6403_v36  ;;  %v15939_v51 = vld [vmem:[#allocation275_spill] sm:$0xff] }
 0x626   : > { %v6406_v2 = vadd.f32 1.0, %v8007_v1  ;;  %v5555_v38 = vadd.f32 %v15938_v41, %v4559_v5  ;;  %v4566_v40 = vmul.f32 %v4054_v11, %v11349_v15  ;;  %8018 = vrcp.f32 %v6404_v52  ;;  %v15943_v14 = vld [vmem:[#allocation335_spill] sm:$0xff] }
 0x627   : > { %v5513_v50 = vrot.slane %v5512_v26, 2  ;;  %v5548_v39 = vadd.f32 %v5547_v28, %v5546_v43  ;;  %v3548_v46 = vadd.f32 %v12752_v53, %v8359_v32  ;;  %8020 = vrcp.f32 %v6405_v9 }
 0x628   : > { %v5556_v56 = vrot.slane %v5555_v38, 4  ;;  %v13016_v29 = vadd.f32 %v15939_v51, %v4566_v40  ;;  %v3549_v20 = vadd.f32 %v8357_v31, %v12755_v21  ;;  %8022 = vrcp.f32 %v6406_v2  ;;  %v13028_v21 = vpop.permute.xlu1 %2972  ;;  %v15946_v51 = vld [vmem:[#allocation338_spill] sm:$0xff] }
 0x629   : > { %v5514_v22 = vadd.f32 %v5513_v50, %v5512_v26  ;;  %v5549_v55 = vrot.slane %v5548_v39, 2  ;;  %3033 = vbcast.lane.b32.xlu0 %v12980_v42, 264  ;;  %2623 = vbcast.lane.b32.xlu1 %v15941_v61, 280  ;;  %v4060_v48 = vmax.f32 %v3548_v46, 0.0  ;;  %v8009_v36 = vpop.eup %8008  ;;  %v3570_v43 = vadd.f32 %v15942_v16, %v8364_v35  ;;  %v15944_v46 = vld [vmem:[#allocation326_spill] sm:$0xff]  ;;  %v15948_v16 = vld [vmem:[#allocation20_spill] sm:$0xff] }
 0x62a   : > { %15940 = vst [vmem:[#allocation233_spill] sm:$0xff] %v13016_v29  ;;  %v5557_v53 = vadd.f32 %v5556_v56, %v5555_v38  ;;  %v4061_v45 = vmax.f32 %v3549_v20, 0.0  ;;  %v3576_v52 = vadd.f32 %v15943_v14, %v8359_v32  ;;  %v6407_v5 = vadd.f32 1.0, %v8009_v36  ;;  %v15945_v56 = vld [vmem:[#allocation323_spill] sm:$0xff] }
 0x62b   : > { %v5515_v11 = vrot.slane %v5514_v22, 1  ;;  %v5550_v1 = vadd.f32 %v5549_v55, %v5548_v39  ;;  %v4572_v9 = vmul.f32 %v4060_v48, %v11187_v0  ;;  %v4082_v2 = vmax.f32 %v3570_v43, 0.0  ;;  %v15961_v29 = vld [vmem:[#allocation315_spill] sm:$0xff] }
 0x62c   : > { %v5558_v26 = vrot.slane %v5557_v53, 2  ;;  %v4573_v28 = vmul.f32 %v4061_v45, %v11229_v47  ;;  %v4088_v41 = vmax.f32 %v3576_v52, 0.0  ;;  %v8011_v38 = vpop.eup %8010  ;;  %8024 = vrcp.f32 %v6407_v5  ;;  %v13041_v5 = vpop.permute.xlu0 %2976 }
 0x62d   : > { %v5516_v40 = vadd.f32 %v5515_v11, %v5514_v22  ;;  %v5551_v50 = vrot.slane %v5550_v1, 1  ;;  %2657 = vbcast.lane.b32.xlu0 %v15944_v46, 272  ;;  %2756 = vbcast.lane.b32.xlu1 %v15945_v56, 280  ;;  %v3577_v20 = vadd.f32 %v8357_v31, %v15946_v51  ;;  %v8013_v61 = vpop.eup %8012  ;;  %v6408_v39 = vadd.f32 1.0, %v8011_v38  ;;  %v15949_v38 = vld [vmem:[#allocation263_spill] sm:$0xff] }
 0x62e   : > { %v5559_v55 = vadd.f32 %v5558_v26, %v5557_v53  ;;  %v13036_v48 = vadd.f32 %v4573_v28, %v4572_v9  ;;  %v4594_v36 = vmul.f32 %v4082_v2, %v11349_v15  ;;  %v8015_v45 = vpop.eup %8014  ;;  %v6435_v43 = vadd.f32 1.0, %v15948_v16  ;;  %v13047_v9 = vpop.permute.xlu1 %2991 }
 0x62f   : > { %v5925_v22 = vadd.f32 %v15364_v59, %v5516_v40  ;;  %v5552_v14 = vadd.f32 %v5551_v50, %v5550_v1  ;;  %v4089_v52 = vmax.f32 %v3577_v20, 0.0  ;;  %v8017_v11 = vpop.eup %8016  ;;  %8026 = vrcp.f32 %v6408_v39  ;;  %v15951_v1 = vld [vmem:[#allocation327_spill] sm:$0xff]  ;;  %v15952_v50 = vld [vmem:[#allocation4_spill] sm:$0xff] }
 0x630   : > { %15947 = vst [vmem:[#allocation235_spill] sm:$0xff] %v13036_v48  ;;  %v6929_v56 = vsel %vm6873_vm1, %v8015_v45, %v8013_v61  ;;  %v5560_v51 = vrot.slane %v5559_v55, 1  ;;  %v13045_v53 = vadd.f32 %v15949_v38, %v4594_v36  ;;  %v8019_v26 = vpop.eup %8018  ;;  %v4600_v40 = vmul.f32 %v4088_v41, %v11187_v0  ;;  %v15953_v61 = vld [vmem:[#allocation24_spill] sm:$0xff]  ;;  %v15954_v45 = vld [vmem:[#allocation274_spill] sm:$0xff]  ;;  %v15955_v38 = vld [vmem:[#allocation305_spill] sm:$0xff] }
 0x631   : > { %v6930_v28 = vsel %vm6875_vm2, %v8017_v11, %v6929_v56  ;;  %v7406_v2 = vmul.f32 -1.442695, %v5925_v22  ;;  %2790 = vbcast.lane.b32.xlu0 %v15951_v1, 272  ;;  %2832 = vbcast.lane.b32.xlu1 %v15952_v50, 280  ;;  %v4601_v20 = vmul.f32 %v4089_v52, %v11229_v47  ;;  %v8021_v39 = vpop.eup %8020  ;;  %8028 = vrcp.f32 %v15953_v61  ;;  %v15956_v41 = vld [vmem:[#allocation28_spill] sm:$0xff] }
 0x632   : > { %15950 = vst [vmem:[#allocation234_spill] sm:$0xff] %v13045_v53  ;;  %v6931_v36 = vsel %vm6877_vm3, %v8019_v26, %v6930_v28  ;;  %v3592_v16 = vadd.f32 %v15954_v45, %v8359_v32  ;;  %v3593_v11 = vadd.f32 %v8357_v31, %v15955_v38  ;;  %v8023_v22 = vpop.eup %8022  ;;  %8030 = vrcp.f32 %v6435_v43  ;;  %v15958_v45 = vld [vmem:[#allocation342_spill] sm:$0xff]  ;;  %v15960_v43 = vld [vmem:[#allocation308_spill] sm:$0xff] }
 0x633   : > { %v13061_v56 = vadd.f32 1.0, %v15956_v41  ;;  %v6932_v50 = vsel %vm6879_vm4, %v8021_v39, %v6931_v36  ;;  %v13064_v53 = vadd.f32 %v4601_v20, %v4600_v40  ;;  %v5561_v61 = vadd.f32 %v5560_v51, %v5559_v55  ;;  %v15959_v38 = vld [vmem:[#allocation346_spill] sm:$0xff]  ;;  %v13074_v40 = vpop.permute.xlu0 %2995  ;;  %v15962_v51 = vld [vmem:[#allocation8_spill] sm:$0xff] }
 0x634   : > { %v6933_v52 = vsel %vm6881_vm5, %v8023_v22, %v6932_v50  ;;  %v4104_v48 = vmax.f32 %v3592_v16, 0.0  ;;  %v4105_v26 = vmax.f32 %v3593_v11, 0.0  ;;  %8032 = vpow2.f32 %v7406_v2  ;;  %v13085_v11 = vpop.permute.xlu1 %2357 }
 0x635   : > { %15957 = vst [vmem:[#allocation237_spill] sm:$0xff] %v13064_v53  ;;  %v5929_v28 = vadd.f32 %v15364_v59, %v5552_v14  ;;  %2851 = vbcast.lane.b32.xlu0 %v15958_v45, 280  ;;  %2885 = vbcast.lane.b32.xlu1 %v15959_v38, 272  ;;  %v3596_v41 = vadd.f32 %v15960_v43, %v8359_v32  ;;  %v15963_v14 = vld [vmem:[#allocation268_spill] sm:$0xff] }
 0x636   : > { %v3597_v39 = vadd.f32 %v8357_v31, %v15961_v29  ;;  %v4616_v20 = vmul.f32 %v4104_v48, %v11187_v0  ;;  %v4617_v55 = vmul.f32 %v4105_v26, %v11229_v47  ;;  %v13080_v2 = vrot.slane %v15923_v10, %v15962_v51  ;;  %v8025_v22 = vpop.eup %8024  ;;  %v15965_v29 = vld [vmem:[#allocation264_spill] sm:$0xff]  ;;  %v15967_v48 = vld [vmem:[#allocation22_spill] sm:$0xff] }
 0x637   : > { %v15964_v36 = vmax.f32 %v15963_v14, 0.0  ;;  %v4108_v50 = vmax.f32 %v3596_v41, 0.0  ;;  %v15966_v43 = vmax.f32 %v15965_v29, 0.0  ;;  %v15968_v26 = vmax.f32 %v15967_v48, 0.0  ;;  %v15970_v14 = vld [vmem:[#allocation320_spill] sm:$0xff] }
 0x638   : > { %v4109_v45 = vmax.f32 %v3597_v39, 0.0  ;;  %v6934_v34 = vsel %vm6883_vm6, %v8025_v22, %v6933_v52  ;;  %v5930_v38 = vadd.f32 %v15364_v59, %v5561_v61  ;;  %v13095_v1 = vadd.f32 %v4617_v55, %v4616_v20 }
 0x639   : > { %v4512_v16 = vmul.f32 %v15964_v36, %v11187_v0  ;;  %v4513_v53 = vmul.f32 %v15966_v43, %v11229_v47  ;;  %v4514_v49 = vmul.f32 %v15968_v26, %v11349_v15  ;;  %v3491_v36 = vadd.f32 %v15926_v19, %v15970_v14  ;;  %2915 = vbcast.lane.b32.xlu0 %v13080_v2, 256  ;;  %v8027_v43 = vpop.eup %8026  ;;  %v13123_v26 = vpop.permute.xlu1 %2585 }
 0x63a   : > { %15969 = vst [vmem:[#allocation239_spill] sm:$0xff] %v13095_v1  ;;  %v7410_v17 = vmul.f32 -1.442695, %v5929_v28  ;;  %v4620_v41 = vmul.f32 %v4108_v50, %v11187_v0  ;;  %2919 = vbcast.lane.b32.xlu1 %v13080_v2, 264  ;;  %v4621_v39 = vmul.f32 %v4109_v45, %v11229_v47  ;;  %v13105_v52 = vrot.slane %v15929_v44, %v15922_v30  ;;  %v15977_v1 = vld [vmem:[#allocation32_spill] sm:$0xff] }
 0x63b   : > { %v5454_v29 = vadd.f32 %v4513_v53, %v4512_v16  ;;  %v4003_v48 = vmax.f32 %v3491_v36, 0.0  ;;  %v3519_v61 = vadd.f32 %v15926_v19, %v12916_v4  ;;  %v3526_v28 = vadd.f32 %v12918_v62, %v8364_v35  ;;  %v13116_v16 = vpop.permute.xlu0 %2490  ;;  %v13118_v50 = vpop.eup %8028 }
 0x63c   : > { %v6935_v20 = vsel %vm6885_vm7, %v8027_v43, %v6934_v34  ;;  %v13112_v55 = vadd.f32 %v4621_v39, %v4620_v41  ;;  %v3539_v53 = vadd.f32 %v15926_v19, %v12924_v33  ;;  %15972 = vst [vmem:[#allocation241_spill] sm:$0xff] %v13118_v50  ;;  %v3546_v62 = vadd.f32 %v12927_v24, %v8364_v35  ;;  %v13125_v34 = vpop.eup %8030 }
 0x63d   : > { %v5455_v22 = vadd.f32 %v5454_v29, %v4514_v49  ;;  %7596 = vmatmul.mubr.f32.gmra.mrb[10].mxu0 %v6935_v20  ;;  %v4515_v30 = vmul.f32 %v4003_v48, %v11548_v58  ;;  %v4031_v45 = vmax.f32 %v3519_v61, 0.0  ;;  %v4038_v4 = vmax.f32 %v3526_v28, 0.0  ;;  %15973 = vst [vmem:[#allocation265_spill] sm:$0xff] %v13125_v34  ;;  %v15974_v49 = vld [vmem:[#allocation347_spill] sm:$0xff] }
 0x63e   : > { %15971 = vst [vmem:[#allocation238_spill] sm:$0xff] %v13112_v55  ;;  %3018 = vbcast.lane.b32.xlu0 %v15974_v49, 272  ;;  %3048 = vbcast.lane.b32.xlu1 %v13105_v52, 256  ;;  %v4051_v33 = vmax.f32 %v3539_v53, 0.0  ;;  %v3552_v14 = vadd.f32 %v12933_v60, %v8359_v32  ;;  %v3553_v36 = vadd.f32 %v8357_v31, %v12936_v7  ;;  %v7411_v39 = vmul.f32 -1.442695, %v5930_v38  ;;  %v8033_v48 = vpop.eup %8032 }
 0x63f   : > { %v3563_v41 = vadd.f32 %v15926_v19, %v12948_v13  ;;  %v5456_v24 = vadd.f32 %v5455_v22, %v4515_v30  ;;  %v4543_v29 = vmul.f32 %v4031_v45, %v11548_v58  ;;  %v4550_v43 = vmul.f32 %v4038_v4, %v11349_v15  ;;  %v15976_v7 = vld [vmem:[#allocation12_spill] sm:$0xff] }
 0x640   : > { %v4563_v61 = vmul.f32 %v4051_v33, %v11548_v58  ;;  %v4058_v28 = vmax.f32 %v3546_v62, 0.0  ;;  %v4064_v20 = vmax.f32 %v3552_v14, 0.0  ;;  %v4065_v53 = vmax.f32 %v3553_v36, 0.0  ;;  %v15979_v38 = vld [vmem:[#allocation324_spill] sm:$0xff]  ;;  %v13147_v62 = vpop.permute.xlu0 %2619  ;;  %v13151_v36 = vpop.permute.xlu1 %2649 }
 0x641   : > { %8034 = vpow2.f32 %v7410_v17  ;;  %v5457_v50 = vrot.slane %v5456_v24, 4  ;;  %v5519_v55 = vadd.f32 %v15976_v7, %v4543_v29  ;;  %v13141_v13 = vadd.f32 %v15977_v1, %v4550_v43  ;;  %v15980_v22 = vld [vmem:[#allocation36_spill] sm:$0xff]  ;;  %v15981_v29 = vld [vmem:[#allocation231_spill] sm:$0xff] }
 0x642   : > { %3052 = vbcast.lane.b32.xlu0 %v13105_v52, 264  ;;  %2642 = vbcast.lane.b32.xlu1 %v15979_v38, 280  ;;  %v5564_v30 = vadd.f32 %v15980_v22, %v4563_v61  ;;  %v4570_v45 = vmul.f32 %v4058_v28, %v11349_v15  ;;  %v4075_v4 = vmax.f32 %v3563_v41, 0.0  ;;  %8036 = vrcp.f32 %v13061_v56  ;;  %v15985_v38 = vld [vmem:[#allocation9_spill] sm:$0xff] }
 0x643   : > { %15978 = vst [vmem:[#allocation243_spill] sm:$0xff] %v13141_v13  ;;  %v5458_v17 = vadd.f32 %v5457_v50, %v5456_v24  ;;  %v5520_v33 = vrot.slane %v5519_v55, 4  ;;  %v4576_v14 = vmul.f32 %v4064_v20, %v11187_v0  ;;  %8038 = vpow2.f32 %v7411_v39  ;;  %v15983_v20 = vld [vmem:[#allocation325_spill] sm:$0xff] }
 0x644   : > { %v5565_v1 = vrot.slane %v5564_v30, 4  ;;  %v13154_v43 = vadd.f32 %v15981_v29, %v4570_v45  ;;  %v4577_v61 = vmul.f32 %v4065_v53, %v11229_v47  ;;  %v4587_v41 = vmul.f32 %v4075_v4, %v11548_v58  ;;  %v15986_v45 = vld [vmem:[#allocation270_spill] sm:$0xff] }
 0x645   : > { %v5459_v7 = vrot.slane %v5458_v17, 2  ;;  %v5521_v28 = vadd.f32 %v5520_v33, %v5519_v55  ;;  %v3567_v56 = vadd.f32 %v15926_v19, %v12952_v37  ;;  %v13160_v50 = vadd.f32 1.0, %v8033_v48 }
 0x646   : > { %15982 = vst [vmem:[#allocation11_spill] sm:$0xff] %v13154_v43  ;;  %v5566_v24 = vadd.f32 %v5565_v1, %v5564_v30  ;;  %2775 = vbcast.lane.b32.xlu0 %v15983_v20, 280  ;;  %2809 = vbcast.lane.b32.xlu1 %v12946_v6, 272  ;;  %v13164_v39 = vadd.f32 %v4577_v61, %v4576_v14  ;;  %v13177_v14 = vpop.permute.xlu0 %2653 }
 0x647   : > { %v13168_v22 = vrot.slane %v15923_v10, %v15985_v38  ;;  %v5460_v53 = vadd.f32 %v5459_v7, %v5458_v17  ;;  %v5522_v55 = vrot.slane %v5521_v28, 2  ;;  %v5618_v4 = vadd.f32 %v15986_v45, %v4587_v41  ;;  %v13180_v7 = vpop.permute.xlu1 %2718 }
 0x648   : > { %15984 = vst [vmem:[#allocation15_spill] sm:$0xff] %v13164_v39  ;;  %v4079_v33 = vmax.f32 %v3567_v56, 0.0  ;;  %v5567_v29 = vrot.slane %v5566_v24, 2  ;;  %v3574_v37 = vadd.f32 %v12975_v18, %v8364_v35  ;;  %v3580_v48 = vadd.f32 %v12982_v3, %v8359_v32  ;;  %v15987_v39 = vld [vmem:[#allocation278_spill] sm:$0xff] }
 0x649   : > { %v3581_v30 = vadd.f32 %v8357_v31, %v13004_v25  ;;  %v5461_v1 = vrot.slane %v5460_v53, 1  ;;  %v5523_v61 = vadd.f32 %v5522_v55, %v5521_v28  ;;  %v5619_v20 = vrot.slane %v5618_v4, 4 }
 0x64a   : > { %v4591_v17 = vmul.f32 %v4079_v33, %v11548_v58  ;;  %v5568_v41 = vadd.f32 %v5567_v29, %v5566_v24  ;;  %2870 = vbcast.lane.b32.xlu0 %v15927_v54, 280  ;;  %2904 = vbcast.lane.b32.xlu1 %v12960_v57, 272  ;;  %v4086_v18 = vmax.f32 %v3574_v37, 0.0  ;;  %v4092_v56 = vmax.f32 %v3580_v48, 0.0 }
 0x64b   : > { %v4093_v3 = vmax.f32 %v3581_v30, 0.0  ;;  %v8035_v45 = vpop.eup %8034  ;;  %v5462_v60 = vadd.f32 %v5461_v1, %v5460_v53  ;;  %v5524_v25 = vrot.slane %v5523_v61, 1  ;;  %v5620_v34 = vadd.f32 %v5619_v20, %v5618_v4  ;;  %v13198_v20 = vpop.permute.xlu0 %2752 }
 0x64c   : > { %v5627_v43 = vadd.f32 %v15987_v39, %v4591_v17  ;;  %v5569_v28 = vrot.slane %v5568_v41, 1  ;;  %v4598_v55 = vmul.f32 %v4086_v18, %v11349_v15  ;;  %v4604_v33 = vmul.f32 %v4092_v56, %v11187_v0  ;;  %v13188_v29 = vpop.eup %8036  ;;  %v13201_v56 = vpop.permute.xlu1 %2782 }
 0x64d   : > { %v4605_v24 = vmul.f32 %v4093_v3, %v11229_v47  ;;  %v5919_v54 = vadd.f32 %v15364_v59, %v5462_v60  ;;  %v5525_v37 = vadd.f32 %v5524_v25, %v5523_v61  ;;  %v5621_v48 = vrot.slane %v5620_v34, 2  ;;  %v8039_v13 = vpop.eup %8038 }
 0x64e   : > { %v5628_v30 = vrot.slane %v5627_v43, 4  ;;  %v6441_v53 = vadd.f32 1.0, %v8035_v45  ;;  %v5570_v1 = vadd.f32 %v5569_v28, %v5568_v41  ;;  %2934 = vbcast.lane.b32.xlu0 %v13168_v22, 256  ;;  %2938 = vbcast.lane.b32.xlu1 %v13168_v22, 264  ;;  %v13194_v39 = vadd.f32 %v12985_v63, %v4598_v55 }
 0x64f   : > { %v13196_v4 = vadd.f32 %v4605_v24, %v4604_v33  ;;  %v7400_v17 = vmul.f32 -1.442695, %v5919_v54  ;;  %v5926_v60 = vadd.f32 %v15364_v59, %v5525_v37  ;;  %v5622_v61 = vadd.f32 %v5621_v48, %v5620_v34 }
 0x650   : > { %v5629_v18 = vadd.f32 %v5628_v30, %v5627_v43  ;;  %v5931_v41 = vadd.f32 %v15364_v59, %v5570_v1  ;;  %v3600_v3 = vadd.f32 %v13007_v23, %v8359_v32  ;;  %v13208_v63 = vrot.slane %v15929_v44, %v15962_v51 }
 0x651   : > { %v3601_v45 = vadd.f32 %v8357_v31, %v13022_v27  ;;  %8040 = vpow2.f32 %v7400_v17  ;;  %v7407_v25 = vmul.f32 -1.442695, %v5926_v60  ;;  %v5623_v28 = vrot.slane %v5622_v61, 1  ;;  %v13225_v17 = vpop.permute.xlu1 %2828 }
 0x652   : > { %v5630_v55 = vrot.slane %v5629_v18, 2  ;;  %v7412_v34 = vmul.f32 -1.442695, %v5931_v41  ;;  %2984 = vbcast.lane.b32.xlu0 %v15933_v8, 280  ;;  %3003 = vbcast.lane.b32.xlu1 %v15937_v12, 280  ;;  %v4112_v43 = vmax.f32 %v3600_v3, 0.0  ;;  %v3624_v23 = vadd.f32 %v13028_v21, %v8359_v32  ;;  %v13220_v8 = vpop.permute.xlu0 %2786 }
 0x653   : > { %v4113_v33 = vmax.f32 %v3601_v45, 0.0  ;;  %8042 = vpow2.f32 %v7407_v25  ;;  %v5624_v51 = vadd.f32 %v5623_v28, %v5622_v61  ;;  %v3625_v27 = vadd.f32 %v8357_v31, %v13041_v5 }
 0x654   : > { %v5631_v24 = vadd.f32 %v5630_v55, %v5629_v18  ;;  %8044 = vpow2.f32 %v7412_v34  ;;  %v4624_v54 = vmul.f32 %v4112_v43, %v11187_v0  ;;  %v4136_v48 = vmax.f32 %v3624_v23, 0.0 }
 0x655   : > { %v4625_v37 = vmul.f32 %v4113_v33, %v11229_v47  ;;  %v5937_v12 = vadd.f32 %v15364_v59, %v5624_v51  ;;  %v4137_v1 = vmax.f32 %v3625_v27, 0.0  ;;  %v3628_v21 = vadd.f32 %v13047_v9, %v8359_v32  ;;  %v13255_v27 = vpop.permute.xlu1 %2877 }
 0x656   : > { %v5632_v30 = vrot.slane %v5631_v24, 1  ;;  %8046 = vrcp.f32 %v13160_v50  ;;  %v6442_v5 = vadd.f32 1.0, %v8039_v13  ;;  %3037 = vbcast.lane.b32.xlu0 %v12980_v42, 272  ;;  %3067 = vbcast.lane.b32.xlu1 %v13208_v63, 256  ;;  %v3629_v61 = vadd.f32 %v8357_v31, %v13074_v40  ;;  %v13249_v33 = vpop.permute.xlu0 %2847 }
 0x657   : > { %v13230_v60 = vadd.f32 %v4625_v37, %v4624_v54  ;;  %v4648_v41 = vmul.f32 %v4136_v48, %v11187_v0  ;;  %v4649_v3 = vmul.f32 %v4137_v1, %v11229_v47  ;;  %v4140_v9 = vmax.f32 %v3628_v21, 0.0 }
 0x658   : > { %v5633_v18 = vadd.f32 %v5632_v30, %v5631_v24  ;;  %8048 = vrcp.f32 %v6441_v53  ;;  %v4141_v45 = vmax.f32 %v3629_v61, 0.0  ;;  %v3495_v13 = vadd.f32 %v15926_v19, %v13085_v11  ;;  %v15991_v61 = vld [vmem:[#allocation229_spill] sm:$0xff] }
 0x659   : > { %v3523_v50 = vadd.f32 %v15926_v19, %v13116_v16  ;;  %v7418_v25 = vmul.f32 -1.442695, %v5937_v12  ;;  %v13241_v55 = vadd.f32 %v4649_v3, %v4648_v41  ;;  %v4652_v40 = vmul.f32 %v4140_v9, %v11187_v0  ;;  %v15988_v12 = vld [vmem:[#allocation10_spill] sm:$0xff] }
 0x65a   : > { %v5938_v28 = vadd.f32 %v15364_v59, %v5633_v18  ;;  %3071 = vbcast.lane.b32.xlu0 %v13208_v63, 264  ;;  %2661 = vbcast.lane.b32.xlu1 %v15944_v46, 280  ;;  %v4653_v53 = vmul.f32 %v4141_v45, %v11229_v47  ;;  %v4007_v34 = vmax.f32 %v3495_v13, 0.0  ;;  %v3543_v11 = vadd.f32 %v15926_v19, %v13123_v26  ;;  %v15992_v41 = vld [vmem:[#allocation226_spill] sm:$0xff] }
 0x65b   : > { %v4035_v43 = vmax.f32 %v3523_v50, 0.0  ;;  %v8041_v16 = vpop.eup %8040  ;;  %8050 = vrcp.f32 %v6442_v5  ;;  %v3550_v51 = vadd.f32 %v13147_v62, %v8364_v35  ;;  %v3556_v24 = vadd.f32 %v13151_v36, %v8359_v32  ;;  %v15989_v36 = vld [vmem:[#allocation327_spill] sm:$0xff]  ;;  %v15990_v5 = vld [vmem:[#allocation346_spill] sm:$0xff] }
 0x65c   : > { %v7419_v23 = vmul.f32 -1.442695, %v5938_v28  ;;  %v6431_v46 = vadd.f32 1.0, %v8041_v16  ;;  %v13257_v54 = vadd.f32 %v4653_v53, %v4652_v40  ;;  %v4519_v37 = vmul.f32 %v4007_v34, %v11548_v58  ;;  %v13279_v34 = vpop.permute.xlu0 %2881  ;;  %v15995_v16 = vld [vmem:[#allocation235_spill] sm:$0xff] }
 0x65d   : > { %v4547_v26 = vmul.f32 %v4035_v43, %v11548_v58  ;;  %v8043_v48 = vpop.eup %8042  ;;  %8052 = vpow2.f32 %v7418_v25  ;;  %v13263_v30 = vrot.slane %v15923_v10, %v15988_v12  ;;  %v4055_v1 = vmax.f32 %v3543_v11, 0.0  ;;  %v15994_v11 = vld [vmem:[#allocation233_spill] sm:$0xff] }
 0x65e   : > { %v4062_v62 = vmax.f32 %v3550_v51, 0.0  ;;  %v8045_v21 = vpop.eup %8044  ;;  %8054 = vpow2.f32 %v7419_v23  ;;  %2794 = vbcast.lane.b32.xlu0 %v15989_v36, 280  ;;  %2889 = vbcast.lane.b32.xlu1 %v15990_v5, 280  ;;  %v5465_v18 = vadd.f32 %v15991_v61, %v4519_v37  ;;  %v13271_v9 = vrot.slane %v15929_v44, %v15985_v38 }
 0x65f   : > { %v5528_v3 = vadd.f32 %v15992_v41, %v4547_v26  ;;  %8056 = vrcp.f32 %v6431_v46  ;;  %v4567_v10 = vmul.f32 %v4055_v1, %v11548_v58  ;;  %v4068_v13 = vmax.f32 %v3556_v24, 0.0  ;;  %v13287_v24 = vpop.permute.xlu1 %3010 }
 0x660   : > { %v4574_v45 = vmul.f32 %v4062_v62, %v11349_v15  ;;  %v13275_v50 = vpop.eup %8046  ;;  %v6438_v25 = vadd.f32 1.0, %v8043_v48  ;;  %v5466_v28 = vrot.slane %v5465_v18, 4  ;;  %v3557_v53 = vadd.f32 %v8357_v31, %v13177_v14 }
 0x661   : > { %15993 = vst [vmem:[#allocation19_spill] sm:$0xff] %v13275_v50  ;;  %v5529_v40 = vrot.slane %v5528_v3, 4  ;;  %v6443_v43 = vadd.f32 1.0, %v8045_v21  ;;  %v5573_v38 = vadd.f32 %v15994_v11, %v4567_v10  ;;  %v3571_v51 = vadd.f32 %v15926_v19, %v13180_v7  ;;  %v15998_v11 = vld [vmem:[#allocation234_spill] sm:$0xff] }
 0x662   : > { %v13283_v23 = vadd.f32 %v15995_v16, %v4574_v45  ;;  %v13289_v46 = vpop.eup %8048  ;;  %v5467_v37 = vadd.f32 %v5466_v28, %v5465_v18  ;;  %2923 = vbcast.lane.b32.xlu0 %v13080_v2, 272  ;;  %2953 = vbcast.lane.b32.xlu1 %v13263_v30, 256  ;;  %v4069_v26 = vmax.f32 %v3557_v53, 0.0  ;;  %v3578_v48 = vadd.f32 %v13198_v20, %v8364_v35 }
 0x663   : > { %15996 = vst [vmem:[#allocation23_spill] sm:$0xff] %v13289_v46  ;;  %v5530_v14 = vadd.f32 %v5529_v40, %v5528_v3  ;;  %v5574_v1 = vrot.slane %v5573_v38, 4  ;;  %v4580_v62 = vmul.f32 %v4068_v13, %v11187_v0  ;;  %v4083_v21 = vmax.f32 %v3571_v51, 0.0  ;;  %v3015_v40 = vpop.permute.xlu0 %3014  ;;  %v2510_v51 = vpop.permute.xlu1 %2509 }
 0x664   : > { %v3584_v7 = vadd.f32 %v13201_v56, %v8359_v32  ;;  %v5468_v36 = vrot.slane %v5467_v37, 2  ;;  %v4581_v61 = vmul.f32 %v4069_v26, %v11229_v47  ;;  %v3585_v18 = vadd.f32 %v8357_v31, %v13220_v8 }
 0x665   : > { %v5531_v5 = vrot.slane %v5530_v14, 2  ;;  %v13301_v41 = vpop.eup %8050  ;;  %v5575_v3 = vadd.f32 %v5574_v1, %v5573_v38  ;;  %v4595_v10 = vmul.f32 %v4083_v21, %v11548_v58  ;;  %v4090_v20 = vmax.f32 %v3578_v48, 0.0  ;;  %v16000_v21 = vld [vmem:[#allocation237_spill] sm:$0xff] }
 0x666   : > { %15997 = vst [vmem:[#allocation242_spill] sm:$0xff] %v13301_v41  ;;  %v4096_v45 = vmax.f32 %v3584_v7, 0.0  ;;  %8058 = vrcp.f32 %v6438_v25  ;;  %v5469_v13 = vadd.f32 %v5468_v36, %v5467_v37  ;;  %2957 = vbcast.lane.b32.xlu0 %v13263_v30, 264  ;;  %3022 = vbcast.lane.b32.xlu1 %v15974_v49, 280  ;;  %v13306_v56 = vadd.f32 %v4581_v61, %v4580_v62 }
 0x667   : > { %v5532_v28 = vadd.f32 %v5531_v5, %v5530_v14  ;;  %v8053_v53 = vpop.eup %8052  ;;  %8060 = vrcp.f32 %v6443_v43  ;;  %v5576_v8 = vrot.slane %v5575_v3, 2  ;;  %v5636_v16 = vadd.f32 %v15998_v11, %v4595_v10 }
 0x668   : > { %v4602_v38 = vmul.f32 %v4090_v20, %v11349_v15  ;;  %v8055_v26 = vpop.eup %8054  ;;  %v5470_v48 = vrot.slane %v5469_v13, 1  ;;  %v4608_v37 = vmul.f32 %v4096_v45, %v11187_v0  ;;  %v4097_v14 = vmax.f32 %v3585_v18, 0.0 }
 0x669   : > { %v5533_v25 = vrot.slane %v5532_v28, 1  ;;  %v13311_v1 = vpop.eup %8056  ;;  %v5577_v49 = vadd.f32 %v5576_v8, %v5575_v3  ;;  %v5637_v62 = vrot.slane %v5636_v16, 4  ;;  %v3594_v43 = vadd.f32 %v13225_v17, %v8364_v35 }
 0x66a   : > { %15999 = vst [vmem:[#allocation245_spill] sm:$0xff] %v13311_v1  ;;  %v13314_v7 = vadd.f32 %v16000_v21, %v4602_v38  ;;  %v6449_v36 = vadd.f32 1.0, %v8053_v53  ;;  %v5471_v5 = vadd.f32 %v5470_v48, %v5469_v13  ;;  %3056 = vbcast.lane.b32.xlu0 %v13105_v52, 272  ;;  %3086 = vbcast.lane.b32.xlu1 %v13271_v9, 256  ;;  %v16001_v21 = vld [vmem:[#allocation239_spill] sm:$0xff] }
 0x66b   : > { %v5534_v61 = vadd.f32 %v5533_v25, %v5532_v28  ;;  %v4609_v10 = vmul.f32 %v4097_v14, %v11229_v47  ;;  %v5578_v18 = vrot.slane %v5577_v49, 1  ;;  %v5638_v20 = vadd.f32 %v5637_v62, %v5636_v16  ;;  %v2605_v28 = vpop.permute.xlu0 %2604  ;;  %v2639_v16 = vpop.permute.xlu1 %2638 }
 0x66c   : > { %v4106_v45 = vmax.f32 %v3594_v43, 0.0  ;;  %v3598_v3 = vadd.f32 %v13249_v33, %v8364_v35  ;;  %v5920_v8 = vadd.f32 %v15364_v59, %v5471_v5  ;;  %v3604_v13 = vadd.f32 %v13255_v27, %v8359_v32 }
 0x66d   : > { %v5927_v11 = vadd.f32 %v15364_v59, %v5534_v61  ;;  %v13325_v17 = vadd.f32 %v4609_v10, %v4608_v37  ;;  %v5579_v53 = vadd.f32 %v5578_v18, %v5577_v49  ;;  %v5639_v38 = vrot.slane %v5638_v20, 2 }
 0x66e   : > { %v4618_v48 = vmul.f32 %v4106_v45, %v11349_v15  ;;  %v4110_v25 = vmax.f32 %v3598_v3, 0.0  ;;  %8062 = vrcp.f32 %v6449_v36  ;;  %v7401_v14 = vmul.f32 -1.442695, %v5920_v8  ;;  %3090 = vbcast.lane.b32.xlu0 %v13271_v9, 264  ;;  %2813 = vbcast.lane.b32.xlu1 %v12946_v6, 280  ;;  %v16004_v45 = vld [vmem:[#allocation238_spill] sm:$0xff] }
 0x66f   : > { %v7408_v62 = vmul.f32 -1.442695, %v5927_v11  ;;  %v3605_v33 = vadd.f32 %v8357_v31, %v13279_v34  ;;  %v5932_v37 = vadd.f32 %v15364_v59, %v5579_v53  ;;  %v5640_v27 = vadd.f32 %v5639_v38, %v5638_v20 }
 0x670   : > { %v13336_v49 = vadd.f32 %v16001_v21, %v4618_v48  ;;  %v4622_v43 = vmul.f32 %v4110_v25, %v11349_v15  ;;  %v13339_v5 = vpop.eup %8058  ;;  %8064 = vpow2.f32 %v7401_v14  ;;  %v4116_v36 = vmax.f32 %v3604_v13, 0.0  ;;  %v2772_v25 = vpop.permute.xlu1 %2771 }
 0x671   : > { %16002 = vst [vmem:[#allocation248_spill] sm:$0xff] %v13339_v5  ;;  %v4117_v61 = vmax.f32 %v3605_v33, 0.0  ;;  %v3632_v10 = vadd.f32 %v13287_v24, %v8359_v32  ;;  %v13343_v6 = vpop.eup %8060  ;;  %8066 = vpow2.f32 %v7408_v62  ;;  %v7413_v34 = vmul.f32 -1.442695, %v5932_v37  ;;  %v2738_v24 = vpop.permute.xlu0 %2737  ;;  %v16050_v5 = vld [vmem:[#allocation366_spill] sm:$0xff] }
 0x672   : > { %16003 = vst [vmem:[#allocation27_spill] sm:$0xff] %v13343_v6  ;;  %v5641_v18 = vrot.slane %v5640_v27, 1  ;;  %v13346_v20 = vadd.f32 %v16004_v45, %v4622_v43  ;;  %2908 = vbcast.lane.b32.xlu0 %v12960_v57, 280  ;;  %2942 = vbcast.lane.b32.xlu1 %v13168_v22, 272  ;;  %v4628_v3 = vmul.f32 %v4116_v36, %v11187_v0  ;;  %v6450_v14 = vadd.f32 1.0, %v8055_v26 }
 0x673   : > { %v4629_v8 = vmul.f32 %v4117_v61, %v11229_v47  ;;  %v4144_v11 = vmax.f32 %v3632_v10, 0.0  ;;  %v3633_v13 = vadd.f32 %v8357_v31, %v3015_v40  ;;  %8068 = vpow2.f32 %v7413_v34 }
 0x674   : > { %v5642_v53 = vadd.f32 %v5641_v18, %v5640_v27  ;;  %v3527_v38 = vadd.f32 %v15926_v19, %v2510_v51  ;;  %v3547_v48 = vadd.f32 %v15926_v19, %v2605_v28  ;;  %v3554_v33 = vadd.f32 %v2639_v16, %v8364_v35 }
 0x675   : > { %v13355_v62 = vadd.f32 %v4629_v8, %v4628_v3  ;;  %v4145_v57 = vmax.f32 %v3633_v13, 0.0  ;;  %v3575_v40 = vadd.f32 %v15926_v19, %v2738_v24  ;;  %v4656_v51 = vmul.f32 %v4144_v11, %v11187_v0  ;;  %v16006_v8 = vld [vmem:[#allocation243_spill] sm:$0xff] }
 0x676   : > { %v5939_v37 = vadd.f32 %v15364_v59, %v5642_v53  ;;  %v4039_v21 = vmax.f32 %v3527_v38, 0.0  ;;  %v4059_v43 = vmax.f32 %v3547_v48, 0.0  ;;  %3041 = vbcast.lane.b32.xlu0 %v12980_v42, 280  ;;  %3075 = vbcast.lane.b32.xlu1 %v13208_v63, 272  ;;  %v4066_v26 = vmax.f32 %v3554_v33, 0.0  ;;  %v16007_v13 = vld [vmem:[#allocation11_spill] sm:$0xff] }
 0x677   : > { %v4657_v28 = vmul.f32 %v4145_v57, %v11229_v47  ;;  %v3582_v27 = vadd.f32 %v2772_v25, %v8364_v35  ;;  %v4087_v10 = vmax.f32 %v3575_v40, 0.0  ;;  %v13371_v42 = vrot.slane %v15929_v44, %v15988_v12  ;;  %v16008_v44 = vld [vmem:[#allocation15_spill] sm:$0xff]  ;;  %v16010_v25 = vld [vmem:[#allocation352_spill] sm:$0xff] }
 0x678   : > { %v7420_v36 = vmul.f32 -1.442695, %v5939_v37  ;;  %v4551_v16 = vmul.f32 %v4039_v21, %v11548_v58  ;;  %v4571_v61 = vmul.f32 %v4059_v43, %v11548_v58  ;;  %v13367_v34 = vpop.eup %8062  ;;  %v4578_v45 = vmul.f32 %v4066_v26, %v11349_v15  ;;  %v16013_v26 = vld [vmem:[#allocation351_spill] sm:$0xff] }
 0x679   : > { %16005 = vst [vmem:[#allocation31_spill] sm:$0xff] %v13367_v34  ;;  %v13373_v18 = vadd.f32 %v4657_v28, %v4656_v51  ;;  %v4094_v3 = vmax.f32 %v3582_v27, 0.0  ;;  %v4599_v53 = vmul.f32 %v4087_v10, %v11548_v58  ;;  %v16011_v57 = vmax.f32 %v16010_v25, 0.0 }
 0x67a   : > { %8070 = vpow2.f32 %v7420_v36  ;;  %v5537_v11 = vadd.f32 %v16006_v8, %v4551_v16  ;;  %v5582_v24 = vadd.f32 %v16007_v13, %v4571_v61  ;;  %v8065_v38 = vpop.eup %8064  ;;  %3105 = vbcast.lane.b32.xlu0 %v13371_v42, 256  ;;  %3109 = vbcast.lane.b32.xlu1 %v13371_v42, 264  ;;  %v13382_v12 = vadd.f32 %v16008_v44, %v4578_v45  ;;  %v16015_v16 = vld [vmem:[#allocation329_spill] sm:$0xff]  ;;  %v16019_v44 = vld [vmem:[#allocation354_spill] sm:$0xff] }
 0x67b   : > { %8072 = vrcp.f32 %v6450_v14  ;;  %v4606_v48 = vmul.f32 %v4094_v3, %v11349_v15  ;;  %v13388_v33 = vmul.f32 %v16011_v57, %v11187_v0  ;;  %v8067_v37 = vpop.eup %8066  ;;  %v6432_v21 = vadd.f32 1.0, %v8065_v38 }
 0x67c   : > { %16009 = vst [vmem:[#allocation35_spill] sm:$0xff] %v13382_v12  ;;  %v5538_v43 = vrot.slane %v5537_v11, 4  ;;  %v5583_v40 = vrot.slane %v5582_v24, 4  ;;  %v5645_v14 = vadd.f32 %v13194_v39, %v4599_v53  ;;  %v6439_v51 = vadd.f32 1.0, %v8067_v37 }
 0x67d   : > { %v13392_v28 = vadd.f32 %v13196_v4, %v4606_v48  ;;  %v16014_v27 = vmax.f32 %v16013_v26, 0.0  ;;  %v16016_v61 = vmax.f32 %v16015_v16, 0.0  ;;  %v8069_v45 = vpop.eup %8068  ;;  %8074 = vrcp.f32 %v6432_v21  ;;  %v16017_v4 = vld [vmem:[#allocation328_spill] sm:$0xff]  ;;  %v16025_v26 = vld [vmem:[#allocation355_spill] sm:$0xff] }
 0x67e   : > { %v5539_v3 = vadd.f32 %v5538_v43, %v5537_v11  ;;  %v5584_v8 = vadd.f32 %v5583_v40, %v5582_v24  ;;  %v5646_v13 = vrot.slane %v5645_v14, 4  ;;  %8076 = vrcp.f32 %v6439_v51  ;;  %2927 = vbcast.lane.b32.xlu0 %v13080_v2, 280  ;;  %2961 = vbcast.lane.b32.xlu1 %v13263_v30, 272  ;;  %v16021_v24 = vld [vmem:[#allocation353_spill] sm:$0xff]  ;;  %v16023_v2 = vld [vmem:[#allocation356_spill] sm:$0xff] }
 0x67f   : > { %16012 = vst [vmem:[#allocation306_spill] sm:$0xff] %v13392_v28  ;;  %v4489_v36 = vmul.f32 %v16014_v27, %v11229_v47  ;;  %v13400_v10 = vmul.f32 %v16016_v61, %v11349_v15  ;;  %v6444_v39 = vadd.f32 1.0, %v8069_v45  ;;  %v16018_v53 = vmax.f32 %v16017_v4, 0.0  ;;  %v16027_v61 = vld [vmem:[#allocation358_spill] sm:$0xff] }
 0x680   : > { %v16020_v48 = vmax.f32 %v16019_v44, 0.0  ;;  %v5540_v57 = vrot.slane %v5539_v3, 2  ;;  %v5585_v37 = vrot.slane %v5584_v8, 2  ;;  %v5647_v11 = vadd.f32 %v5646_v13, %v5645_v14 }
 0x681   : > { %v13407_v38 = vmul.f32 %v16018_v53, %v11548_v58  ;;  %v16022_v21 = vmax.f32 %v16021_v24, 0.0  ;;  %v16024_v40 = vmax.f32 %v16023_v2, 0.0  ;;  %v16026_v27 = vmax.f32 %v16025_v26, 0.0  ;;  %v16029_v53 = vld [vmem:[#allocation357_spill] sm:$0xff]  ;;  %v16033_v26 = vld [vmem:[#allocation359_spill] sm:$0xff] }
 0x682   : > { %v4492_v25 = vmul.f32 %v16020_v48, %v11187_v0  ;;  %v16028_v45 = vmax.f32 %v16027_v61, 0.0  ;;  %v16030_v14 = vmax.f32 %v16029_v53, 0.0  ;;  %v5541_v44 = vadd.f32 %v5540_v57, %v5539_v3  ;;  %3060 = vbcast.lane.b32.xlu0 %v13105_v52, 280  ;;  %3094 = vbcast.lane.b32.xlu1 %v13271_v9, 272  ;;  %v16037_v3 = vld [vmem:[#allocation361_spill] sm:$0xff]  ;;  %v16039_v52 = vld [vmem:[#allocation363_spill] sm:$0xff] }
 0x683   : > { %v4493_v43 = vmul.f32 %v16022_v21, %v11229_v47  ;;  %v4494_v51 = vmul.f32 %v16024_v40, %v11349_v15  ;;  %v13421_v16 = vmul.f32 %v16026_v27, %v11548_v58  ;;  %v5586_v48 = vadd.f32 %v5585_v37, %v5584_v8  ;;  %v16031_v21 = vld [vmem:[#allocation360_spill] sm:$0xff] }
 0x684   : > { %v4496_v4 = vmul.f32 %v16028_v45, %v11187_v0  ;;  %v4497_v13 = vmul.f32 %v16030_v14, %v11229_v47  ;;  %v5648_v24 = vrot.slane %v5647_v11, 2  ;;  %v16032_v2 = vmax.f32 %v16031_v21, 0.0  ;;  %v16035_v45 = vld [vmem:[#allocation321_spill] sm:$0xff]  ;;  %v8071_v37 = vpop.eup %8070 }
 0x685   : > { %8078 = vrcp.f32 %v6444_v39  ;;  %v16034_v27 = vmax.f32 %v16033_v26, 0.0  ;;  %v16036_v53 = vmax.f32 %v16035_v45, 0.0  ;;  %v16038_v8 = vmax.f32 %v16037_v3, 0.0  ;;  %v13446_v41 = vpop.eup %8072  ;;  %v16042_v26 = vld [vmem:[#allocation362_spill] sm:$0xff]  ;;  %v16044_v45 = vld [vmem:[#allocation365_spill] sm:$0xff]  ;;  %v16046_v3 = vld [vmem:[#allocation364_spill] sm:$0xff] }
 0x686   : > { %v4498_v40 = vmul.f32 %v16032_v2, %v11349_v15  ;;  %v5542_v21 = vrot.slane %v5541_v44, 1  ;;  %v5587_v2 = vrot.slane %v5586_v48, 1  ;;  %v5649_v39 = vadd.f32 %v5648_v24, %v5647_v11  ;;  %16041 = vst [vmem:[#allocation348_spill] sm:$0xff] %v13446_v41  ;;  %v16048_v11 = vld [vmem:[#allocation367_spill] sm:$0xff]  ;;  %2946 = vbcast.lane.b32.xlu0 %v13168_v22, 280  ;;  %3079 = vbcast.lane.b32.xlu1 %v13208_v63, 280 }
 0x687   : > { %v4499_v61 = vmul.f32 %v16034_v27, %v11548_v58  ;;  %v4500_v14 = vmul.f32 %v16036_v53, %v11187_v0  ;;  %v4501_v57 = vmul.f32 %v16038_v8, %v11229_v47  ;;  %v16040_v34 = vmax.f32 %v16039_v52, 0.0 }
 0x688   : > { %v16043_v27 = vmax.f32 %v16042_v26, 0.0  ;;  %v16045_v53 = vmax.f32 %v16044_v45, 0.0  ;;  %v16047_v8 = vmax.f32 %v16046_v3, 0.0  ;;  %v16049_v24 = vmax.f32 %v16048_v11, 0.0  ;;  %v16052_v45 = vld [vmem:[#allocation369_spill] sm:$0xff] }
 0x689   : > { %v4502_v6 = vmul.f32 %v16040_v34, %v11349_v15  ;;  %v5543_v34 = vadd.f32 %v5542_v21, %v5541_v44  ;;  %v5588_v52 = vadd.f32 %v5587_v2, %v5586_v48  ;;  %v5650_v41 = vrot.slane %v5649_v39, 1  ;;  %v16056_v44 = vld [vmem:[#allocation371_spill] sm:$0xff]  ;;  %v16059_v2 = vld [vmem:[#allocation370_spill] sm:$0xff] }
 0x68a   : > { %v4503_v46 = vmul.f32 %v16043_v27, %v11548_v58  ;;  %v4504_v1 = vmul.f32 %v16045_v53, %v11187_v0  ;;  %v4505_v28 = vmul.f32 %v16047_v8, %v11229_v47  ;;  %v4506_v12 = vmul.f32 %v16049_v24, %v11349_v15  ;;  %v16054_v8 = vld [vmem:[#allocation368_spill] sm:$0xff]  ;;  %3113 = vbcast.lane.b32.xlu0 %v13371_v42, 272 }
 0x68b   : > { %v16051_v26 = vmax.f32 %v16050_v5, 0.0  ;;  %v6451_v50 = vadd.f32 1.0, %v8071_v37  ;;  %v16053_v53 = vmax.f32 %v16052_v45, 0.0  ;;  %v16055_v11 = vmax.f32 %v16054_v8, 0.0  ;;  %v13476_v5 = vpop.eup %8074  ;;  %v7600_v8 = vpop.f32.mrb[16].mxu1  ;;  %2965 = vbcast.lane.b32.xlu1 %v13263_v30, 280 }
 0x68c   : > { %v16057_v48 = vmax.f32 %v16056_v44, 0.0  ;;  %16058 = vst [vmem:[#allocation307_spill] sm:$0xff] %v13476_v5  ;;  %v5928_v37 = vadd.f32 %v15364_v59, %v5543_v34  ;;  %v5933_v22 = vadd.f32 %v15364_v59, %v5588_v52  ;;  %v5651_v63 = vadd.f32 %v5650_v41, %v5649_v39  ;;  %7162 = vst.msk [vmem:[%s13489_s18 + $0x48] sm:$0xff] %vm371_vm0, %v7600_v8 }
 0x68d   : > { %v4507_v27 = vmul.f32 %v16051_v26, %v11548_v58  ;;  %v4508_v3 = vmul.f32 %v16053_v53, %v11187_v0  ;;  %v4509_v24 = vmul.f32 %v16055_v11, %v11229_v47  ;;  %v16060_v26 = vmax.f32 %v16059_v2, 0.0  ;;  %v7588_v53 = vpop.f32.mrb[4].mxu0  ;;  %v13491_v11 = vpop.eup %8076 }
 0x68e   : > { %v13474_v21 = vmul.f32 %v16057_v48, %v11349_v15  ;;  %v5400_v34 = vadd.f32 %v4489_v36, %v13388_v33  ;;  %v5409_v52 = vadd.f32 %v4493_v43, %v4492_v25  ;;  %v5418_v41 = vadd.f32 %v4497_v13, %v4496_v4  ;;  %7154 = vst.msk [vmem:[%s13489_s18 + $0x8] sm:$0xff] %vm371_vm0, %v7588_v53  ;;  %v7074_v13 = vpop.f32.mrb[5].mxu0 }
 0x68f   : > { %v13483_v45 = vmul.f32 %v16060_v26, %v11548_v58  ;;  %v5427_v39 = vadd.f32 %v4501_v57, %v4500_v14  ;;  %v7409_v44 = vmul.f32 -1.442695, %v5928_v37  ;;  %v7414_v48 = vmul.f32 -1.442695, %v5933_v22  ;;  %v7114_v14 = vpop.f32.mrb[17].mxu1  ;;  %v13502_v57 = vpop.eup %8078  ;;  %7153 = vst.msk [vmem:[%s13489_s18] sm:$0xff] %vm371_vm0, %v7074_v13 }
 0x690   : > { %v5940_v2 = vadd.f32 %v15364_v59, %v5651_v63  ;;  %v5436_v26 = vadd.f32 %v4505_v28, %v4504_v1  ;;  %8080 = vrcp.f32 %v6451_v50  ;;  %v5401_v5 = vadd.f32 %v5400_v34, %v13400_v10  ;;  %v2802_v50 = vpop.permute.xlu0 %2801  ;;  %v2806_v1 = vpop.permute.xlu1 %2805  ;;  %7161 = vst.msk [vmem:[%s13489_s18 + $0x40] sm:$0xff] %vm371_vm0, %v7114_v14  ;;  %3098 = vbcast.lane.b32.xlu0 %v13271_v9, 280 }
 0x691   : > { %v5410_v33 = vadd.f32 %v5409_v52, %v4494_v51  ;;  %v5419_v36 = vadd.f32 %v5418_v41, %v4498_v40  ;;  %8082 = vpow2.f32 %v7409_v44  ;;  %v5428_v43 = vadd.f32 %v5427_v39, %v4502_v6  ;;  %v7591_v40 = vpop.f32.mrb[6].mxu0  ;;  %3117 = vbcast.lane.b32.xlu1 %v13371_v42, 280 }
 0x692   : > { %v7421_v25 = vmul.f32 -1.442695, %v5940_v2  ;;  %v5437_v4 = vadd.f32 %v5436_v26, %v4506_v12  ;;  %8084 = vpow2.f32 %v7414_v48  ;;  %v5402_v28 = vadd.f32 %v5401_v5, %v13407_v38  ;;  %7156 = vst.msk [vmem:[%s13489_s18 + $0x18] sm:$0xff] %vm371_vm0, %v7591_v40  ;;  %v7084_v8 = vpop.f32.mrb[7].mxu0 }
 0x693   : > { %v5411_v30 = vadd.f32 %v5410_v33, %v13421_v16  ;;  %v5420_v10 = vadd.f32 %v5419_v36, %v4499_v61  ;;  %v3588_v6 = vadd.f32 %v2802_v50, %v8359_v32  ;;  %v3589_v12 = vadd.f32 %v8357_v31, %v2806_v1  ;;  %7155 = vst.msk [vmem:[%s13489_s18 + $0x10] sm:$0xff] %vm371_vm0, %v7084_v8 }
 0x694   : > { %8086 = vpow2.f32 %v7421_v25  ;;  %v5429_v51 = vadd.f32 %v5428_v43, %v4503_v46  ;;  %v5403_v38 = vrot.slane %v5402_v28, 4  ;;  %v5438_v61 = vadd.f32 %v5437_v4, %v4507_v27  ;;  %v2867_v34 = vpop.permute.xlu0 %2866  ;;  %v2897_v52 = vpop.permute.xlu1 %2896 }
 0x695   : > { %v5412_v5 = vrot.slane %v5411_v30, 4  ;;  %v5421_v16 = vrot.slane %v5420_v10, 4  ;;  %v4100_v37 = vmax.f32 %v3588_v6, 0.0  ;;  %v4101_v22 = vmax.f32 %v3589_v12, 0.0 }
 0x696   : > { %v5430_v63 = vrot.slane %v5429_v51, 4  ;;  %v5445_v53 = vadd.f32 %v4509_v24, %v4508_v3  ;;  %v5404_v46 = vadd.f32 %v5403_v38, %v5402_v28  ;;  %v5439_v9 = vrot.slane %v5438_v61, 4 }
 0x697   : > { %v5413_v41 = vadd.f32 %v5412_v5, %v5411_v30  ;;  %v5422_v39 = vadd.f32 %v5421_v16, %v5420_v10  ;;  %v4612_v42 = vmul.f32 %v4100_v37, %v11187_v0  ;;  %v4613_v44 = vmul.f32 %v4101_v22, %v11229_v47 }
 0x698   : > { %v3602_v27 = vadd.f32 %v2867_v34, %v8364_v35  ;;  %v3608_v48 = vadd.f32 %v2897_v52, %v8359_v32  ;;  %v5405_v2 = vrot.slane %v5404_v46, 2  ;;  %v5431_v24 = vadd.f32 %v5430_v63, %v5429_v51  ;;  %v2901_v28 = vpop.permute.xlu0 %2900  ;;  %v2981_v30 = vpop.permute.xlu1 %2980 }
 0x699   : > { %v5414_v26 = vrot.slane %v5413_v41, 2  ;;  %v5423_v3 = vrot.slane %v5422_v39, 2  ;;  %v13522_v33 = vadd.f32 %v4613_v44, %v4612_v42  ;;  %v5440_v43 = vadd.f32 %v5439_v9, %v5438_v61 }
 0x69a   : > { %v4114_v36 = vmax.f32 %v3602_v27, 0.0  ;;  %v4120_v25 = vmax.f32 %v3608_v48, 0.0  ;;  %v13524_v4 = vpop.eup %8080  ;;  %v5406_v13 = vadd.f32 %v5405_v2, %v5404_v46  ;;  %v5432_v1 = vrot.slane %v5431_v24, 2 }
 0x69b   : > { %v5415_v14 = vadd.f32 %v5414_v26, %v5413_v41  ;;  %v5424_v50 = vadd.f32 %v5423_v3, %v5422_v39  ;;  %v8083_v10 = vpop.eup %8082  ;;  %v5441_v40 = vrot.slane %v5440_v43, 2  ;;  %v5446_v51 = vadd.f32 %v5445_v53, %v13474_v21 }
 0x69c   : > { %v4626_v6 = vmul.f32 %v4114_v36, %v11349_v15  ;;  %v4632_v12 = vmul.f32 %v4120_v25, %v11187_v0  ;;  %v8085_v38 = vpop.eup %8084  ;;  %v6440_v5 = vadd.f32 1.0, %v8083_v10  ;;  %v5407_v16 = vrot.slane %v5406_v13, 1  ;;  %v3000_v9 = vpop.permute.xlu0 %2999 }
 0x69d   : > { %v5416_v61 = vrot.slane %v5415_v14, 1  ;;  %v5425_v37 = vrot.slane %v5424_v50, 1  ;;  %v6445_v63 = vadd.f32 1.0, %v8085_v38  ;;  %v5433_v34 = vadd.f32 %v5432_v1, %v5431_v24  ;;  %v3030_v42 = vpop.permute.xlu1 %3029 }
 0x69e   : > { %v8087_v22 = vpop.eup %8086  ;;  %v13530_v8 = vadd.f32 %v13230_v60, %v4626_v6  ;;  %v5442_v52 = vadd.f32 %v5441_v40, %v5440_v43  ;;  %8088 = vrcp.f32 %v6440_v5  ;;  %v5408_v41 = vadd.f32 %v5407_v16, %v5406_v13 }
 0x69f   : > { %v6452_v46 = vadd.f32 1.0, %v8087_v22  ;;  %v5417_v39 = vadd.f32 %v5416_v61, %v5415_v14  ;;  %8090 = vrcp.f32 %v6445_v63  ;;  %v5426_v21 = vadd.f32 %v5425_v37, %v5424_v50 }
 0x6a0   : > { %v5434_v53 = vrot.slane %v5433_v34, 1  ;;  %v5443_v44 = vrot.slane %v5442_v52, 1  ;;  %v5447_v27 = vadd.f32 %v5446_v51, %v13483_v45  ;;  %v5913_v48 = vadd.f32 %v15364_v59, %v5408_v41  ;;  %v3034_v14 = vpop.permute.xlu0 %3033 }
 0x6a1   : > { %8092 = vrcp.f32 %v6452_v46  ;;  %v5914_v60 = vadd.f32 %v15364_v59, %v5417_v39  ;;  %v5915_v3 = vadd.f32 %v15364_v59, %v5426_v21  ;;  %v3609_v24 = vadd.f32 %v8357_v31, %v2901_v28  ;;  %v2624_v50 = vpop.permute.xlu1 %2623 }
 0x6a2   : > { %v5435_v2 = vadd.f32 %v5434_v53, %v5433_v34  ;;  %v5444_v26 = vadd.f32 %v5443_v44, %v5442_v52  ;;  %v5448_v36 = vrot.slane %v5447_v27, 4  ;;  %v7394_v25 = vmul.f32 -1.442695, %v5913_v48 }
 0x6a3   : > { %v7395_v43 = vmul.f32 -1.442695, %v5914_v60  ;;  %v3626_v13 = vadd.f32 %v2981_v30, %v8364_v35  ;;  %v7396_v10 = vmul.f32 -1.442695, %v5915_v3  ;;  %v4121_v6 = vmax.f32 %v3609_v24, 0.0  ;;  %v16061_v24 = vld [vmem:[#allocation16_spill] sm:$0xff] }
 0x6a4   : > { %v5916_v1 = vadd.f32 %v15364_v59, %v5435_v2  ;;  %v5917_v45 = vadd.f32 %v15364_v59, %v5444_v26  ;;  %v5449_v40 = vadd.f32 %v5448_v36, %v5447_v27  ;;  %8094 = vpow2.f32 %v7394_v25  ;;  %v2658_v22 = vpop.permute.xlu0 %2657  ;;  %v16062_v36 = vld [vmem:[#allocation241_spill] sm:$0xff] }
 0x6a5   : > { %v4138_v51 = vmax.f32 %v3626_v13, 0.0  ;;  %v3630_v38 = vadd.f32 %v3000_v9, %v8364_v35  ;;  %8096 = vpow2.f32 %v7395_v43  ;;  %v4633_v16 = vmul.f32 %v4121_v6, %v11229_v47  ;;  %v2757_v63 = vpop.permute.xlu1 %2756 }
 0x6a6   : > { %v7397_v28 = vmul.f32 -1.442695, %v5916_v1  ;;  %v7398_v5 = vmul.f32 -1.442695, %v5917_v45  ;;  %v5450_v61 = vrot.slane %v5449_v40, 2  ;;  %8098 = vpow2.f32 %v7396_v10 }
 0x6a7   : > { %v4650_v30 = vmul.f32 %v4138_v51, %v11349_v15  ;;  %v4142_v37 = vmax.f32 %v3630_v38, 0.0  ;;  %v13543_v34 = vadd.f32 %v4633_v16, %v4632_v12  ;;  %v3636_v52 = vadd.f32 %v3030_v42, %v8359_v32  ;;  %v16063_v38 = vld [vmem:[#allocation265_spill] sm:$0xff] }
 0x6a8   : > { %8100 = vpow2.f32 %v7397_v28  ;;  %v3637_v46 = vadd.f32 %v8357_v31, %v3034_v14  ;;  %v13547_v41 = vpop.eup %8088  ;;  %v5451_v39 = vadd.f32 %v5450_v61, %v5449_v40  ;;  %v3551_v12 = vadd.f32 %v15926_v19, %v2624_v50 }
 0x6a9   : > { %8102 = vpow2.f32 %v7398_v5  ;;  %v13550_v9 = vadd.f32 %v13241_v55, %v4650_v30  ;;  %v4654_v21 = vmul.f32 %v4142_v37, %v11349_v15  ;;  %v13553_v53 = vpop.eup %8090  ;;  %v4148_v44 = vmax.f32 %v3636_v52, 0.0  ;;  %v2791_v55 = vpop.permute.xlu0 %2790 }
 0x6aa   : > { %v4149_v27 = vmax.f32 %v3637_v46, 0.0  ;;  %v3558_v48 = vadd.f32 %v2658_v22, %v8364_v35  ;;  %v5452_v60 = vrot.slane %v5451_v39, 1  ;;  %v3579_v26 = vadd.f32 %v15926_v19, %v2757_v63  ;;  %v2833_v3 = vpop.permute.xlu1 %2832 }
 0x6ab   : > { %v13557_v42 = vpop.eup %8092  ;;  %v13560_v2 = vadd.f32 %v13257_v54, %v4654_v21  ;;  %v6957_v25 = vsel %vm6873_vm1, %v16062_v36, %v16061_v24  ;;  %v4660_v43 = vmul.f32 %v4148_v44, %v11187_v0  ;;  %v4063_v14 = vmax.f32 %v3551_v12, 0.0 }
 0x6ac   : > { %v4661_v13 = vmul.f32 %v4149_v27, %v11229_v47  ;;  %v4070_v50 = vmax.f32 %v3558_v48, 0.0  ;;  %v5453_v1 = vadd.f32 %v5452_v60, %v5451_v39  ;;  %v4091_v45 = vmax.f32 %v3579_v26, 0.0 }
 0x6ad   : > { %v3586_v10 = vadd.f32 %v2791_v55, %v8364_v35  ;;  %v3595_v54 = vadd.f32 %v15926_v19, %v2833_v3  ;;  %v4575_v40 = vmul.f32 %v4063_v14, %v11548_v58  ;;  %v13576_v28 = vsel %vm6875_vm2, %v16063_v38, %v6957_v25  ;;  %v2852_v22 = vpop.permute.xlu0 %2851 }
 0x6ae   : > { %v13570_v6 = vadd.f32 %v4661_v13, %v4660_v43  ;;  %v4582_v51 = vmul.f32 %v4070_v50, %v11349_v15  ;;  %v8095_v5 = vpop.eup %8094  ;;  %v5918_v16 = vadd.f32 %v15364_v59, %v5453_v1  ;;  %v4603_v61 = vmul.f32 %v4091_v45, %v11548_v58  ;;  %v2886_v63 = vpop.permute.xlu1 %2885 }
 0x6af   : > { %v4098_v30 = vmax.f32 %v3586_v10, 0.0  ;;  %v4107_v37 = vmax.f32 %v3595_v54, 0.0  ;;  %v8097_v52 = vpop.eup %8096  ;;  %v6425_v46 = vadd.f32 1.0, %v8095_v5  ;;  %v5591_v39 = vadd.f32 %v13283_v23, %v4575_v40 }
 0x6b0   : > { %v13582_v21 = vadd.f32 %v13306_v56, %v4582_v51  ;;  %v3599_v44 = vadd.f32 %v15926_v19, %v2852_v22  ;;  %v8099_v27 = vpop.eup %8098  ;;  %v7399_v12 = vmul.f32 -1.442695, %v5918_v16  ;;  %v6426_v48 = vadd.f32 1.0, %v8097_v52 }
 0x6b1   : > { %v5654_v60 = vadd.f32 %v13314_v7, %v4603_v61  ;;  %v4610_v26 = vmul.f32 %v4098_v30, %v11349_v15  ;;  %v6427_v3 = vadd.f32 1.0, %v8099_v27  ;;  %8104 = vrcp.f32 %v6425_v46  ;;  %v2916_v13 = vpop.permute.xlu0 %2915 }
 0x6b2   : > { %v8101_v55 = vpop.eup %8100  ;;  %v5592_v24 = vrot.slane %v5591_v39, 4  ;;  %v4619_v36 = vmul.f32 %v4107_v37, %v11548_v58  ;;  %8106 = vpow2.f32 %v7399_v12  ;;  %v2920_v14 = vpop.permute.xlu1 %2919  ;;  %v4111_v10 = vmax.f32 %v3599_v44, 0.0 }
 0x6b3   : > { %v8103_v25 = vpop.eup %8102  ;;  %v6428_v23 = vadd.f32 1.0, %v8101_v55  ;;  %v5655_v56 = vrot.slane %v5654_v60, 4  ;;  %v13589_v43 = vadd.f32 %v13325_v17, %v4610_v26  ;;  %8108 = vrcp.f32 %v6426_v48 }
 0x6b4   : > { %v6429_v50 = vadd.f32 1.0, %v8103_v25  ;;  %v5593_v7 = vadd.f32 %v5592_v24, %v5591_v39  ;;  %v5690_v1 = vadd.f32 %v13336_v49, %v4619_v36  ;;  %8110 = vrcp.f32 %v6427_v3 }
 0x6b5   : > { %v5656_v45 = vadd.f32 %v5655_v56, %v5654_v60  ;;  %v3606_v54 = vadd.f32 %v2886_v63, %v8364_v35  ;;  %8112 = vrcp.f32 %v6428_v23  ;;  %v3612_v38 = vadd.f32 %v2916_v13, %v8359_v32  ;;  %v3019_v61 = vpop.permute.xlu0 %3018 }
 0x6b6   : > { %v5594_v40 = vrot.slane %v5593_v7, 2  ;;  %v5691_v51 = vrot.slane %v5690_v1, 4  ;;  %8114 = vrcp.f32 %v6429_v50  ;;  %v4623_v5 = vmul.f32 %v4111_v10, %v11548_v58  ;;  %v3049_v30 = vpop.permute.xlu1 %3048 }
 0x6b7   : > { %v5657_v17 = vrot.slane %v5656_v45, 2  ;;  %v4118_v16 = vmax.f32 %v3606_v54, 0.0  ;;  %v4124_v49 = vmax.f32 %v3612_v38, 0.0  ;;  %v3613_v52 = vadd.f32 %v8357_v31, %v2920_v14 }
 0x6b8   : > { %v5595_v37 = vadd.f32 %v5594_v40, %v5593_v7  ;;  %v5692_v22 = vadd.f32 %v5691_v51, %v5690_v1  ;;  %v5699_v63 = vadd.f32 %v13346_v20, %v4623_v5  ;;  %v3634_v44 = vadd.f32 %v3019_v61, %v8364_v35 }
 0x6b9   : > { %v5658_v46 = vadd.f32 %v5657_v17, %v5656_v45  ;;  %v4630_v39 = vmul.f32 %v4118_v16, %v11349_v15  ;;  %v4636_v48 = vmul.f32 %v4124_v49, %v11187_v0  ;;  %v4125_v60 = vmax.f32 %v3613_v52, 0.0  ;;  %v3053_v36 = vpop.permute.xlu0 %3052 }
 0x6ba   : > { %v5596_v27 = vrot.slane %v5595_v37, 1  ;;  %v5693_v12 = vrot.slane %v5692_v22, 2  ;;  %v5700_v55 = vrot.slane %v5699_v63, 4  ;;  %v4146_v24 = vmax.f32 %v3634_v44, 0.0  ;;  %v2643_v25 = vpop.permute.xlu1 %2642 }
 0x6bb   : > { %v5659_v26 = vrot.slane %v5658_v46, 1  ;;  %v13601_v3 = vadd.f32 %v13355_v62, %v4630_v39  ;;  %v8105_v23 = vpop.eup %8104  ;;  %v4637_v13 = vmul.f32 %v4125_v60, %v11229_v47  ;;  %v3640_v14 = vadd.f32 %v3049_v30, %v8359_v32 }
 0x6bc   : > { %v5597_v56 = vadd.f32 %v5596_v27, %v5595_v37  ;;  %v5694_v20 = vadd.f32 %v5693_v12, %v5692_v22  ;;  %v8107_v50 = vpop.eup %8106  ;;  %v5701_v1 = vadd.f32 %v5700_v55, %v5699_v63  ;;  %v4658_v45 = vmul.f32 %v4146_v24, %v11349_v15  ;;  %v16065_v24 = vld [vmem:[#allocation248_spill] sm:$0xff] }
 0x6bd   : > { %v5660_v7 = vadd.f32 %v5659_v26, %v5658_v46  ;;  %v6959_v62 = vsel %vm6877_vm3, %v13188_v29, %v13576_v28  ;;  %v8109_v10 = vpop.eup %8108  ;;  %v6430_v54 = vadd.f32 1.0, %v8107_v50  ;;  %v13610_v38 = vadd.f32 %v4637_v13, %v4636_v48  ;;  %v2776_v37 = vpop.permute.xlu0 %2775  ;;  %v16064_v48 = vld [vmem:[#allocation19_spill] sm:$0xff] }
 0x6be   : > { %v5934_v40 = vadd.f32 %v15364_v59, %v5597_v56  ;;  %v5695_v51 = vrot.slane %v5694_v20, 1  ;;  %v8111_v17 = vpop.eup %8110  ;;  %v6950_v5 = vsel %vm6873_vm1, %v8109_v10, %v8105_v23  ;;  %v5702_v61 = vrot.slane %v5701_v1, 2  ;;  %v2810_v22 = vpop.permute.xlu1 %2809 }
 0x6bf   : > { %v5941_v16 = vadd.f32 %v15364_v59, %v5660_v7  ;;  %v13615_v30 = vadd.f32 %v13373_v18, %v4658_v45  ;;  %v8113_v49 = vpop.eup %8112  ;;  %8116 = vrcp.f32 %v6430_v54  ;;  %v6951_v29 = vsel %vm6875_vm2, %v8111_v17, %v6950_v5 }
 0x6c0   : > { %v7415_v28 = vmul.f32 -1.442695, %v5934_v40  ;;  %v5696_v52 = vadd.f32 %v5695_v51, %v5694_v20  ;;  %v8115_v46 = vpop.eup %8114  ;;  %v6952_v63 = vsel %vm6877_vm3, %v8113_v49, %v6951_v29  ;;  %v5703_v44 = vadd.f32 %v5702_v61, %v5701_v1 }
 0x6c1   : > { %v7422_v39 = vmul.f32 -1.442695, %v5941_v16  ;;  %v4152_v27 = vmax.f32 %v3640_v14, 0.0  ;;  %v6953_v12 = vsel %vm6879_vm4, %v8115_v46, %v6952_v63  ;;  %v6960_v60 = vsel %vm6879_vm4, %v16064_v48, %v6959_v62  ;;  %v2871_v56 = vpop.permute.xlu0 %2870  ;;  %v7594_v46 = vpop.f32.mrb[8].mxu0 }
 0x6c2   : > { %8118 = vpow2.f32 %v7415_v28  ;;  %v5945_v18 = vadd.f32 %v15364_v59, %v5696_v52  ;;  %v5704_v26 = vrot.slane %v5703_v44, 1  ;;  %v6961_v23 = vsel %vm6881_vm5, %v16065_v24, %v6960_v60  ;;  %v2905_v20 = vpop.permute.xlu1 %2904  ;;  %7158 = vst.msk [vmem:[%s13489_s18 + $0x28] sm:$0xff] %vm371_vm0, %v7594_v46  ;;  %v7094_v60 = vpop.f32.mrb[9].mxu0  ;;  %v16067_v24 = vld [vmem:[#allocation306_spill] sm:$0xff] }
 0x6c3   : > { %8120 = vpow2.f32 %v7422_v39  ;;  %v4664_v55 = vmul.f32 %v4152_v27, %v11187_v0  ;;  %v6962_v14 = vsel %vm6883_vm6, %v13491_v11, %v6961_v23  ;;  %v3641_v50 = vadd.f32 %v8357_v31, %v3053_v36  ;;  %7157 = vst.msk [vmem:[%s13489_s18 + $0x20] sm:$0xff] %vm371_vm0, %v7094_v60 }
 0x6c4   : > { %v7426_v13 = vmul.f32 -1.442695, %v5945_v18  ;;  %v3555_v7 = vadd.f32 %v15926_v19, %v2643_v25  ;;  %v5705_v1 = vadd.f32 %v5704_v26, %v5703_v44  ;;  %v6963_v45 = vsel %vm6885_vm7, %v13547_v41, %v6962_v14  ;;  %v16066_v44 = vld [vmem:[#allocation35_spill] sm:$0xff]  ;;  %v16068_v14 = vld [vmem:[#allocation245_spill] sm:$0xff] }
 0x6c5   : > { %v3583_v62 = vadd.f32 %v15926_v19, %v2776_v37  ;;  %v3590_v10 = vadd.f32 %v2810_v22, %v8364_v35  ;;  %v4153_v54 = vmax.f32 %v3641_v50, 0.0  ;;  %v3603_v51 = vadd.f32 %v15926_v19, %v2871_v56  ;;  %v2935_v25 = vpop.permute.xlu0 %2934 }
 0x6c6   : > { %8122 = vpow2.f32 %v7426_v13  ;;  %v4067_v40 = vmax.f32 %v3555_v7, 0.0  ;;  %v5946_v17 = vadd.f32 %v15364_v59, %v5705_v1  ;;  %v3610_v36 = vadd.f32 %v2905_v20, %v8364_v35  ;;  %v2939_v16 = vpop.permute.xlu1 %2938 }
 0x6c7   : > { %v4095_v11 = vmax.f32 %v3583_v62, 0.0  ;;  %v4102_v5 = vmax.f32 %v3590_v10, 0.0  ;;  %v4665_v41 = vmul.f32 %v4153_v54, %v11229_v47  ;;  %v4115_v37 = vmax.f32 %v3603_v51, 0.0  ;;  %v16069_v10 = vld [vmem:[#allocation307_spill] sm:$0xff] }
 0x6c8   : > { %v4579_v61 = vmul.f32 %v4067_v40, %v11548_v58  ;;  %v3616_v22 = vadd.f32 %v2935_v25, %v8359_v32  ;;  %v7427_v49 = vmul.f32 -1.442695, %v5946_v17  ;;  %v4122_v52 = vmax.f32 %v3610_v36, 0.0 }
 0x6c9   : > { %v4607_v29 = vmul.f32 %v4095_v11, %v11548_v58  ;;  %v4614_v28 = vmul.f32 %v4102_v5, %v11349_v15  ;;  %v8117_v63 = vpop.eup %8116  ;;  %v13642_v39 = vadd.f32 %v4665_v41, %v4664_v55  ;;  %v4627_v18 = vmul.f32 %v4115_v37, %v11548_v58  ;;  %v2985_v20 = vpop.permute.xlu0 %2984 }
 0x6ca   : > { %v5600_v27 = vadd.f32 %v16066_v44, %v4579_v61  ;;  %v4128_v48 = vmax.f32 %v3616_v22, 0.0  ;;  %v6954_v26 = vsel %vm6881_vm5, %v8117_v63, %v6953_v12  ;;  %8124 = vpow2.f32 %v7427_v49  ;;  %v3004_v13 = vpop.permute.xlu1 %3003 }
 0x6cb   : > { %v5663_v23 = vadd.f32 %v16067_v24, %v4607_v29  ;;  %v13651_v56 = vadd.f32 %v13522_v33, %v4614_v28  ;;  %v6955_v50 = vsel %vm6883_vm6, %v16068_v14, %v6954_v26  ;;  %v5708_v1 = vadd.f32 %v13530_v8, %v4627_v18 }
 0x6cc   : > { %v8119_v55 = vpop.eup %8118  ;;  %v5601_v7 = vrot.slane %v5600_v27, 4  ;;  %v4634_v62 = vmul.f32 %v4122_v52, %v11349_v15  ;;  %v6956_v54 = vsel %vm6885_vm7, %v16069_v10, %v6955_v50  ;;  %v4640_v51 = vmul.f32 %v4128_v48, %v11187_v0 }
 0x6cd   : > { %v8121_v12 = vpop.eup %8120  ;;  %v6446_v40 = vadd.f32 1.0, %v8119_v55  ;;  %v5664_v33 = vrot.slane %v5663_v23, 4  ;;  %7601 = vmatprep.mubr.f32.mxu1 %v6956_v54  ;;  %v5709_v5 = vrot.slane %v5708_v1, 4  ;;  %v3617_v25 = vadd.f32 %v8357_v31, %v2939_v16  ;;  %v3038_v61 = vpop.permute.xlu0 %3037 }
 0x6ce   : > { %v6453_v17 = vadd.f32 1.0, %v8121_v12  ;;  %v5602_v11 = vadd.f32 %v5601_v7, %v5600_v27  ;;  %v13663_v36 = vadd.f32 %v13543_v34, %v4634_v62  ;;  %7602 = vmatmul.mubr.f32.gmra.mrb[18].mxu1 %v6963_v45  ;;  %v3627_v41 = vadd.f32 %v15926_v19, %v2985_v20  ;;  %v3068_v37 = vpop.permute.xlu1 %3067 }
 0x6cf   : > { %8126 = vrcp.f32 %v6446_v40  ;;  %v5665_v8 = vadd.f32 %v5664_v33, %v5663_v23  ;;  %v5710_v29 = vadd.f32 %v5709_v5, %v5708_v1  ;;  %v3631_v28 = vadd.f32 %v15926_v19, %v3004_v13 }
 0x6d0   : > { %v8123_v22 = vpop.eup %8122  ;;  %8128 = vrcp.f32 %v6453_v17  ;;  %v5603_v49 = vrot.slane %v5602_v11, 2  ;;  %v4129_v63 = vmax.f32 %v3617_v25, 0.0  ;;  %v4139_v34 = vmax.f32 %v3627_v41, 0.0 }
 0x6d1   : > { %v6457_v52 = vadd.f32 1.0, %v8123_v22  ;;  %v5666_v46 = vrot.slane %v5665_v8, 2  ;;  %v5711_v27 = vrot.slane %v5710_v29, 2  ;;  %v4143_v45 = vmax.f32 %v3631_v28, 0.0  ;;  %v3072_v26 = vpop.permute.xlu0 %3071 }
 0x6d2   : > { %v5604_v44 = vadd.f32 %v5603_v49, %v5602_v11  ;;  %v3638_v18 = vadd.f32 %v3038_v61, %v8364_v35  ;;  %v4641_v48 = vmul.f32 %v4129_v63, %v11229_v47  ;;  %v4651_v60 = vmul.f32 %v4139_v34, %v11548_v58  ;;  %v2662_v24 = vpop.permute.xlu1 %2661 }
 0x6d3   : > { %8130 = vrcp.f32 %v6457_v52  ;;  %v5667_v16 = vadd.f32 %v5666_v46, %v5665_v8  ;;  %v5712_v20 = vadd.f32 %v5711_v27, %v5710_v29  ;;  %v4655_v13 = vmul.f32 %v4143_v45, %v11548_v58 }
 0x6d4   : > { %v5605_v23 = vrot.slane %v5604_v44, 1  ;;  %v4150_v55 = vmax.f32 %v3638_v18, 0.0  ;;  %v8125_v14 = vpop.eup %8124  ;;  %v13672_v7 = vadd.f32 %v4641_v48, %v4640_v51  ;;  %v5762_v1 = vadd.f32 %v13550_v9, %v4651_v60 }
 0x6d5   : > { %v5668_v50 = vrot.slane %v5667_v16, 1  ;;  %v3644_v62 = vadd.f32 %v3068_v37, %v8359_v32  ;;  %v6458_v12 = vadd.f32 1.0, %v8125_v14  ;;  %v5713_v54 = vrot.slane %v5712_v20, 1  ;;  %v2795_v8 = vpop.permute.xlu0 %2794 }
 0x6d6   : > { %v5606_v10 = vadd.f32 %v5605_v23, %v5604_v44  ;;  %v5771_v40 = vadd.f32 %v13560_v2, %v4655_v13  ;;  %v5763_v17 = vrot.slane %v5762_v1, 4  ;;  %v4662_v11 = vmul.f32 %v4150_v55, %v11349_v15  ;;  %v2890_v25 = vpop.permute.xlu1 %2889 }
 0x6d7   : > { %v5669_v33 = vadd.f32 %v5668_v50, %v5667_v16  ;;  %v4156_v5 = vmax.f32 %v3644_v62, 0.0  ;;  %8132 = vrcp.f32 %v6458_v12  ;;  %v5714_v41 = vadd.f32 %v5713_v54, %v5712_v20 }
 0x6d8   : > { %v5935_v51 = vadd.f32 %v15364_v59, %v5606_v10  ;;  %v5772_v61 = vrot.slane %v5771_v40, 4  ;;  %v5764_v22 = vadd.f32 %v5763_v17, %v5762_v1  ;;  %v13683_v49 = vadd.f32 %v13570_v6, %v4662_v11 }
 0x6d9   : > { %v13679_v9 = vpop.eup %8126  ;;  %v5942_v37 = vadd.f32 %v15364_v59, %v5669_v33  ;;  %v4668_v2 = vmul.f32 %v4156_v5, %v11187_v0  ;;  %v5947_v52 = vadd.f32 %v15364_v59, %v5714_v41  ;;  %v3645_v63 = vadd.f32 %v8357_v31, %v3072_v26  ;;  %v2924_v18 = vpop.permute.xlu0 %2923 }
 0x6da   : > { %v13686_v29 = vpop.eup %8128  ;;  %v7416_v28 = vmul.f32 -1.442695, %v5935_v51  ;;  %v5773_v46 = vadd.f32 %v5772_v61, %v5771_v40  ;;  %v5765_v44 = vrot.slane %v5764_v22, 2  ;;  %v3559_v27 = vadd.f32 %v15926_v19, %v2662_v24  ;;  %v2954_v16 = vpop.permute.xlu1 %2953 }
 0x6db   : > { %v7423_v34 = vmul.f32 -1.442695, %v5942_v37  ;;  %v3587_v45 = vadd.f32 %v15926_v19, %v2795_v8  ;;  %v7428_v6 = vmul.f32 -1.442695, %v5947_v52  ;;  %v4157_v60 = vmax.f32 %v3645_v63, 0.0 }
 0x6dc   : > { %8134 = vpow2.f32 %v7416_v28  ;;  %v5774_v48 = vrot.slane %v5773_v46, 2  ;;  %v5766_v20 = vadd.f32 %v5765_v44, %v5764_v22  ;;  %v4071_v13 = vmax.f32 %v3559_v27, 0.0 }
 0x6dd   : > { %v13692_v23 = vpop.eup %8130  ;;  %8136 = vpow2.f32 %v7423_v34  ;;  %v4099_v55 = vmax.f32 %v3587_v45, 0.0  ;;  %v4669_v14 = vmul.f32 %v4157_v60, %v11229_v47  ;;  %v3607_v24 = vadd.f32 %v15926_v19, %v2890_v25  ;;  %v2958_v10 = vpop.permute.xlu0 %2957 }
 0x6de   : > { %8138 = vpow2.f32 %v7428_v6  ;;  %v5775_v26 = vadd.f32 %v5774_v48, %v5773_v46  ;;  %v5767_v50 = vrot.slane %v5766_v20, 1  ;;  %v4583_v1 = vmul.f32 %v4071_v13, %v11548_v58  ;;  %v3023_v54 = vpop.permute.xlu1 %3022 }
 0x6df   : > { %v4611_v62 = vmul.f32 %v4099_v55, %v11548_v58  ;;  %v3614_v12 = vadd.f32 %v2924_v18, %v8364_v35  ;;  %v13699_v33 = vadd.f32 %v4669_v14, %v4668_v2  ;;  %v4119_v17 = vmax.f32 %v3607_v24, 0.0 }
 0x6e0   : > { %v5776_v40 = vrot.slane %v5775_v26, 1  ;;  %v3620_v11 = vadd.f32 %v2954_v16, %v8359_v32  ;;  %v5768_v5 = vadd.f32 %v5767_v50, %v5766_v20  ;;  %v5609_v8 = vadd.f32 %v13582_v21, %v4583_v1 }
 0x6e1   : > { %v5672_v25 = vadd.f32 %v13589_v43, %v4611_v62  ;;  %v4126_v51 = vmax.f32 %v3614_v12, 0.0  ;;  %v13704_v41 = vpop.eup %8132  ;;  %v4631_v37 = vmul.f32 %v4119_v17, %v11548_v58  ;;  %v3621_v28 = vadd.f32 %v8357_v31, %v2958_v10  ;;  %v3057_v34 = vpop.permute.xlu0 %3056 }
 0x6e2   : > { %v5777_v61 = vadd.f32 %v5776_v40, %v5775_v26  ;;  %v4132_v22 = vmax.f32 %v3620_v11, 0.0  ;;  %v5953_v2 = vadd.f32 %v15364_v59, %v5768_v5  ;;  %v5610_v52 = vrot.slane %v5609_v8, 4  ;;  %v3087_v44 = vpop.permute.xlu1 %3086 }
 0x6e3   : > { %v5673_v46 = vrot.slane %v5672_v25, 4  ;;  %v4638_v63 = vmul.f32 %v4126_v51, %v11349_v15  ;;  %v5717_v43 = vadd.f32 %v13601_v3, %v4631_v37  ;;  %v4133_v45 = vmax.f32 %v3621_v28, 0.0 }
 0x6e4   : > { %v5954_v21 = vadd.f32 %v15364_v59, %v5777_v61  ;;  %v4644_v27 = vmul.f32 %v4132_v22, %v11187_v0  ;;  %v7434_v18 = vmul.f32 -1.442695, %v5953_v2  ;;  %v5611_v16 = vadd.f32 %v5610_v52, %v5609_v8 }
 0x6e5   : > { %v5674_v6 = vadd.f32 %v5673_v46, %v5672_v25  ;;  %v13714_v48 = vadd.f32 %v13610_v38, %v4638_v63  ;;  %v5718_v13 = vrot.slane %v5717_v43, 4  ;;  %v4645_v55 = vmul.f32 %v4133_v45, %v11229_v47  ;;  %v3091_v1 = vpop.permute.xlu0 %3090 }
 0x6e6   : > { %v8135_v60 = vpop.eup %8134  ;;  %v7435_v20 = vmul.f32 -1.442695, %v5954_v21  ;;  %v3635_v26 = vadd.f32 %v15926_v19, %v3023_v54  ;;  %8140 = vpow2.f32 %v7434_v18  ;;  %v5612_v3 = vrot.slane %v5611_v16, 2  ;;  %v2814_v62 = vpop.permute.xlu1 %2813 }
 0x6e7   : > { %v8137_v14 = vpop.eup %8136  ;;  %v6447_v24 = vadd.f32 1.0, %v8135_v60  ;;  %v5675_v50 = vrot.slane %v5674_v6, 2  ;;  %v5719_v40 = vadd.f32 %v5718_v13, %v5717_v43  ;;  %v13718_v38 = vadd.f32 %v4645_v55, %v4644_v27 }
 0x6e8   : > { %v8139_v12 = vpop.eup %8138  ;;  %v6454_v10 = vadd.f32 1.0, %v8137_v14  ;;  %8142 = vpow2.f32 %v7435_v20  ;;  %v5613_v11 = vadd.f32 %v5612_v3, %v5611_v16  ;;  %v4147_v54 = vmax.f32 %v3635_v26, 0.0 }
 0x6e9   : > { %8144 = vrcp.f32 %v6447_v24  ;;  %v6459_v17 = vadd.f32 1.0, %v8139_v12  ;;  %v5676_v5 = vadd.f32 %v5675_v50, %v5674_v6  ;;  %v5720_v8 = vrot.slane %v5719_v40, 2  ;;  %v2909_v22 = vpop.permute.xlu0 %2908 }
 0x6ea   : > { %8146 = vrcp.f32 %v6454_v10  ;;  %v3642_v25 = vadd.f32 %v3057_v34, %v8364_v35  ;;  %v5614_v51 = vrot.slane %v5613_v11, 1  ;;  %v3648_v37 = vadd.f32 %v3087_v44, %v8359_v32  ;;  %v2943_v28 = vpop.permute.xlu1 %2942 }
 0x6eb   : > { %8148 = vrcp.f32 %v6459_v17  ;;  %v5677_v61 = vrot.slane %v5676_v5, 1  ;;  %v5721_v2 = vadd.f32 %v5720_v8, %v5719_v40  ;;  %v4659_v52 = vmul.f32 %v4147_v54, %v11548_v58 }
 0x6ec   : > { %v4154_v46 = vmax.f32 %v3642_v25, 0.0  ;;  %v3649_v63 = vadd.f32 %v8357_v31, %v3091_v1  ;;  %v5615_v21 = vadd.f32 %v5614_v51, %v5613_v11  ;;  %v4160_v27 = vmax.f32 %v3648_v37, 0.0 }
 0x6ed   : > { %v5678_v43 = vadd.f32 %v5677_v61, %v5676_v5  ;;  %v3591_v45 = vadd.f32 %v15926_v19, %v2814_v62  ;;  %v5722_v18 = vrot.slane %v5721_v2, 1  ;;  %v5780_v34 = vadd.f32 %v13615_v30, %v4659_v52  ;;  %v3042_v55 = vpop.permute.xlu0 %3041 }
 0x6ee   : > { %v4666_v16 = vmul.f32 %v4154_v46, %v11349_v15  ;;  %v4161_v6 = vmax.f32 %v3649_v63, 0.0  ;;  %v5936_v44 = vadd.f32 %v15364_v59, %v5615_v21  ;;  %v4672_v20 = vmul.f32 %v4160_v27, %v11187_v0  ;;  %v3076_v26 = vpop.permute.xlu1 %3075 }
 0x6ef   : > { %v5943_v60 = vadd.f32 %v15364_v59, %v5678_v43  ;;  %v4103_v13 = vmax.f32 %v3591_v45, 0.0  ;;  %v5723_v14 = vadd.f32 %v5722_v18, %v5721_v2  ;;  %v5781_v24 = vrot.slane %v5780_v34, 4 }
 0x6f0   : > { %v13731_v3 = vadd.f32 %v13642_v39, %v4666_v16  ;;  %v4673_v50 = vmul.f32 %v4161_v6, %v11229_v47  ;;  %v8141_v30 = vpop.eup %8140  ;;  %v7417_v1 = vmul.f32 -1.442695, %v5936_v44  ;;  %v3611_v10 = vadd.f32 %v15926_v19, %v2909_v22 }
 0x6f1   : > { %v7424_v62 = vmul.f32 -1.442695, %v5943_v60  ;;  %v4615_v12 = vmul.f32 %v4103_v13, %v11548_v58  ;;  %v6465_v17 = vadd.f32 1.0, %v8141_v30  ;;  %v5948_v11 = vadd.f32 %v15364_v59, %v5723_v14  ;;  %v3106_v61 = vpop.permute.xlu0 %3105 }
 0x6f2   : > { %v8143_v40 = vpop.eup %8142  ;;  %v5782_v5 = vadd.f32 %v5781_v24, %v5780_v34  ;;  %v13737_v8 = vadd.f32 %v4673_v50, %v4672_v20  ;;  %8150 = vpow2.f32 %v7417_v1  ;;  %v4123_v51 = vmax.f32 %v3611_v10, 0.0  ;;  %v3110_v37 = vpop.permute.xlu1 %3109 }
 0x6f3   : > { %v13739_v54 = vpop.eup %8144  ;;  %v6466_v39 = vadd.f32 1.0, %v8143_v40  ;;  %v5681_v25 = vadd.f32 %v13651_v56, %v4615_v12  ;;  %8152 = vrcp.f32 %v6465_v17  ;;  %v7429_v22 = vmul.f32 -1.442695, %v5948_v11 }
 0x6f4   : > { %v13742_v2 = vpop.eup %8146  ;;  %v5783_v52 = vrot.slane %v5782_v5, 2  ;;  %v3618_v46 = vadd.f32 %v2943_v28, %v8364_v35  ;;  %v4635_v43 = vmul.f32 %v4123_v51, %v11548_v58  ;;  %v3639_v27 = vadd.f32 %v15926_v19, %v3042_v55 }
 0x6f5   : > { %v13745_v63 = vpop.eup %8148  ;;  %8154 = vrcp.f32 %v6466_v39  ;;  %v5682_v21 = vrot.slane %v5681_v25, 4  ;;  %v3646_v18 = vadd.f32 %v3076_v26, %v8364_v35  ;;  %v2928_v44 = vpop.permute.xlu0 %2927  ;;  %v3652_v14 = vadd.f32 %v3106_v61, %v8359_v32 }
 0x6f6   : > { %8156 = vpow2.f32 %v7424_v62  ;;  %v5784_v56 = vadd.f32 %v5783_v52, %v5782_v5  ;;  %v4130_v45 = vmax.f32 %v3618_v46, 0.0  ;;  %v5726_v16 = vadd.f32 %v13663_v36, %v4635_v43  ;;  %v2962_v28 = vpop.permute.xlu1 %2961 }
 0x6f7   : > { %8158 = vpow2.f32 %v7429_v22  ;;  %v5683_v34 = vadd.f32 %v5682_v21, %v5681_v25  ;;  %v4151_v6 = vmax.f32 %v3639_v27, 0.0  ;;  %v4158_v13 = vmax.f32 %v3646_v18, 0.0 }
 0x6f8   : > { %v5785_v60 = vrot.slane %v5784_v56, 1  ;;  %v4642_v20 = vmul.f32 %v4130_v45, %v11349_v15  ;;  %v5727_v55 = vrot.slane %v5726_v16, 4  ;;  %v3653_v30 = vadd.f32 %v8357_v31, %v3110_v37 }
 0x6f9   : > { %v5684_v24 = vrot.slane %v5683_v34, 2  ;;  %v4663_v50 = vmul.f32 %v4151_v6, %v11548_v58  ;;  %v4670_v36 = vmul.f32 %v4158_v13, %v11349_v15  ;;  %v4164_v62 = vmax.f32 %v3652_v14, 0.0  ;;  %v3061_v11 = vpop.permute.xlu0 %3060 }
 0x6fa   : > { %v5786_v26 = vadd.f32 %v5785_v60, %v5784_v56  ;;  %v13756_v1 = vadd.f32 %v13672_v7, %v4642_v20  ;;  %v5728_v10 = vadd.f32 %v5727_v55, %v5726_v16  ;;  %v4165_v17 = vmax.f32 %v3653_v30, 0.0  ;;  %v3095_v7 = vpop.permute.xlu1 %3094 }
 0x6fb   : > { %v5685_v12 = vadd.f32 %v5684_v24, %v5683_v34  ;;  %v5789_v40 = vadd.f32 %v13683_v49, %v4663_v50  ;;  %v13762_v5 = vadd.f32 %v13699_v33, %v4670_v36  ;;  %v4676_v31 = vmul.f32 %v4164_v62, %v11187_v0 }
 0x6fc   : > { %v5955_v32 = vadd.f32 %v15364_v59, %v5786_v26  ;;  %v3615_v39 = vadd.f32 %v15926_v19, %v2928_v44  ;;  %v8151_v25 = vpop.eup %8150  ;;  %v5729_v61 = vrot.slane %v5728_v10, 2  ;;  %v4677_v22 = vmul.f32 %v4165_v17, %v11229_v47 }
 0x6fd   : > { %v5686_v51 = vrot.slane %v5685_v12, 1  ;;  %v5790_v37 = vrot.slane %v5789_v40, 4  ;;  %v13767_v52 = vpop.eup %8152  ;;  %v6448_v49 = vadd.f32 1.0, %v8151_v25  ;;  %v3622_v43 = vadd.f32 %v2962_v28, %v8364_v35  ;;  %v2947_v18 = vpop.permute.xlu0 %2946 }
 0x6fe   : > { %v7436_v46 = vmul.f32 -1.442695, %v5955_v32  ;;  %v4127_v21 = vmax.f32 %v3615_v39, 0.0  ;;  %v5730_v0 = vadd.f32 %v5729_v61, %v5728_v10  ;;  %v13772_v45 = vadd.f32 %v4677_v22, %v4676_v31  ;;  %v3080_v50 = vpop.permute.xlu1 %3079 }
 0x6ff   : > { %v13770_v33 = vpop.eup %8154  ;;  %v5687_v27 = vadd.f32 %v5686_v51, %v5685_v12  ;;  %v5791_v56 = vadd.f32 %v5790_v37, %v5789_v40  ;;  %8160 = vrcp.f32 %v6448_v49  ;;  %v4134_v47 = vmax.f32 %v3622_v43, 0.0 }
 0x700   : > { %v8157_v34 = vpop.eup %8156  ;;  %v4639_v16 = vmul.f32 %v4127_v21, %v11548_v58  ;;  %v3643_v6 = vadd.f32 %v15926_v19, %v3061_v11  ;;  %8162 = vpow2.f32 %v7436_v46  ;;  %v5731_v20 = vrot.slane %v5730_v0, 1 }
 0x701   : > { %v8159_v44 = vpop.eup %8158  ;;  %v6455_v60 = vadd.f32 1.0, %v8157_v34  ;;  %v5944_v28 = vadd.f32 %v15364_v59, %v5687_v27  ;;  %v5792_v14 = vrot.slane %v5791_v56, 2  ;;  %v4646_v55 = vmul.f32 %v4134_v47, %v11349_v15  ;;  %v3114_v40 = vpop.permute.xlu0 %3113 }
 0x702   : > { %v6460_v13 = vadd.f32 1.0, %v8159_v44  ;;  %v5735_v24 = vadd.f32 %v13714_v48, %v4639_v16  ;;  %v5732_v26 = vadd.f32 %v5731_v20, %v5730_v0  ;;  %v4155_v36 = vmax.f32 %v3643_v6, 0.0  ;;  %v2966_v43 = vpop.permute.xlu1 %2965 }
 0x703   : > { %8164 = vrcp.f32 %v6455_v60  ;;  %v7425_v30 = vmul.f32 -1.442695, %v5944_v28  ;;  %v5793_v62 = vadd.f32 %v5792_v14, %v5791_v56  ;;  %v5752_v10 = vadd.f32 %v13718_v38, %v4646_v55 }
 0x704   : > { %8166 = vrcp.f32 %v6460_v13  ;;  %v5736_v12 = vrot.slane %v5735_v24, 4  ;;  %v5949_v17 = vadd.f32 %v15364_v59, %v5732_v26  ;;  %v4667_v11 = vmul.f32 %v4155_v36, %v11548_v58 }
 0x705   : > { %8168 = vpow2.f32 %v7425_v30  ;;  %v3650_v48 = vadd.f32 %v3095_v7, %v8364_v35  ;;  %v5794_v32 = vrot.slane %v5793_v62, 1  ;;  %v3619_v39 = vadd.f32 %v15926_v19, %v2947_v18 }
 0x706   : > { %v5737_v31 = vadd.f32 %v5736_v12, %v5735_v24  ;;  %v3647_v25 = vadd.f32 %v15926_v19, %v3080_v50  ;;  %v7430_v51 = vmul.f32 -1.442695, %v5949_v17  ;;  %v5798_v61 = vadd.f32 %v13731_v3, %v4667_v11  ;;  %v16071_v12 = vld [vmem:[#allocation242_spill] sm:$0xff] }
 0x707   : > { %v4162_v37 = vmax.f32 %v3650_v48, 0.0  ;;  %v3654_v38 = vadd.f32 %v3114_v40, %v8364_v35  ;;  %v5795_v22 = vadd.f32 %v5794_v32, %v5793_v62  ;;  %v4131_v46 = vmax.f32 %v3619_v39, 0.0  ;;  %v16070_v62 = vld [vmem:[#allocation23_spill] sm:$0xff] }
 0x708   : > { %v5738_v49 = vrot.slane %v5737_v31, 2  ;;  %v4159_v21 = vmax.f32 %v3647_v25, 0.0  ;;  %8170 = vpow2.f32 %v7430_v51  ;;  %v5799_v27 = vrot.slane %v5798_v61, 4 }
 0x709   : > { %v4674_v7 = vmul.f32 %v4162_v37, %v11349_v15  ;;  %v4166_v0 = vmax.f32 %v3654_v38, 0.0  ;;  %v8161_v56 = vpop.eup %8160  ;;  %v5956_v18 = vadd.f32 %v15364_v59, %v5795_v22  ;;  %v4643_v16 = vmul.f32 %v4131_v46, %v11548_v58 }
 0x70a   : > { %v5739_v34 = vadd.f32 %v5738_v49, %v5737_v31  ;;  %v4671_v3 = vmul.f32 %v4159_v21, %v11548_v58  ;;  %v8163_v47 = vpop.eup %8162  ;;  %v5800_v35 = vadd.f32 %v5799_v27, %v5798_v61  ;;  %v3623_v60 = vadd.f32 %v15926_v19, %v2966_v43  ;;  %v16072_v31 = vld [vmem:[#allocation27_spill] sm:$0xff] }
 0x70b   : > { %v13792_v6 = vadd.f32 %v13737_v8, %v4674_v7  ;;  %v4678_v44 = vmul.f32 %v4166_v0, %v11349_v15  ;;  %v6467_v28 = vadd.f32 1.0, %v8163_v47  ;;  %v7437_v20 = vmul.f32 -1.442695, %v5956_v18  ;;  %v3099_v0 = vpop.permute.xlu0 %3098  ;;  %v3118_v18 = vpop.permute.xlu1 %3117 }
 0x70c   : > { %v5740_v13 = vrot.slane %v5739_v34, 1  ;;  %v5744_v14 = vadd.f32 %v13756_v1, %v4643_v16  ;;  %v5801_v55 = vrot.slane %v5800_v35, 2  ;;  %v5807_v50 = vadd.f32 %v13762_v5, %v4671_v3 }
 0x70d   : > { %v13797_v24 = vpop.eup %8164  ;;  %v13801_v30 = vadd.f32 %v13772_v45, %v4678_v44  ;;  %v4135_v26 = vmax.f32 %v3623_v60, 0.0  ;;  %8172 = vrcp.f32 %v6467_v28  ;;  %v6964_v40 = vsel %vm6873_vm1, %v16071_v12, %v16070_v62 }
 0x70e   : > { %v13803_v8 = vpop.eup %8166  ;;  %v5741_v15 = vadd.f32 %v5740_v13, %v5739_v34  ;;  %v5745_v36 = vrot.slane %v5744_v14, 4  ;;  %8174 = vpow2.f32 %v7437_v20  ;;  %v5802_v1 = vadd.f32 %v5801_v55, %v5800_v35 }
 0x70f   : > { %v8169_v17 = vpop.eup %8168  ;;  %v5808_v11 = vrot.slane %v5807_v50, 4  ;;  %v4647_v48 = vmul.f32 %v4135_v26, %v11548_v58  ;;  %v6965_v39 = vsel %vm6875_vm2, %v16072_v31, %v6964_v40  ;;  %v3655_v44 = vadd.f32 %v15926_v19, %v3118_v18 }
 0x710   : > { %v6456_v5 = vadd.f32 1.0, %v8169_v17  ;;  %v5950_v45 = vadd.f32 %v15364_v59, %v5741_v15  ;;  %v5746_v32 = vadd.f32 %v5745_v36, %v5744_v14  ;;  %v5803_v25 = vrot.slane %v5802_v1, 1  ;;  %v7597_v60 = vpop.f32.mrb[10].mxu0  ;;  %v16074_v14 = vld [vmem:[#allocation348_spill] sm:$0xff] }
 0x711   : > { %v5809_v51 = vadd.f32 %v5808_v11, %v5807_v50  ;;  %v5753_v61 = vadd.f32 %v5752_v10, %v4647_v48  ;;  %v6966_v37 = vsel %vm6877_vm3, %v13502_v57, %v6965_v39  ;;  %7160 = vst.msk [vmem:[%s13489_s18 + $0x38] sm:$0xff] %vm371_vm0, %v7597_v60  ;;  %v4167_v36 = vmax.f32 %v3655_v44, 0.0 }
 0x712   : > { %8176 = vrcp.f32 %v6456_v5  ;;  %v7431_v38 = vmul.f32 -1.442695, %v5950_v45  ;;  %v5747_v22 = vrot.slane %v5746_v32, 2  ;;  %v6967_v49 = vsel %vm6879_vm4, %v13553_v53, %v6966_v37  ;;  %v8171_v46 = vpop.eup %8170 }
 0x713   : > { %v5804_v21 = vadd.f32 %v5803_v25, %v5802_v1  ;;  %v5810_v43 = vrot.slane %v5809_v51, 2  ;;  %v5754_v27 = vrot.slane %v5753_v61, 4  ;;  %v6968_v7 = vsel %vm6881_vm5, %v13679_v9, %v6967_v49 }
 0x714   : > { %v6461_v34 = vadd.f32 1.0, %v8171_v46  ;;  %8178 = vpow2.f32 %v7431_v38  ;;  %v5748_v10 = vadd.f32 %v5747_v22, %v5746_v32  ;;  %v6969_v57 = vsel %vm6883_vm6, %v13739_v54, %v6968_v7  ;;  %v16073_v54 = vld [vmem:[#allocation31_spill] sm:$0xff] }
 0x715   : > { %v5957_v16 = vadd.f32 %v15364_v59, %v5804_v21  ;;  %v5811_v3 = vadd.f32 %v5810_v43, %v5809_v51  ;;  %v5755_v53 = vadd.f32 %v5754_v27, %v5753_v61  ;;  %v6970_v47 = vsel %vm6885_vm7, %v8161_v56, %v6969_v57  ;;  %v7104_v56 = vpop.f32.mrb[11].mxu0 }
 0x716   : > { %8180 = vrcp.f32 %v6461_v34  ;;  %v5749_v35 = vrot.slane %v5748_v10, 1  ;;  %7604 = vmatprep.mubr.f32.mxu1 %v6970_v47  ;;  %v3651_v9 = vadd.f32 %v15926_v19, %v3099_v0  ;;  %v6971_v55 = vsel %vm6873_vm1, %v16074_v14, %v16073_v54  ;;  %7159 = vst.msk [vmem:[%s13489_s18 + $0x30] sm:$0xff] %vm371_vm0, %v7104_v56 }
 0x717   : > { %v7438_v28 = vmul.f32 -1.442695, %v5957_v16  ;;  %v5812_v20 = vrot.slane %v5811_v3, 1  ;;  %v5756_v13 = vrot.slane %v5755_v53, 2  ;;  %v8173_v50 = vpop.eup %8172  ;;  %v6972_v62 = vsel %vm6875_vm2, %v13524_v4, %v6971_v55 }
 0x718   : > { %v5750_v26 = vadd.f32 %v5749_v35, %v5748_v10  ;;  %v4163_v15 = vmax.f32 %v3651_v9, 0.0  ;;  %v8175_v12 = vpop.eup %8174  ;;  %v6973_v17 = vsel %vm6877_vm3, %v13557_v42, %v6972_v62  ;;  %v4679_v5 = vmul.f32 %v4167_v36, %v11548_v58 }
 0x719   : > { %8182 = vpow2.f32 %v7438_v28  ;;  %v5813_v19 = vadd.f32 %v5812_v20, %v5811_v3  ;;  %v5757_v40 = vadd.f32 %v5756_v13, %v5755_v53  ;;  %v6468_v1 = vadd.f32 1.0, %v8175_v12 }
 0x71a   : > { %v5951_v11 = vadd.f32 %v15364_v59, %v5750_v26  ;;  %v4675_v48 = vmul.f32 %v4163_v15, %v11548_v58  ;;  %v6974_v4 = vsel %vm6879_vm4, %v13686_v29, %v6973_v17  ;;  %v6978_v31 = vsel %vm6873_vm1, %v13704_v41, %v13692_v23 }
 0x71b   : > { %v5958_v45 = vadd.f32 %v15364_v59, %v5813_v19  ;;  %v5758_v32 = vrot.slane %v5757_v40, 1  ;;  %8184 = vrcp.f32 %v6468_v1  ;;  %v5825_v51 = vadd.f32 %v13801_v30, %v4679_v5 }
 0x71c   : > { %v8177_v39 = vpop.eup %8176  ;;  %v7432_v42 = vmul.f32 -1.442695, %v5951_v11  ;;  %v5816_v25 = vadd.f32 %v13792_v6, %v4675_v48  ;;  %v6975_v58 = vsel %vm6881_vm5, %v13742_v2, %v6974_v4  ;;  %v6979_v38 = vsel %vm6875_vm2, %v13745_v63, %v6978_v31 }
 0x71d   : > { %v7439_v61 = vmul.f32 -1.442695, %v5958_v45  ;;  %v5759_v37 = vadd.f32 %v5758_v32, %v5757_v40  ;;  %v5826_v49 = vrot.slane %v5825_v51, 4  ;;  %v6976_v23 = vsel %vm6883_vm6, %v13797_v24, %v6975_v58 }
 0x71e   : > { %v8179_v29 = vpop.eup %8178  ;;  %8186 = vpow2.f32 %v7432_v42  ;;  %v5817_v22 = vrot.slane %v5816_v25, 4  ;;  %v6977_v30 = vsel %vm6885_vm7, %v8177_v39, %v6976_v23  ;;  %v6980_v2 = vsel %vm6877_vm3, %v13803_v8, %v6979_v38 }
 0x71f   : > { %v6462_v41 = vadd.f32 1.0, %v8179_v29  ;;  %8188 = vpow2.f32 %v7439_v61  ;;  %v5952_v6 = vadd.f32 %v15364_v59, %v5759_v37  ;;  %v5827_v43 = vadd.f32 %v5826_v49, %v5825_v51  ;;  %7605 = vmatmul.mubr.f32.gmra.mrb[20].mxu1 %v6977_v30 }
 0x720   : > { %v8181_v46 = vpop.eup %8180  ;;  %v5818_v21 = vadd.f32 %v5817_v22, %v5816_v25  ;;  %v6985_v63 = vsel %vm6873_vm1, %v13770_v33, %v13767_v52 }
 0x721   : > { %8190 = vrcp.f32 %v6462_v41  ;;  %v7433_v27 = vmul.f32 -1.442695, %v5952_v6  ;;  %v6981_v24 = vsel %vm6879_vm4, %v8181_v46, %v6980_v2  ;;  %v6986_v7 = vsel %vm6875_vm2, %v8173_v50, %v6985_v63 }
 0x722   : > { %v5819_v0 = vrot.slane %v5818_v21, 2  ;;  %v5828_v18 = vrot.slane %v5827_v43, 2 }
 0x723   : > { %v8183_v34 = vpop.eup %8182  ;;  %8192 = vpow2.f32 %v7433_v27 }
 0x724   : > { %v6469_v10 = vadd.f32 1.0, %v8183_v34  ;;  %v5820_v57 = vadd.f32 %v5819_v0, %v5818_v21  ;;  %v5829_v16 = vadd.f32 %v5828_v18, %v5827_v43 }
 0x725   : > { %v8185_v3 = vpop.eup %8184 }
 0x726   : > { %8194 = vrcp.f32 %v6469_v10  ;;  %v5821_v8 = vrot.slane %v5820_v57, 1  ;;  %v5830_v53 = vrot.slane %v5829_v16, 1  ;;  %v6987_v47 = vsel %vm6877_vm3, %v8185_v3, %v6986_v7 }
 0x728   : > { %v8187_v52 = vpop.eup %8186  ;;  %v5822_v33 = vadd.f32 %v5821_v8, %v5820_v57  ;;  %v5831_v35 = vadd.f32 %v5830_v53, %v5829_v16 }
 0x729   : > { %v8189_v9 = vpop.eup %8188  ;;  %v6463_v44 = vadd.f32 1.0, %v8187_v52 }
 0x72a   : > { %v6470_v60 = vadd.f32 1.0, %v8189_v9  ;;  %v5959_v28 = vadd.f32 %v15364_v59, %v5822_v33  ;;  %v5960_v20 = vadd.f32 %v15364_v59, %v5831_v35 }
 0x72b   : > { %v8191_v13 = vpop.eup %8190  ;;  %8196 = vrcp.f32 %v6463_v44 }
 0x72c   : > { %8198 = vrcp.f32 %v6470_v60  ;;  %v7440_v54 = vmul.f32 -1.442695, %v5959_v28  ;;  %v7441_v14 = vmul.f32 -1.442695, %v5960_v20  ;;  %v6982_v55 = vsel %vm6881_vm5, %v8191_v13, %v6981_v24 }
 0x72d   : > { %v8193_v50 = vpop.eup %8192 }
 0x72e   : > { %v6464_v56 = vadd.f32 1.0, %v8193_v50  ;;  %8200 = vpow2.f32 %v7440_v54 }
 0x72f   : > { %8202 = vpow2.f32 %v7441_v14 }
 0x730   : > { %v8195_v26 = vpop.eup %8194  ;;  %8204 = vrcp.f32 %v6464_v56 }
 0x731   : > { %v6988_v15 = vsel %vm6879_vm4, %v8195_v26, %v6987_v47 }
 0x735   : > { %v8197_v36 = vpop.eup %8196 }
 0x736   : > { %v8199_v62 = vpop.eup %8198  ;;  %v6983_v12 = vsel %vm6883_vm6, %v8197_v36, %v6982_v55 }
 0x737   : > { %v6989_v59 = vsel %vm6881_vm5, %v8199_v62, %v6988_v15 }
 0x738   : > { %v8201_v19 = vpop.eup %8200 }
 0x739   : > { %v8203_v40 = vpop.eup %8202  ;;  %v6471_v17 = vadd.f32 1.0, %v8201_v19 }
 0x73a   : > { %v8205_v1 = vpop.eup %8204  ;;  %v6472_v11 = vadd.f32 1.0, %v8203_v40 }
 0x73b   : > { %8206 = vrcp.f32 %v6471_v17  ;;  %v6984_v48 = vsel %vm6885_vm7, %v8205_v1, %v6983_v12 }
 0x73c   : > { %8208 = vrcp.f32 %v6472_v11  ;;  %7607 = vmatprep.mubr.f32.mxu1 %v6984_v48 }
 0x745   : > { %v8207_v5 = vpop.eup %8206 }
 0x746   : > { %v8209_v45 = vpop.eup %8208  ;;  %v6990_v32 = vsel %vm6883_vm6, %v8207_v5, %v6989_v59 }
 0x747   : > { %v6991_v4 = vsel %vm6885_vm7, %v8209_v45, %v6990_v32 }
 0x748   : > { %7608 = vmatmul.mubr.f32.gmra.mrb[22].mxu1 %v6991_v4 }
 0x7a1   : > { %v7603_v31 = vpop.f32.mrb[18].mxu1 }
 0x7a2   : > { %7164 = vst.msk [vmem:[%s13489_s18 + $0x58] sm:$0xff] %vm371_vm0, %v7603_v31  ;;  %v7124_v39 = vpop.f32.mrb[19].mxu1 }
 0x7a3   : > { %7163 = vst.msk [vmem:[%s13489_s18 + $0x50] sm:$0xff] %vm371_vm0, %v7124_v39 }
 0x7f2   : > { %v7606_v42 = vpop.f32.mrb[20].mxu1 }
 0x7f3   : > { %7166 = vst.msk [vmem:[%s13489_s18 + $0x68] sm:$0xff] %vm371_vm0, %v7606_v42  ;;  %v7134_v25 = vpop.f32.mrb[21].mxu1 }
 0x7f4   : > { %7165 = vst.msk [vmem:[%s13489_s18 + $0x60] sm:$0xff] %vm371_vm0, %v7134_v25 }
 0x81b   : > { %v7609_v51 = vpop.f32.mrb[22].mxu1 }
 0x81c   : > { %7168 = vst.msk [vmem:[%s13489_s18 + $0x78] sm:$0xff] %vm371_vm0, %v7609_v51  ;;  %v7144_v61 = vpop.f32.mrb[23].mxu1 }
 0x81d   : > { %7167 = vst.msk [vmem:[%s13489_s18 + $0x70] sm:$0xff] %vm371_vm0, %v7144_v61 }
 0x81e PF: > { %s18_s28 = sadd.s32 1, %s8232_s28   ;;  %s16075_s26 = smov %s8228_s27 }
 0x81f   : > { %p15_p5 = scmp.ge.s32.totalorder %s18_s28, 4   ;;  %s16076_s27 = smov %s16078_s6 }
 0x821   :  { %17 = sbr.rel (!%p15_p5) target bundleno = 2 (0x2), region = 88 }

</bundles_post_ra>
